<compile_context>
chip_gen: v6e
topology: v6e:2x2x1
jax: 0.10.0
libtpu: 0.0.40
codegen_flags: <defaults>
</compile_context>

<pallas_src>
import math
from functools import partial

import jax
import jax.numpy as jnp
from jax import lax
from jax.experimental import pallas as pl
from jax.experimental.pallas import tpu as pltpu


def _round_up(v, m):
    return (v + m - 1) // m * m


def _pick_row_block(H, Wp, med, max_rows=8, acc_budget_bytes=128 * 1024):
    """Largest divisor of H that is <= max_rows and keeps the f32 accumulator
    tile (R * Wp * med * 4 bytes) within the register-resident budget."""
    per_row = max(1, Wp * med * 4)
    cap = max(1, min(max_rows, acc_budget_bytes // per_row))
    best = 1
    for r in range(1, min(cap, H) + 1):
        if H % r == 0:
            best = r
    return best


def _sepconv_kernel(x_ref, w1_ref, dw_ref, w2_ref, sb_ref, o_ref, ypad_ref,
                    *, H, W, Wp, R, K):
    # x_ref   : (1, H*W, dim)       this batch element's tokens
    # w1_ref  : (dim, med)          pwconv1 weight (transposed)
    # dw_ref  : (K*K, med)          depthwise taps, channels-last, row-major
    # w2_ref  : (med, dim)          pwconv2 weight (transposed)
    # sb_ref  : (2,) in SMEM        StarReLU [scale, bias]
    # o_ref   : (1, H*W, dim)       output tokens
    # ypad_ref: (H+2P, Wp, med)     VMEM scratch (vertically + right zero-padded)
    P = K // 2
    med = w1_ref.shape[1]
    sdtype = ypad_ref.dtype

    scale = sb_ref[0]
    bias = sb_ref[1]

    # ---- pwconv1 (MXU, f32 accumulate) + StarReLU (VPU) over all tokens ----
    y = jnp.dot(x_ref[0], w1_ref[...], preferred_element_type=jnp.float32)
    r = jnp.maximum(y, 0.0)
    y = scale * (r * r) + bias                             # (H*W, med) f32

    # ---- fill the padded stencil scratch ----
    # Halo rows (top/bottom P) and pad columns [W, Wp) must be zero so the
    # roll-based W shifts wrap into zeros (no per-tap masking).  They are
    # re-zeroed every grid step, so no reliance on scratch persistence
    # (megacore-safe with "parallel" batch sharding).
    zero_rows = jnp.zeros((P, Wp, med), sdtype)
    ypad_ref[0:P, :, :] = zero_rows
    ypad_ref[P + H:P + H + P, :, :] = zero_rows
    ypad_ref[P:P + H, W:Wp, :] = jnp.zeros((H, Wp - W, med), sdtype)
    ypad_ref[P:P + H, 0:W, :] = y.reshape(H, W, med).astype(sdtype)

    # Depthwise tap weights: one contiguous load, indexed in-register below.
    dw_all = dw_ref[...]                                   # (K*K, med) f32

    n = R * Wp            # flattened (rows x padded-width) sublane extent
    nblk = H // R

    def block_body(blk, carry):
        h0 = blk * R                                       # first output row
        acc = jnp.zeros((n, med), jnp.float32)
        for dh in range(K):                                # static 7x7 unroll
            rows = ypad_ref[pl.ds(h0 + dh, R), :, :]       # aligned (R,Wp,med)
            rows = rows.reshape(n, med).astype(jnp.float32)
            for dwi in range(K):
                s = dwi - P                                # W shift in [-3, 3]
                if s == 0:
                    shifted = rows
                else:
                    # shifted[k] = rows[(k + s) mod n]; wraps land in the zero
                    # pad columns, so zero-padding semantics come for free.
                    shifted = pltpu.roll(rows, (-s) % n, axis=0)
                acc = acc + dw_all[dh * K + dwi] * shifted
        # act2 = Identity; fused pwconv2 for this row block (MXU work
        # interleaved with the VPU/XLU stencil of the other blocks).
        valid = acc.reshape(R, Wp, med)[:, :W, :].reshape(R * W, med)
        out_tile = jnp.dot(valid.astype(w2_ref.dtype), w2_ref[...],
                           preferred_element_type=jnp.float32)
        tok0 = h0 * W
        if (R * W) % 8 == 0:
            tok0 = pl.multiple_of(tok0, 8)
        o_ref[0, pl.ds(tok0, R * W), :] = out_tile.astype(o_ref.dtype)
        return carry

    lax.fori_loop(0, nblk, block_body, 0)


def sepconv(x, w_pw1, w_dw, w_pw2, scale=1.0, bias=0.0, *,
            row_block=None, vmem_limit_bytes=None):
    """SepConv forward.

    x     : (B, H, W, dim)   NHWC activations
    w_pw1 : (med, dim)       torch nn.Linear(dim, med).weight layout
    w_dw  : (med, 1, K, K)   torch depthwise Conv2d weight layout
    w_pw2 : (dim, med)       torch nn.Linear(med, dim).weight layout
    scale, bias : StarReLU parameters (scalars)
    """
    B, H, W, dim = x.shape
    med = w_pw1.shape[0]
    K = w_dw.shape[-1]
    P = K // 2
    assert w_pw1.shape == (med, dim)
    assert w_dw.shape == (med, 1, K, K)
    assert w_pw2.shape == (dim, med)
    assert K % 2 == 1

    # >= P zero columns on the right absorb the cyclic roll wrap for |shift|<=P.
    Wp = _round_up(W + P, 8)
    R = row_block if row_block is not None else _pick_row_block(H, Wp, med)
    assert H % R == 0, (H, R)

    cdtype = x.dtype
    # Lane-dense weight layouts, matched dtype (bf16 x -> bf16 MXU path).
    w1_t = jnp.asarray(w_pw1).T.astype(cdtype)                       # (dim, med)
    w2_t = jnp.asarray(w_pw2).T.astype(cdtype)                       # (med, dim)
    dw_flat = (jnp.transpose(jnp.asarray(w_dw)[:, 0], (1, 2, 0))     # (K, K, med)
               .reshape(K * K, med).astype(jnp.float32))             # f32 taps
    sb = jnp.asarray([scale, bias], dtype=jnp.float32)               # StarReLU
    x_tok = jnp.asarray(x).reshape(B, H * W, dim)                    # free in XLA

    # Advisory cost hint for the XLA scheduler.
    flops = B * (2 * H * W * dim * med          # pwconv1
                 + 2 * K * K * H * W * med      # depthwise
                 + 2 * H * W * med * dim)       # pwconv2
    bytes_accessed = (x.size * x.dtype.itemsize
                      + w1_t.size * w1_t.dtype.itemsize
                      + dw_flat.size * dw_flat.dtype.itemsize
                      + w2_t.size * w2_t.dtype.itemsize
                      + B * H * W * dim * x.dtype.itemsize)
    cost = pl.CostEstimate(flops=flops, transcendentals=0,
                           bytes_accessed=bytes_accessed)

    compiler_kwargs = dict(dimension_semantics=("parallel",))
    if vmem_limit_bytes is not None:
        compiler_kwargs["vmem_limit_bytes"] = vmem_limit_bytes

    kernel = partial(_sepconv_kernel, H=H, W=W, Wp=Wp, R=R, K=K)

    out_tok = pl.pallas_call(
        kernel,
        out_shape=jax.ShapeDtypeStruct((B, H * W, dim), x.dtype),
        grid_spec=pltpu.PrefetchScalarGridSpec(
            num_scalar_prefetch=0,
            grid=(B,),
            in_specs=[
                # Per-batch token tile.
                pl.BlockSpec((1, H * W, dim), lambda b: (b, 0, 0)),
                # Weights: constant block index -> fetched once, VMEM-resident.
                pl.BlockSpec((dim, med), lambda b: (0, 0)),
                pl.BlockSpec((K * K, med), lambda b: (0, 0)),
                pl.BlockSpec((med, dim), lambda b: (0, 0)),
                # StarReLU scale/bias scalars in SMEM.
                pl.BlockSpec(memory_space=pltpu.MemorySpace.SMEM),
            ],
            out_specs=pl.BlockSpec((1, H * W, dim), lambda b: (b, 0, 0)),
            scratch_shapes=[
                pltpu.VMEM((H + 2 * P, Wp, med), cdtype),
            ],
        ),
        compiler_params=pltpu.CompilerParams(**compiler_kwargs),
        cost_estimate=cost,
    )(x_tok, w1_t, dw_flat, w2_t, sb)

    return out_tok.reshape(B, H, W, dim)


def sepconv_reference(x, w_pw1, w_dw, w_pw2, scale, bias):
    """Pure-JAX reference matching the PyTorch module (f32 precision)."""
    med = w_pw1.shape[0]
    K = w_dw.shape[-1]
    P = K // 2
    hp = lax.Precision.HIGHEST
    y = jnp.einsum("bhwc,mc->bhwm", x, w_pw1, precision=hp)          # pwconv1
    y = scale * jnp.maximum(y, 0.0) ** 2 + bias                       # StarReLU
    rhs = jnp.transpose(w_dw[:, 0], (1, 2, 0))[:, :, None, :]         # (K,K,1,med)
    y = lax.conv_general_dilated(                                     # depthwise
        y, rhs, window_strides=(1, 1), padding=((P, P), (P, P)),
        dimension_numbers=("NHWC", "HWIO", "NHWC"),
        feature_group_count=med, precision=hp)
    return jnp.einsum("bhwm,dm->bhwd", y, w_pw2, precision=hp)        # pwconv2


if __name__ == "__main__":
    key = jax.random.PRNGKey(0)
    k1, k2, k3, kx = jax.random.split(key, 4)

    # Small but lane-dense shapes: dim multiple of 128 keeps both pointwise
    # GEMMs full-width on the MXU; W multiple of 8 keeps all reshapes free.
    B, H, W, dim = 2, 16, 16, 128
    expansion, K = 2, 7
    med = expansion * dim

    w_pw1 = jax.random.normal(k1, (med, dim), jnp.float32) / jnp.sqrt(dim)
    w_dw = jax.random.normal(k2, (med, 1, K, K), jnp.float32) * 0.1
    w_pw2 = jax.random.normal(k3, (dim, med), jnp.float32) / jnp.sqrt(med)
    x = jax.random.normal(kx, (B, H, W, dim), jnp.float32)
    scale, bias = 1.5, 0.25   # non-default StarReLU params to exercise the path

    out = sepconv(x, w_pw1, w_dw, w_pw2, scale, bias)
    out = jax.block_until_ready(out)

    ref = sepconv_reference(x, w_pw1, w_dw, w_pw2, scale, bias)
    assert out.shape == (B, H, W, dim)
    max_err = float(jnp.max(jnp.abs(out - ref)))
    assert jnp.allclose(out, ref, atol=2e-3, rtol=2e-3), max_err

    print("KERNEL_OK")
</pallas_src>

<mosaic_0001>
module attributes {stable_mosaic.version = 11 : i64} {
  func.func @_sepconv_kernel(%arg0: i32, %arg1: memref<1x256x128xf32, #tpu.memory_space<vmem>>, %arg2: memref<128x256xf32, #tpu.memory_space<vmem>>, %arg3: memref<49x256xf32, #tpu.memory_space<vmem>>, %arg4: memref<256x128xf32, #tpu.memory_space<vmem>>, %arg5: memref<2xf32, #tpu.memory_space<smem>>, %arg6: memref<1x256x128xf32, #tpu.memory_space<vmem>>, %arg7: memref<22x24x256xf32, #tpu.memory_space<vmem>>) attributes {dimension_semantics = [#tpu.dimension_semantics<parallel>], iteration_bounds = array<i64: 2>, scalar_prefetch = 0 : i64, scratch_operands = 1 : i64, tpu.core_type = #tpu.core_type<tc>, window_params = [{transform_indices = @transform_0, window_bounds = array<i64: 1, 256, 128>}, {pipeline_mode = #tpu.pipeline_mode<synchronous>, transform_indices = @transform_1, window_bounds = array<i64: 128, 256>}, {pipeline_mode = #tpu.pipeline_mode<synchronous>, transform_indices = @transform_2, window_bounds = array<i64: 49, 256>}, {pipeline_mode = #tpu.pipeline_mode<synchronous>, transform_indices = @transform_3, window_bounds = array<i64: 256, 128>}, {transform_indices = @transform_4, window_bounds = array<i64: 2>}, {transform_indices = @transform_5, window_bounds = array<i64: 1, 256, 128>}]} {
    %c0 = arith.constant 0 : index
    %0 = memref.load %arg5[%c0] : memref<2xf32, #tpu.memory_space<smem>>
    %c1 = arith.constant 1 : index
    %1 = memref.load %arg5[%c1] : memref<2xf32, #tpu.memory_space<smem>>
    %c0_0 = arith.constant 0 : index
    %c0_1 = arith.constant 0 : index
    %c0_2 = arith.constant 0 : index
    %2 = vector.load %arg1[%c0_0, %c0_1, %c0_2] : memref<1x256x128xf32, #tpu.memory_space<vmem>>, vector<1x256x128xf32>
    %3 = vector.shape_cast %2 : vector<1x256x128xf32> to vector<256x128xf32>
    %c0_3 = arith.constant 0 : index
    %c0_4 = arith.constant 0 : index
    %4 = vector.load %arg2[%c0_3, %c0_4] : memref<128x256xf32, #tpu.memory_space<vmem>>, vector<128x256xf32>
    %cst = arith.constant dense<0.000000e+00> : vector<256x256xf32>
    %5 = tpu.matmul %3, %4, %cst {dimension_numbers = #tpu.dot_dimension_numbers<[1], [0], [0], [1], [0, 0, 1, 1], [], []>} : vector<256x128xf32>, vector<128x256xf32>, vector<256x256xf32> -> vector<256x256xf32>
    %cst_5 = arith.constant 0.000000e+00 : f32
    %6 = vector.broadcast %cst_5 : f32 to vector<256x256xf32>
    %7 = arith.maximumf %5, %6 : vector<256x256xf32>
    %8 = arith.mulf %7, %7 : vector<256x256xf32>
    %9 = vector.broadcast %0 : f32 to vector<256x256xf32>
    %10 = arith.mulf %9, %8 : vector<256x256xf32>
    %11 = vector.broadcast %1 : f32 to vector<256x256xf32>
    %12 = arith.addf %10, %11 : vector<256x256xf32>
    %cst_6 = arith.constant 0.000000e+00 : f32
    %13 = vector.broadcast %cst_6 : f32 to vector<3x24x256xf32>
    %c0_7 = arith.constant 0 : index
    %c0_8 = arith.constant 0 : index
    %c0_9 = arith.constant 0 : index
    %14 = vector.load %arg7[%c0_7, %c0_8, %c0_9] : memref<22x24x256xf32, #tpu.memory_space<vmem>>, vector<3x24x256xf32>
    tpu.vector_store %arg7[%c0_7, %c0_8, %c0_9], %13 {strides = array<i32>} : memref<22x24x256xf32, #tpu.memory_space<vmem>>, vector<3x24x256xf32>,
    %c19 = arith.constant 19 : index
    %c0_10 = arith.constant 0 : index
    %c0_11 = arith.constant 0 : index
    %15 = vector.load %arg7[%c19, %c0_10, %c0_11] : memref<22x24x256xf32, #tpu.memory_space<vmem>>, vector<3x24x256xf32>
    tpu.vector_store %arg7[%c19, %c0_10, %c0_11], %13 {strides = array<i32>} : memref<22x24x256xf32, #tpu.memory_space<vmem>>, vector<3x24x256xf32>,
    %cst_12 = arith.constant 0.000000e+00 : f32
    %16 = vector.broadcast %cst_12 : f32 to vector<16x8x256xf32>
    %c3 = arith.constant 3 : index
    %c16 = arith.constant 16 : index
    %c0_13 = arith.constant 0 : index
    %17 = vector.load %arg7[%c3, %c16, %c0_13] : memref<22x24x256xf32, #tpu.memory_space<vmem>>, vector<16x8x256xf32>
    tpu.vector_store %arg7[%c3, %c16, %c0_13], %16 {strides = array<i32>} : memref<22x24x256xf32, #tpu.memory_space<vmem>>, vector<16x8x256xf32>,
    %18 = vector.shape_cast %12 : vector<256x256xf32> to vector<16x16x256xf32>
    %c3_14 = arith.constant 3 : index
    %c0_15 = arith.constant 0 : index
    %c0_16 = arith.constant 0 : index
    %19 = vector.load %arg7[%c3_14, %c0_15, %c0_16] : memref<22x24x256xf32, #tpu.memory_space<vmem>>, vector<16x16x256xf32>
    tpu.vector_store %arg7[%c3_14, %c0_15, %c0_16], %18 {strides = array<i32>} : memref<22x24x256xf32, #tpu.memory_space<vmem>>, vector<16x16x256xf32>,
    %c0_17 = arith.constant 0 : index
    %c0_18 = arith.constant 0 : index
    %20 = vector.load %arg3[%c0_17, %c0_18] : memref<49x256xf32, #tpu.memory_space<vmem>>, vector<49x256xf32>
    %c0_i32 = arith.constant 0 : i32
    %c4_i32 = arith.constant 4 : i32
    %21 = arith.addi %c0_i32, %c4_i32 : i32
    %c1_i32 = arith.constant 1 : i32
    scf.for %arg8 = %c0_i32 to %21 step %c1_i32  : i32 {
      %c4_i32_20 = arith.constant 4 : i32
      %22 = arith.muli %arg8, %c4_i32_20 : i32
      %cst_21 = arith.constant 0.000000e+00 : f32
      %23 = vector.broadcast %cst_21 : f32 to vector<96x256xf32>
      %c0_i32_22 = arith.constant 0 : i32
      %24 = arith.addi %22, %c0_i32_22 : i32
      %25 = arith.index_cast %24 : i32 to index
      %c0_23 = arith.constant 0 : index
      %c0_24 = arith.constant 0 : index
      %26 = vector.load %arg7[%25, %c0_23, %c0_24] : memref<22x24x256xf32, #tpu.memory_space<vmem>>, vector<4x24x256xf32>
      %27 = vector.shape_cast %26 : vector<4x24x256xf32> to vector<96x256xf32>
      %c3_i32 = arith.constant 3 : i32
      %28 = tpu.dynamic_rotate %27 by %c3_i32 dim 0 : vector<96x256xf32>, i32 -> vector<96x256xf32>
      %29 = vector.extract_strided_slice %20 {offsets = [0, 0], sizes = [1, 256], strides = [1, 1]} : vector<49x256xf32> to vector<1x256xf32>
      %30 = vector.shape_cast %29 : vector<1x256xf32> to vector<256xf32>
      %31 = vector.shape_cast %30 : vector<256xf32> to vector<1x256xf32>
      %32 = vector.broadcast %31 : vector<1x256xf32> to vector<96x256xf32>
      %33 = arith.mulf %32, %28 : vector<96x256xf32>
      %34 = arith.addf %23, %33 : vector<96x256xf32>
      %c2_i32 = arith.constant 2 : i32
      %35 = tpu.dynamic_rotate %27 by %c2_i32 dim 0 : vector<96x256xf32>, i32 -> vector<96x256xf32>
      %36 = vector.extract_strided_slice %20 {offsets = [1, 0], sizes = [1, 256], strides = [1, 1]} : vector<49x256xf32> to vector<1x256xf32>
      %37 = vector.shape_cast %36 : vector<1x256xf32> to vector<256xf32>
      %38 = vector.shape_cast %37 : vector<256xf32> to vector<1x256xf32>
      %39 = vector.broadcast %38 : vector<1x256xf32> to vector<96x256xf32>
      %40 = arith.mulf %39, %35 : vector<96x256xf32>
      %41 = arith.addf %34, %40 : vector<96x256xf32>
      %c1_i32_25 = arith.constant 1 : i32
      %42 = tpu.dynamic_rotate %27 by %c1_i32_25 dim 0 : vector<96x256xf32>, i32 -> vector<96x256xf32>
      %43 = vector.extract_strided_slice %20 {offsets = [2, 0], sizes = [1, 256], strides = [1, 1]} : vector<49x256xf32> to vector<1x256xf32>
      %44 = vector.shape_cast %43 : vector<1x256xf32> to vector<256xf32>
      %45 = vector.shape_cast %44 : vector<256xf32> to vector<1x256xf32>
      %46 = vector.broadcast %45 : vector<1x256xf32> to vector<96x256xf32>
      %47 = arith.mulf %46, %42 : vector<96x256xf32>
      %48 = arith.addf %41, %47 : vector<96x256xf32>
      %49 = vector.extract_strided_slice %20 {offsets = [3, 0], sizes = [1, 256], strides = [1, 1]} : vector<49x256xf32> to vector<1x256xf32>
      %50 = vector.shape_cast %49 : vector<1x256xf32> to vector<256xf32>
      %51 = vector.shape_cast %50 : vector<256xf32> to vector<1x256xf32>
      %52 = vector.broadcast %51 : vector<1x256xf32> to vector<96x256xf32>
      %53 = arith.mulf %52, %27 : vector<96x256xf32>
      %54 = arith.addf %48, %53 : vector<96x256xf32>
      %c95_i32 = arith.constant 95 : i32
      %55 = tpu.dynamic_rotate %27 by %c95_i32 dim 0 : vector<96x256xf32>, i32 -> vector<96x256xf32>
      %56 = vector.extract_strided_slice %20 {offsets = [4, 0], sizes = [1, 256], strides = [1, 1]} : vector<49x256xf32> to vector<1x256xf32>
      %57 = vector.shape_cast %56 : vector<1x256xf32> to vector<256xf32>
      %58 = vector.shape_cast %57 : vector<256xf32> to vector<1x256xf32>
      %59 = vector.broadcast %58 : vector<1x256xf32> to vector<96x256xf32>
      %60 = arith.mulf %59, %55 : vector<96x256xf32>
      %61 = arith.addf %54, %60 : vector<96x256xf32>
      %c94_i32 = arith.constant 94 : i32
      %62 = tpu.dynamic_rotate %27 by %c94_i32 dim 0 : vector<96x256xf32>, i32 -> vector<96x256xf32>
      %63 = vector.extract_strided_slice %20 {offsets = [5, 0], sizes = [1, 256], strides = [1, 1]} : vector<49x256xf32> to vector<1x256xf32>
      %64 = vector.shape_cast %63 : vector<1x256xf32> to vector<256xf32>
      %65 = vector.shape_cast %64 : vector<256xf32> to vector<1x256xf32>
      %66 = vector.broadcast %65 : vector<1x256xf32> to vector<96x256xf32>
      %67 = arith.mulf %66, %62 : vector<96x256xf32>
      %68 = arith.addf %61, %67 : vector<96x256xf32>
      %c93_i32 = arith.constant 93 : i32
      %69 = tpu.dynamic_rotate %27 by %c93_i32 dim 0 : vector<96x256xf32>, i32 -> vector<96x256xf32>
      %70 = vector.extract_strided_slice %20 {offsets = [6, 0], sizes = [1, 256], strides = [1, 1]} : vector<49x256xf32> to vector<1x256xf32>
      %71 = vector.shape_cast %70 : vector<1x256xf32> to vector<256xf32>
      %72 = vector.shape_cast %71 : vector<256xf32> to vector<1x256xf32>
      %73 = vector.broadcast %72 : vector<1x256xf32> to vector<96x256xf32>
      %74 = arith.mulf %73, %69 : vector<96x256xf32>
      %75 = arith.addf %68, %74 : vector<96x256xf32>
      %c1_i32_26 = arith.constant 1 : i32
      %76 = arith.addi %22, %c1_i32_26 : i32
      %77 = arith.index_cast %76 : i32 to index
      %c0_27 = arith.constant 0 : index
      %c0_28 = arith.constant 0 : index
      %78 = vector.load %arg7[%77, %c0_27, %c0_28] : memref<22x24x256xf32, #tpu.memory_space<vmem>>, vector<4x24x256xf32>
      %79 = vector.shape_cast %78 : vector<4x24x256xf32> to vector<96x256xf32>
      %c3_i32_29 = arith.constant 3 : i32
      %80 = tpu.dynamic_rotate %79 by %c3_i32_29 dim 0 : vector<96x256xf32>, i32 -> vector<96x256xf32>
      %81 = vector.extract_strided_slice %20 {offsets = [7, 0], sizes = [1, 256], strides = [1, 1]} : vector<49x256xf32> to vector<1x256xf32>
      %82 = vector.shape_cast %81 : vector<1x256xf32> to vector<256xf32>
      %83 = vector.shape_cast %82 : vector<256xf32> to vector<1x256xf32>
      %84 = vector.broadcast %83 : vector<1x256xf32> to vector<96x256xf32>
      %85 = arith.mulf %84, %80 : vector<96x256xf32>
      %86 = arith.addf %75, %85 : vector<96x256xf32>
      %c2_i32_30 = arith.constant 2 : i32
      %87 = tpu.dynamic_rotate %79 by %c2_i32_30 dim 0 : vector<96x256xf32>, i32 -> vector<96x256xf32>
      %88 = vector.extract_strided_slice %20 {offsets = [8, 0], sizes = [1, 256], strides = [1, 1]} : vector<49x256xf32> to vector<1x256xf32>
      %89 = vector.shape_cast %88 : vector<1x256xf32> to vector<256xf32>
      %90 = vector.shape_cast %89 : vector<256xf32> to vector<1x256xf32>
      %91 = vector.broadcast %90 : vector<1x256xf32> to vector<96x256xf32>
      %92 = arith.mulf %91, %87 : vector<96x256xf32>
      %93 = arith.addf %86, %92 : vector<96x256xf32>
      %c1_i32_31 = arith.constant 1 : i32
      %94 = tpu.dynamic_rotate %79 by %c1_i32_31 dim 0 : vector<96x256xf32>, i32 -> vector<96x256xf32>
      %95 = vector.extract_strided_slice %20 {offsets = [9, 0], sizes = [1, 256], strides = [1, 1]} : vector<49x256xf32> to vector<1x256xf32>
      %96 = vector.shape_cast %95 : vector<1x256xf32> to vector<256xf32>
      %97 = vector.shape_cast %96 : vector<256xf32> to vector<1x256xf32>
      %98 = vector.broadcast %97 : vector<1x256xf32> to vector<96x256xf32>
      %99 = arith.mulf %98, %94 : vector<96x256xf32>
      %100 = arith.addf %93, %99 : vector<96x256xf32>
      %101 = vector.extract_strided_slice %20 {offsets = [10, 0], sizes = [1, 256], strides = [1, 1]} : vector<49x256xf32> to vector<1x256xf32>
      %102 = vector.shape_cast %101 : vector<1x256xf32> to vector<256xf32>
      %103 = vector.shape_cast %102 : vector<256xf32> to vector<1x256xf32>
      %104 = vector.broadcast %103 : vector<1x256xf32> to vector<96x256xf32>
      %105 = arith.mulf %104, %79 : vector<96x256xf32>
      %106 = arith.addf %100, %105 : vector<96x256xf32>
      %c95_i32_32 = arith.constant 95 : i32
      %107 = tpu.dynamic_rotate %79 by %c95_i32_32 dim 0 : vector<96x256xf32>, i32 -> vector<96x256xf32>
      %108 = vector.extract_strided_slice %20 {offsets = [11, 0], sizes = [1, 256], strides = [1, 1]} : vector<49x256xf32> to vector<1x256xf32>
      %109 = vector.shape_cast %108 : vector<1x256xf32> to vector<256xf32>
      %110 = vector.shape_cast %109 : vector<256xf32> to vector<1x256xf32>
      %111 = vector.broadcast %110 : vector<1x256xf32> to vector<96x256xf32>
      %112 = arith.mulf %111, %107 : vector<96x256xf32>
      %113 = arith.addf %106, %112 : vector<96x256xf32>
      %c94_i32_33 = arith.constant 94 : i32
      %114 = tpu.dynamic_rotate %79 by %c94_i32_33 dim 0 : vector<96x256xf32>, i32 -> vector<96x256xf32>
      %115 = vector.extract_strided_slice %20 {offsets = [12, 0], sizes = [1, 256], strides = [1, 1]} : vector<49x256xf32> to vector<1x256xf32>
      %116 = vector.shape_cast %115 : vector<1x256xf32> to vector<256xf32>
      %117 = vector.shape_cast %116 : vector<256xf32> to vector<1x256xf32>
      %118 = vector.broadcast %117 : vector<1x256xf32> to vector<96x256xf32>
      %119 = arith.mulf %118, %114 : vector<96x256xf32>
      %120 = arith.addf %113, %119 : vector<96x256xf32>
      %c93_i32_34 = arith.constant 93 : i32
      %121 = tpu.dynamic_rotate %79 by %c93_i32_34 dim 0 : vector<96x256xf32>, i32 -> vector<96x256xf32>
      %122 = vector.extract_strided_slice %20 {offsets = [13, 0], sizes = [1, 256], strides = [1, 1]} : vector<49x256xf32> to vector<1x256xf32>
      %123 = vector.shape_cast %122 : vector<1x256xf32> to vector<256xf32>
      %124 = vector.shape_cast %123 : vector<256xf32> to vector<1x256xf32>
      %125 = vector.broadcast %124 : vector<1x256xf32> to vector<96x256xf32>
      %126 = arith.mulf %125, %121 : vector<96x256xf32>
      %127 = arith.addf %120, %126 : vector<96x256xf32>
      %c2_i32_35 = arith.constant 2 : i32
      %128 = arith.addi %22, %c2_i32_35 : i32
      %129 = arith.index_cast %128 : i32 to index
      %c0_36 = arith.constant 0 : index
      %c0_37 = arith.constant 0 : index
      %130 = vector.load %arg7[%129, %c0_36, %c0_37] : memref<22x24x256xf32, #tpu.memory_space<vmem>>, vector<4x24x256xf32>
      %131 = vector.shape_cast %130 : vector<4x24x256xf32> to vector<96x256xf32>
      %c3_i32_38 = arith.constant 3 : i32
      %132 = tpu.dynamic_rotate %131 by %c3_i32_38 dim 0 : vector<96x256xf32>, i32 -> vector<96x256xf32>
      %133 = vector.extract_strided_slice %20 {offsets = [14, 0], sizes = [1, 256], strides = [1, 1]} : vector<49x256xf32> to vector<1x256xf32>
      %134 = vector.shape_cast %133 : vector<1x256xf32> to vector<256xf32>
      %135 = vector.shape_cast %134 : vector<256xf32> to vector<1x256xf32>
      %136 = vector.broadcast %135 : vector<1x256xf32> to vector<96x256xf32>
      %137 = arith.mulf %136, %132 : vector<96x256xf32>
      %138 = arith.addf %127, %137 : vector<96x256xf32>
      %c2_i32_39 = arith.constant 2 : i32
      %139 = tpu.dynamic_rotate %131 by %c2_i32_39 dim 0 : vector<96x256xf32>, i32 -> vector<96x256xf32>
      %140 = vector.extract_strided_slice %20 {offsets = [15, 0], sizes = [1, 256], strides = [1, 1]} : vector<49x256xf32> to vector<1x256xf32>
      %141 = vector.shape_cast %140 : vector<1x256xf32> to vector<256xf32>
      %142 = vector.shape_cast %141 : vector<256xf32> to vector<1x256xf32>
      %143 = vector.broadcast %142 : vector<1x256xf32> to vector<96x256xf32>
      %144 = arith.mulf %143, %139 : vector<96x256xf32>
      %145 = arith.addf %138, %144 : vector<96x256xf32>
      %c1_i32_40 = arith.constant 1 : i32
      %146 = tpu.dynamic_rotate %131 by %c1_i32_40 dim 0 : vector<96x256xf32>, i32 -> vector<96x256xf32>
      %147 = vector.extract_strided_slice %20 {offsets = [16, 0], sizes = [1, 256], strides = [1, 1]} : vector<49x256xf32> to vector<1x256xf32>
      %148 = vector.shape_cast %147 : vector<1x256xf32> to vector<256xf32>
      %149 = vector.shape_cast %148 : vector<256xf32> to vector<1x256xf32>
      %150 = vector.broadcast %149 : vector<1x256xf32> to vector<96x256xf32>
      %151 = arith.mulf %150, %146 : vector<96x256xf32>
      %152 = arith.addf %145, %151 : vector<96x256xf32>
      %153 = vector.extract_strided_slice %20 {offsets = [17, 0], sizes = [1, 256], strides = [1, 1]} : vector<49x256xf32> to vector<1x256xf32>
      %154 = vector.shape_cast %153 : vector<1x256xf32> to vector<256xf32>
      %155 = vector.shape_cast %154 : vector<256xf32> to vector<1x256xf32>
      %156 = vector.broadcast %155 : vector<1x256xf32> to vector<96x256xf32>
      %157 = arith.mulf %156, %131 : vector<96x256xf32>
      %158 = arith.addf %152, %157 : vector<96x256xf32>
      %c95_i32_41 = arith.constant 95 : i32
      %159 = tpu.dynamic_rotate %131 by %c95_i32_41 dim 0 : vector<96x256xf32>, i32 -> vector<96x256xf32>
      %160 = vector.extract_strided_slice %20 {offsets = [18, 0], sizes = [1, 256], strides = [1, 1]} : vector<49x256xf32> to vector<1x256xf32>
      %161 = vector.shape_cast %160 : vector<1x256xf32> to vector<256xf32>
      %162 = vector.shape_cast %161 : vector<256xf32> to vector<1x256xf32>
      %163 = vector.broadcast %162 : vector<1x256xf32> to vector<96x256xf32>
      %164 = arith.mulf %163, %159 : vector<96x256xf32>
      %165 = arith.addf %158, %164 : vector<96x256xf32>
      %c94_i32_42 = arith.constant 94 : i32
      %166 = tpu.dynamic_rotate %131 by %c94_i32_42 dim 0 : vector<96x256xf32>, i32 -> vector<96x256xf32>
      %167 = vector.extract_strided_slice %20 {offsets = [19, 0], sizes = [1, 256], strides = [1, 1]} : vector<49x256xf32> to vector<1x256xf32>
      %168 = vector.shape_cast %167 : vector<1x256xf32> to vector<256xf32>
      %169 = vector.shape_cast %168 : vector<256xf32> to vector<1x256xf32>
      %170 = vector.broadcast %169 : vector<1x256xf32> to vector<96x256xf32>
      %171 = arith.mulf %170, %166 : vector<96x256xf32>
      %172 = arith.addf %165, %171 : vector<96x256xf32>
      %c93_i32_43 = arith.constant 93 : i32
      %173 = tpu.dynamic_rotate %131 by %c93_i32_43 dim 0 : vector<96x256xf32>, i32 -> vector<96x256xf32>
      %174 = vector.extract_strided_slice %20 {offsets = [20, 0], sizes = [1, 256], strides = [1, 1]} : vector<49x256xf32> to vector<1x256xf32>
      %175 = vector.shape_cast %174 : vector<1x256xf32> to vector<256xf32>
      %176 = vector.shape_cast %175 : vector<256xf32> to vector<1x256xf32>
      %177 = vector.broadcast %176 : vector<1x256xf32> to vector<96x256xf32>
      %178 = arith.mulf %177, %173 : vector<96x256xf32>
      %179 = arith.addf %172, %178 : vector<96x256xf32>
      %c3_i32_44 = arith.constant 3 : i32
      %180 = arith.addi %22, %c3_i32_44 : i32
      %181 = arith.index_cast %180 : i32 to index
      %c0_45 = arith.constant 0 : index
      %c0_46 = arith.constant 0 : index
      %182 = vector.load %arg7[%181, %c0_45, %c0_46] : memref<22x24x256xf32, #tpu.memory_space<vmem>>, vector<4x24x256xf32>
      %183 = vector.shape_cast %182 : vector<4x24x256xf32> to vector<96x256xf32>
      %c3_i32_47 = arith.constant 3 : i32
      %184 = tpu.dynamic_rotate %183 by %c3_i32_47 dim 0 : vector<96x256xf32>, i32 -> vector<96x256xf32>
      %185 = vector.extract_strided_slice %20 {offsets = [21, 0], sizes = [1, 256], strides = [1, 1]} : vector<49x256xf32> to vector<1x256xf32>
      %186 = vector.shape_cast %185 : vector<1x256xf32> to vector<256xf32>
      %187 = vector.shape_cast %186 : vector<256xf32> to vector<1x256xf32>
      %188 = vector.broadcast %187 : vector<1x256xf32> to vector<96x256xf32>
      %189 = arith.mulf %188, %184 : vector<96x256xf32>
      %190 = arith.addf %179, %189 : vector<96x256xf32>
      %c2_i32_48 = arith.constant 2 : i32
      %191 = tpu.dynamic_rotate %183 by %c2_i32_48 dim 0 : vector<96x256xf32>, i32 -> vector<96x256xf32>
      %192 = vector.extract_strided_slice %20 {offsets = [22, 0], sizes = [1, 256], strides = [1, 1]} : vector<49x256xf32> to vector<1x256xf32>
      %193 = vector.shape_cast %192 : vector<1x256xf32> to vector<256xf32>
      %194 = vector.shape_cast %193 : vector<256xf32> to vector<1x256xf32>
      %195 = vector.broadcast %194 : vector<1x256xf32> to vector<96x256xf32>
      %196 = arith.mulf %195, %191 : vector<96x256xf32>
      %197 = arith.addf %190, %196 : vector<96x256xf32>
      %c1_i32_49 = arith.constant 1 : i32
      %198 = tpu.dynamic_rotate %183 by %c1_i32_49 dim 0 : vector<96x256xf32>, i32 -> vector<96x256xf32>
      %199 = vector.extract_strided_slice %20 {offsets = [23, 0], sizes = [1, 256], strides = [1, 1]} : vector<49x256xf32> to vector<1x256xf32>
      %200 = vector.shape_cast %199 : vector<1x256xf32> to vector<256xf32>
      %201 = vector.shape_cast %200 : vector<256xf32> to vector<1x256xf32>
      %202 = vector.broadcast %201 : vector<1x256xf32> to vector<96x256xf32>
      %203 = arith.mulf %202, %198 : vector<96x256xf32>
      %204 = arith.addf %197, %203 : vector<96x256xf32>
      %205 = vector.extract_strided_slice %20 {offsets = [24, 0], sizes = [1, 256], strides = [1, 1]} : vector<49x256xf32> to vector<1x256xf32>
      %206 = vector.shape_cast %205 : vector<1x256xf32> to vector<256xf32>
      %207 = vector.shape_cast %206 : vector<256xf32> to vector<1x256xf32>
      %208 = vector.broadcast %207 : vector<1x256xf32> to vector<96x256xf32>
      %209 = arith.mulf %208, %183 : vector<96x256xf32>
      %210 = arith.addf %204, %209 : vector<96x256xf32>
      %c95_i32_50 = arith.constant 95 : i32
      %211 = tpu.dynamic_rotate %183 by %c95_i32_50 dim 0 : vector<96x256xf32>, i32 -> vector<96x256xf32>
      %212 = vector.extract_strided_slice %20 {offsets = [25, 0], sizes = [1, 256], strides = [1, 1]} : vector<49x256xf32> to vector<1x256xf32>
      %213 = vector.shape_cast %212 : vector<1x256xf32> to vector<256xf32>
      %214 = vector.shape_cast %213 : vector<256xf32> to vector<1x256xf32>
      %215 = vector.broadcast %214 : vector<1x256xf32> to vector<96x256xf32>
      %216 = arith.mulf %215, %211 : vector<96x256xf32>
      %217 = arith.addf %210, %216 : vector<96x256xf32>
      %c94_i32_51 = arith.constant 94 : i32
      %218 = tpu.dynamic_rotate %183 by %c94_i32_51 dim 0 : vector<96x256xf32>, i32 -> vector<96x256xf32>
      %219 = vector.extract_strided_slice %20 {offsets = [26, 0], sizes = [1, 256], strides = [1, 1]} : vector<49x256xf32> to vector<1x256xf32>
      %220 = vector.shape_cast %219 : vector<1x256xf32> to vector<256xf32>
      %221 = vector.shape_cast %220 : vector<256xf32> to vector<1x256xf32>
      %222 = vector.broadcast %221 : vector<1x256xf32> to vector<96x256xf32>
      %223 = arith.mulf %222, %218 : vector<96x256xf32>
      %224 = arith.addf %217, %223 : vector<96x256xf32>
      %c93_i32_52 = arith.constant 93 : i32
      %225 = tpu.dynamic_rotate %183 by %c93_i32_52 dim 0 : vector<96x256xf32>, i32 -> vector<96x256xf32>
      %226 = vector.extract_strided_slice %20 {offsets = [27, 0], sizes = [1, 256], strides = [1, 1]} : vector<49x256xf32> to vector<1x256xf32>
      %227 = vector.shape_cast %226 : vector<1x256xf32> to vector<256xf32>
      %228 = vector.shape_cast %227 : vector<256xf32> to vector<1x256xf32>
      %229 = vector.broadcast %228 : vector<1x256xf32> to vector<96x256xf32>
      %230 = arith.mulf %229, %225 : vector<96x256xf32>
      %231 = arith.addf %224, %230 : vector<96x256xf32>
      %c4_i32_53 = arith.constant 4 : i32
      %232 = arith.addi %22, %c4_i32_53 : i32
      %233 = arith.index_cast %232 : i32 to index
      %c0_54 = arith.constant 0 : index
      %c0_55 = arith.constant 0 : index
      %234 = vector.load %arg7[%233, %c0_54, %c0_55] : memref<22x24x256xf32, #tpu.memory_space<vmem>>, vector<4x24x256xf32>
      %235 = vector.shape_cast %234 : vector<4x24x256xf32> to vector<96x256xf32>
      %c3_i32_56 = arith.constant 3 : i32
      %236 = tpu.dynamic_rotate %235 by %c3_i32_56 dim 0 : vector<96x256xf32>, i32 -> vector<96x256xf32>
      %237 = vector.extract_strided_slice %20 {offsets = [28, 0], sizes = [1, 256], strides = [1, 1]} : vector<49x256xf32> to vector<1x256xf32>
      %238 = vector.shape_cast %237 : vector<1x256xf32> to vector<256xf32>
      %239 = vector.shape_cast %238 : vector<256xf32> to vector<1x256xf32>
      %240 = vector.broadcast %239 : vector<1x256xf32> to vector<96x256xf32>
      %241 = arith.mulf %240, %236 : vector<96x256xf32>
      %242 = arith.addf %231, %241 : vector<96x256xf32>
      %c2_i32_57 = arith.constant 2 : i32
      %243 = tpu.dynamic_rotate %235 by %c2_i32_57 dim 0 : vector<96x256xf32>, i32 -> vector<96x256xf32>
      %244 = vector.extract_strided_slice %20 {offsets = [29, 0], sizes = [1, 256], strides = [1, 1]} : vector<49x256xf32> to vector<1x256xf32>
      %245 = vector.shape_cast %244 : vector<1x256xf32> to vector<256xf32>
      %246 = vector.shape_cast %245 : vector<256xf32> to vector<1x256xf32>
      %247 = vector.broadcast %246 : vector<1x256xf32> to vector<96x256xf32>
      %248 = arith.mulf %247, %243 : vector<96x256xf32>
      %249 = arith.addf %242, %248 : vector<96x256xf32>
      %c1_i32_58 = arith.constant 1 : i32
      %250 = tpu.dynamic_rotate %235 by %c1_i32_58 dim 0 : vector<96x256xf32>, i32 -> vector<96x256xf32>
      %251 = vector.extract_strided_slice %20 {offsets = [30, 0], sizes = [1, 256], strides = [1, 1]} : vector<49x256xf32> to vector<1x256xf32>
      %252 = vector.shape_cast %251 : vector<1x256xf32> to vector<256xf32>
      %253 = vector.shape_cast %252 : vector<256xf32> to vector<1x256xf32>
      %254 = vector.broadcast %253 : vector<1x256xf32> to vector<96x256xf32>
      %255 = arith.mulf %254, %250 : vector<96x256xf32>
      %256 = arith.addf %249, %255 : vector<96x256xf32>
      %257 = vector.extract_strided_slice %20 {offsets = [31, 0], sizes = [1, 256], strides = [1, 1]} : vector<49x256xf32> to vector<1x256xf32>
      %258 = vector.shape_cast %257 : vector<1x256xf32> to vector<256xf32>
      %259 = vector.shape_cast %258 : vector<256xf32> to vector<1x256xf32>
      %260 = vector.broadcast %259 : vector<1x256xf32> to vector<96x256xf32>
      %261 = arith.mulf %260, %235 : vector<96x256xf32>
      %262 = arith.addf %256, %261 : vector<96x256xf32>
      %c95_i32_59 = arith.constant 95 : i32
      %263 = tpu.dynamic_rotate %235 by %c95_i32_59 dim 0 : vector<96x256xf32>, i32 -> vector<96x256xf32>
      %264 = vector.extract_strided_slice %20 {offsets = [32, 0], sizes = [1, 256], strides = [1, 1]} : vector<49x256xf32> to vector<1x256xf32>
      %265 = vector.shape_cast %264 : vector<1x256xf32> to vector<256xf32>
      %266 = vector.shape_cast %265 : vector<256xf32> to vector<1x256xf32>
      %267 = vector.broadcast %266 : vector<1x256xf32> to vector<96x256xf32>
      %268 = arith.mulf %267, %263 : vector<96x256xf32>
      %269 = arith.addf %262, %268 : vector<96x256xf32>
      %c94_i32_60 = arith.constant 94 : i32
      %270 = tpu.dynamic_rotate %235 by %c94_i32_60 dim 0 : vector<96x256xf32>, i32 -> vector<96x256xf32>
      %271 = vector.extract_strided_slice %20 {offsets = [33, 0], sizes = [1, 256], strides = [1, 1]} : vector<49x256xf32> to vector<1x256xf32>
      %272 = vector.shape_cast %271 : vector<1x256xf32> to vector<256xf32>
      %273 = vector.shape_cast %272 : vector<256xf32> to vector<1x256xf32>
      %274 = vector.broadcast %273 : vector<1x256xf32> to vector<96x256xf32>
      %275 = arith.mulf %274, %270 : vector<96x256xf32>
      %276 = arith.addf %269, %275 : vector<96x256xf32>
      %c93_i32_61 = arith.constant 93 : i32
      %277 = tpu.dynamic_rotate %235 by %c93_i32_61 dim 0 : vector<96x256xf32>, i32 -> vector<96x256xf32>
      %278 = vector.extract_strided_slice %20 {offsets = [34, 0], sizes = [1, 256], strides = [1, 1]} : vector<49x256xf32> to vector<1x256xf32>
      %279 = vector.shape_cast %278 : vector<1x256xf32> to vector<256xf32>
      %280 = vector.shape_cast %279 : vector<256xf32> to vector<1x256xf32>
      %281 = vector.broadcast %280 : vector<1x256xf32> to vector<96x256xf32>
      %282 = arith.mulf %281, %277 : vector<96x256xf32>
      %283 = arith.addf %276, %282 : vector<96x256xf32>
      %c5_i32 = arith.constant 5 : i32
      %284 = arith.addi %22, %c5_i32 : i32
      %285 = arith.index_cast %284 : i32 to index
      %c0_62 = arith.constant 0 : index
      %c0_63 = arith.constant 0 : index
      %286 = vector.load %arg7[%285, %c0_62, %c0_63] : memref<22x24x256xf32, #tpu.memory_space<vmem>>, vector<4x24x256xf32>
      %287 = vector.shape_cast %286 : vector<4x24x256xf32> to vector<96x256xf32>
      %c3_i32_64 = arith.constant 3 : i32
      %288 = tpu.dynamic_rotate %287 by %c3_i32_64 dim 0 : vector<96x256xf32>, i32 -> vector<96x256xf32>
      %289 = vector.extract_strided_slice %20 {offsets = [35, 0], sizes = [1, 256], strides = [1, 1]} : vector<49x256xf32> to vector<1x256xf32>
      %290 = vector.shape_cast %289 : vector<1x256xf32> to vector<256xf32>
      %291 = vector.shape_cast %290 : vector<256xf32> to vector<1x256xf32>
      %292 = vector.broadcast %291 : vector<1x256xf32> to vector<96x256xf32>
      %293 = arith.mulf %292, %288 : vector<96x256xf32>
      %294 = arith.addf %283, %293 : vector<96x256xf32>
      %c2_i32_65 = arith.constant 2 : i32
      %295 = tpu.dynamic_rotate %287 by %c2_i32_65 dim 0 : vector<96x256xf32>, i32 -> vector<96x256xf32>
      %296 = vector.extract_strided_slice %20 {offsets = [36, 0], sizes = [1, 256], strides = [1, 1]} : vector<49x256xf32> to vector<1x256xf32>
      %297 = vector.shape_cast %296 : vector<1x256xf32> to vector<256xf32>
      %298 = vector.shape_cast %297 : vector<256xf32> to vector<1x256xf32>
      %299 = vector.broadcast %298 : vector<1x256xf32> to vector<96x256xf32>
      %300 = arith.mulf %299, %295 : vector<96x256xf32>
      %301 = arith.addf %294, %300 : vector<96x256xf32>
      %c1_i32_66 = arith.constant 1 : i32
      %302 = tpu.dynamic_rotate %287 by %c1_i32_66 dim 0 : vector<96x256xf32>, i32 -> vector<96x256xf32>
      %303 = vector.extract_strided_slice %20 {offsets = [37, 0], sizes = [1, 256], strides = [1, 1]} : vector<49x256xf32> to vector<1x256xf32>
      %304 = vector.shape_cast %303 : vector<1x256xf32> to vector<256xf32>
      %305 = vector.shape_cast %304 : vector<256xf32> to vector<1x256xf32>
      %306 = vector.broadcast %305 : vector<1x256xf32> to vector<96x256xf32>
      %307 = arith.mulf %306, %302 : vector<96x256xf32>
      %308 = arith.addf %301, %307 : vector<96x256xf32>
      %309 = vector.extract_strided_slice %20 {offsets = [38, 0], sizes = [1, 256], strides = [1, 1]} : vector<49x256xf32> to vector<1x256xf32>
      %310 = vector.shape_cast %309 : vector<1x256xf32> to vector<256xf32>
      %311 = vector.shape_cast %310 : vector<256xf32> to vector<1x256xf32>
      %312 = vector.broadcast %311 : vector<1x256xf32> to vector<96x256xf32>
      %313 = arith.mulf %312, %287 : vector<96x256xf32>
      %314 = arith.addf %308, %313 : vector<96x256xf32>
      %c95_i32_67 = arith.constant 95 : i32
      %315 = tpu.dynamic_rotate %287 by %c95_i32_67 dim 0 : vector<96x256xf32>, i32 -> vector<96x256xf32>
      %316 = vector.extract_strided_slice %20 {offsets = [39, 0], sizes = [1, 256], strides = [1, 1]} : vector<49x256xf32> to vector<1x256xf32>
      %317 = vector.shape_cast %316 : vector<1x256xf32> to vector<256xf32>
      %318 = vector.shape_cast %317 : vector<256xf32> to vector<1x256xf32>
      %319 = vector.broadcast %318 : vector<1x256xf32> to vector<96x256xf32>
      %320 = arith.mulf %319, %315 : vector<96x256xf32>
      %321 = arith.addf %314, %320 : vector<96x256xf32>
      %c94_i32_68 = arith.constant 94 : i32
      %322 = tpu.dynamic_rotate %287 by %c94_i32_68 dim 0 : vector<96x256xf32>, i32 -> vector<96x256xf32>
      %323 = vector.extract_strided_slice %20 {offsets = [40, 0], sizes = [1, 256], strides = [1, 1]} : vector<49x256xf32> to vector<1x256xf32>
      %324 = vector.shape_cast %323 : vector<1x256xf32> to vector<256xf32>
      %325 = vector.shape_cast %324 : vector<256xf32> to vector<1x256xf32>
      %326 = vector.broadcast %325 : vector<1x256xf32> to vector<96x256xf32>
      %327 = arith.mulf %326, %322 : vector<96x256xf32>
      %328 = arith.addf %321, %327 : vector<96x256xf32>
      %c93_i32_69 = arith.constant 93 : i32
      %329 = tpu.dynamic_rotate %287 by %c93_i32_69 dim 0 : vector<96x256xf32>, i32 -> vector<96x256xf32>
      %330 = vector.extract_strided_slice %20 {offsets = [41, 0], sizes = [1, 256], strides = [1, 1]} : vector<49x256xf32> to vector<1x256xf32>
      %331 = vector.shape_cast %330 : vector<1x256xf32> to vector<256xf32>
      %332 = vector.shape_cast %331 : vector<256xf32> to vector<1x256xf32>
      %333 = vector.broadcast %332 : vector<1x256xf32> to vector<96x256xf32>
      %334 = arith.mulf %333, %329 : vector<96x256xf32>
      %335 = arith.addf %328, %334 : vector<96x256xf32>
      %c6_i32 = arith.constant 6 : i32
      %336 = arith.addi %22, %c6_i32 : i32
      %337 = arith.index_cast %336 : i32 to index
      %c0_70 = arith.constant 0 : index
      %c0_71 = arith.constant 0 : index
      %338 = vector.load %arg7[%337, %c0_70, %c0_71] : memref<22x24x256xf32, #tpu.memory_space<vmem>>, vector<4x24x256xf32>
      %339 = vector.shape_cast %338 : vector<4x24x256xf32> to vector<96x256xf32>
      %c3_i32_72 = arith.constant 3 : i32
      %340 = tpu.dynamic_rotate %339 by %c3_i32_72 dim 0 : vector<96x256xf32>, i32 -> vector<96x256xf32>
      %341 = vector.extract_strided_slice %20 {offsets = [42, 0], sizes = [1, 256], strides = [1, 1]} : vector<49x256xf32> to vector<1x256xf32>
      %342 = vector.shape_cast %341 : vector<1x256xf32> to vector<256xf32>
      %343 = vector.shape_cast %342 : vector<256xf32> to vector<1x256xf32>
      %344 = vector.broadcast %343 : vector<1x256xf32> to vector<96x256xf32>
      %345 = arith.mulf %344, %340 : vector<96x256xf32>
      %346 = arith.addf %335, %345 : vector<96x256xf32>
      %c2_i32_73 = arith.constant 2 : i32
      %347 = tpu.dynamic_rotate %339 by %c2_i32_73 dim 0 : vector<96x256xf32>, i32 -> vector<96x256xf32>
      %348 = vector.extract_strided_slice %20 {offsets = [43, 0], sizes = [1, 256], strides = [1, 1]} : vector<49x256xf32> to vector<1x256xf32>
      %349 = vector.shape_cast %348 : vector<1x256xf32> to vector<256xf32>
      %350 = vector.shape_cast %349 : vector<256xf32> to vector<1x256xf32>
      %351 = vector.broadcast %350 : vector<1x256xf32> to vector<96x256xf32>
      %352 = arith.mulf %351, %347 : vector<96x256xf32>
      %353 = arith.addf %346, %352 : vector<96x256xf32>
      %c1_i32_74 = arith.constant 1 : i32
      %354 = tpu.dynamic_rotate %339 by %c1_i32_74 dim 0 : vector<96x256xf32>, i32 -> vector<96x256xf32>
      %355 = vector.extract_strided_slice %20 {offsets = [44, 0], sizes = [1, 256], strides = [1, 1]} : vector<49x256xf32> to vector<1x256xf32>
      %356 = vector.shape_cast %355 : vector<1x256xf32> to vector<256xf32>
      %357 = vector.shape_cast %356 : vector<256xf32> to vector<1x256xf32>
      %358 = vector.broadcast %357 : vector<1x256xf32> to vector<96x256xf32>
      %359 = arith.mulf %358, %354 : vector<96x256xf32>
      %360 = arith.addf %353, %359 : vector<96x256xf32>
      %361 = vector.extract_strided_slice %20 {offsets = [45, 0], sizes = [1, 256], strides = [1, 1]} : vector<49x256xf32> to vector<1x256xf32>
      %362 = vector.shape_cast %361 : vector<1x256xf32> to vector<256xf32>
      %363 = vector.shape_cast %362 : vector<256xf32> to vector<1x256xf32>
      %364 = vector.broadcast %363 : vector<1x256xf32> to vector<96x256xf32>
      %365 = arith.mulf %364, %339 : vector<96x256xf32>
      %366 = arith.addf %360, %365 : vector<96x256xf32>
      %c95_i32_75 = arith.constant 95 : i32
      %367 = tpu.dynamic_rotate %339 by %c95_i32_75 dim 0 : vector<96x256xf32>, i32 -> vector<96x256xf32>
      %368 = vector.extract_strided_slice %20 {offsets = [46, 0], sizes = [1, 256], strides = [1, 1]} : vector<49x256xf32> to vector<1x256xf32>
      %369 = vector.shape_cast %368 : vector<1x256xf32> to vector<256xf32>
      %370 = vector.shape_cast %369 : vector<256xf32> to vector<1x256xf32>
      %371 = vector.broadcast %370 : vector<1x256xf32> to vector<96x256xf32>
      %372 = arith.mulf %371, %367 : vector<96x256xf32>
      %373 = arith.addf %366, %372 : vector<96x256xf32>
      %c94_i32_76 = arith.constant 94 : i32
      %374 = tpu.dynamic_rotate %339 by %c94_i32_76 dim 0 : vector<96x256xf32>, i32 -> vector<96x256xf32>
      %375 = vector.extract_strided_slice %20 {offsets = [47, 0], sizes = [1, 256], strides = [1, 1]} : vector<49x256xf32> to vector<1x256xf32>
      %376 = vector.shape_cast %375 : vector<1x256xf32> to vector<256xf32>
      %377 = vector.shape_cast %376 : vector<256xf32> to vector<1x256xf32>
      %378 = vector.broadcast %377 : vector<1x256xf32> to vector<96x256xf32>
      %379 = arith.mulf %378, %374 : vector<96x256xf32>
      %380 = arith.addf %373, %379 : vector<96x256xf32>
      %c93_i32_77 = arith.constant 93 : i32
      %381 = tpu.dynamic_rotate %339 by %c93_i32_77 dim 0 : vector<96x256xf32>, i32 -> vector<96x256xf32>
      %382 = vector.extract_strided_slice %20 {offsets = [48, 0], sizes = [1, 256], strides = [1, 1]} : vector<49x256xf32> to vector<1x256xf32>
      %383 = vector.shape_cast %382 : vector<1x256xf32> to vector<256xf32>
      %384 = vector.shape_cast %383 : vector<256xf32> to vector<1x256xf32>
      %385 = vector.broadcast %384 : vector<1x256xf32> to vector<96x256xf32>
      %386 = arith.mulf %385, %381 : vector<96x256xf32>
      %387 = arith.addf %380, %386 : vector<96x256xf32>
      %388 = vector.shape_cast %387 : vector<96x256xf32> to vector<4x24x256xf32>
      %389 = vector.extract_strided_slice %388 {offsets = [0, 0, 0], sizes = [4, 16, 256], strides = [1, 1, 1]} : vector<4x24x256xf32> to vector<4x16x256xf32>
      %390 = vector.shape_cast %389 : vector<4x16x256xf32> to vector<64x256xf32>
      %c0_78 = arith.constant 0 : index
      %c0_79 = arith.constant 0 : index
      %391 = vector.load %arg4[%c0_78, %c0_79] : memref<256x128xf32, #tpu.memory_space<vmem>>, vector<256x128xf32>
      %cst_80 = arith.constant dense<0.000000e+00> : vector<64x128xf32>
      %392 = tpu.matmul %390, %391, %cst_80 {dimension_numbers = #tpu.dot_dimension_numbers<[1], [0], [0], [1], [0, 0, 1, 1], [], []>} : vector<64x256xf32>, vector<256x128xf32>, vector<64x128xf32> -> vector<64x128xf32>
      %c16_i32 = arith.constant 16 : i32
      %393 = arith.muli %22, %c16_i32 : i32
      %394 = tpu.assume_multiple %393, 8 : i32
      %c0_81 = arith.constant 0 : index
      %395 = arith.index_cast %394 : i32 to index
      %c0_82 = arith.constant 0 : index
      %396 = vector.load %arg6[%c0_81, %395, %c0_82] : memref<1x256x128xf32, #tpu.memory_space<vmem>>, vector<1x64x128xf32>
      %397 = vector.shape_cast %396 : vector<1x64x128xf32> to vector<64x128xf32>
      %398 = vector.shape_cast %392 : vector<64x128xf32> to vector<1x64x128xf32>
      tpu.vector_store %arg6[%c0_81, %395, %c0_82], %398 {strides = array<i32>} : memref<1x256x128xf32, #tpu.memory_space<vmem>>, vector<1x64x128xf32>,
    }
    %c4_i32_19 = arith.constant 4 : i32
    return
  }
  func.func @transform_0(%arg0: i32) -> (i32, i32, i32) {
    %c0_i32 = arith.constant 0 : i32
    %c0_i32_0 = arith.constant 0 : i32
    %c0_i32_1 = arith.constant 0 : i32
    return %arg0, %c0_i32, %c0_i32_0 : i32, i32, i32
  }
  func.func @transform_1(%arg0: i32) -> (i32, i32) {
    %c0_i32 = arith.constant 0 : i32
    %c0_i32_0 = arith.constant 0 : i32
    %c0_i32_1 = arith.constant 0 : i32
    return %c0_i32, %c0_i32_0 : i32, i32
  }
  func.func @transform_2(%arg0: i32) -> (i32, i32) {
    %c0_i32 = arith.constant 0 : i32
    %c0_i32_0 = arith.constant 0 : i32
    %c0_i32_1 = arith.constant 0 : i32
    return %c0_i32, %c0_i32_0 : i32, i32
  }
  func.func @transform_3(%arg0: i32) -> (i32, i32) {
    %c0_i32 = arith.constant 0 : i32
    %c0_i32_0 = arith.constant 0 : i32
    %c0_i32_1 = arith.constant 0 : i32
    return %c0_i32, %c0_i32_0 : i32, i32
  }
  func.func @transform_4(%arg0: i32) -> i32 {
    %c0_i32 = arith.constant 0 : i32
    %c0_i32_0 = arith.constant 0 : i32
    return %c0_i32 : i32
  }
  func.func @transform_5(%arg0: i32) -> (i32, i32, i32) {
    %c0_i32 = arith.constant 0 : i32
    %c0_i32_0 = arith.constant 0 : i32
    %c0_i32_1 = arith.constant 0 : i32
    return %arg0, %c0_i32, %c0_i32_0 : i32, i32, i32
  }
}

</mosaic_0001>

<bundles_post_ra>
// kernel: tpu_custom_call.1
= control target key start
LH: loop header
LB: loop body
LE: loop exit
PB: predicated region body
PF: predicated region fallthrough
CT: control target
= control target key end

     0   :  { %10 = vsyncpa [#allocation4], 0  ;;  %s11784_s0 = inlined_call_operand.hbm [shape: f32[2,256,128], index: 0, kind: input, shape index: {}]   ;;  %s11785_s1 = inlined_call_operand.hbm [shape: f32[128,256], index: 1, kind: input, shape index: {}]   ;;  %s11786_s2 = inlined_call_operand.hbm [shape: f32[49,256], index: 2, kind: input, shape index: {}]   ;;  %s11787_s3 = inlined_call_operand.hbm [shape: f32[256,128], index: 3, kind: input, shape index: {}]   ;;  %s11788_s4 = inlined_call_operand.vmem [shape: f32[2], index: 4, kind: input, shape index: {}]   ;;  %s11789_s5 = inlined_call_operand.hbm [shape: f32[2,256,128], index: 5, kind: output, shape index: {}]  }
   0x1   :  { %12 = vsyncpa [#allocation4 + $0x1], 0 }
   0x2   :  { %13 = vsyncpa [#allocation8], 0 }
   0x3   :  { %14 = vsyncpa [#allocation11], 0 }
   0x4   :  { %15 = vsyncpa [#allocation6], 0 }
   0x5   :  { %16 = vsyncpa [#allocation5], 0 }
   0x6   :  { %18 = vsyncpa [#allocation5 + $0x1], 0  ;;  %s5920_s18 = smov 0   ;;  %s5922_s19 = smov 0  }
   0x7   :  { %s5924_s20 = smov 0   ;;  %s5926_s21 = smov 0  }
   0x8 LB: > { %s5941_s22 = sadd.s32 4294967295, %s5871_s21   ;;  %s5188_s23 = sadd.s32 4294967294, %s5871_s21   ;;  %s5871_s21 = sphi %s5926_s21, %s13598_s21   ;;  %s5867_s20 = sphi %s5924_s20, %s13597_s20   ;;  %s5863_s19 = sphi %s5922_s19, %s13596_s19   ;;  %s5859_s18 = sphi %s5920_s18, %s13595_s18  }
   0x9   : > { %p44_p0 = scmp.ne.s32.totalorder %s5863_s19, %s5859_s18  ;;  %p11790_p1 = scmp.eq.s32.totalorder %s5941_s22, 0 }
   0xa   : > { %p158_p3 = scmp.eq.s32.totalorder %s5188_s23, 1  ;;  %p5189_p5 = scmp.ge.s32.totalorder %s5871_s21, 1 }
   0xb   : > { %p5950_p4 = por %p11790_p1, %p44_p0  ;;  %p165_p7 = scmp.lt.s32.totalorder %s5871_s21, 3 }
   0xc   : > { %p5955_p6 = por %p158_p3, %p44_p0  ;;  %s5877_s27 = smov [#allocation7]  }
   0xd   : > { %s12402_s24 = scalar_select %p5950_p4, 1, 0 }
   0xe   : > { %s12403_s25 = scalar_select %p5955_p6, 1, 0 }
   0xf   : > { %p5960_p8 = pnand %p5189_p5, %p165_p7  ;;  %s177_s28 = sshll.u32 %s5877_s27, 4  ;;  %s178_s28 = int_to_ptr.vmem [resolvable:$true] %s177_s28 }
  0x10   : > { %s5878_s30 = smov [#allocation9]   ;;  %s5879_s7 = smov [#allocation10]  }
  0x11   : > { %s12404_s26 = scalar_select %p5960_p8, 1, 0 }
  0x12   : > { %p5516_p9 = pneg %p5960_p8  ;;  %s190_s6 = sshll.u32 %s5878_s30, 4  ;;  %s191_s6 = int_to_ptr.vmem [resolvable:$true] %s190_s6 }
  0x13   : > { %s203_s8 = sshll.u32 %s5879_s7, 4  ;;  %s5681_s9 = scalar_lea.vmem %s178_s28, 4096  ;;  %s204_s8 = int_to_ptr.vmem [resolvable:$true] %s203_s8 }
  0x14   : > { %p5969_p11 = pnand %p5516_p9, %p11790_p1  ;;  %p5682_p13 = scmp.ne.s32.totalorder %s178_s28, %s5681_s9 }
  0x15   : > { %p5689_p5 = scmp.lt.s32.totalorder %s178_s28, %s178_s28  ;;  %p5690_p7 = scmp.lt.s32.totalorder %s5681_s9, %s5681_s9 }
  0x16   : > { %p5672_p12 = pneg %p5969_p11 }
  0x17   : > { %p5691_p9 = por %p5690_p7, %p5689_p5 }
  0x18   : > { %p5684_p0 = pnand %p5682_p13, %p5672_p12 }
  0x1a   : > { %p5685_p3 = pneg %p5684_p0 }
  0x1c   : > { %p5692_p10 = pnand %p5691_p9, %p5685_p3 }
  0x1e   : > { %5695 = shalt.err (!%p5692_p10)
}
  0x1f   : > { %s5880_s10 = smov 256   ;;  %s5881_s11 = smov 16  }
  0x20   : > { %5519 = dma.hbm_to_vmem [thread:$0]  (!%p5969_p11), %s11785_s1, 4096, %s178_s28, [#allocation8], %s5880_s10, %s5880_s10, %s5881_s11  }
  0x21   : > { %s5707_s14 = scalar_lea.vmem %s191_s6, 1792  ;;  %p5715_p2 = scmp.lt.s32.totalorder %s191_s6, %s191_s6 }
  0x22   : > { %p5708_p1 = scmp.ne.s32.totalorder %s191_s6, %s5707_s14  ;;  %p5716_p6 = scmp.lt.s32.totalorder %s5707_s14, %s5707_s14 }
  0x24   : > { %p5710_p13 = pnand %p5708_p1, %p5672_p12  ;;  %p5717_p5 = por %p5716_p6, %p5715_p2 }
  0x26   : > { %p5711_p0 = pneg %p5710_p13 }
  0x28   : > { %p5718_p3 = pnand %p5717_p5, %p5711_p0 }
  0x2a   : > { %5721 = shalt.err (!%p5718_p3)
}
  0x2b   : > { %5522 = dma.hbm_to_vmem [thread:$0]  (!%p5969_p11), %s11786_s2, 1792, %s191_s6, [#allocation8], %s5880_s10, %s5880_s10, %s5881_s11  }
  0x2c   : > { %s217_s27 = sshll.u32 %s11788_s4, 4  ;;  %s5733_s28 = scalar_lea.vmem %s204_s8, 4096  ;;  %s218_s27 = int_to_ptr.vmem [resolvable:$true] %s217_s27 }
  0x2d   : > { %p5734_p1 = scmp.ne.s32.totalorder %s204_s8, %s5733_s28  ;;  %p5741_p6 = scmp.lt.s32.totalorder %s204_s8, %s204_s8 }
  0x2e   : > { %p5742_p7 = scmp.lt.s32.totalorder %s5733_s28, %s5733_s28 }
  0x2f   : > { %p5736_p10 = pnand %p5734_p1, %p5672_p12 }
  0x30   : > { %p5743_p9 = por %p5742_p7, %p5741_p6 }
  0x31   : > { %p5737_p2 = pneg %p5736_p10 }
  0x33   : > { %p5744_p13 = pnand %p5743_p9, %p5737_p2 }
  0x35   : > { %5747 = shalt.err (!%p5744_p13)
}
  0x36   : > { %s11791_s30 = smov 128   ;;  %s5883_s6 = smov 8  }
  0x37   : > { %5525 = dma.hbm_to_vmem [thread:$0]  (!%p5969_p11), %s11787_s3, 4096, %s204_s8, [#allocation11], %s11791_s30, %s11791_s30, %s5883_s6  }
  0x38   : > { %s5748_s10 = scalar_lea.vmem %s218_s27, 16  ;;  %p5756_p1 = scmp.lt.s32.totalorder %s218_s27, %s218_s27 }
  0x39   : > { %p5749_p0 = scmp.ne.s32.totalorder %s218_s27, %s5748_s10  ;;  %p5757_p10 = scmp.lt.s32.totalorder %s5748_s10, %s5748_s10 }
  0x3b   : > { %p5751_p5 = pnand %p5749_p0, %p5672_p12  ;;  %p5758_p2 = por %p5757_p10, %p5756_p1 }
  0x3d   : > { %p5752_p3 = pneg %p5751_p5 }
  0x3f   : > { %p5759_p6 = pnand %p5758_p2, %p5752_p3 }
  0x41   : > { %5762 = shalt.err (!%p5759_p6)
}
  0x42   : > { %s5884_s11 = smov [#allocation12]   ;;  %s6011_s8 = sadd.s32 1, %s5871_s21  }
  0x43   : > { %5528 = dma.vmem_to_smem (!%p5969_p11), %s218_s27, 16, %s5884_s11, [#allocation6]  }
  0x44   : > { %s28_s12 = ssub.s32 %s5871_s21, %s6011_s8  ;;  %s31_s13 = sadd.s32 1, %s5867_s20 }
  0x45   : > { %p29_p12 = scmp.eq.s32.totalorder %s28_s12, 0  ;;  %p38_p7 = scmp.ne.s32.totalorder %s5867_s20, %s5863_s19 }
  0x46   : > { %p39_p9 = scmp.eq.s32.totalorder %s5871_s21, 0  ;;  %p12406_p0 = scmp.eq.s32.totalorder %s5941_s22, 1 }
  0x47   : > { %s6020_s29 = scalar_select %p29_p12, %s5867_s20, %s31_s13  }
  0x48   : > { %p40_p13 = por %p39_p9, %p38_p7  ;;  %p6024_p5 = por %p12406_p0, %p38_p7 }
  0x49   : > { %p5541_p3 = scmp.lt.s32.totalorder %s5871_s21, 2  ;;  %s228_s15 = sand.u32 1, %s5867_s20  }
  0x4a   : > { %s12407_s14 = scalar_select %p6024_p5, 1, 0 }
  0x4b   : > { %s5195_s16 = sshll.u32 %s228_s15, 8  ;;  %s5373_s17 = sshll.u32 %s5871_s21, 12 }
  0x4c   : > { %s6034_s28 = scalar_lea.hbm %s11784_s0, %s5373_s17  ;;  %s232_s7 = scalar_lea.vmem [#allocation3], %s5195_s16 }
  0x4d   : > { %s239_s9 = sshll.u32 %s232_s7, 4  ;;  %p6038_p11 = pnand %p5541_p3, %p40_p13  ;;  %s6036_s9 = int_to_ptr.vmem [resolvable:$true] %s239_s9 }
  0x4e   : > { %s6042_s11 = scalar_lea.sflag [#allocation4], %s228_s15  ;;  %s5763_s12 = scalar_lea.hbm %s6034_s28, 4096 }
  0x4f   : > { %p5764_p1 = scmp.ne.s32.totalorder %s6034_s28, %s5763_s12  ;;  %p5765_p10 = pneg %p6038_p11 }
  0x50   : > { %s5768_s16 = scalar_lea.hbm %s11784_s0, 8192  ;;  %p5769_p12 = scmp.lt.s32.totalorder %s6034_s28, %s11784_s0 }
  0x51   : > { %p5766_p2 = pnand %p5765_p10, %p5764_p1  ;;  %p5770_p7 = scmp.lt.s32.totalorder %s5768_s16, %s5763_s12 }
  0x53   : > { %p5767_p6 = pneg %p5766_p2  ;;  %p5771_p9 = por %p5770_p7, %p5769_p12 }
  0x55   : > { %p5772_p13 = pnand %p5771_p9, %p5767_p6 }
  0x57   : > { %5775 = shalt.err (!%p5772_p13)
}
  0x58   : > { %s5776_s15 = scalar_lea.vmem %s6036_s9, 4096  ;;  %s5885_s7 = smov [#allocation3]  }
  0x59   : > { %p5777_p0 = scmp.ne.s32.totalorder %s6036_s9, %s5776_s15  ;;  %s5781_s30 = sshll.u32 %s5885_s7, 4  ;;  %s5782_s30 = int_to_ptr.vmem [resolvable:$false] %s5781_s30 }
  0x5a   : > { %s5783_s13 = scalar_lea.vmem %s5782_s30, 8192  ;;  %p5784_p2 = scmp.lt.s32.totalorder %s6036_s9, %s5782_s30 }
  0x5b   : > { %p5779_p3 = pnand %p5777_p0, %p5765_p10  ;;  %p5785_p5 = scmp.lt.s32.totalorder %s5783_s13, %s5776_s15 }
  0x5d   : > { %p5780_p1 = pneg %p5779_p3  ;;  %p5786_p4 = por %p5785_p5, %p5784_p2 }
  0x5f   : > { %p5787_p8 = pnand %p5786_p4, %p5780_p1 }
  0x61   : > { %5790 = shalt.err (!%p5787_p8)
}
  0x62   : > { %s12409_s12 = smov 128   ;;  %p12410_p10 = scmp.ne.s32.totalorder %s12404_s26, 0 }
  0x63   : > { %5532 = dma.hbm_to_vmem [thread:$0]  (!%p6038_p11), %s6034_s28, 4096, %s6036_s9, %s6042_s11, %s12409_s12, %s12409_s12, %s5883_s6  }
  0x64   : > { %251 = sbr.rel (%p12410_p10) target bundleno = 1431 (0x597), region = 40 }
  0x69   : > { %s6069_s17 = sand.u32 1, %s5863_s19   ;;  %p12411_p4 = scmp.ne.s32.totalorder %s12402_s24, 0 }
  0x6a   : > { %s5199_s30 = sshll.u32 %s6069_s17, 8  ;;  %s254_s16 = scalar_lea.sflag [#allocation4], %s6069_s17 }
  0x6b   : > { %s6075_s10 = scalar_lea.vmem [#allocation3], %s5199_s30 }
  0x6c   : > { %5838 = dma.done.wait (%p12411_p4), %s254_s16, 4096  }
  0x6d   : > { %5840 = vsyncadd (%p12411_p4), %s254_s16, 4294963200  ;;  %p12412_p8 = scmp.eq.s32.totalorder %s5941_s22, 0 }
  0x6f   : > { %5842 = dma.done.wait (%p12412_p8), [#allocation8], 5888   ;;  %p12413_p5 = pmov %p12412_p8 }
  0x71   : > { %5844 = vsyncadd (%p12413_p5), [#allocation8], 4294961408  ;;  %p12414_p11 = pmov %p12413_p5 }
  0x72   : > { %p12415_p6 = pmov %p12413_p5 }
  0x73   : > { %5846 = dma.done.wait (%p12414_p11), [#allocation11], 4096  }
  0x74   : > { %5848 = vsyncadd (%p12415_p6), [#allocation11], 4294963200  ;;  %p12416_p12 = pmov %p12413_p5 }
  0x75   : > { %p12417_p7 = pmov %p12413_p5 }
  0x76   : > { %5850 = dma.done.wait (%p12416_p12), [#allocation6], 16  }
  0x77   : > { %5852 = vsyncadd (%p12417_p7), [#allocation6], 4294967280 }
  0x78   : > { %278 = sfence }
  0x79   : > { %v366_v0 = vld [vmem:[#allocation7 + $0xf8] sm:$0xff]  ;;  %v6093_v1 = vld [vmem:[#allocation7 + $0xf0] sm:$0xff]  ;;  %v6095_v2 = vld [vmem:[#allocation7 + $0xe8] sm:$0xff]  ;;  %v5886_v4 = vmov 0.0   ;;  %s301_s24 = sld [smem:[#allocation12]]  ;;  %s6399_s6 = scalar_lea.vmem [#allocation13], %s5199_s30 }
  0x7a   : > { %367 = vmatprep.subr.mxu0 %v366_v0  ;;  %5432 = vmatprep.subr.mxu1 %v366_v0  ;;  %v6097_v3 = vld [vmem:[#allocation7 + $0xe0] sm:$0xff]  ;;  %882 = vst [vmem:[#allocation2] sm:$0xff] %v5886_v4  ;;  %883 = vst [vmem:[#allocation2 + $0x8] sm:$0xff] %v5886_v4  ;;  %v362_v5 = vld [vmem:[#allocation7 + $0xd8] sm:$0xff]  ;;  %s5205_s26 = sld [smem:[#allocation12 + $0x1]]  ;;  %s6401_s28 = smov 0  }
  0x7b   : > { %884 = vst [vmem:[#allocation2 + $0x10] sm:$0xff] %v5886_v4  ;;  %885 = vst [vmem:[#allocation2 + $0x18] sm:$0xff] %v5886_v4  ;;  %368 = vmatpush1.msra.mxu0 %v6093_v1  ;;  %5448 = vmatpush1.msra.mxu1 %v6093_v1  ;;  %v361_v6 = vld [vmem:[#allocation7 + $0xd0] sm:$0xff]  ;;  %v360_v7 = vld [vmem:[#allocation7 + $0xc8] sm:$0xff] }
  0x7c   : > { %886 = vst [vmem:[#allocation2 + $0x20] sm:$0xff] %v5886_v4  ;;  %887 = vst [vmem:[#allocation2 + $0x28] sm:$0xff] %v5886_v4  ;;  %369 = vmatprep.subr.mxu0 %v6095_v2  ;;  %5433 = vmatprep.subr.mxu1 %v6095_v2  ;;  %v359_v8 = vld [vmem:[#allocation7 + $0xc0] sm:$0xff]  ;;  %v358_v9 = vld [vmem:[#allocation7 + $0xb8] sm:$0xff] }
  0x7d   : > { %888 = vst [vmem:[#allocation2 + $0x30] sm:$0xff] %v5886_v4  ;;  %889 = vst [vmem:[#allocation2 + $0x38] sm:$0xff] %v5886_v4  ;;  %370 = vmatpush1.msra.mxu0 %v6097_v3  ;;  %5449 = vmatpush1.msra.mxu1 %v6097_v3  ;;  %v357_v10 = vld [vmem:[#allocation7 + $0xb0] sm:$0xff]  ;;  %v356_v11 = vld [vmem:[#allocation7 + $0xa8] sm:$0xff] }
  0x7e   : > { %890 = vst [vmem:[#allocation2 + $0x40] sm:$0xff] %v5886_v4  ;;  %891 = vst [vmem:[#allocation2 + $0x48] sm:$0xff] %v5886_v4  ;;  %371 = vmatprep.subr.mxu0 %v362_v5  ;;  %5434 = vmatprep.subr.mxu1 %v362_v5  ;;  %v355_v12 = vld [vmem:[#allocation7 + $0xa0] sm:$0xff]  ;;  %v354_v13 = vld [vmem:[#allocation7 + $0x98] sm:$0xff] }
  0x7f   : > { %892 = vst [vmem:[#allocation2 + $0x50] sm:$0xff] %v5886_v4  ;;  %893 = vst [vmem:[#allocation2 + $0x58] sm:$0xff] %v5886_v4  ;;  %372 = vmatpush1.msra.mxu0 %v361_v6  ;;  %5450 = vmatpush1.msra.mxu1 %v361_v6  ;;  %v353_v14 = vld [vmem:[#allocation7 + $0x90] sm:$0xff]  ;;  %v352_v15 = vld [vmem:[#allocation7 + $0x88] sm:$0xff] }
  0x80   : > { %894 = vst [vmem:[#allocation2 + $0x60] sm:$0xff] %v5886_v4  ;;  %895 = vst [vmem:[#allocation2 + $0x68] sm:$0xff] %v5886_v4  ;;  %373 = vmatprep.subr.mxu0 %v360_v7  ;;  %5435 = vmatprep.subr.mxu1 %v360_v7  ;;  %v351_v16 = vld [vmem:[#allocation7 + $0x80] sm:$0xff]  ;;  %v350_v17 = vld [vmem:[#allocation7 + $0x78] sm:$0xff] }
  0x81   : > { %896 = vst [vmem:[#allocation2 + $0x70] sm:$0xff] %v5886_v4  ;;  %897 = vst [vmem:[#allocation2 + $0x78] sm:$0xff] %v5886_v4  ;;  %374 = vmatpush1.msra.mxu0 %v359_v8  ;;  %5451 = vmatpush1.msra.mxu1 %v359_v8  ;;  %v349_v18 = vld [vmem:[#allocation7 + $0x70] sm:$0xff]  ;;  %v348_v19 = vld [vmem:[#allocation7 + $0x68] sm:$0xff] }
  0x82   : > { %898 = vst [vmem:[#allocation2 + $0x80] sm:$0xff] %v5886_v4  ;;  %899 = vst [vmem:[#allocation2 + $0x88] sm:$0xff] %v5886_v4  ;;  %375 = vmatprep.subr.mxu0 %v358_v9  ;;  %5436 = vmatprep.subr.mxu1 %v358_v9  ;;  %v347_v20 = vld [vmem:[#allocation7 + $0x60] sm:$0xff]  ;;  %v346_v21 = vld [vmem:[#allocation7 + $0x58] sm:$0xff] }
  0x83   : > { %901 = vst [vmem:[#allocation2 + $0x390] sm:$0xff] %v5886_v4  ;;  %902 = vst [vmem:[#allocation2 + $0x398] sm:$0xff] %v5886_v4  ;;  %376 = vmatpush1.msra.mxu0 %v357_v10  ;;  %5452 = vmatpush1.msra.mxu1 %v357_v10  ;;  %v345_v22 = vld [vmem:[#allocation7 + $0x50] sm:$0xff]  ;;  %v344_v23 = vld [vmem:[#allocation7 + $0x48] sm:$0xff] }
  0x84   : > { %903 = vst [vmem:[#allocation2 + $0x3a0] sm:$0xff] %v5886_v4  ;;  %904 = vst [vmem:[#allocation2 + $0x3a8] sm:$0xff] %v5886_v4  ;;  %377 = vmatprep.subr.mxu0 %v356_v11  ;;  %5437 = vmatprep.subr.mxu1 %v356_v11  ;;  %v343_v24 = vld [vmem:[#allocation7 + $0x40] sm:$0xff]  ;;  %v342_v25 = vld [vmem:[#allocation7 + $0x38] sm:$0xff] }
  0x85   : > { %905 = vst [vmem:[#allocation2 + $0x3b0] sm:$0xff] %v5886_v4  ;;  %906 = vst [vmem:[#allocation2 + $0x3b8] sm:$0xff] %v5886_v4  ;;  %378 = vmatpush1.msra.mxu0 %v355_v12  ;;  %5453 = vmatpush1.msra.mxu1 %v355_v12  ;;  %v341_v26 = vld [vmem:[#allocation7 + $0x30] sm:$0xff]  ;;  %v340_v27 = vld [vmem:[#allocation7 + $0x28] sm:$0xff] }
  0x86   : > { %907 = vst [vmem:[#allocation2 + $0x3c0] sm:$0xff] %v5886_v4  ;;  %908 = vst [vmem:[#allocation2 + $0x3c8] sm:$0xff] %v5886_v4  ;;  %379 = vmatprep.subr.mxu0 %v354_v13  ;;  %5438 = vmatprep.subr.mxu1 %v354_v13  ;;  %v339_v28 = vld [vmem:[#allocation7 + $0x20] sm:$0xff]  ;;  %v338_v29 = vld [vmem:[#allocation7 + $0x18] sm:$0xff] }
  0x87   : > { %909 = vst [vmem:[#allocation2 + $0x3d0] sm:$0xff] %v5886_v4  ;;  %910 = vst [vmem:[#allocation2 + $0x3d8] sm:$0xff] %v5886_v4  ;;  %380 = vmatpush1.msra.mxu0 %v353_v14  ;;  %5454 = vmatpush1.msra.mxu1 %v353_v14  ;;  %v337_v30 = vld [vmem:[#allocation7 + $0x10] sm:$0xff]  ;;  %v336_v31 = vld [vmem:[#allocation7 + $0x8] sm:$0xff] }
  0x88   : > { %911 = vst [vmem:[#allocation2 + $0x3e0] sm:$0xff] %v5886_v4  ;;  %912 = vst [vmem:[#allocation2 + $0x3e8] sm:$0xff] %v5886_v4  ;;  %381 = vmatprep.subr.mxu0 %v352_v15  ;;  %5439 = vmatprep.subr.mxu1 %v352_v15  ;;  %v335_v32 = vld [vmem:[#allocation7] sm:$0xff]  ;;  %v304_v35 = vld [vmem:[%s6075_s10 + $0x8] sm:$0xff] }
  0x89   : > { %913 = vst [vmem:[#allocation2 + $0x3f0] sm:$0xff] %v5886_v4  ;;  %914 = vst [vmem:[#allocation2 + $0x3f8] sm:$0xff] %v5886_v4  ;;  %382 = vmatpush1.msra.mxu0 %v351_v16  ;;  %5455 = vmatpush1.msra.mxu1 %v351_v16  ;;  %v303_v33 = vld [vmem:[%s6075_s10] sm:$0xff]  ;;  %v320_v36 = vld [vmem:[%s6075_s10 + $0x88] sm:$0xff] }
  0x8a   : > { %915 = vst [vmem:[#allocation2 + $0x400] sm:$0xff] %v5886_v4  ;;  %916 = vst [vmem:[#allocation2 + $0x408] sm:$0xff] %v5886_v4  ;;  %383 = vmatprep.subr.mxu0 %v350_v17  ;;  %5440 = vmatprep.subr.mxu1 %v350_v17  ;;  %v319_v34 = vld [vmem:[%s6075_s10 + $0x80] sm:$0xff]  ;;  %v305_v37 = vld [vmem:[%s6075_s10 + $0x10] sm:$0xff] }
  0x8b   : > { %917 = vst [vmem:[#allocation2 + $0x410] sm:$0xff] %v5886_v4  ;;  %918 = vst [vmem:[#allocation2 + $0x418] sm:$0xff] %v5886_v4  ;;  %384 = vmatpush1.msra.mxu0 %v349_v18  ;;  %5456 = vmatpush1.msra.mxu1 %v349_v18  ;;  %v321_v38 = vld [vmem:[%s6075_s10 + $0x90] sm:$0xff]  ;;  %v306_v39 = vld [vmem:[%s6075_s10 + $0x18] sm:$0xff] }
  0x8c   : > { %920 = vst [vmem:[#allocation2 + $0xb0] sm:$0xff] %v5886_v4  ;;  %921 = vst [vmem:[#allocation2 + $0xb8] sm:$0xff] %v5886_v4  ;;  %385 = vmatprep.subr.mxu0 %v348_v19  ;;  %5441 = vmatprep.subr.mxu1 %v348_v19  ;;  %v322_v40 = vld [vmem:[%s6075_s10 + $0x98] sm:$0xff]  ;;  %v307_v41 = vld [vmem:[%s6075_s10 + $0x20] sm:$0xff]  ;;  %v6265_v19 = vstv %s301_s24 }
  0x8d   : > { %922 = vst [vmem:[#allocation2 + $0xe0] sm:$0xff] %v5886_v4  ;;  %923 = vst [vmem:[#allocation2 + $0xe8] sm:$0xff] %v5886_v4  ;;  %386 = vmatpush1.msra.mxu0 %v347_v20  ;;  %5457 = vmatpush1.msra.mxu1 %v347_v20  ;;  %v323_v42 = vld [vmem:[%s6075_s10 + $0xa0] sm:$0xff]  ;;  %v308_v43 = vld [vmem:[%s6075_s10 + $0x28] sm:$0xff] }
  0x8e   : > { %924 = vst [vmem:[#allocation2 + $0x110] sm:$0xff] %v5886_v4  ;;  %925 = vst [vmem:[#allocation2 + $0x118] sm:$0xff] %v5886_v4  ;;  %387 = vmatprep.subr.mxu0 %v346_v21  ;;  %5442 = vmatprep.subr.mxu1 %v346_v21  ;;  %v324_v44 = vld [vmem:[%s6075_s10 + $0xa8] sm:$0xff]  ;;  %v309_v45 = vld [vmem:[%s6075_s10 + $0x30] sm:$0xff] }
  0x8f   : > { %926 = vst [vmem:[#allocation2 + $0x140] sm:$0xff] %v5886_v4  ;;  %927 = vst [vmem:[#allocation2 + $0x148] sm:$0xff] %v5886_v4  ;;  %388 = vmatpush1.msra.mxu0 %v345_v22  ;;  %5458 = vmatpush1.msra.mxu1 %v345_v22  ;;  %v325_v46 = vld [vmem:[%s6075_s10 + $0xb0] sm:$0xff]  ;;  %v310_v47 = vld [vmem:[%s6075_s10 + $0x38] sm:$0xff] }
  0x90   : > { %928 = vst [vmem:[#allocation2 + $0x170] sm:$0xff] %v5886_v4  ;;  %929 = vst [vmem:[#allocation2 + $0x178] sm:$0xff] %v5886_v4  ;;  %389 = vmatprep.subr.mxu0 %v344_v23  ;;  %5443 = vmatprep.subr.mxu1 %v344_v23  ;;  %v326_v48 = vld [vmem:[%s6075_s10 + $0xb8] sm:$0xff]  ;;  %v311_v49 = vld [vmem:[%s6075_s10 + $0x40] sm:$0xff] }
  0x91   : > { %930 = vst [vmem:[#allocation2 + $0x1a0] sm:$0xff] %v5886_v4  ;;  %931 = vst [vmem:[#allocation2 + $0x1a8] sm:$0xff] %v5886_v4  ;;  %390 = vmatpush1.msra.mxu0 %v343_v24  ;;  %5459 = vmatpush1.msra.mxu1 %v343_v24  ;;  %v327_v50 = vld [vmem:[%s6075_s10 + $0xc0] sm:$0xff]  ;;  %v312_v51 = vld [vmem:[%s6075_s10 + $0x48] sm:$0xff] }
  0x92   : > { %932 = vst [vmem:[#allocation2 + $0x1d0] sm:$0xff] %v5886_v4  ;;  %933 = vst [vmem:[#allocation2 + $0x1d8] sm:$0xff] %v5886_v4  ;;  %391 = vmatprep.subr.mxu0 %v342_v25  ;;  %5444 = vmatprep.subr.mxu1 %v342_v25  ;;  %v328_v52 = vld [vmem:[%s6075_s10 + $0xc8] sm:$0xff]  ;;  %v313_v53 = vld [vmem:[%s6075_s10 + $0x50] sm:$0xff] }
  0x93   : > { %934 = vst [vmem:[#allocation2 + $0x200] sm:$0xff] %v5886_v4  ;;  %935 = vst [vmem:[#allocation2 + $0x208] sm:$0xff] %v5886_v4  ;;  %392 = vmatpush1.msra.mxu0 %v341_v26  ;;  %5460 = vmatpush1.msra.mxu1 %v341_v26  ;;  %v329_v54 = vld [vmem:[%s6075_s10 + $0xd0] sm:$0xff]  ;;  %v314_v55 = vld [vmem:[%s6075_s10 + $0x58] sm:$0xff]  ;;  %v6267_v26 = vstv %s5205_s26 }
  0x94   : > { %936 = vst [vmem:[#allocation2 + $0x230] sm:$0xff] %v5886_v4  ;;  %937 = vst [vmem:[#allocation2 + $0x238] sm:$0xff] %v5886_v4  ;;  %393 = vmatprep.subr.mxu0 %v340_v27  ;;  %5445 = vmatprep.subr.mxu1 %v340_v27  ;;  %v330_v56 = vld [vmem:[%s6075_s10 + $0xd8] sm:$0xff]  ;;  %v315_v57 = vld [vmem:[%s6075_s10 + $0x60] sm:$0xff] }
  0x95   : > { %938 = vst [vmem:[#allocation2 + $0x260] sm:$0xff] %v5886_v4  ;;  %939 = vst [vmem:[#allocation2 + $0x268] sm:$0xff] %v5886_v4  ;;  %394 = vmatpush1.msra.mxu0 %v339_v28  ;;  %5461 = vmatpush1.msra.mxu1 %v339_v28  ;;  %v331_v58 = vld [vmem:[%s6075_s10 + $0xe0] sm:$0xff]  ;;  %v316_v59 = vld [vmem:[%s6075_s10 + $0x68] sm:$0xff] }
  0x96   : > { %940 = vst [vmem:[#allocation2 + $0x290] sm:$0xff] %v5886_v4  ;;  %941 = vst [vmem:[#allocation2 + $0x298] sm:$0xff] %v5886_v4  ;;  %395 = vmatprep.subr.mxu0 %v338_v29  ;;  %5446 = vmatprep.subr.mxu1 %v338_v29  ;;  %v332_v60 = vld [vmem:[%s6075_s10 + $0xe8] sm:$0xff]  ;;  %v317_v61 = vld [vmem:[%s6075_s10 + $0x70] sm:$0xff] }
  0x97   : > { %942 = vst [vmem:[#allocation2 + $0x2c0] sm:$0xff] %v5886_v4  ;;  %943 = vst [vmem:[#allocation2 + $0x2c8] sm:$0xff] %v5886_v4  ;;  %396 = vmatpush1.msra.mxu0 %v337_v30  ;;  %5462 = vmatpush1.msra.mxu1 %v337_v30  ;;  %v333_v62 = vld [vmem:[%s6075_s10 + $0xf0] sm:$0xff]  ;;  %v318_v63 = vld [vmem:[%s6075_s10 + $0x78] sm:$0xff] }
  0x98   : > { %944 = vst [vmem:[#allocation2 + $0x2f0] sm:$0xff] %v5886_v4  ;;  %945 = vst [vmem:[#allocation2 + $0x2f8] sm:$0xff] %v5886_v4  ;;  %397 = vmatprep.subr.mxu0 %v336_v31  ;;  %5447 = vmatprep.subr.mxu1 %v336_v31  ;;  %v334_v0 = vld [vmem:[%s6075_s10 + $0xf8] sm:$0xff]  ;;  %v6237_v1 = vld [vmem:[#allocation9] sm:$0xff] }
  0x99   : > { %946 = vst [vmem:[#allocation2 + $0x320] sm:$0xff] %v5886_v4  ;;  %947 = vst [vmem:[#allocation2 + $0x328] sm:$0xff] %v5886_v4  ;;  %398 = vmatpush1.msra.mxu0 %v335_v32  ;;  %5463 = vmatpush1.msra.mxu1 %v335_v32  ;;  %v6239_v2 = vld [vmem:[#allocation9 + $0x8] sm:$0xff]  ;;  %v6241_v3 = vld [vmem:[#allocation9 + $0x10] sm:$0xff] }
  0x9a   : > { %948 = vst [vmem:[#allocation2 + $0x350] sm:$0xff] %v5886_v4  ;;  %949 = vst [vmem:[#allocation2 + $0x358] sm:$0xff] %v5886_v4  ;;  %431 = vmatprep.mubr.f32.mxu0 %v5886_v4  ;;  %527 = vmatprep.mubr.f32.mxu1 %v5886_v4  ;;  %v6243_v5 = vld [vmem:[#allocation9 + $0x18] sm:$0xff]  ;;  %v6245_v6 = vld [vmem:[#allocation9 + $0x20] sm:$0xff] }
  0x9b   : > { %950 = vst [vmem:[#allocation2 + $0x380] sm:$0xff] %v5886_v4  ;;  %951 = vst [vmem:[#allocation2 + $0x388] sm:$0xff] %v5886_v4  ;;  %432 = vmatmul.mubr.f32.vlgmr.msra.gmra.mxu0 %v303_v33  ;;  %528 = vmatmul.mubr.f32.vlgmr.msra.gmra.mxu1 %v319_v34  ;;  %v6247_v7 = vld [vmem:[#allocation9 + $0x28] sm:$0xff]  ;;  %v6249_v8 = vld [vmem:[#allocation9 + $0x30] sm:$0xff] }
  0x9c   : > { %437 = vmatprep.mubr.f32.mxu0 %v5886_v4  ;;  %533 = vmatprep.mubr.f32.mxu1 %v5886_v4  ;;  %12418 = vst [vmem:[#allocation19_spill] sm:$0xff] %v6237_v1  ;;  %12419 = vst [vmem:[#allocation20_spill] sm:$0xff] %v6239_v2  ;;  %v6251_v9 = vld [vmem:[#allocation9 + $0x38] sm:$0xff]  ;;  %v6255_v10 = vld [vmem:[#allocation9 + $0x48] sm:$0xff] }
  0x9d   : > { %12420 = vst [vmem:[#allocation21_spill] sm:$0xff] %v6241_v3  ;;  %12421 = vst [vmem:[#allocation22_spill] sm:$0xff] %v6243_v5  ;;  %v6257_v11 = vld [vmem:[#allocation9 + $0x50] sm:$0xff]  ;;  %v6259_v12 = vld [vmem:[#allocation9 + $0x58] sm:$0xff] }
  0x9e   : > { %12422 = vst [vmem:[#allocation23_spill] sm:$0xff] %v6245_v6  ;;  %12423 = vst [vmem:[#allocation24_spill] sm:$0xff] %v6247_v7  ;;  %v6261_v13 = vld [vmem:[#allocation9 + $0x60] ss:$0 sm:$0xff]  ;;  %v6263_v14 = vld [vmem:[#allocation9 + $0x68] ss:$0 sm:$0xff] }
  0x9f   : > { %438 = vmatmul.mubr.f32.gmra.mxu0 %v304_v35  ;;  %534 = vmatmul.mubr.f32.gmra.mxu1 %v320_v36  ;;  %12424 = vst [vmem:[#allocation25_spill] sm:$0xff] %v6249_v8  ;;  %12425 = vst [vmem:[#allocation26_spill] sm:$0xff] %v6251_v9 }
  0xa0   : > { %443 = vmatprep.mubr.f32.mxu0 %v5886_v4  ;;  %539 = vmatprep.mubr.f32.mxu1 %v5886_v4  ;;  %12427 = vst [vmem:[#allocation28_spill] sm:$0xff] %v6255_v10  ;;  %12428 = vst [vmem:[#allocation29_spill] sm:$0xff] %v6257_v11 }
  0xa1   : > { %12429 = vst [vmem:[#allocation30_spill] sm:$0xff] %v6259_v12  ;;  %12430 = vst [vmem:[#allocation31_spill] sm:$0xff] %v6261_v13 }
  0xa2   : > { %12431 = vst [vmem:[#allocation32_spill] sm:$0xff] %v6263_v14 }
  0xa3   : > { %444 = vmatmul.mubr.f32.gmra.mxu0 %v305_v37  ;;  %540 = vmatmul.mubr.f32.gmra.mxu1 %v321_v38 }
  0xa4   : > { %449 = vmatprep.mubr.f32.mxu0 %v5886_v4  ;;  %545 = vmatprep.mubr.f32.mxu1 %v5886_v4 }
  0xa7   : > { %450 = vmatmul.mubr.f32.gmra.mxu0 %v306_v39  ;;  %546 = vmatmul.mubr.f32.gmra.mxu1 %v322_v40 }
  0xa8   : > { %455 = vmatprep.mubr.f32.mxu0 %v5886_v4  ;;  %551 = vmatprep.mubr.f32.mxu1 %v5886_v4 }
  0xab   : > { %456 = vmatmul.mubr.f32.gmra.mxu0 %v307_v41  ;;  %552 = vmatmul.mubr.f32.gmra.mxu1 %v323_v42 }
  0xac   : > { %461 = vmatprep.mubr.f32.mxu0 %v5886_v4  ;;  %557 = vmatprep.mubr.f32.mxu1 %v5886_v4 }
  0xaf   : > { %462 = vmatmul.mubr.f32.gmra.mxu0 %v308_v43  ;;  %558 = vmatmul.mubr.f32.gmra.mxu1 %v324_v44 }
  0xb0   : > { %467 = vmatprep.mubr.f32.mxu0 %v5886_v4  ;;  %563 = vmatprep.mubr.f32.mxu1 %v5886_v4 }
  0xb3   : > { %468 = vmatmul.mubr.f32.gmra.mxu0 %v309_v45  ;;  %564 = vmatmul.mubr.f32.gmra.mxu1 %v325_v46 }
  0xb4   : > { %473 = vmatprep.mubr.f32.mxu0 %v5886_v4  ;;  %569 = vmatprep.mubr.f32.mxu1 %v5886_v4 }
  0xb7   : > { %474 = vmatmul.mubr.f32.gmra.mxu0 %v310_v47  ;;  %570 = vmatmul.mubr.f32.gmra.mxu1 %v326_v48 }
  0xb8   : > { %479 = vmatprep.mubr.f32.mxu0 %v5886_v4  ;;  %575 = vmatprep.mubr.f32.mxu1 %v5886_v4 }
  0xbb   : > { %480 = vmatmul.mubr.f32.gmra.mxu0 %v311_v49  ;;  %576 = vmatmul.mubr.f32.gmra.mxu1 %v327_v50 }
  0xbc   : > { %485 = vmatprep.mubr.f32.mxu0 %v5886_v4  ;;  %581 = vmatprep.mubr.f32.mxu1 %v5886_v4 }
  0xbf   : > { %486 = vmatmul.mubr.f32.gmra.mxu0 %v312_v51  ;;  %582 = vmatmul.mubr.f32.gmra.mxu1 %v328_v52 }
  0xc0   : > { %491 = vmatprep.mubr.f32.mxu0 %v5886_v4  ;;  %587 = vmatprep.mubr.f32.mxu1 %v5886_v4 }
  0xc3   : > { %492 = vmatmul.mubr.f32.gmra.mxu0 %v313_v53  ;;  %588 = vmatmul.mubr.f32.gmra.mxu1 %v329_v54 }
  0xc4   : > { %497 = vmatprep.mubr.f32.mxu0 %v5886_v4  ;;  %593 = vmatprep.mubr.f32.mxu1 %v5886_v4 }
  0xc7   : > { %498 = vmatmul.mubr.f32.gmra.mxu0 %v314_v55  ;;  %594 = vmatmul.mubr.f32.gmra.mxu1 %v330_v56 }
  0xc8   : > { %503 = vmatprep.mubr.f32.mxu0 %v5886_v4  ;;  %599 = vmatprep.mubr.f32.mxu1 %v5886_v4 }
  0xcb   : > { %504 = vmatmul.mubr.f32.gmra.mxu0 %v315_v57  ;;  %600 = vmatmul.mubr.f32.gmra.mxu1 %v331_v58 }
  0xcc   : > { %509 = vmatprep.mubr.f32.mxu0 %v5886_v4  ;;  %605 = vmatprep.mubr.f32.mxu1 %v5886_v4 }
  0xcf   : > { %510 = vmatmul.mubr.f32.gmra.mxu0 %v316_v59  ;;  %606 = vmatmul.mubr.f32.gmra.mxu1 %v332_v60 }
  0xd0   : > { %515 = vmatprep.mubr.f32.mxu0 %v5886_v4  ;;  %611 = vmatprep.mubr.f32.mxu1 %v5886_v4 }
  0xd3   : > { %516 = vmatmul.mubr.f32.gmra.mxu0 %v317_v61  ;;  %612 = vmatmul.mubr.f32.gmra.mxu1 %v333_v62 }
  0xd4   : > { %521 = vmatprep.mubr.f32.mxu0 %v5886_v4  ;;  %617 = vmatprep.mubr.f32.mxu1 %v5886_v4  ;;  %v6253_v4 = vld [vmem:[#allocation9 + $0x40] sm:$0xff] }
  0xd5   : > { %12426 = vst [vmem:[#allocation27_spill] sm:$0xff] %v6253_v4 }
  0xd7   : > { %522 = vmatmul.mubr.f32.gmra.mxu0 %v318_v63  ;;  %618 = vmatmul.mubr.f32.gmra.mxu1 %v334_v0 }
 0x15b   : > { %v433_v15 = vpop.f32.mrf.mxu0  ;;  %v529_v16 = vpop.f32.mrf.mxu1 }
 0x15c   : > { %v624_v17 = vmax.f32 %v433_v15, 0.0  ;;  %v656_v18 = vmax.f32 %v529_v16, 0.0 }
 0x15d   : > { %v435_v20 = vpop.f32.mrf.mxu0  ;;  %v531_v21 = vpop.f32.mrf.mxu1 }
 0x15e   : > { %v688_v22 = vmul.f32 %v624_v17, %v624_v17  ;;  %v720_v23 = vmul.f32 %v656_v18, %v656_v18  ;;  %v625_v24 = vmax.f32 %v435_v20, 0.0  ;;  %v657_v25 = vmax.f32 %v531_v21, 0.0 }
 0x15f   : > { %v439_v27 = vpop.f32.mrf.mxu0  ;;  %v535_v28 = vpop.f32.mrf.mxu1 }
 0x160   : > { %v753_v29 = vmul.f32 %v6265_v19, %v688_v22  ;;  %v785_v30 = vmul.f32 %v6265_v19, %v720_v23  ;;  %v689_v31 = vmul.f32 %v625_v24, %v625_v24  ;;  %v721_v32 = vmul.f32 %v657_v25, %v657_v25 }
 0x161   : > { %v626_v33 = vmax.f32 %v439_v27, 0.0  ;;  %v658_v34 = vmax.f32 %v535_v28, 0.0  ;;  %v441_v35 = vpop.f32.mrf.mxu0  ;;  %v537_v36 = vpop.f32.mrf.mxu1 }
 0x162   : > { %v818_v37 = vadd.f32 %v6267_v26, %v753_v29  ;;  %v850_v38 = vadd.f32 %v6267_v26, %v785_v30  ;;  %v754_v39 = vmul.f32 %v6265_v19, %v689_v31  ;;  %v786_v40 = vmul.f32 %v6265_v19, %v721_v32 }
 0x163   : > { %v690_v41 = vmul.f32 %v626_v33, %v626_v33  ;;  %v722_v42 = vmul.f32 %v658_v34, %v658_v34  ;;  %v627_v43 = vmax.f32 %v441_v35, 0.0  ;;  %v659_v44 = vmax.f32 %v537_v36, 0.0  ;;  %v445_v45 = vpop.f32.mrf.mxu0  ;;  %v541_v46 = vpop.f32.mrf.mxu1 }
 0x164   : > { %952 = vst [vmem:[#allocation2 + $0x90] sm:$0xff] %v818_v37  ;;  %984 = vst [vmem:[#allocation2 + $0x210] sm:$0xff] %v850_v38  ;;  %v819_v47 = vadd.f32 %v6267_v26, %v754_v39  ;;  %v851_v48 = vadd.f32 %v6267_v26, %v786_v40  ;;  %v628_v49 = vmax.f32 %v445_v45, 0.0  ;;  %v660_v50 = vmax.f32 %v541_v46, 0.0 }
 0x165   : > { %v755_v51 = vmul.f32 %v6265_v19, %v690_v41  ;;  %v787_v52 = vmul.f32 %v6265_v19, %v722_v42  ;;  %v691_v53 = vmul.f32 %v627_v43, %v627_v43  ;;  %v723_v54 = vmul.f32 %v659_v44, %v659_v44  ;;  %v447_v55 = vpop.f32.mrf.mxu0  ;;  %v543_v56 = vpop.f32.mrf.mxu1 }
 0x166   : > { %953 = vst [vmem:[#allocation2 + $0x98] sm:$0xff] %v819_v47  ;;  %985 = vst [vmem:[#allocation2 + $0x218] sm:$0xff] %v851_v48  ;;  %v692_v57 = vmul.f32 %v628_v49, %v628_v49  ;;  %v724_v58 = vmul.f32 %v660_v50, %v660_v50  ;;  %v629_v59 = vmax.f32 %v447_v55, 0.0  ;;  %v661_v60 = vmax.f32 %v543_v56, 0.0 }
 0x167   : > { %v820_v61 = vadd.f32 %v6267_v26, %v755_v51  ;;  %v852_v62 = vadd.f32 %v6267_v26, %v787_v52  ;;  %v756_v63 = vmul.f32 %v6265_v19, %v691_v53  ;;  %v788_v0 = vmul.f32 %v6265_v19, %v723_v54  ;;  %v451_v15 = vpop.f32.mrf.mxu0  ;;  %v547_v16 = vpop.f32.mrf.mxu1 }
 0x168   : > { %v757_v17 = vmul.f32 %v6265_v19, %v692_v57  ;;  %v789_v18 = vmul.f32 %v6265_v19, %v724_v58  ;;  %v693_v20 = vmul.f32 %v629_v59, %v629_v59  ;;  %v725_v21 = vmul.f32 %v661_v60, %v661_v60 }
 0x169   : > { %954 = vst [vmem:[#allocation2 + $0xa0] sm:$0xff] %v820_v61  ;;  %986 = vst [vmem:[#allocation2 + $0x220] sm:$0xff] %v852_v62  ;;  %v821_v22 = vadd.f32 %v6267_v26, %v756_v63  ;;  %v853_v23 = vadd.f32 %v6267_v26, %v788_v0  ;;  %v630_v24 = vmax.f32 %v451_v15, 0.0  ;;  %v662_v25 = vmax.f32 %v547_v16, 0.0  ;;  %v453_v27 = vpop.f32.mrf.mxu0  ;;  %v549_v28 = vpop.f32.mrf.mxu1 }
 0x16a   : > { %v822_v29 = vadd.f32 %v6267_v26, %v757_v17  ;;  %v854_v30 = vadd.f32 %v6267_v26, %v789_v18  ;;  %v758_v31 = vmul.f32 %v6265_v19, %v693_v20  ;;  %v790_v32 = vmul.f32 %v6265_v19, %v725_v21 }
 0x16b   : > { %955 = vst [vmem:[#allocation2 + $0xa8] sm:$0xff] %v821_v22  ;;  %987 = vst [vmem:[#allocation2 + $0x228] sm:$0xff] %v853_v23  ;;  %v694_v33 = vmul.f32 %v630_v24, %v630_v24  ;;  %v726_v34 = vmul.f32 %v662_v25, %v662_v25  ;;  %v631_v35 = vmax.f32 %v453_v27, 0.0  ;;  %v663_v36 = vmax.f32 %v549_v28, 0.0  ;;  %v457_v37 = vpop.f32.mrf.mxu0  ;;  %v553_v38 = vpop.f32.mrf.mxu1 }
 0x16c   : > { %956 = vst [vmem:[#allocation2 + $0xc0] sm:$0xff] %v822_v29  ;;  %988 = vst [vmem:[#allocation2 + $0x240] sm:$0xff] %v854_v30  ;;  %v823_v39 = vadd.f32 %v6267_v26, %v758_v31  ;;  %v855_v40 = vadd.f32 %v6267_v26, %v790_v32  ;;  %v632_v41 = vmax.f32 %v457_v37, 0.0  ;;  %v664_v42 = vmax.f32 %v553_v38, 0.0 }
 0x16d   : > { %v759_v43 = vmul.f32 %v6265_v19, %v694_v33  ;;  %v791_v44 = vmul.f32 %v6265_v19, %v726_v34  ;;  %v695_v45 = vmul.f32 %v631_v35, %v631_v35  ;;  %v727_v46 = vmul.f32 %v663_v36, %v663_v36  ;;  %v459_v47 = vpop.f32.mrf.mxu0  ;;  %v555_v48 = vpop.f32.mrf.mxu1 }
 0x16e   : > { %957 = vst [vmem:[#allocation2 + $0xc8] sm:$0xff] %v823_v39  ;;  %989 = vst [vmem:[#allocation2 + $0x248] sm:$0xff] %v855_v40  ;;  %v696_v49 = vmul.f32 %v632_v41, %v632_v41  ;;  %v728_v50 = vmul.f32 %v664_v42, %v664_v42  ;;  %v633_v51 = vmax.f32 %v459_v47, 0.0  ;;  %v665_v52 = vmax.f32 %v555_v48, 0.0 }
 0x16f   : > { %v824_v53 = vadd.f32 %v6267_v26, %v759_v43  ;;  %v856_v54 = vadd.f32 %v6267_v26, %v791_v44  ;;  %v760_v55 = vmul.f32 %v6265_v19, %v695_v45  ;;  %v792_v56 = vmul.f32 %v6265_v19, %v727_v46  ;;  %v463_v57 = vpop.f32.mrf.mxu0  ;;  %v559_v58 = vpop.f32.mrf.mxu1 }
 0x170   : > { %v761_v59 = vmul.f32 %v6265_v19, %v696_v49  ;;  %v793_v60 = vmul.f32 %v6265_v19, %v728_v50  ;;  %v697_v61 = vmul.f32 %v633_v51, %v633_v51  ;;  %v729_v62 = vmul.f32 %v665_v52, %v665_v52 }
 0x171   : > { %958 = vst [vmem:[#allocation2 + $0xd0] sm:$0xff] %v824_v53  ;;  %990 = vst [vmem:[#allocation2 + $0x250] sm:$0xff] %v856_v54  ;;  %v825_v63 = vadd.f32 %v6267_v26, %v760_v55  ;;  %v857_v0 = vadd.f32 %v6267_v26, %v792_v56  ;;  %v634_v15 = vmax.f32 %v463_v57, 0.0  ;;  %v666_v16 = vmax.f32 %v559_v58, 0.0  ;;  %v465_v17 = vpop.f32.mrf.mxu0  ;;  %v561_v18 = vpop.f32.mrf.mxu1 }
 0x172   : > { %v826_v20 = vadd.f32 %v6267_v26, %v761_v59  ;;  %v858_v21 = vadd.f32 %v6267_v26, %v793_v60  ;;  %v762_v22 = vmul.f32 %v6265_v19, %v697_v61  ;;  %v794_v23 = vmul.f32 %v6265_v19, %v729_v62 }
 0x173   : > { %959 = vst [vmem:[#allocation2 + $0xd8] sm:$0xff] %v825_v63  ;;  %991 = vst [vmem:[#allocation2 + $0x258] sm:$0xff] %v857_v0  ;;  %v698_v24 = vmul.f32 %v634_v15, %v634_v15  ;;  %v730_v25 = vmul.f32 %v666_v16, %v666_v16  ;;  %v635_v27 = vmax.f32 %v465_v17, 0.0  ;;  %v667_v28 = vmax.f32 %v561_v18, 0.0  ;;  %v469_v29 = vpop.f32.mrf.mxu0  ;;  %v565_v30 = vpop.f32.mrf.mxu1 }
 0x174   : > { %960 = vst [vmem:[#allocation2 + $0xf0] sm:$0xff] %v826_v20  ;;  %992 = vst [vmem:[#allocation2 + $0x270] sm:$0xff] %v858_v21  ;;  %v827_v31 = vadd.f32 %v6267_v26, %v762_v22  ;;  %v859_v32 = vadd.f32 %v6267_v26, %v794_v23  ;;  %v636_v33 = vmax.f32 %v469_v29, 0.0  ;;  %v668_v34 = vmax.f32 %v565_v30, 0.0 }
 0x175   : > { %v763_v35 = vmul.f32 %v6265_v19, %v698_v24  ;;  %v795_v36 = vmul.f32 %v6265_v19, %v730_v25  ;;  %v699_v37 = vmul.f32 %v635_v27, %v635_v27  ;;  %v731_v38 = vmul.f32 %v667_v28, %v667_v28  ;;  %v471_v39 = vpop.f32.mrf.mxu0  ;;  %v567_v40 = vpop.f32.mrf.mxu1 }
 0x176   : > { %961 = vst [vmem:[#allocation2 + $0xf8] sm:$0xff] %v827_v31  ;;  %993 = vst [vmem:[#allocation2 + $0x278] sm:$0xff] %v859_v32  ;;  %v700_v41 = vmul.f32 %v636_v33, %v636_v33  ;;  %v732_v42 = vmul.f32 %v668_v34, %v668_v34  ;;  %v637_v43 = vmax.f32 %v471_v39, 0.0  ;;  %v669_v44 = vmax.f32 %v567_v40, 0.0 }
 0x177   : > { %v828_v45 = vadd.f32 %v6267_v26, %v763_v35  ;;  %v860_v46 = vadd.f32 %v6267_v26, %v795_v36  ;;  %v764_v47 = vmul.f32 %v6265_v19, %v699_v37  ;;  %v796_v48 = vmul.f32 %v6265_v19, %v731_v38  ;;  %v475_v49 = vpop.f32.mrf.mxu0  ;;  %v571_v50 = vpop.f32.mrf.mxu1 }
 0x178   : > { %v765_v51 = vmul.f32 %v6265_v19, %v700_v41  ;;  %v797_v52 = vmul.f32 %v6265_v19, %v732_v42  ;;  %v701_v53 = vmul.f32 %v637_v43, %v637_v43  ;;  %v733_v54 = vmul.f32 %v669_v44, %v669_v44 }
 0x179   : > { %962 = vst [vmem:[#allocation2 + $0x100] sm:$0xff] %v828_v45  ;;  %994 = vst [vmem:[#allocation2 + $0x280] sm:$0xff] %v860_v46  ;;  %v829_v55 = vadd.f32 %v6267_v26, %v764_v47  ;;  %v861_v56 = vadd.f32 %v6267_v26, %v796_v48  ;;  %v638_v57 = vmax.f32 %v475_v49, 0.0  ;;  %v670_v58 = vmax.f32 %v571_v50, 0.0  ;;  %v477_v59 = vpop.f32.mrf.mxu0  ;;  %v573_v60 = vpop.f32.mrf.mxu1 }
 0x17a   : > { %v830_v61 = vadd.f32 %v6267_v26, %v765_v51  ;;  %v862_v62 = vadd.f32 %v6267_v26, %v797_v52  ;;  %v766_v63 = vmul.f32 %v6265_v19, %v701_v53  ;;  %v798_v0 = vmul.f32 %v6265_v19, %v733_v54 }
 0x17b   : > { %963 = vst [vmem:[#allocation2 + $0x108] sm:$0xff] %v829_v55  ;;  %995 = vst [vmem:[#allocation2 + $0x288] sm:$0xff] %v861_v56  ;;  %v702_v15 = vmul.f32 %v638_v57, %v638_v57  ;;  %v734_v16 = vmul.f32 %v670_v58, %v670_v58  ;;  %v639_v17 = vmax.f32 %v477_v59, 0.0  ;;  %v671_v18 = vmax.f32 %v573_v60, 0.0  ;;  %v481_v20 = vpop.f32.mrf.mxu0  ;;  %v577_v21 = vpop.f32.mrf.mxu1 }
 0x17c   : > { %964 = vst [vmem:[#allocation2 + $0x120] sm:$0xff] %v830_v61  ;;  %996 = vst [vmem:[#allocation2 + $0x2a0] sm:$0xff] %v862_v62  ;;  %v831_v22 = vadd.f32 %v6267_v26, %v766_v63  ;;  %v863_v23 = vadd.f32 %v6267_v26, %v798_v0  ;;  %v640_v24 = vmax.f32 %v481_v20, 0.0  ;;  %v672_v25 = vmax.f32 %v577_v21, 0.0 }
 0x17d   : > { %v767_v27 = vmul.f32 %v6265_v19, %v702_v15  ;;  %v799_v28 = vmul.f32 %v6265_v19, %v734_v16  ;;  %v703_v29 = vmul.f32 %v639_v17, %v639_v17  ;;  %v735_v30 = vmul.f32 %v671_v18, %v671_v18  ;;  %v483_v31 = vpop.f32.mrf.mxu0  ;;  %v579_v32 = vpop.f32.mrf.mxu1 }
 0x17e   : > { %965 = vst [vmem:[#allocation2 + $0x128] sm:$0xff] %v831_v22  ;;  %997 = vst [vmem:[#allocation2 + $0x2a8] sm:$0xff] %v863_v23  ;;  %v704_v33 = vmul.f32 %v640_v24, %v640_v24  ;;  %v736_v34 = vmul.f32 %v672_v25, %v672_v25  ;;  %v641_v35 = vmax.f32 %v483_v31, 0.0  ;;  %v673_v36 = vmax.f32 %v579_v32, 0.0 }
 0x17f   : > { %v832_v37 = vadd.f32 %v6267_v26, %v767_v27  ;;  %v864_v38 = vadd.f32 %v6267_v26, %v799_v28  ;;  %v768_v39 = vmul.f32 %v6265_v19, %v703_v29  ;;  %v800_v40 = vmul.f32 %v6265_v19, %v735_v30  ;;  %v487_v41 = vpop.f32.mrf.mxu0  ;;  %v583_v42 = vpop.f32.mrf.mxu1 }
 0x180   : > { %v769_v43 = vmul.f32 %v6265_v19, %v704_v33  ;;  %v801_v44 = vmul.f32 %v6265_v19, %v736_v34  ;;  %v705_v45 = vmul.f32 %v641_v35, %v641_v35  ;;  %v737_v46 = vmul.f32 %v673_v36, %v673_v36 }
 0x181   : > { %966 = vst [vmem:[#allocation2 + $0x130] sm:$0xff] %v832_v37  ;;  %998 = vst [vmem:[#allocation2 + $0x2b0] sm:$0xff] %v864_v38  ;;  %v833_v47 = vadd.f32 %v6267_v26, %v768_v39  ;;  %v865_v48 = vadd.f32 %v6267_v26, %v800_v40  ;;  %v642_v49 = vmax.f32 %v487_v41, 0.0  ;;  %v674_v50 = vmax.f32 %v583_v42, 0.0  ;;  %v489_v51 = vpop.f32.mrf.mxu0  ;;  %v585_v52 = vpop.f32.mrf.mxu1 }
 0x182   : > { %v834_v53 = vadd.f32 %v6267_v26, %v769_v43  ;;  %v866_v54 = vadd.f32 %v6267_v26, %v801_v44  ;;  %v770_v55 = vmul.f32 %v6265_v19, %v705_v45  ;;  %v802_v56 = vmul.f32 %v6265_v19, %v737_v46 }
 0x183   : > { %967 = vst [vmem:[#allocation2 + $0x138] sm:$0xff] %v833_v47  ;;  %999 = vst [vmem:[#allocation2 + $0x2b8] sm:$0xff] %v865_v48  ;;  %v706_v57 = vmul.f32 %v642_v49, %v642_v49  ;;  %v738_v58 = vmul.f32 %v674_v50, %v674_v50  ;;  %v643_v59 = vmax.f32 %v489_v51, 0.0  ;;  %v675_v60 = vmax.f32 %v585_v52, 0.0  ;;  %v493_v61 = vpop.f32.mrf.mxu0  ;;  %v589_v62 = vpop.f32.mrf.mxu1 }
 0x184   : > { %968 = vst [vmem:[#allocation2 + $0x150] sm:$0xff] %v834_v53  ;;  %1000 = vst [vmem:[#allocation2 + $0x2d0] sm:$0xff] %v866_v54  ;;  %v835_v63 = vadd.f32 %v6267_v26, %v770_v55  ;;  %v867_v0 = vadd.f32 %v6267_v26, %v802_v56  ;;  %v644_v15 = vmax.f32 %v493_v61, 0.0  ;;  %v676_v16 = vmax.f32 %v589_v62, 0.0 }
 0x185   : > { %v771_v17 = vmul.f32 %v6265_v19, %v706_v57  ;;  %v803_v18 = vmul.f32 %v6265_v19, %v738_v58  ;;  %v707_v20 = vmul.f32 %v643_v59, %v643_v59  ;;  %v739_v21 = vmul.f32 %v675_v60, %v675_v60  ;;  %v495_v22 = vpop.f32.mrf.mxu0  ;;  %v591_v23 = vpop.f32.mrf.mxu1 }
 0x186   : > { %969 = vst [vmem:[#allocation2 + $0x158] sm:$0xff] %v835_v63  ;;  %1001 = vst [vmem:[#allocation2 + $0x2d8] sm:$0xff] %v867_v0  ;;  %v708_v24 = vmul.f32 %v644_v15, %v644_v15  ;;  %v740_v25 = vmul.f32 %v676_v16, %v676_v16  ;;  %v645_v27 = vmax.f32 %v495_v22, 0.0  ;;  %v677_v28 = vmax.f32 %v591_v23, 0.0 }
 0x187   : > { %v836_v29 = vadd.f32 %v6267_v26, %v771_v17  ;;  %v868_v30 = vadd.f32 %v6267_v26, %v803_v18  ;;  %v772_v31 = vmul.f32 %v6265_v19, %v707_v20  ;;  %v804_v32 = vmul.f32 %v6265_v19, %v739_v21  ;;  %v499_v33 = vpop.f32.mrf.mxu0  ;;  %v595_v34 = vpop.f32.mrf.mxu1 }
 0x188   : > { %v773_v35 = vmul.f32 %v6265_v19, %v708_v24  ;;  %v805_v36 = vmul.f32 %v6265_v19, %v740_v25  ;;  %v709_v37 = vmul.f32 %v645_v27, %v645_v27  ;;  %v741_v38 = vmul.f32 %v677_v28, %v677_v28 }
 0x189   : > { %970 = vst [vmem:[#allocation2 + $0x160] sm:$0xff] %v836_v29  ;;  %1002 = vst [vmem:[#allocation2 + $0x2e0] sm:$0xff] %v868_v30  ;;  %v837_v39 = vadd.f32 %v6267_v26, %v772_v31  ;;  %v869_v40 = vadd.f32 %v6267_v26, %v804_v32  ;;  %v646_v41 = vmax.f32 %v499_v33, 0.0  ;;  %v678_v42 = vmax.f32 %v595_v34, 0.0  ;;  %v501_v43 = vpop.f32.mrf.mxu0  ;;  %v597_v44 = vpop.f32.mrf.mxu1 }
 0x18a   : > { %v838_v45 = vadd.f32 %v6267_v26, %v773_v35  ;;  %v870_v46 = vadd.f32 %v6267_v26, %v805_v36  ;;  %v774_v47 = vmul.f32 %v6265_v19, %v709_v37  ;;  %v806_v48 = vmul.f32 %v6265_v19, %v741_v38 }
 0x18b   : > { %971 = vst [vmem:[#allocation2 + $0x168] sm:$0xff] %v837_v39  ;;  %1003 = vst [vmem:[#allocation2 + $0x2e8] sm:$0xff] %v869_v40  ;;  %v710_v49 = vmul.f32 %v646_v41, %v646_v41  ;;  %v742_v50 = vmul.f32 %v678_v42, %v678_v42  ;;  %v647_v51 = vmax.f32 %v501_v43, 0.0  ;;  %v679_v52 = vmax.f32 %v597_v44, 0.0  ;;  %v505_v53 = vpop.f32.mrf.mxu0  ;;  %v601_v54 = vpop.f32.mrf.mxu1 }
 0x18c   : > { %972 = vst [vmem:[#allocation2 + $0x180] sm:$0xff] %v838_v45  ;;  %1004 = vst [vmem:[#allocation2 + $0x300] sm:$0xff] %v870_v46  ;;  %v839_v55 = vadd.f32 %v6267_v26, %v774_v47  ;;  %v871_v56 = vadd.f32 %v6267_v26, %v806_v48  ;;  %v648_v57 = vmax.f32 %v505_v53, 0.0  ;;  %v680_v58 = vmax.f32 %v601_v54, 0.0 }
 0x18d   : > { %v775_v59 = vmul.f32 %v6265_v19, %v710_v49  ;;  %v807_v60 = vmul.f32 %v6265_v19, %v742_v50  ;;  %v711_v61 = vmul.f32 %v647_v51, %v647_v51  ;;  %v743_v62 = vmul.f32 %v679_v52, %v679_v52  ;;  %v507_v63 = vpop.f32.mrf.mxu0  ;;  %v603_v0 = vpop.f32.mrf.mxu1 }
 0x18e   : > { %973 = vst [vmem:[#allocation2 + $0x188] sm:$0xff] %v839_v55  ;;  %1005 = vst [vmem:[#allocation2 + $0x308] sm:$0xff] %v871_v56  ;;  %v712_v15 = vmul.f32 %v648_v57, %v648_v57  ;;  %v744_v16 = vmul.f32 %v680_v58, %v680_v58  ;;  %v649_v17 = vmax.f32 %v507_v63, 0.0  ;;  %v681_v18 = vmax.f32 %v603_v0, 0.0 }
 0x18f   : > { %v840_v20 = vadd.f32 %v6267_v26, %v775_v59  ;;  %v872_v21 = vadd.f32 %v6267_v26, %v807_v60  ;;  %v776_v22 = vmul.f32 %v6265_v19, %v711_v61  ;;  %v808_v23 = vmul.f32 %v6265_v19, %v743_v62  ;;  %v511_v24 = vpop.f32.mrf.mxu0  ;;  %v607_v25 = vpop.f32.mrf.mxu1 }
 0x190   : > { %v777_v27 = vmul.f32 %v6265_v19, %v712_v15  ;;  %v809_v28 = vmul.f32 %v6265_v19, %v744_v16  ;;  %v713_v29 = vmul.f32 %v649_v17, %v649_v17  ;;  %v745_v30 = vmul.f32 %v681_v18, %v681_v18 }
 0x191   : > { %974 = vst [vmem:[#allocation2 + $0x190] sm:$0xff] %v840_v20  ;;  %1006 = vst [vmem:[#allocation2 + $0x310] sm:$0xff] %v872_v21  ;;  %v841_v31 = vadd.f32 %v6267_v26, %v776_v22  ;;  %v873_v32 = vadd.f32 %v6267_v26, %v808_v23  ;;  %v650_v33 = vmax.f32 %v511_v24, 0.0  ;;  %v682_v34 = vmax.f32 %v607_v25, 0.0  ;;  %v513_v35 = vpop.f32.mrf.mxu0  ;;  %v609_v36 = vpop.f32.mrf.mxu1 }
 0x192   : > { %v842_v37 = vadd.f32 %v6267_v26, %v777_v27  ;;  %v874_v38 = vadd.f32 %v6267_v26, %v809_v28  ;;  %v778_v39 = vmul.f32 %v6265_v19, %v713_v29  ;;  %v810_v40 = vmul.f32 %v6265_v19, %v745_v30 }
 0x193   : > { %975 = vst [vmem:[#allocation2 + $0x198] sm:$0xff] %v841_v31  ;;  %1007 = vst [vmem:[#allocation2 + $0x318] sm:$0xff] %v873_v32  ;;  %v714_v41 = vmul.f32 %v650_v33, %v650_v33  ;;  %v746_v42 = vmul.f32 %v682_v34, %v682_v34  ;;  %v651_v43 = vmax.f32 %v513_v35, 0.0  ;;  %v683_v44 = vmax.f32 %v609_v36, 0.0  ;;  %v517_v45 = vpop.f32.mrf.mxu0  ;;  %v613_v46 = vpop.f32.mrf.mxu1 }
 0x194   : > { %976 = vst [vmem:[#allocation2 + $0x1b0] sm:$0xff] %v842_v37  ;;  %1008 = vst [vmem:[#allocation2 + $0x330] sm:$0xff] %v874_v38  ;;  %v843_v47 = vadd.f32 %v6267_v26, %v778_v39  ;;  %v875_v48 = vadd.f32 %v6267_v26, %v810_v40  ;;  %v652_v49 = vmax.f32 %v517_v45, 0.0  ;;  %v684_v50 = vmax.f32 %v613_v46, 0.0 }
 0x195   : > { %v779_v51 = vmul.f32 %v6265_v19, %v714_v41  ;;  %v811_v52 = vmul.f32 %v6265_v19, %v746_v42  ;;  %v715_v53 = vmul.f32 %v651_v43, %v651_v43  ;;  %v747_v54 = vmul.f32 %v683_v44, %v683_v44  ;;  %v519_v55 = vpop.f32.mrf.mxu0  ;;  %v615_v56 = vpop.f32.mrf.mxu1 }
 0x196   : > { %977 = vst [vmem:[#allocation2 + $0x1b8] sm:$0xff] %v843_v47  ;;  %1009 = vst [vmem:[#allocation2 + $0x338] sm:$0xff] %v875_v48  ;;  %v716_v57 = vmul.f32 %v652_v49, %v652_v49  ;;  %v748_v58 = vmul.f32 %v684_v50, %v684_v50  ;;  %v653_v59 = vmax.f32 %v519_v55, 0.0  ;;  %v685_v60 = vmax.f32 %v615_v56, 0.0 }
 0x197   : > { %v844_v61 = vadd.f32 %v6267_v26, %v779_v51  ;;  %v876_v62 = vadd.f32 %v6267_v26, %v811_v52  ;;  %v780_v63 = vmul.f32 %v6265_v19, %v715_v53  ;;  %v812_v0 = vmul.f32 %v6265_v19, %v747_v54  ;;  %v523_v15 = vpop.f32.mrf.mxu0  ;;  %v619_v16 = vpop.f32.mrf.mxu1 }
 0x198   : > { %v781_v17 = vmul.f32 %v6265_v19, %v716_v57  ;;  %v813_v18 = vmul.f32 %v6265_v19, %v748_v58  ;;  %v717_v20 = vmul.f32 %v653_v59, %v653_v59  ;;  %v749_v21 = vmul.f32 %v685_v60, %v685_v60 }
 0x199   : > { %978 = vst [vmem:[#allocation2 + $0x1c0] sm:$0xff] %v844_v61  ;;  %1010 = vst [vmem:[#allocation2 + $0x340] sm:$0xff] %v876_v62  ;;  %v845_v22 = vadd.f32 %v6267_v26, %v780_v63  ;;  %v877_v23 = vadd.f32 %v6267_v26, %v812_v0  ;;  %v654_v24 = vmax.f32 %v523_v15, 0.0  ;;  %v686_v25 = vmax.f32 %v619_v16, 0.0  ;;  %v525_v27 = vpop.f32.mrf.mxu0  ;;  %v621_v28 = vpop.f32.mrf.mxu1 }
 0x19a   : > { %v846_v29 = vadd.f32 %v6267_v26, %v781_v17  ;;  %v878_v30 = vadd.f32 %v6267_v26, %v813_v18  ;;  %v782_v31 = vmul.f32 %v6265_v19, %v717_v20  ;;  %v814_v32 = vmul.f32 %v6265_v19, %v749_v21 }
 0x19b   : > { %979 = vst [vmem:[#allocation2 + $0x1c8] sm:$0xff] %v845_v22  ;;  %1011 = vst [vmem:[#allocation2 + $0x348] sm:$0xff] %v877_v23  ;;  %v718_v33 = vmul.f32 %v654_v24, %v654_v24  ;;  %v750_v34 = vmul.f32 %v686_v25, %v686_v25  ;;  %v655_v35 = vmax.f32 %v525_v27, 0.0  ;;  %v687_v36 = vmax.f32 %v621_v28, 0.0 }
 0x19c   : > { %980 = vst [vmem:[#allocation2 + $0x1e0] sm:$0xff] %v846_v29  ;;  %1012 = vst [vmem:[#allocation2 + $0x360] sm:$0xff] %v878_v30  ;;  %v847_v37 = vadd.f32 %v6267_v26, %v782_v31  ;;  %v879_v38 = vadd.f32 %v6267_v26, %v814_v32 }
 0x19d   : > { %v783_v39 = vmul.f32 %v6265_v19, %v718_v33  ;;  %v815_v40 = vmul.f32 %v6265_v19, %v750_v34  ;;  %v719_v41 = vmul.f32 %v655_v35, %v655_v35  ;;  %v751_v42 = vmul.f32 %v687_v36, %v687_v36 }
 0x19e   : > { %981 = vst [vmem:[#allocation2 + $0x1e8] sm:$0xff] %v847_v37  ;;  %1013 = vst [vmem:[#allocation2 + $0x368] sm:$0xff] %v879_v38 }
 0x19f   : > { %v848_v43 = vadd.f32 %v6267_v26, %v783_v39  ;;  %v880_v44 = vadd.f32 %v6267_v26, %v815_v40  ;;  %v784_v45 = vmul.f32 %v6265_v19, %v719_v41  ;;  %v816_v46 = vmul.f32 %v6265_v19, %v751_v42 }
 0x1a1   : > { %982 = vst [vmem:[#allocation2 + $0x1f0] sm:$0xff] %v848_v43  ;;  %1014 = vst [vmem:[#allocation2 + $0x370] sm:$0xff] %v880_v44  ;;  %v849_v47 = vadd.f32 %v6267_v26, %v784_v45  ;;  %v881_v48 = vadd.f32 %v6267_v26, %v816_v46 }
 0x1a3   : > { %983 = vst [vmem:[#allocation2 + $0x1f8] sm:$0xff] %v849_v47  ;;  %1015 = vst [vmem:[#allocation2 + $0x378] sm:$0xff] %v881_v48 }
 0x1a4 LB: >> { %v12432_v12 = vld [vmem:[#allocation30_spill] sm:$0xff]  ;;  %v12433_v10 = vld [vmem:[#allocation28_spill] sm:$0xff]  ;;  %v4910_v50 = vld [vmem:[#allocation10 + $0xf0] sm:$0xff]  ;;  %v1088_v51 = vlaneseq  ;;  %s5374_s9 = smul.u32 192, %s5875_s28  ;;  %s5367_s23 = sshll.u32 %s5875_s28, 6  ;;  %s5875_s28 = sphi %s6401_s28, %s1035_s28  }
 0x1a5   : >> { %v12434_v9 = vld [vmem:[#allocation26_spill] sm:$0xff]  ;;  %v12435_v7 = vld [vmem:[#allocation24_spill] sm:$0xff]  ;;  %v4894_v26 = vld [vmem:[#allocation10 + $0x70] sm:$0xff]  ;;  %s11568_s27 = scalar_lea.vmem %s6399_s6, %s5367_s23 [#allocation13]  ;;  %s1035_s28 = sadd.s32 1, %s5875_s28  }
 0x1a6   : >> { %v12436_v5 = vld [vmem:[#allocation22_spill] sm:$0xff]  ;;  %v12437_v2 = vld [vmem:[#allocation20_spill] sm:$0xff]  ;;  %v6406_v53 = vshrl.u32 %v1088_v51, 7  ;;  %v4908_v55 = vld [vmem:[#allocation10 + $0xe0] sm:$0xff]  ;;  %s6439_s11 = scalar_lea.vmem [#allocation2], %s5374_s9  ;;  %p1032_p9 = scmp.ge.s32.totalorder %s1035_s28, 4  }
 0x1a7   : >> { %v4911_v19 = vld [vmem:[#allocation10 + $0xf8] sm:$0xff]  ;;  %v4909_v52 = vld [vmem:[#allocation10 + $0xe8] sm:$0xff]  ;;  %v4892_v57 = vld [vmem:[#allocation10 + $0x60] sm:$0xff]  ;;  %s5375_s15 = sshll.u32 (%p1032_p9), %s5941_s22, 12  ;;  %s5041_s30 = sshll.u32 (%p1032_p9), %s6399_s6, 4  ;;  %s11741_s30 = int_to_ptr.vmem [resolvable:$true] %s5041_s30 }
 0x1a8   : >> { %v4895_v49 = vld [vmem:[#allocation10 + $0x78] sm:$0xff]  ;;  %5376 = vmatprep.subr.mxu0 %v4911_v19  ;;  %5464 = vmatprep.subr.mxu1 %v4911_v19  ;;  %v4893_v54 = vld [vmem:[#allocation10 + $0x68] sm:$0xff]  ;;  %v6410_v56 = vsub.s32 0, %v6406_v53  ;;  %v6413_v58 = vsub.s32 1, %v6406_v53  ;;  %v6416_v60 = vsub.s32 2, %v6406_v53  ;;  %v6419_v61 = vsub.s32 3, %v6406_v53  ;;  %s11738_s12 = scalar_lea.hbm (%p1032_p9), %s11789_s5, %s5375_s15 }
 0x1a9   : >> { %5377 = vmatpush3.msra.mxu0 %v4895_v49  ;;  %5480 = vmatpush3.msra.mxu1 %v4895_v49  ;;  %v4907_v59 = vld [vmem:[#allocation10 + $0xd8] sm:$0xff]  ;;  %v4906_v63 = vld [vmem:[#allocation10 + $0xd0] sm:$0xff]  ;;  %vm1090_vm0 = vcmp.lt.s32.totalorder %v6406_v53, 3  ;;  %vm1171_vm1 = vcmp.lt.s32.totalorder %v6406_v53, 2  ;;  %vm1252_vm2 = vcmp.lt.s32.totalorder %v6406_v53, 1  ;;  %vm1373_vm3 = vcmp.lt.s32.totalorder %v6406_v53, 7 }
 0x1aa   : >> { %5378 = vmatprep.subr.mxu0 %v4910_v50  ;;  %5465 = vmatprep.subr.mxu1 %v4910_v50  ;;  %12438 = vst [vmem:[#allocation33_spill] sm:$0xff] %v6410_v56  ;;  %12439 = vst [vmem:[#allocation34_spill] sm:$0xff] %v6413_v58  ;;  %v4891_v62 = vld [vmem:[#allocation10 + $0x58] sm:$0xff]  ;;  %v6424_v0 = vrot.slane %v12437_v2, %v6410_v56  ;;  %v4890_v15 = vld [vmem:[#allocation10 + $0x50] sm:$0xff]  ;;  %v6430_v16 = vrot.slane %v12437_v2, %v6413_v58  ;;  %v6434_v17 = vsub.s32 4, %v6406_v53  ;;  %s5028_s16 = scalar_lea.sflag (%p1032_p9), [#allocation5], %s6069_s17 }
 0x1ab   : >> { %5379 = vmatpush3.msra.mxu0 %v4894_v26  ;;  %5481 = vmatpush3.msra.mxu1 %v4894_v26  ;;  %vm1454_vm4 = vcmp.lt.s32.totalorder %v6406_v53, 6  ;;  %v4905_v18 = vld [vmem:[#allocation10 + $0xc8] sm:$0xff]  ;;  %v6442_v20 = vld [vmem:[%s6439_s11 + $0x8] sm:$0xff]  ;;  %v6446_v21 = vrot.slane %v12437_v2, %v6416_v60  ;;  %v6450_v22 = vrot.slane %v12437_v2, %v6419_v61  ;;  %v6453_v23 = vsub.s32 5, %v6406_v53  ;;  %v4904_v31 = vld [vmem:[#allocation10 + $0xc0] sm:$0xff]  ;;  %s5791_s10 = scalar_lea.vmem (%p1032_p9), %s11741_s30, 4096 }
 0x1ac   : >> { %5380 = vmatprep.subr.mxu0 %v4909_v52  ;;  %5466 = vmatprep.subr.mxu1 %v4909_v52  ;;  %12440 = vst [vmem:[#allocation35_spill] sm:$0xff] %v6424_v0  ;;  %12441 = vst [vmem:[#allocation36_spill] sm:$0xff] %v6430_v16  ;;  %vm1535_vm5 = vcmp.lt.s32.totalorder %v6406_v53, 5  ;;  %v4889_v24 = vld [vmem:[#allocation10 + $0x48] sm:$0xff]  ;;  %v11803_v27 = vrot.slane %v6442_v20, 5  ;;  %v11802_v28 = vrot.slane %v6442_v20, 6  ;;  %v6475_v39 = vrot.slane %v12437_v2, %v6434_v17  ;;  %p5792_p13 = scmp.ne.s32.totalorder (%p1032_p9), %s11741_s30, %s5791_s10 }
 0x1ad   : >> { %5381 = vmatpush3.msra.mxu0 %v4893_v54  ;;  %5482 = vmatpush3.msra.mxu1 %v4893_v54  ;;  %12442 = vst [vmem:[#allocation37_spill] sm:$0xff] %v6442_v20  ;;  %12443 = vst [vmem:[#allocation38_spill] sm:$0xff] %v6446_v21  ;;  %v6457_v25 = vld [vmem:[%s6439_s11 + $0xb8] sm:$0xff]  ;;  %v11801_v29 = vrot.slane %v6442_v20, 7  ;;  %v6463_v30 = vsub.s32 6, %v6406_v53  ;;  %v1350_v36 = vrot.slane %v6442_v20, 1  ;;  %v1318_v54 = vmul.f32 %v6450_v22, %v6442_v20 }
 0x1ae   : >> { %5382 = vmatprep.subr.mxu0 %v4908_v55  ;;  %5467 = vmatprep.subr.mxu1 %v4908_v55  ;;  %12444 = vst [vmem:[#allocation39_spill] sm:$0xff] %v6450_v22  ;;  %12445 = vst [vmem:[#allocation40_spill] sm:$0xff] %v6457_v25  ;;  %v6466_v32 = vld [vmem:[%s6439_s11 + $0x18] sm:$0xff]  ;;  %v11813_v33 = vrot.slane %v6457_v25, 5  ;;  %v11812_v34 = vrot.slane %v6457_v25, 6  ;;  %v11810_v35 = vrot.slane %v6457_v25, 7  ;;  %v6714_v4 = vrot.slane %v12435_v7, %v6434_v17 }
 0x1af   : >> { %5383 = vmatpush3.msra.mxu0 %v4892_v57  ;;  %5483 = vmatpush3.msra.mxu1 %v4892_v57  ;;  %12446 = vst [vmem:[#allocation41_spill] sm:$0xff] %v6466_v32  ;;  %v4888_v37 = vld [vmem:[#allocation10 + $0x40] sm:$0xff]  ;;  %v11799_v38 = vrot.slane %v6466_v32, 1  ;;  %12447 = vst [vmem:[#allocation42_spill] sm:$0xff] %v6475_v39  ;;  %v1431_v40 = vrot.slane %v6442_v20, 2  ;;  %v11797_v41 = vrot.slane %v6466_v32, 2  ;;  %v6516_v57 = vrot.slane %v12437_v2, %v6453_v23 }
 0x1b0   : >> { %5384 = vmatprep.subr.mxu0 %v4907_v59  ;;  %5468 = vmatprep.subr.mxu1 %v4907_v59  ;;  %v4903_v42 = vld [vmem:[#allocation10 + $0xb8] sm:$0xff]  ;;  %v1106_v43 = vsel %vm1090_vm0, %v11813_v33, %v11803_v27  ;;  %v1187_v44 = vsel %vm1171_vm1, %v11812_v34, %v11802_v28  ;;  %v1268_v45 = vsel %vm1252_vm2, %v11810_v35, %v11801_v29  ;;  %v1512_v46 = vrot.slane %v6442_v20, 3  ;;  %v6499_v47 = vld [vmem:[%s6439_s11 + $0x38] sm:$0xff]  ;;  %v4902_v52 = vld [vmem:[#allocation10 + $0xb0] sm:$0xff]  ;;  %p13592_p0 = scmp.ne.s32.totalorder (%p1032_p9), %s12407_s14, 0  ;;  %s5887_s24 = smov (%p1032_p9), [#allocation13]  }
 0x1b1   : >> { %5385 = vmatpush3.msra.mxu0 %v4891_v62  ;;  %5484 = vmatpush3.msra.mxu1 %v4891_v62  ;;  %12448 = vst [vmem:[#allocation43_spill] sm:$0xff] %v6499_v47  ;;  %v6502_v48 = vld [vmem:[%s6439_s11 + $0xe8] sm:$0xff]  ;;  %v1116_v49 = vmul.f32 %v6424_v0, %v1106_v43  ;;  %v1197_v50 = vmul.f32 %v6430_v16, %v1187_v44  ;;  %v11796_v26 = vrot.slane %v6466_v32, 3  ;;  %12450 = vst [vmem:[#allocation45_spill] sm:$0xff] %v6516_v57  ;;  %v4886_v62 = vld [vmem:[#allocation10 + $0x30] sm:$0xff]  ;;  %s5795_s26 = sshll.u32 (%p1032_p9), %s5887_s24, 4  ;;  %s5796_s26 = int_to_ptr.vmem [resolvable:$false] %s5795_s26 }
 0x1b2   : >> { %5386 = vmatprep.subr.mxu0 %v4906_v63  ;;  %5469 = vmatprep.subr.mxu1 %v4906_v63  ;;  %12449 = vst [vmem:[#allocation44_spill] sm:$0xff] %v6502_v48  ;;  %v4887_v19 = vld [vmem:[#allocation10 + $0x38] sm:$0xff]  ;;  %v1278_v51 = vmul.f32 %v6446_v21, %v1268_v45  ;;  %v1389_v55 = vsel %vm1373_vm3, %v1350_v36, %v11799_v38  ;;  %v6519_v59 = vsub.s32 7, %v6406_v53  ;;  %v4900_v44 = vld [vmem:[#allocation10 + $0xa0] sm:$0xff]  ;;  %v6649_v35 = vld [vmem:[%s6439_s11 + $0x78] sm:$0xff]  ;;  %p5793_p3 = pnand (%p1032_p9), %p5792_p13, %p13592_p0  ;;  %s5797_s22 = scalar_lea.vmem (%p1032_p9), %s5796_s26, 8192 }
 0x1b3   : >> { %5387 = vmatpush3.msra.mxu0 %v4890_v15  ;;  %5485 = vmatpush3.msra.mxu1 %v4890_v15  ;;  %v1213_v63 = vadd.f32 %v1197_v50, %v1116_v49  ;;  %v1470_v15 = vsel %vm1454_vm4, %v1431_v40, %v11797_v41  ;;  %v6529_v36 = vrot.slane %v12437_v2, %v6463_v30  ;;  %v11798_v49 = vrot.slane %v6499_v47, 6  ;;  %v4896_v28 = vld [vmem:[#allocation10 + $0x80] sm:$0xff]  ;;  %v6736_v8 = vld [vmem:[%s6439_s11 + $0xa8] sm:$0xff]  ;;  %p5798_p2 = scmp.lt.s32.totalorder (%p1032_p9), %s11741_s30, %s5796_s26  ;;  %p5799_p10 = scmp.lt.s32.totalorder (%p1032_p9), %s5797_s22, %s5791_s10 }
 0x1b4   : >> { %5388 = vmatprep.subr.mxu0 %v4905_v18  ;;  %5470 = vmatprep.subr.mxu1 %v4905_v18  ;;  %v11795_v18 = vrot.slane %v6499_v47, 5  ;;  %v1399_v43 = vmul.f32 %v6475_v39, %v1389_v55  ;;  %v1551_v40 = vsel %vm1535_vm5, %v1512_v46, %v11796_v26  ;;  %v1480_v45 = vmul.f32 %v6516_v57, %v1470_v15  ;;  %v4883_v15 = vld [vmem:[#allocation10 + $0x18] sm:$0xff]  ;;  %p5794_p1 = pneg (%p1032_p9), %p5793_p3 }
 0x1b5   : >> { %5389 = vmatpush3.msra.mxu0 %v4889_v24  ;;  %5486 = vmatpush3.msra.mxu1 %v4889_v24  ;;  %v11808_v24 = vrot.slane %v6502_v48, 5  ;;  %12451 = vst [vmem:[#allocation46_spill] sm:$0xff] %v6529_v36  ;;  %v11805_v50 = vrot.slane %v6502_v48, 6  ;;  %v11800_v55 = vrot.slane %v6499_v47, 7  ;;  %v6557_v26 = vld [vmem:[%s6439_s11 + $0x48] sm:$0xff]  ;;  %v6588_v27 = vrot.slane %v12436_v5, %v6419_v61  ;;  %12466 = vst [vmem:[#allocation61_spill] sm:$0xff] %v6649_v35  ;;  %p5800_p4 = por (%p1032_p9), %p5799_p10, %p5798_p2 }
 0x1b6   : >> { %5390 = vmatprep.subr.mxu0 %v4904_v31  ;;  %5471 = vmatprep.subr.mxu1 %v4904_v31  ;;  %v4901_v31 = vld [vmem:[#allocation10 + $0xa8] sm:$0xff]  ;;  %12454 = vst [vmem:[#allocation49_spill] sm:$0xff] %v6557_v26  ;;  %v11807_v29 = vrot.slane %v6557_v26, 2  ;;  %12476 = vst [vmem:[#allocation69_spill] sm:$0xff] %v6714_v4  ;;  %v6745_v3 = vrot.slane %v12435_v7, %v6519_v59  ;;  %v6749_v1 = vrot.slane %v12434_v9, %v6410_v56 }
 0x1b7   : >> { %5391 = vmatpush3.msra.mxu0 %v4888_v37  ;;  %5487 = vmatpush3.msra.mxu1 %v4888_v37  ;;  %v4885_v37 = vld [vmem:[#allocation10 + $0x28] sm:$0xff]  ;;  %v1659_v46 = vsel %vm1090_vm0, %v11808_v24, %v11795_v18  ;;  %v4898_v18 = vld [vmem:[#allocation10 + $0x90] sm:$0xff]  ;;  %12457 = vst [vmem:[#allocation52_spill] sm:$0xff] %v6588_v27  ;;  %12482 = vst [vmem:[#allocation74_spill] sm:$0xff] %v6736_v8  ;;  %p5801_p8 = pnand (%p1032_p9), %p5800_p4, %p5794_p1 }
 0x1b8   : >> { %5392 = vmatprep.subr.mxu0 %v4903_v42  ;;  %5472 = vmatprep.subr.mxu1 %v4903_v42  ;;  %v1294_v42 = vadd.f32 %v1278_v51, %v1213_v63  ;;  %v4884_v51 = vld [vmem:[#allocation10 + $0x20] sm:$0xff]  ;;  %v4899_v63 = vld [vmem:[#allocation10 + $0x98] sm:$0xff]  ;;  %12484 = vst [vmem:[#allocation75_spill] sm:$0xff] %v6745_v3  ;;  %12485 = vst [vmem:[#allocation76_spill] sm:$0xff] %v6749_v1 }
 0x1b9   : >> { %5393 = vmatpush3.msra.mxu0 %v4887_v19  ;;  %5488 = vmatpush3.msra.mxu1 %v4887_v19  ;;  %v6539_v19 = vrot.slane %v12437_v2, %v6519_v59  ;;  %v6686_v2 = vrot.slane %v12435_v7, %v6416_v60 }
 0x1ba   : >> { %5394 = vmatprep.subr.mxu0 %v4902_v52  ;;  %5473 = vmatprep.subr.mxu1 %v4902_v52  ;;  %v1334_v52 = vadd.f32 %v1318_v54, %v1294_v42  ;;  %v1561_v54 = vmul.f32 %v6529_v36, %v1551_v40  ;;  %v6554_v42 = vrot.slane %v12436_v5, %v6410_v56  ;;  %v4882_v40 = vld [vmem:[#allocation10 + $0x10] sm:$0xff] }
 0x1bb   : >> { %5395 = vmatpush3.msra.mxu0 %v4886_v62  ;;  %5489 = vmatpush3.msra.mxu1 %v4886_v62  ;;  %12452 = vst [vmem:[#allocation47_spill] sm:$0xff] %v6539_v19  ;;  %v11804_v62 = vrot.slane %v6502_v48, 7  ;;  %v1669_v41 = vmul.f32 %v6539_v19, %v1659_v46  ;;  %v11806_v46 = vrot.slane %v6557_v26, 1  ;;  %12471 = vst [vmem:[#allocation66_spill] sm:$0xff] %v6686_v2 }
 0x1bc   : >> { %5396 = vmatprep.subr.mxu0 %v4901_v31  ;;  %5474 = vmatprep.subr.mxu1 %v4901_v31  ;;  %v1415_v31 = vadd.f32 %v1399_v43, %v1334_v52  ;;  %12453 = vst [vmem:[#allocation48_spill] sm:$0xff] %v6554_v42  ;;  %v6568_v43 = vrot.slane %v12436_v5, %v6413_v58  ;;  %v1901_v52 = vrot.slane %v6499_v47, 1 }
 0x1bd   : >> { %5397 = vmatpush3.msra.mxu0 %v4885_v37  ;;  %5490 = vmatpush3.msra.mxu1 %v4885_v37  ;;  %v1739_v37 = vsel %vm1171_vm1, %v11805_v50, %v11798_v49  ;;  %v4897_v49 = vld [vmem:[#allocation10 + $0x88] sm:$0xff]  ;;  %v6604_v50 = vld [vmem:[%s6439_s11 + $0x68] sm:$0xff] }
 0x1be   : >> { %5398 = vmatprep.subr.mxu0 %v4900_v44  ;;  %5475 = vmatprep.subr.mxu1 %v4900_v44  ;;  %12455 = vst [vmem:[#allocation50_spill] sm:$0xff] %v6568_v43  ;;  %v1496_v44 = vadd.f32 %v1480_v45, %v1415_v31  ;;  %v4881_v45 = vld [vmem:[#allocation10 + $0x8] sm:$0xff]  ;;  %v1749_v38 = vmul.f32 %v6554_v42, %v1739_v37  ;;  %v6633_v24 = vrot.slane %v6604_v50, 6  ;;  %v2449_v33 = vrot.slane %v6604_v50, 1 }
 0x1bf   : >> { %5399 = vmatpush3.msra.mxu0 %v4884_v51  ;;  %5491 = vmatpush3.msra.mxu1 %v4884_v51  ;;  %v1819_v51 = vsel %vm1252_vm2, %v11804_v62, %v11800_v55  ;;  %v1981_v55 = vrot.slane %v6499_v47, 2  ;;  %v6591_v62 = vld [vmem:[%s6439_s11 + $0x118] sm:$0xff]  ;;  %v1939_v37 = vsel %vm1373_vm3, %v1901_v52, %v11806_v46  ;;  %v6616_v46 = vrot.slane %v12436_v5, %v6453_v23 }
 0x1c0   : >> { %5400 = vmatprep.subr.mxu0 %v4899_v63  ;;  %5476 = vmatprep.subr.mxu1 %v4899_v63  ;;  %v6580_v63 = vrot.slane %v12436_v5, %v6416_v60  ;;  %v1577_v31 = vadd.f32 %v1561_v54, %v1496_v44  ;;  %12458 = vst [vmem:[#allocation53_spill] sm:$0xff] %v6591_v62  ;;  %v11809_v44 = vrot.slane %v6557_v26, 3  ;;  %12463 = vst [vmem:[#allocation58_spill] sm:$0xff] %v6633_v24 }
 0x1c1   : >> { %5401 = vmatpush3.msra.mxu0 %v4883_v15  ;;  %5492 = vmatpush3.msra.mxu1 %v4883_v15  ;;  %v1829_v15 = vmul.f32 %v6568_v43, %v1819_v51  ;;  %v6601_v51 = vrot.slane %v12436_v5, %v6434_v17  ;;  %v2019_v52 = vsel %vm1454_vm4, %v1981_v55, %v11807_v29  ;;  %v6624_v55 = vrot.slane %v6604_v50, 5 }
 0x1c2   : >> { %12456 = vst [vmem:[#allocation51_spill] sm:$0xff] %v6580_v63  ;;  %5402 = vmatprep.subr.mxu0 %v4898_v18  ;;  %5477 = vmatprep.subr.mxu1 %v4898_v18  ;;  %v4880_v18 = vld [vmem:[#allocation10] sm:$0xff]  ;;  %v1685_v54 = vadd.f32 %v1669_v41, %v1577_v31  ;;  %v11811_v31 = vrot.slane %v6591_v62, 5  ;;  %12460 = vst [vmem:[#allocation55_spill] sm:$0xff] %v6616_v46  ;;  %v2529_v32 = vrot.slane %v6604_v50, 2  ;;  %v2609_v13 = vrot.slane %v6604_v50, 3 }
 0x1c3   : >> { %5403 = vmatpush3.msra.mxu0 %v4882_v40  ;;  %5493 = vmatpush3.msra.mxu1 %v4882_v40  ;;  %v2061_v40 = vrot.slane %v6499_v47, 3  ;;  %12459 = vst [vmem:[#allocation54_spill] sm:$0xff] %v6601_v51  ;;  %12461 = vst [vmem:[#allocation56_spill] sm:$0xff] %v6624_v55  ;;  %v2029_v29 = vmul.f32 %v6601_v51, %v2019_v52  ;;  %v6645_v52 = vrot.slane %v6604_v50, 7 }
 0x1c4   : >> { %5404 = vmatprep.subr.mxu0 %v4897_v49  ;;  %5478 = vmatprep.subr.mxu1 %v4897_v49  ;;  %v1765_v41 = vadd.f32 %v1749_v38, %v1685_v54  ;;  %v1869_v49 = vmul.f32 %v6499_v47, %v6580_v63  ;;  %v6848_v51 = vrot.slane %v12434_v9, %v6519_v59 }
 0x1c5   : >> { %5405 = vmatpush3.msra.mxu0 %v4881_v45  ;;  %5494 = vmatpush3.msra.mxu1 %v4881_v45  ;;  %v1949_v45 = vmul.f32 %v6588_v27, %v1939_v37  ;;  %v2099_v54 = vsel %vm1535_vm5, %v2061_v40, %v11809_v44  ;;  %v6630_v37 = vrot.slane %v12436_v5, %v6463_v30 }
 0x1c6   : >> { %5406 = vmatprep.subr.mxu0 %v4896_v28  ;;  %5479 = vmatprep.subr.mxu1 %v4896_v28  ;;  %v11815_v28 = vrot.slane %v6591_v62, 6  ;;  %v1845_v38 = vadd.f32 %v1829_v15, %v1765_v41  ;;  %v2207_v40 = vsel %vm1090_vm0, %v11811_v31, %v6624_v55  ;;  %v6642_v41 = vrot.slane %v12436_v5, %v6519_v59 }
 0x1c7   : >> { %5407 = vmatpush3.msra.mxu0 %v4880_v18  ;;  %5495 = vmatpush3.msra.mxu1 %v4880_v18  ;;  %v11825_v18 = vrot.slane %v6591_v62, 7  ;;  %12462 = vst [vmem:[#allocation57_spill] sm:$0xff] %v6630_v37  ;;  %12465 = vst [vmem:[#allocation60_spill] sm:$0xff] %v6645_v52  ;;  %v2109_v44 = vmul.f32 %v6616_v46, %v2099_v54  ;;  %v6662_v31 = vrot.slane %v12435_v7, %v6413_v58 }
 0x1c8   : >> { %v1885_v15 = vadd.f32 %v1869_v49, %v1845_v38  ;;  %12464 = vst [vmem:[#allocation59_spill] sm:$0xff] %v6642_v41  ;;  %v2287_v49 = vsel %vm1171_vm1, %v11815_v28, %v6633_v24  ;;  %v6658_v38 = vrot.slane %v12435_v7, %v6410_v56  ;;  %v6672_v28 = vld [vmem:[%s6439_s11 + $0x148] sm:$0xff]  ;;  %v2217_v5 = vmul.f32 %v6630_v37, %v2207_v40 }
 0x1c9   : >> { %12468 = vst [vmem:[#allocation63_spill] sm:$0xff] %v6662_v31  ;;  %v2367_v54 = vsel %vm1252_vm2, %v11825_v18, %v6645_v52  ;;  %12469 = vst [vmem:[#allocation64_spill] sm:$0xff] %v6672_v28  ;;  %v2297_v47 = vmul.f32 %v6642_v41, %v2287_v49  ;;  %v2417_v18 = vmul.f32 %v6604_v50, %v6662_v31  ;;  %v12478_v11 = vrot.slane %v6672_v28, 5 }
 0x1ca   : >> { %12467 = vst [vmem:[#allocation62_spill] sm:$0xff] %v6658_v38  ;;  %v1965_v34 = vadd.f32 %v1949_v45, %v1885_v15  ;;  %v6679_v15 = vld [vmem:[%s6439_s11 + $0x98] sm:$0xff]  ;;  %v2377_v20 = vmul.f32 %v6658_v38, %v2367_v54  ;;  %v6697_v54 = vrot.slane %v12435_v7, %v6419_v61  ;;  %v12483_v6 = vrot.slane %v6672_v28, 6  ;;  %12505 = vst [vmem:[#allocation91_spill] sm:$0xff] %v6848_v51 }
 0x1cb   : >> { %12470 = vst [vmem:[#allocation65_spill] sm:$0xff] %v6679_v15  ;;  %v6703_v40 = vrot.slane %v6679_v15, 5  ;;  %v6717_v45 = vrot.slane %v6679_v15, 6  ;;  %v12486_v62 = vrot.slane %v6649_v35, 3  ;;  %v3077_v48 = vrot.slane %v6679_v15, 2 }
 0x1cc   : >> { %v2045_v26 = vadd.f32 %v2029_v29, %v1965_v34  ;;  %v12472_v34 = vrot.slane %v6649_v35, 1  ;;  %12473 = vst [vmem:[#allocation67_spill] sm:$0xff] %v6697_v54  ;;  %v6844_v46 = vrot.slane %v12434_v9, %v6463_v30 }
 0x1cd   : >> { %12474 = vst [vmem:[#allocation68_spill] sm:$0xff] %v6703_v40  ;;  %12477 = vst [vmem:[#allocation70_spill] sm:$0xff] %v6717_v45 }
 0x1ce   : >> { %v2125_v29 = vadd.f32 %v2109_v44, %v2045_v26  ;;  %v6693_v49 = vsel %vm1373_vm3, %v2449_v33, %v12472_v34  ;;  %v12475_v33 = vrot.slane %v6649_v35, 2  ;;  %v2755_v26 = vsel %vm1090_vm0, %v12478_v11, %v6703_v40  ;;  %12504 = vst [vmem:[#allocation90_spill] sm:$0xff] %v6844_v46 }
 0x1cf   : >> { %v2835_v11 = vsel %vm1171_vm1, %v12483_v6, %v6717_v45  ;;  %v2497_v31 = vmul.f32 %v6686_v2, %v6693_v49  ;;  %v2965_v2 = vmul.f32 %v6679_v15, %v6749_v1  ;;  %v6820_v1 = vrot.slane %v12434_v9, %v6434_v17 }
 0x1d0   : >> { %v2233_v44 = vadd.f32 %v2217_v5, %v2125_v29  ;;  %v6710_v34 = vsel %vm1454_vm4, %v2529_v32, %v12475_v33  ;;  %v6726_v5 = vrot.slane %v12435_v7, %v6453_v23  ;;  %v6730_v32 = vrot.slane %v12435_v7, %v6463_v30 }
 0x1d1   : >> { %v6733_v29 = vrot.slane %v6679_v15, 7  ;;  %v2997_v7 = vrot.slane %v6679_v15, 1  ;;  %v2577_v35 = vmul.f32 %v6697_v54, %v6710_v34  ;;  %v6782_v54 = vrot.slane %v12434_v9, %v6413_v58  ;;  %12499 = vst [vmem:[#allocation86_spill] sm:$0xff] %v6820_v1 }
 0x1d2   : >> { %12479 = vst [vmem:[#allocation71_spill] sm:$0xff] %v6726_v5  ;;  %12480 = vst [vmem:[#allocation72_spill] sm:$0xff] %v6730_v32  ;;  %v2313_v33 = vadd.f32 %v2297_v47, %v2233_v44  ;;  %v6755_v47 = vsel %vm1535_vm5, %v2609_v13, %v12486_v62  ;;  %v12487_v44 = vrot.slane %v6672_v28, 7  ;;  %v6771_v62 = vld [vmem:[%s6439_s11 + $0x178] sm:$0xff]  ;;  %v2765_v28 = vmul.f32 %v6726_v5, %v2755_v26 }
 0x1d3   : >> { %12481 = vst [vmem:[#allocation73_spill] sm:$0xff] %v6733_v29  ;;  %v2657_v13 = vmul.f32 %v6714_v4, %v6755_v47  ;;  %12488 = vst [vmem:[#allocation77_spill] sm:$0xff] %v6771_v62  ;;  %v6785_v4 = vld [vmem:[%s6439_s11 + $0xc8] sm:$0xff]  ;;  %v12491_v26 = vrot.slane %v6736_v8, 1  ;;  %v12494_v5 = vrot.slane %v6736_v8, 2 }
 0x1d4   : >> { %v2915_v6 = vsel %vm1252_vm2, %v12487_v44, %v6733_v29  ;;  %v2393_v41 = vadd.f32 %v2377_v20, %v2313_v33  ;;  %v2845_v44 = vmul.f32 %v6730_v32, %v2835_v11  ;;  %12489 = vst [vmem:[#allocation78_spill] sm:$0xff] %v6782_v54  ;;  %12490 = vst [vmem:[#allocation79_spill] sm:$0xff] %v6785_v4  ;;  %v6830_v32 = vld [vmem:[%s6439_s11 + $0xd8] sm:$0xff]  ;;  %v3545_v63 = vrot.slane %v6785_v4, 1 }
 0x1d5   : >> { %v2925_v33 = vmul.f32 %v6745_v3, %v2915_v6  ;;  %v6791_v11 = vsel %vm1373_vm3, %v2997_v7, %v12491_v26  ;;  %v3157_v3 = vrot.slane %v6679_v15, 3  ;;  %v6806_v7 = vsel %vm1454_vm4, %v3077_v48, %v12494_v5  ;;  %12502 = vst [vmem:[#allocation89_spill] sm:$0xff] %v6830_v32 }
 0x1d6   : >> { %v2433_v20 = vadd.f32 %v2417_v18, %v2393_v41  ;;  %12492 = vst [vmem:[#allocation80_spill] sm:$0xff] %v6791_v11  ;;  %v6795_v18 = vrot.slane %v12434_v9, %v6416_v60  ;;  %v11871_v41 = vrot.slane %v6771_v62, 5  ;;  %12495 = vst [vmem:[#allocation82_spill] sm:$0xff] %v6806_v7  ;;  %v6810_v26 = vrot.slane %v12434_v9, %v6419_v61 }
 0x1d7   : >> { %v6813_v6 = vrot.slane %v6785_v4, 5  ;;  %v6824_v48 = vrot.slane %v12434_v9, %v6453_v23  ;;  %v6827_v5 = vrot.slane %v6785_v4, 7  ;;  %v12506_v15 = vrot.slane %v6771_v62, 7 }
 0x1d8   : >> { %12493 = vst [vmem:[#allocation81_spill] sm:$0xff] %v6795_v18  ;;  %v2513_v38 = vadd.f32 %v2497_v31, %v2433_v20  ;;  %12496 = vst [vmem:[#allocation83_spill] sm:$0xff] %v6810_v26  ;;  %v6816_v31 = vrot.slane %v6785_v4, 6  ;;  %v3045_v14 = vmul.f32 %v6782_v54, %v6791_v11  ;;  %v3125_v25 = vmul.f32 %v6795_v18, %v6806_v7  ;;  %v6879_v18 = vld [vmem:[%s6439_s11 + $0xf8] sm:$0xff] }
 0x1d9   : >> { %12497 = vst [vmem:[#allocation84_spill] sm:$0xff] %v6813_v6  ;;  %12500 = vst [vmem:[#allocation87_spill] sm:$0xff] %v6824_v48  ;;  %v3303_v37 = vsel %vm1090_vm0, %v11871_v41, %v6813_v6  ;;  %v3463_v41 = vsel %vm1252_vm2, %v12506_v15, %v6827_v5  ;;  %v12507_v9 = vrot.slane %v6736_v8, 3  ;;  %v6870_v15 = vrot.slane %v12433_v10, %v6410_v56 }
 0x1da   : >> { %12498 = vst [vmem:[#allocation85_spill] sm:$0xff] %v6816_v31  ;;  %v2593_v20 = vadd.f32 %v2577_v35, %v2513_v38  ;;  %12501 = vst [vmem:[#allocation88_spill] sm:$0xff] %v6827_v5  ;;  %v12503_v35 = vrot.slane %v6771_v62, 6  ;;  %v3313_v62 = vmul.f32 %v6820_v1, %v3303_v37  ;;  %v6882_v8 = vmul.f32 %v6844_v46, %v3463_v41 }
 0x1db   : >> { %12509 = vst [vmem:[#allocation93_spill] sm:$0xff] %v6870_v15  ;;  %12510 = vst [vmem:[#allocation94_spill] sm:$0xff] %v6879_v18  ;;  %v12511_v37 = vrot.slane %v6830_v32, 1  ;;  %v6898_v41 = vrot.slane %v12433_v10, %v6413_v58  ;;  %v12516_v1 = vrot.slane %v6830_v32, 2 }
 0x1dc   : >> { %v3383_v38 = vsel %vm1171_vm1, %v12503_v35, %v6816_v31  ;;  %v2673_v27 = vadd.f32 %v2657_v13, %v2593_v20  ;;  %v5338_v31 = vld [vmem:[%s6439_s11 + $0x1a8] sm:$0xff]  ;;  %v6866_v13 = vsel %vm1535_vm5, %v3157_v3, %v12507_v9  ;;  %v3625_v3 = vrot.slane %v6785_v4, 2 }
 0x1dd   : >> { %12508 = vst [vmem:[#allocation92_spill] sm:$0xff] %v6866_v13  ;;  %v3205_v35 = vmul.f32 %v6810_v26, %v6866_v13  ;;  %v6876_v54 = vmul.f32 %v6824_v48, %v3383_v38  ;;  %v3835_v7 = vrot.slane %v5338_v31, 5  ;;  %v6894_v38 = vsel %vm1373_vm3, %v3545_v63, %v12511_v37  ;;  %12513 = vst [vmem:[#allocation96_spill] sm:$0xff] %v6898_v41  ;;  %v6920_v26 = vld [vmem:[%s6439_s11 + $0x108] sm:$0xff] }
 0x1de   : >> { %v2781_v20 = vadd.f32 %v2765_v28, %v2673_v27  ;;  %v6888_v28 = vmul.f32 %v6785_v4, %v6848_v51  ;;  %12512 = vst [vmem:[#allocation95_spill] sm:$0xff] %v6894_v38  ;;  %v6902_v46 = vmul.f32 %v6870_v15, %v6894_v38  ;;  %v6907_v9 = vrot.slane %v6879_v18, 5  ;;  %12517 = vst [vmem:[#allocation99_spill] sm:$0xff] %v6920_v26 }
 0x1df   : >> { %v6911_v63 = vrot.slane %v12433_v10, %v6416_v60  ;;  %v3915_v37 = vrot.slane %v5338_v31, 6  ;;  %v3995_v48 = vrot.slane %v5338_v31, 7  ;;  %v6917_v15 = vsel %vm1454_vm4, %v3625_v3, %v12516_v1 }
 0x1e0   : >> { %v2861_v27 = vadd.f32 %v2845_v44, %v2781_v20  ;;  %v3705_v44 = vrot.slane %v6785_v4, 3  ;;  %12514 = vst [vmem:[#allocation97_spill] sm:$0xff] %v6907_v9  ;;  %v3851_v20 = vsel %vm1090_vm0, %v3835_v7, %v6907_v9  ;;  %v6933_v38 = vrot.slane %v6879_v18, 7 }
 0x1e1   : >> { %12515 = vst [vmem:[#allocation98_spill] sm:$0xff] %v6911_v63  ;;  %v4093_v1 = vrot.slane %v6879_v18, 1  ;;  %v6939_v4 = vrot.slane %v12433_v10, %v6434_v17  ;;  %v6943_v7 = vrot.slane %v12433_v10, %v6453_v23  ;;  %v6947_v9 = vrot.slane %v12433_v10, %v6463_v30 }
 0x1e2   : >> { %v2941_v51 = vadd.f32 %v2925_v33, %v2861_v27  ;;  %v6927_v33 = vrot.slane %v12433_v10, %v6419_v61  ;;  %v6930_v27 = vrot.slane %v6879_v18, 6  ;;  %12520 = vst [vmem:[#allocation102_spill] sm:$0xff] %v6933_v38  ;;  %v12525_v3 = vrot.slane %v6830_v32, 3 }
 0x1e3   : >> { %12521 = vst [vmem:[#allocation103_spill] sm:$0xff] %v6939_v4  ;;  %12522 = vst [vmem:[#allocation104_spill] sm:$0xff] %v6943_v7  ;;  %v4011_v11 = vsel %vm1252_vm2, %v3995_v48, %v6933_v38  ;;  %v12526_v32 = vrot.slane %v6920_v26, 1 }
 0x1e4   : >> { %12518 = vst [vmem:[#allocation100_spill] sm:$0xff] %v6927_v33  ;;  %12519 = vst [vmem:[#allocation101_spill] sm:$0xff] %v6930_v27  ;;  %v2981_v31 = vadd.f32 %v2965_v2, %v2941_v51  ;;  %v6951_v2 = vrot.slane %v12433_v10, %v6519_v59  ;;  %v6957_v13 = vsel %vm1535_vm5, %v3705_v44, %v12525_v3  ;;  %v4173_v44 = vrot.slane %v6879_v18, 2 }
 0x1e5   : >> { %12523 = vst [vmem:[#allocation105_spill] sm:$0xff] %v6947_v9  ;;  %v3931_v5 = vsel %vm1171_vm1, %v3915_v37, %v6930_v27  ;;  %v6967_v10 = vmul.f32 %v6898_v41, %v6917_v15  ;;  %v6976_v37 = vmul.f32 %v6927_v33, %v3851_v20  ;;  %v6982_v48 = vsel %vm1373_vm3, %v4093_v1, %v12526_v32  ;;  %v7004_v32 = vld [vmem:[%s6439_s11 + $0x128] sm:$0xff]  ;;  %v5364_v1 = vld [vmem:[%s6439_s11 + $0x1d8] sm:$0xff] }
 0x1e6   : >> { %12524 = vst [vmem:[#allocation106_spill] sm:$0xff] %v6951_v2  ;;  %v3061_v51 = vadd.f32 %v3045_v14, %v2981_v31  ;;  %v6971_v14 = vmul.f32 %v6911_v63, %v6957_v13  ;;  %12527 = vst [vmem:[#allocation107_spill] sm:$0xff] %v6982_v48  ;;  %v6986_v41 = vrot.slane %v12432_v12, %v6410_v56  ;;  %v1051_v63 = vld [vmem:[%s6439_s11 + $0x58] sm:$0xff]  ;;  %v4253_v56 = vrot.slane %v6879_v18, 3 }
 0x1e7   : >> { %v6990_v38 = vmul.f32 %v6939_v4, %v3931_v5  ;;  %v6993_v31 = vmul.f32 %v6943_v7, %v4011_v11  ;;  %v7001_v20 = vmul.f32 %v6951_v2, %v6982_v48  ;;  %v7011_v11 = vrot.slane %v12432_v12, %v6413_v58 }
 0x1e8   : >> { %v3141_v3 = vadd.f32 %v3125_v25, %v3061_v51  ;;  %12528 = vst [vmem:[#allocation108_spill] sm:$0xff] %v6986_v41  ;;  %v6997_v25 = vmul.f32 %v6879_v18, %v6947_v9  ;;  %v12530_v7 = vrot.slane %v6920_v26, 2  ;;  %v1075_v2 = vrot.slane %v1051_v63, 5 }
 0x1e9   : >> { %12529 = vst [vmem:[#allocation109_spill] sm:$0xff] %v7011_v11  ;;  %v1158_v33 = vrot.slane %v1051_v63, 6  ;;  %v1239_v9 = vrot.slane %v1051_v63, 7  ;;  %v4383_v5 = vrot.slane %v5364_v1, 5  ;;  %v4463_v58 = vrot.slane %v5364_v1, 6 }
 0x1ea   : >> { %v3221_v51 = vadd.f32 %v3205_v35, %v3141_v3  ;;  %v7017_v4 = vsel %vm1454_vm4, %v4173_v44, %v12530_v7  ;;  %v7024_v3 = vrot.slane %v7004_v32, 5  ;;  %v1098_v18 = vsel %vm1090_vm0, %v1075_v2, %v6624_v55 }
 0x1eb   : >> { %12531 = vst [vmem:[#allocation110_spill] sm:$0xff] %v7017_v4  ;;  %v7021_v35 = vmul.f32 %v6986_v41, %v7017_v4  ;;  %v1179_v7 = vsel %vm1171_vm1, %v1158_v33, %v6633_v24  ;;  %v1124_v44 = vmul.f32 %v6424_v0, %v1098_v18  ;;  %v5222_v4 = vld [vmem:[%s6439_s11 + $0x88] sm:$0xff]  ;;  %v7048_v33 = vrot.slane %v12432_v12, %v6416_v60 }
 0x1ec   : >> { %v3329_v48 = vadd.f32 %v3313_v62, %v3221_v51  ;;  %12533 = vst [vmem:[#allocation112_spill] sm:$0xff] %v7024_v3  ;;  %v1260_v62 = vsel %vm1252_vm2, %v1239_v9, %v6645_v52  ;;  %v1205_v51 = vmul.f32 %v6430_v16, %v1179_v7  ;;  %v7051_v9 = vrot.slane %v7004_v32, 6  ;;  %v12570_v16 = vld [vmem:[#allocation95_spill] sm:$0xff] }
 0x1ed   : >> { %12532 = vst [vmem:[#allocation111_spill] sm:$0xff] %v7021_v35  ;;  %v1286_v41 = vmul.f32 %v6446_v21, %v1260_v62  ;;  %v12534_v35 = vrot.slane %v6920_v26, 3  ;;  %12535 = vst [vmem:[#allocation113_spill] sm:$0xff] %v7048_v33  ;;  %v7065_v62 = vrot.slane %v12432_v12, %v6419_v61  ;;  %v7081_v26 = vrot.slane %v12432_v12, %v6434_v17  ;;  %v12569_v21 = vld [vmem:[#allocation66_spill] sm:$0xff] }
 0x1ee   : >> { %v3409_v63 = vadd.f32 %v6876_v54, %v3329_v48  ;;  %12536 = vst [vmem:[#allocation114_spill] sm:$0xff] %v7051_v9  ;;  %v4543_v54 = vrot.slane %v5364_v1, 7  ;;  %v1221_v7 = vadd.f32 %v1205_v51, %v1124_v44  ;;  %v7068_v1 = vrot.slane %v7004_v32, 7 }
 0x1ef   : >> { %v7044_v2 = vsel %vm1535_vm5, %v4253_v56, %v12534_v35  ;;  %v1326_v56 = vmul.f32 %v6604_v50, %v6450_v22  ;;  %v4399_v35 = vsel %vm1090_vm0, %v4383_v5, %v7024_v3  ;;  %12537 = vst [vmem:[#allocation115_spill] sm:$0xff] %v7065_v62  ;;  %v4479_v44 = vsel %vm1171_vm1, %v4463_v58, %v7051_v9  ;;  %v7089_v58 = vld [vmem:[%s6439_s11 + $0x138] sm:$0xff] }
 0x1f0   : >> { %v3489_v18 = vadd.f32 %v6882_v8, %v3409_v63  ;;  %v7056_v48 = vmul.f32 %v7011_v11, %v7044_v2  ;;  %12538 = vst [vmem:[#allocation116_spill] sm:$0xff] %v7068_v1  ;;  %v1631_v8 = vrot.slane %v5222_v4, 5  ;;  %v1302_v51 = vadd.f32 %v1286_v41, %v1221_v7  ;;  %12539 = vst [vmem:[#allocation117_spill] sm:$0xff] %v7081_v26 }
 0x1f1   : >> { %v1407_v50 = vmul.f32 %v6693_v49, %v6475_v39  ;;  %v4559_v5 = vsel %vm1252_vm2, %v4543_v54, %v7068_v1  ;;  %v7085_v52 = vrot.slane %v12432_v12, %v6453_v23  ;;  %12541 = vst [vmem:[#allocation119_spill] sm:$0xff] %v7089_v58  ;;  %v4641_v41 = vrot.slane %v7004_v32, 1 }
 0x1f2   : >> { %v3529_v63 = vadd.f32 %v6888_v28, %v3489_v18  ;;  %v1711_v28 = vrot.slane %v5222_v4, 6  ;;  %v1342_v49 = vadd.f32 %v1326_v56, %v1302_v51  ;;  %v1488_v7 = vmul.f32 %v6710_v34, %v6516_v57 }
 0x1f3   : >> { %12540 = vst [vmem:[#allocation118_spill] sm:$0xff] %v7085_v52  ;;  %v7097_v24 = vrot.slane %v12432_v12, %v6463_v30  ;;  %v1651_v55 = vsel %vm1090_vm0, %v1631_v8, %v6703_v40  ;;  %v1791_v39 = vrot.slane %v5222_v4, 7  ;;  %v1569_v56 = vmul.f32 %v6755_v47, %v6529_v36  ;;  %v12564_v36 = vld [vmem:[#allocation63_spill] sm:$0xff] }
 0x1f4   : >> { %v3609_v18 = vadd.f32 %v6902_v46, %v3529_v63  ;;  %v4721_v63 = vrot.slane %v7004_v32, 2  ;;  %v1423_v22 = vadd.f32 %v1407_v50, %v1342_v49  ;;  %v11948_v34 = vrot.slane %v7089_v58, 2 }
 0x1f5   : >> { %12542 = vst [vmem:[#allocation120_spill] sm:$0xff] %v7097_v24  ;;  %v4801_v51 = vrot.slane %v7004_v32, 3  ;;  %v11949_v54 = vrot.slane %v7089_v58, 3  ;;  %v1731_v57 = vsel %vm1171_vm1, %v1711_v28, %v6717_v45  ;;  %v1677_v50 = vmul.f32 %v6539_v19, %v1651_v55 }
 0x1f6   : >> { %v3689_v46 = vadd.f32 %v6967_v10, %v3609_v18  ;;  %v7114_v10 = vmul.f32 %v7048_v33, %v4399_v35  ;;  %v1504_v8 = vadd.f32 %v1488_v7, %v1423_v22  ;;  %v7118_v47 = vmul.f32 %v7065_v62, %v4479_v44 }
 0x1f7   : >> { %v7121_v18 = vmul.f32 %v7081_v26, %v4559_v5  ;;  %v7125_v49 = vrot.slane %v12432_v12, %v6519_v59  ;;  %v12544_v22 = vrot.slane %v7089_v58, 1  ;;  %v1757_v28 = vmul.f32 %v6554_v42, %v1731_v57  ;;  %v12552_v58 = vld [vmem:[#allocation85_spill] sm:$0xff]  ;;  %v12558_v42 = vld [vmem:[#allocation55_spill] sm:$0xff] }
 0x1f8   : >> { %v3769_v4 = vadd.f32 %v6971_v14, %v3689_v46  ;;  %v1811_v14 = vsel %vm1252_vm2, %v1791_v39, %v6733_v29  ;;  %v1585_v44 = vadd.f32 %v1569_v56, %v1504_v8  ;;  %v7138_v5 = vmul.f32 %v7004_v32, %v7085_v52  ;;  %v12545_v56 = vld [vmem:[#allocation40_spill] sm:$0xff] }
 0x1f9   : >> { %12543 = vst [vmem:[#allocation121_spill] sm:$0xff] %v7125_v49  ;;  %v4679_v55 = vsel %vm1373_vm3, %v4641_v41, %v12544_v22  ;;  %v7147_v39 = vsel %vm1454_vm4, %v4721_v63, %v11948_v34  ;;  %v1837_v46 = vmul.f32 %v6568_v43, %v1811_v14  ;;  %v12547_v22 = vld [vmem:[#allocation32_spill] sm:$0xff]  ;;  %v12555_v45 = vrot.slane %v12545_v56, 7  ;;  %v12556_v43 = vld [vmem:[#allocation54_spill] sm:$0xff] }
 0x1fa   : >> { %v3877_v35 = vadd.f32 %v6976_v37, %v3769_v4  ;;  %v7141_v7 = vmul.f32 %v7097_v24, %v4679_v55  ;;  %v7153_v37 = vsel %vm1535_vm5, %v4801_v51, %v11949_v54  ;;  %v1693_v41 = vadd.f32 %v1677_v50, %v1585_v44  ;;  %v12548_v51 = vld [vmem:[#allocation51_spill] sm:$0xff]  ;;  %v12549_v54 = vld [vmem:[#allocation65_spill] sm:$0xff]  ;;  %v12550_v50 = vld [vmem:[#allocation52_spill] sm:$0xff] }
 0x1fb   : >> { %v12546_v4 = vrot.slane %v12545_v56, 5  ;;  %v7164_v63 = vmul.f32 %v7125_v49, %v7147_v39  ;;  %v7168_v34 = vmul.f32 %v12547_v22, %v7153_v37  ;;  %v12554_v29 = vld [vmem:[#allocation88_spill] sm:$0xff] }
 0x1fc   : >> { %v3957_v57 = vadd.f32 %v6990_v38, %v3877_v35  ;;  %v1877_v38 = vmul.f32 %v12549_v54, %v12548_v51  ;;  %v12551_v35 = vld [vmem:[#allocation80_spill] sm:$0xff]  ;;  %v1773_v12 = vadd.f32 %v1757_v28, %v1693_v41  ;;  %v2359_v40 = vsel %vm1252_vm2, %v12555_v45, %v12554_v29  ;;  %v12557_v54 = vld [vmem:[#allocation82_spill] sm:$0xff]  ;;  %v12560_v28 = vld [vmem:[#allocation57_spill] sm:$0xff] }
 0x1fd   : >> { %v2199_v8 = vsel %vm1090_vm0, %v12546_v4, %v6813_v6  ;;  %v1957_v14 = vmul.f32 %v12551_v35, %v12550_v50  ;;  %v12553_v4 = vrot.slane %v12545_v56, 6  ;;  %v2037_v51 = vmul.f32 %v12557_v54, %v12556_v43  ;;  %v12559_v35 = vld [vmem:[#allocation92_spill] sm:$0xff]  ;;  %v12561_v41 = vld [vmem:[#allocation97_spill] sm:$0xff]  ;;  %v12565_v45 = vld [vmem:[#allocation79_spill] sm:$0xff] }
 0x1fe   : >> { %v4037_v44 = vadd.f32 %v6993_v31, %v3957_v57  ;;  %v2117_v31 = vmul.f32 %v12559_v35, %v12558_v42  ;;  %v2225_v57 = vmul.f32 %v12560_v28, %v2199_v8  ;;  %v12562_v50 = vld [vmem:[#allocation44_spill] sm:$0xff]  ;;  %v7198_v29 = vmul.f32 %v12565_v45, %v12564_v36  ;;  %v12567_v8 = vld [vmem:[#allocation59_spill] sm:$0xff]  ;;  %v12568_v42 = vld [vmem:[#allocation62_spill] sm:$0xff] }
 0x1ff   : >> { %v2279_v6 = vsel %vm1171_vm1, %v12553_v4, %v12552_v58  ;;  %v12563_v19 = vrot.slane %v12562_v50, 5  ;;  %v1853_v58 = vadd.f32 %v1837_v46, %v1773_v12  ;;  %v12566_v54 = vrot.slane %v12562_v50, 6  ;;  %v12572_v45 = vld [vmem:[#allocation69_spill] sm:$0xff] }
 0x200   : >> { %v4077_v56 = vadd.f32 %v6997_v25, %v4037_v44  ;;  %v2305_v28 = vmul.f32 %v12567_v8, %v2279_v6  ;;  %v2385_v43 = vmul.f32 %v12568_v42, %v2359_v40  ;;  %v12571_v25 = vld [vmem:[#allocation67_spill] sm:$0xff]  ;;  %v7224_v6 = vld [vmem:[%s6439_s11 + $0x158] sm:$0xff] }
 0x201   : >> { %v2747_v4 = vsel %vm1090_vm0, %v12563_v19, %v12561_v41  ;;  %v2827_v35 = vsel %vm1171_vm1, %v12566_v54, %v6930_v27  ;;  %v7209_v19 = vmul.f32 %v12570_v16, %v12569_v21  ;;  %v7213_v12 = vmul.f32 %v6917_v15, %v12571_v25  ;;  %v12573_v54 = vld [vmem:[#allocation71_spill] sm:$0xff]  ;;  %12574 = vst [vmem:[#allocation40_spill] sm:$0xff] %v7224_v6  ;;  %v12575_v40 = vld [vmem:[#allocation72_spill] sm:$0xff]  ;;  %v12576_v16 = vld [vmem:[#allocation102_spill] sm:$0xff] }
 0x202   : >> { %v4157_v46 = vadd.f32 %v7001_v20, %v4077_v56  ;;  %v1893_v44 = vadd.f32 %v1877_v38, %v1853_v58  ;;  %v7218_v41 = vmul.f32 %v6957_v13, %v12572_v45  ;;  %v7221_v27 = vmul.f32 %v12573_v54, %v2747_v4  ;;  %v12578_v20 = vld [vmem:[#allocation76_spill] sm:$0xff]  ;;  %v12579_v58 = vld [vmem:[#allocation94_spill] sm:$0xff]  ;;  %v12581_v56 = vld [vmem:[#allocation107_spill] sm:$0xff] }
 0x203   : >> { %v7227_v36 = vmul.f32 %v12575_v40, %v2827_v35  ;;  %v12577_v21 = vrot.slane %v12562_v50, 7  ;;  %v7236_v38 = vmul.f32 %v12579_v58, %v12578_v20  ;;  %v12580_v13 = vld [vmem:[#allocation78_spill] sm:$0xff]  ;;  %v12582_v4 = vld [vmem:[#allocation111_spill] sm:$0xff]  ;;  %v12583_v35 = vld [vmem:[#allocation53_spill] sm:$0xff] }
 0x204   : >> { %v7240_v45 = vmul.f32 %v12581_v56, %v12580_v13  ;;  %v4237_v54 = vadd.f32 %v12582_v4, %v4157_v46  ;;  %v1973_v25 = vadd.f32 %v1957_v14, %v1893_v44  ;;  %v12584_v40 = vrot.slane %v12583_v35, 5  ;;  %v12587_v20 = vld [vmem:[#allocation110_spill] sm:$0xff]  ;;  %v12593_v44 = vld [vmem:[#allocation91_spill] sm:$0xff] }
 0x205   : >> { %v2907_v15 = vsel %vm1252_vm2, %v12577_v21, %v12576_v16  ;;  %v12585_v21 = vrot.slane %v12583_v35, 6  ;;  %v12586_v16 = vld [vmem:[#allocation81_spill] sm:$0xff]  ;;  %v12588_v46 = vrot.slane %v12583_v35, 7  ;;  %v12591_v35 = vld [vmem:[#allocation86_spill] sm:$0xff]  ;;  %v7280_v13 = vmul.f32 %v7004_v32, %v12593_v44 }
 0x206   : >> { %v3295_v50 = vsel %vm1090_vm0, %v12584_v40, %v7024_v3  ;;  %v7255_v42 = vmul.f32 %v12587_v20, %v12586_v16  ;;  %v4317_v56 = vadd.f32 %v7056_v48, %v4237_v54  ;;  %v2053_v4 = vadd.f32 %v2037_v51, %v1973_v25  ;;  %v12590_v20 = vld [vmem:[#allocation83_spill] sm:$0xff]  ;;  %v12594_v54 = vld [vmem:[#allocation90_spill] sm:$0xff] }
 0x207   : >> { %v3375_v58 = vsel %vm1171_vm1, %v12585_v21, %v7051_v9  ;;  %v3455_v14 = vsel %vm1252_vm2, %v12588_v46, %v7068_v1  ;;  %v12589_v21 = vld [vmem:[#allocation75_spill] sm:$0xff]  ;;  %v7270_v3 = vmul.f32 %v7044_v2, %v12590_v20  ;;  %v7273_v16 = vmul.f32 %v12591_v35, %v3295_v50  ;;  %v12595_v2 = vld [vmem:[#allocation93_spill] sm:$0xff]  ;;  %v7291_v50 = vld [vmem:[%s6439_s11 + $0x168] sm:$0xff] }
 0x208   : >> { %v7266_v9 = vmul.f32 %v12589_v21, %v2907_v15  ;;  %v12592_v46 = vld [vmem:[#allocation87_spill] sm:$0xff]  ;;  %v4425_v51 = vadd.f32 %v7114_v10, %v4317_v56  ;;  %v2133_v25 = vadd.f32 %v2117_v31, %v2053_v4  ;;  %v7285_v15 = vmul.f32 %v12594_v54, %v3455_v14  ;;  %12596 = vst [vmem:[#allocation65_spill] sm:$0xff] %v7291_v50  ;;  %v7294_v35 = vld [vmem:[%s6439_s11] sm:$0xff]  ;;  %v12604_v54 = vld [vmem:[#allocation96_spill] sm:$0xff] }
 0x209   : >> { %v7276_v1 = vmul.f32 %v12592_v46, %v3375_v58  ;;  %v7288_v40 = vmul.f32 %v4679_v55, %v12595_v2  ;;  %12597 = vst [vmem:[#allocation80_spill] sm:$0xff] %v7294_v35  ;;  %v7297_v58 = vld [vmem:[%s6439_s11 + $0xb0] sm:$0xff]  ;;  %v12599_v32 = vrot.slane %v7224_v6, 5  ;;  %v12600_v46 = vld [vmem:[#allocation64_spill] sm:$0xff]  ;;  %v12602_v31 = vrot.slane %v7224_v6, 6  ;;  %v12605_v21 = vld [vmem:[#allocation98_spill] sm:$0xff] }
 0x20a   : >> { %12598 = vst [vmem:[#allocation82_spill] sm:$0xff] %v7297_v58  ;;  %v12601_v44 = vrot.slane %v12600_v46, 5  ;;  %v12603_v14 = vrot.slane %v12600_v46, 6  ;;  %v4105_v56 = vrot.slane %v7224_v6, 1  ;;  %v4505_v48 = vadd.f32 %v7118_v47, %v4425_v51 }
 0x20b   : >> { %v2241_v2 = vadd.f32 %v2225_v57, %v2133_v25  ;;  %v7316_v20 = vmul.f32 %v7147_v39, %v12604_v54  ;;  %v12607_v8 = vrot.slane %v12600_v46, 7  ;;  %v11975_v47 = vrot.slane %v7294_v35, 5 }
 0x20c   : >> { %v3843_v10 = vsel %vm1090_vm0, %v12601_v44, %v12599_v32  ;;  %v3923_v55 = vsel %vm1171_vm1, %v12603_v14, %v12602_v31  ;;  %v7320_v44 = vmul.f32 %v7153_v37, %v12605_v21  ;;  %v12606_v32 = vrot.slane %v7224_v6, 7  ;;  %v12608_v14 = vld [vmem:[#allocation105_spill] sm:$0xff]  ;;  %v12609_v37 = vld [vmem:[#allocation100_spill] sm:$0xff]  ;;  %v12610_v21 = vld [vmem:[#allocation103_spill] sm:$0xff] }
 0x20d   : >> { %v7330_v4 = vmul.f32 %v7224_v6, %v12608_v14  ;;  %v11976_v39 = vrot.slane %v7297_v58, 5  ;;  %v4585_v57 = vadd.f32 %v7121_v18, %v4505_v48  ;;  %v2321_v51 = vadd.f32 %v2305_v28, %v2241_v2  ;;  %v12612_v28 = vld [vmem:[#allocation33_spill] sm:$0xff]  ;;  %v12613_v48 = vld [vmem:[#allocation19_spill] sm:$0xff] }
 0x20e   : >> { %v4003_v31 = vsel %vm1252_vm2, %v12607_v8, %v12606_v32  ;;  %v7336_v25 = vmul.f32 %v12609_v37, %v3843_v10  ;;  %v7339_v54 = vmul.f32 %v12610_v21, %v3923_v55  ;;  %v12611_v46 = vrot.slane %v7291_v50, 1  ;;  %v12615_v21 = vld [vmem:[#allocation104_spill] sm:$0xff]  ;;  %v12616_v37 = vld [vmem:[#allocation34_spill] sm:$0xff] }
 0x20f   : >> { %v1105_v18 = vsel %vm1090_vm0, %v11976_v39, %v11975_v47  ;;  %v7355_v2 = vrot.slane %v12613_v48, %v12612_v28  ;;  %v4625_v55 = vadd.f32 %v7138_v5, %v4585_v57  ;;  %v2401_v32 = vadd.f32 %v2385_v43, %v2321_v51  ;;  %v7383_v51 = vld [vmem:[%s6439_s11 + $0x10] sm:$0xff] }
 0x210   : >> { %v7345_v8 = vsel %vm1373_vm3, %v4105_v56, %v12611_v46  ;;  %v7360_v56 = vmul.f32 %v12615_v21, %v4003_v31  ;;  %v11977_v46 = vrot.slane %v7297_v58, 6  ;;  %v7366_v0 = vrot.slane %v12613_v48, %v12616_v37  ;;  %12620 = vst [vmem:[#allocation95_spill] sm:$0xff] %v7383_v51 }
 0x211   : >> { %12614 = vst [vmem:[#allocation92_spill] sm:$0xff] %v7355_v2  ;;  %v1115_v14 = vmul.f32 %v7355_v2, %v1105_v18  ;;  %v11980_v47 = vrot.slane %v7294_v35, 7  ;;  %v11981_v39 = vrot.slane %v7297_v58, 7  ;;  %v4705_v10 = vadd.f32 %v7141_v7, %v4625_v55 }
 0x212   : >> { %12617 = vst [vmem:[#allocation44_spill] sm:$0xff] %v7366_v0  ;;  %v2441_v5 = vadd.f32 %v7198_v29, %v2401_v32  ;;  %v12618_v43 = vrot.slane %v7294_v35, 6  ;;  %v7380_v57 = vrot.slane %v12613_v48, %v6416_v60  ;;  %v7394_v7 = vrot.slane %v12613_v48, %v6419_v61 }
 0x213   : >> { %v1267_v29 = vsel %vm1252_vm2, %v11981_v39, %v11980_v47  ;;  %v1349_v55 = vrot.slane %v7294_v35, 1  ;;  %v4785_v32 = vadd.f32 %v7164_v63, %v4705_v10  ;;  %v7405_v47 = vrot.slane %v12613_v48, %v6434_v17  ;;  %v7416_v10 = vld [vmem:[%s6439_s11 + $0x30] sm:$0xff] }
 0x214   : >> { %v1186_v31 = vsel %vm1171_vm1, %v11977_v46, %v12618_v43  ;;  %12619 = vst [vmem:[#allocation79_spill] sm:$0xff] %v7380_v57  ;;  %12621 = vst [vmem:[#allocation94_spill] sm:$0xff] %v7394_v7  ;;  %v2521_v43 = vadd.f32 %v7209_v19, %v2441_v5  ;;  %v11988_v46 = vrot.slane %v7383_v51, 1  ;;  %v1317_v58 = vmul.f32 %v7394_v7, %v7294_v35  ;;  %v7419_v5 = vld [vmem:[%s6439_s11 + $0xe0] sm:$0xff] }
 0x215   : >> { %v1196_v18 = vmul.f32 %v7366_v0, %v1186_v31  ;;  %v1277_v31 = vmul.f32 %v7380_v57, %v1267_v29  ;;  %12622 = vst [vmem:[#allocation107_spill] sm:$0xff] %v7405_v47  ;;  %v1430_v39 = vrot.slane %v7294_v35, 2  ;;  %v4865_v0 = vadd.f32 %v7168_v34, %v4785_v32  ;;  %12623 = vst [vmem:[#allocation111_spill] sm:$0xff] %v7416_v10 }
 0x216   : >> { %v2601_v63 = vadd.f32 %v7213_v12, %v2521_v43  ;;  %v1388_v19 = vsel %vm1373_vm3, %v1349_v55, %v11988_v46  ;;  %12624 = vst [vmem:[#allocation53_spill] sm:$0xff] %v7419_v5  ;;  %v7424_v7 = vrot.slane %v12613_v48, %v6453_v23  ;;  %v1511_v34 = vrot.slane %v7294_v35, 3 }
 0x217   : >> { %v1212_v21 = vadd.f32 %v1196_v18, %v1115_v14  ;;  %v11987_v14 = vrot.slane %v7383_v51, 2  ;;  %v1398_v29 = vmul.f32 %v7405_v47, %v1388_v19  ;;  %4976 = vmatprep.mubr.f32.mxu0 %v4865_v0  ;;  %v11986_v32 = vrot.slane %v7383_v51, 3 }
 0x218   : >> { %12625 = vst [vmem:[#allocation110_spill] sm:$0xff] %v7424_v7  ;;  %v2681_v12 = vadd.f32 %v7218_v41, %v2601_v63  ;;  %v11989_v19 = vrot.slane %v7416_v10, 5  ;;  %v11990_v0 = vrot.slane %v7419_v5, 5  ;;  %v7447_v63 = vrot.slane %v12613_v48, %v6519_v59 }
 0x219   : >> { %v1293_v18 = vadd.f32 %v1277_v31, %v1212_v21  ;;  %v1469_v55 = vsel %vm1454_vm4, %v1430_v39, %v11987_v14  ;;  %v7435_v21 = vrot.slane %v12613_v48, %v6463_v30  ;;  %v1550_v39 = vsel %vm1535_vm5, %v1511_v34, %v11986_v32  ;;  %v12628_v14 = vld [vmem:[#allocation21_spill] sm:$0xff] }
 0x21a   : >> { %v1479_v31 = vmul.f32 %v7424_v7, %v1469_v55  ;;  %v2789_v41 = vadd.f32 %v7221_v27, %v2681_v12  ;;  %12627 = vst [vmem:[#allocation33_spill] sm:$0xff] %v7447_v63  ;;  %v1658_v27 = vsel %vm1090_vm0, %v11990_v0, %v11989_v19  ;;  %v11992_v12 = vrot.slane %v7419_v5, 6 }
 0x21b   : >> { %12626 = vst [vmem:[#allocation64_spill] sm:$0xff] %v7435_v21  ;;  %v1333_v43 = vadd.f32 %v1317_v58, %v1293_v18  ;;  %v11991_v58 = vrot.slane %v7416_v10, 6  ;;  %v1560_v55 = vmul.f32 %v7435_v21, %v1550_v39  ;;  %v1668_v32 = vmul.f32 %v7447_v63, %v1658_v27  ;;  %v12631_v27 = vld [vmem:[#allocation106_spill] sm:$0xff] }
 0x21c   : >> { %v2869_v34 = vadd.f32 %v7227_v36, %v2789_v41  ;;  %v7462_v46 = vrot.slane %v12628_v14, %v12612_v28  ;;  %v11999_v19 = vrot.slane %v7419_v5, 7  ;;  %v7474_v36 = vrot.slane %v12628_v14, %v12616_v37 }
 0x21d   : >> { %v1414_v18 = vadd.f32 %v1398_v29, %v1333_v43  ;;  %v11998_v29 = vrot.slane %v7416_v10, 7  ;;  %v1738_v39 = vsel %vm1171_vm1, %v11992_v12, %v11991_v58  ;;  %v7479_v0 = vmul.f32 %v12631_v27, %v7345_v8  ;;  %v7508_v27 = vld [vmem:[%s6439_s11 + $0x110] sm:$0xff] }
 0x21e   : >> { %12629 = vst [vmem:[#allocation34_spill] sm:$0xff] %v7462_v46  ;;  %12630 = vst [vmem:[#allocation122_spill] sm:$0xff] %v7474_v36  ;;  %v2949_v41 = vadd.f32 %v7266_v9, %v2869_v34  ;;  %v1900_v58 = vrot.slane %v7416_v10, 1  ;;  %v7494_v8 = vrot.slane %v12628_v14, %v6416_v60 }
 0x21f   : >> { %v1495_v43 = vadd.f32 %v1479_v31, %v1414_v18  ;;  %v7482_v31 = vld [vmem:[%s6439_s11 + $0x40] sm:$0xff]  ;;  %v1748_v18 = vmul.f32 %v7462_v46, %v1738_v39  ;;  %v1818_v9 = vsel %vm1252_vm2, %v11999_v19, %v11998_v29  ;;  %v4185_v39 = vrot.slane %v7224_v6, 2  ;;  %12635 = vst [vmem:[#allocation126_spill] sm:$0xff] %v7508_v27 }
 0x220   : >> { %12632 = vst [vmem:[#allocation123_spill] sm:$0xff] %v7482_v31  ;;  %12633 = vst [vmem:[#allocation124_spill] sm:$0xff] %v7494_v8  ;;  %v12004_v34 = vrot.slane %v7482_v31, 1  ;;  %v2989_v48 = vadd.f32 %v7236_v38, %v2949_v41  ;;  %v1828_v35 = vmul.f32 %v7474_v36, %v1818_v9  ;;  %v7504_v29 = vrot.slane %v12628_v14, %v6419_v61  ;;  %v7512_v41 = vld [vmem:[%s6439_s11 + $0x188] sm:$0xff] }
 0x221   : >> { %v1576_v12 = vadd.f32 %v1560_v55, %v1495_v43  ;;  %v1980_v55 = vrot.slane %v7416_v10, 2  ;;  %12636 = vst [vmem:[#allocation127_spill] sm:$0xff] %v7512_v41  ;;  %v4265_v9 = vrot.slane %v7224_v6, 3  ;;  %v1868_v19 = vmul.f32 %v7416_v10, %v7494_v8 }
 0x222   : >> { %12634 = vst [vmem:[#allocation125_spill] sm:$0xff] %v7504_v29  ;;  %v3069_v38 = vadd.f32 %v7240_v45, %v2989_v48  ;;  %v1938_v51 = vsel %vm1373_vm3, %v1900_v58, %v12004_v34  ;;  %v7525_v45 = vrot.slane %v12628_v14, %v6434_v17  ;;  %v7528_v48 = vld [vmem:[%s6439_s11 + $0x60] sm:$0xff]  ;;  %v12638_v34 = vrot.slane %v7482_v31, 2 }
 0x223   : >> { %v1684_v43 = vadd.f32 %v1668_v32, %v1576_v12  ;;  %v2060_v32 = vrot.slane %v7416_v10, 3  ;;  %v1948_v10 = vmul.f32 %v7504_v29, %v1938_v51  ;;  %v7541_v8 = vrot.slane %v12628_v14, %v6453_v23 }
 0x224   : >> { %12637 = vst [vmem:[#allocation128_spill] sm:$0xff] %v7525_v45  ;;  %v3149_v36 = vadd.f32 %v7255_v42, %v3069_v38  ;;  %v2018_v12 = vsel %vm1454_vm4, %v1980_v55, %v12638_v34  ;;  %v12640_v38 = vrot.slane %v7482_v31, 3  ;;  %v7549_v34 = vrot.slane %v7528_v48, 5 }
 0x225   : >> { %v1764_v5 = vadd.f32 %v1748_v18, %v1684_v43  ;;  %v12011_v18 = vrot.slane %v7508_v27, 5  ;;  %12639 = vst [vmem:[#allocation129_spill] sm:$0xff] %v7541_v8  ;;  %v12012_v55 = vrot.slane %v7508_v27, 6  ;;  %v2028_v51 = vmul.f32 %v7525_v45, %v2018_v12 }
 0x226   : >> { %v3229_v42 = vadd.f32 %v7270_v3, %v3149_v36  ;;  %v2098_v58 = vsel %vm1535_vm5, %v2060_v32, %v12640_v38  ;;  %12641 = vst [vmem:[#allocation130_spill] sm:$0xff] %v7549_v34  ;;  %v7556_v43 = vrot.slane %v12628_v14, %v6463_v30  ;;  %v7565_v32 = vrot.slane %v7528_v48, 6 }
 0x227   : >> { %v1844_v6 = vadd.f32 %v1828_v35, %v1764_v5  ;;  %v2206_v36 = vsel %vm1090_vm0, %v12011_v18, %v7549_v34  ;;  %v2108_v35 = vmul.f32 %v7541_v8, %v2098_v58  ;;  %v12646_v18 = vrot.slane %v7291_v50, 3 }
 0x228   : >> { %12642 = vst [vmem:[#allocation131_spill] sm:$0xff] %v7556_v43  ;;  %v3337_v3 = vadd.f32 %v7273_v16, %v3229_v42  ;;  %12643 = vst [vmem:[#allocation132_spill] sm:$0xff] %v7565_v32  ;;  %v7575_v16 = vrot.slane %v12628_v14, %v6519_v59  ;;  %v7617_v14 = vld [vmem:[%s6439_s11 + $0x70] sm:$0xff] }
 0x229   : >> { %v1884_v5 = vadd.f32 %v1868_v19, %v1844_v6  ;;  %v12644_v6 = vrot.slane %v7291_v50, 2  ;;  %v4283_v38 = vsel %vm1535_vm5, %v4265_v9, %v12646_v18  ;;  %v7599_v18 = vmul.f32 %v7512_v41, %v7085_v52  ;;  %12653 = vst [vmem:[#allocation137_spill] sm:$0xff] %v7617_v14 }
 0x22a   : >> { %12645 = vst [vmem:[#allocation133_spill] sm:$0xff] %v7575_v16  ;;  %v3417_v42 = vadd.f32 %v7276_v1, %v3337_v3  ;;  %v12648_v1 = vld [vmem:[#allocation23_spill] sm:$0xff]  ;;  %v12654_v52 = vrot.slane %v7512_v41, 5 }
 0x22b   : >> { %v4203_v19 = vsel %vm1454_vm4, %v4185_v39, %v12644_v6  ;;  %v1964_v12 = vadd.f32 %v1948_v10, %v1884_v5  ;;  %v2286_v10 = vsel %vm1171_vm1, %v12012_v55, %v7565_v32  ;;  %v7588_v39 = vrot.slane %v7528_v48, 7 }
 0x22c   : >> { %v2216_v6 = vmul.f32 %v7556_v43, %v2206_v36  ;;  %v7594_v3 = vrot.slane %v12648_v1, %v12612_v28  ;;  %v3497_v9 = vadd.f32 %v7285_v15, %v3417_v42  ;;  %v12650_v55 = vrot.slane %v7508_v27, 7  ;;  %v12652_v36 = vld [vmem:[#allocation108_spill] sm:$0xff] }
 0x22d   : >> { %12647 = vst [vmem:[#allocation134_spill] sm:$0xff] %v7588_v39  ;;  %v2044_v5 = vadd.f32 %v2028_v51, %v1964_v12  ;;  %v7608_v51 = vrot.slane %v12648_v1, %v12616_v37  ;;  %v7611_v12 = vmul.f32 %v12652_v36, %v4203_v19  ;;  %v7614_v15 = vmul.f32 %v7011_v11, %v4283_v38 }
 0x22e   : >> { %12649 = vst [vmem:[#allocation135_spill] sm:$0xff] %v7594_v3  ;;  %v2366_v58 = vsel %vm1252_vm2, %v12650_v55, %v7588_v39  ;;  %v2296_v50 = vmul.f32 %v7575_v16, %v2286_v10  ;;  %v3537_v31 = vadd.f32 %v7280_v13, %v3497_v9  ;;  %v12655_v55 = vld [vmem:[#allocation77_spill] sm:$0xff]  ;;  %v2448_v19 = vrot.slane %v7528_v48, 1 }
 0x22f   : >> { %12651 = vst [vmem:[#allocation136_spill] sm:$0xff] %v7608_v51  ;;  %v2124_v42 = vadd.f32 %v2108_v35, %v2044_v5  ;;  %v12656_v27 = vrot.slane %v12655_v55, 5  ;;  %v12657_v35 = vrot.slane %v7512_v41, 6  ;;  %v12658_v5 = vrot.slane %v12655_v55, 6 }
 0x230   : >> { %v2376_v9 = vmul.f32 %v7594_v3, %v2366_v58  ;;  %v7638_v11 = vrot.slane %v12648_v1, %v6416_v60  ;;  %v2416_v38 = vmul.f32 %v7528_v48, %v7608_v51  ;;  %v2528_v36 = vrot.slane %v7528_v48, 2 }
 0x231   : >> { %v4391_v43 = vsel %vm1090_vm0, %v12656_v27, %v12654_v52  ;;  %v4471_v10 = vsel %vm1171_vm1, %v12658_v5, %v12657_v35  ;;  %v2232_v13 = vadd.f32 %v2216_v6, %v2124_v42  ;;  %v7641_v52 = vld [vmem:[%s6439_s11 + $0x140] sm:$0xff]  ;;  %v3617_v27 = vadd.f32 %v7288_v40, %v3537_v31  ;;  %v7655_v35 = vld [vmem:[%s6439_s11 + $0x90] sm:$0xff] }
 0x232   : >> { %12659 = vst [vmem:[#allocation77_spill] sm:$0xff] %v7638_v11  ;;  %12660 = vst [vmem:[#allocation138_spill] sm:$0xff] %v7641_v52  ;;  %v7650_v6 = vrot.slane %v12648_v1, %v6419_v61  ;;  %v2608_v58 = vrot.slane %v7528_v48, 3  ;;  %v12662_v31 = vrot.slane %v7512_v41, 7  ;;  %v12663_v5 = vrot.slane %v12655_v55, 7 }
 0x233   : >> { %v2312_v8 = vadd.f32 %v2296_v50, %v2232_v13  ;;  %v3697_v40 = vadd.f32 %v7316_v20, %v3617_v27  ;;  %v12664_v50 = vrot.slane %v7617_v14, 1  ;;  %v4653_v42 = vrot.slane %v7512_v41, 1 }
 0x234   : >> { %12661 = vst [vmem:[#allocation139_spill] sm:$0xff] %v7650_v6  ;;  %v4551_v16 = vsel %vm1252_vm2, %v12663_v5, %v12662_v31  ;;  %v7676_v55 = vrot.slane %v12648_v1, %v6434_v17  ;;  %v12666_v31 = vrot.slane %v7617_v14, 2  ;;  %v7686_v5 = vrot.slane %v7655_v35, 5 }
 0x235   : >> { %v7668_v13 = vsel %vm1373_vm3, %v2448_v19, %v12664_v50  ;;  %v2392_v51 = vadd.f32 %v2376_v9, %v2312_v8  ;;  %v3777_v27 = vadd.f32 %v7320_v44, %v3697_v40  ;;  %v12668_v3 = vrot.slane %v7617_v14, 3 }
 0x236   : >> { %v2496_v20 = vmul.f32 %v7638_v11, %v7668_v13  ;;  %12665 = vst [vmem:[#allocation140_spill] sm:$0xff] %v7676_v55  ;;  %v7683_v19 = vsel %vm1454_vm4, %v2528_v36, %v12666_v31  ;;  %12667 = vst [vmem:[#allocation141_spill] sm:$0xff] %v7686_v5  ;;  %v7699_v36 = vrot.slane %v12648_v1, %v6453_v23  ;;  %v12670_v31 = vrot.slane %v7641_v52, 5 }
 0x237   : >> { %v2432_v9 = vadd.f32 %v2416_v38, %v2392_v51  ;;  %v2576_v50 = vmul.f32 %v7650_v6, %v7683_v19  ;;  %v7695_v44 = vsel %vm1535_vm5, %v2608_v58, %v12668_v3  ;;  %v3885_v40 = vadd.f32 %v7336_v25, %v3777_v27 }
 0x238   : >> { %12669 = vst [vmem:[#allocation142_spill] sm:$0xff] %v7699_v36  ;;  %v2754_v51 = vsel %vm1090_vm0, %v12670_v31, %v7686_v5  ;;  %v7708_v38 = vrot.slane %v7655_v35, 6  ;;  %v4417_v3 = vmul.f32 %v7048_v33, %v4391_v43  ;;  %v2656_v14 = vmul.f32 %v7676_v55, %v7695_v44 }
 0x239   : >> { %v2512_v58 = vadd.f32 %v2496_v20, %v2432_v9  ;;  %v7716_v25 = vrot.slane %v12648_v1, %v6463_v30  ;;  %v3965_v27 = vadd.f32 %v7339_v54, %v3885_v40  ;;  %v4497_v31 = vmul.f32 %v7065_v62, %v4471_v10  ;;  %v7729_v20 = vld [vmem:[%s6439_s11 + $0x198] sm:$0xff] }
 0x23a   : >> { %12671 = vst [vmem:[#allocation143_spill] sm:$0xff] %v7708_v38  ;;  %v12673_v6 = vrot.slane %v7641_v52, 6  ;;  %v7726_v43 = vrot.slane %v7655_v35, 7  ;;  %12675 = vst [vmem:[#allocation146_spill] sm:$0xff] %v7729_v20  ;;  %v7732_v9 = vmul.f32 %v7081_v26, %v4551_v16  ;;  %v2764_v54 = vmul.f32 %v7699_v36, %v2754_v51  ;;  %v12678_v16 = vld [vmem:[#allocation25_spill] sm:$0xff] }
 0x23b   : >> { %12672 = vst [vmem:[#allocation144_spill] sm:$0xff] %v7716_v25  ;;  %v2592_v33 = vadd.f32 %v2576_v50, %v2512_v58  ;;  %v7737_v10 = vrot.slane %v12648_v1, %v6519_v59  ;;  %v4045_v40 = vadd.f32 %v7360_v56, %v3965_v27  ;;  %v7748_v50 = vrot.slane %v12678_v16, %v12612_v28  ;;  %v7753_v26 = vld [vmem:[%s6439_s11 + $0xa0] sm:$0xff] }
 0x23c   : >> { %v2834_v8 = vsel %vm1171_vm1, %v12673_v6, %v7708_v38  ;;  %12674 = vst [vmem:[#allocation145_spill] sm:$0xff] %v7726_v43  ;;  %v12677_v6 = vrot.slane %v7641_v52, 7  ;;  %v4733_v51 = vrot.slane %v7512_v41, 2  ;;  %12680 = vst [vmem:[#allocation149_spill] sm:$0xff] %v7753_v26  ;;  %v4813_v62 = vrot.slane %v7512_v41, 3  ;;  %v7781_v36 = vld [vmem:[%s6439_s11 + $0xc0] sm:$0xff] }
 0x23d   : >> { %12676 = vst [vmem:[#allocation147_spill] sm:$0xff] %v7737_v10  ;;  %12679 = vst [vmem:[#allocation148_spill] sm:$0xff] %v7748_v50  ;;  %v2672_v1 = vadd.f32 %v2656_v14, %v2592_v33  ;;  %v2844_v56 = vmul.f32 %v7716_v25, %v2834_v8  ;;  %v4085_v27 = vadd.f32 %v7330_v4, %v4045_v40  ;;  %v7767_v14 = vld [vmem:[%s6439_s11 + $0x170] sm:$0xff]  ;;  %v3076_v40 = vrot.slane %v7655_v35, 2 }
 0x23e   : >> { %v2914_v55 = vsel %vm1252_vm2, %v12677_v6, %v7726_v43  ;;  %v2996_v6 = vrot.slane %v7655_v35, 1  ;;  %v7764_v33 = vrot.slane %v12678_v16, %v12616_v37  ;;  %12682 = vst [vmem:[#allocation151_spill] sm:$0xff] %v7767_v14  ;;  %v2964_v8 = vmul.f32 %v7655_v35, %v7748_v50 }
 0x23f   : >> { %v2780_v11 = vadd.f32 %v2764_v54, %v2672_v1  ;;  %v2924_v45 = vmul.f32 %v7737_v10, %v2914_v55  ;;  %v4165_v4 = vadd.f32 %v7479_v0, %v4085_v27  ;;  %v7776_v1 = vrot.slane %v12678_v16, %v6416_v60 }
 0x240   : >> { %12681 = vst [vmem:[#allocation150_spill] sm:$0xff] %v7764_v33  ;;  %v3156_v55 = vrot.slane %v7655_v35, 3  ;;  %v12684_v27 = vrot.slane %v7729_v20, 1  ;;  %v12685_v58 = vrot.slane %v7753_v26, 1  ;;  %v12686_v10 = vrot.slane %v7729_v20, 2 }
 0x241   : >> { %v2860_v52 = vadd.f32 %v2844_v56, %v2780_v11  ;;  %12683 = vst [vmem:[#allocation152_spill] sm:$0xff] %v7776_v1  ;;  %v4245_v0 = vadd.f32 %v7611_v12, %v4165_v4  ;;  %v12063_v56 = vrot.slane %v7767_v14, 5 }
 0x242   : >> { %v4671_v41 = vsel %vm1373_vm3, %v4653_v42, %v12684_v27  ;;  %v7792_v11 = vsel %vm1373_vm3, %v2996_v6, %v12685_v58  ;;  %v4751_v54 = vsel %vm1454_vm4, %v4733_v51, %v12686_v10  ;;  %v7803_v42 = vrot.slane %v12678_v16, %v6419_v61 }
 0x243   : >> { %v2940_v25 = vadd.f32 %v2924_v45, %v2860_v52  ;;  %v3044_v12 = vmul.f32 %v7764_v33, %v7792_v11  ;;  %v4325_v4 = vadd.f32 %v7614_v15, %v4245_v0  ;;  %v12688_v58 = vrot.slane %v7753_v26, 2 }
 0x244   : >> { %12687 = vst [vmem:[#allocation153_spill] sm:$0xff] %v7803_v42  ;;  %v7813_v27 = vrot.slane %v7781_v36, 5  ;;  %v12690_v51 = vrot.slane %v7753_v26, 3  ;;  %v4697_v45 = vmul.f32 %v7097_v24, %v4671_v41  ;;  %v12694_v26 = vrot.slane %v7729_v20, 3 }
 0x245   : >> { %v7810_v6 = vsel %vm1454_vm4, %v3076_v40, %v12688_v58  ;;  %v2980_v52 = vadd.f32 %v2964_v8, %v2940_v25  ;;  %v7826_v40 = vrot.slane %v12678_v16, %v6434_v17  ;;  %v4433_v0 = vadd.f32 %v4417_v3, %v4325_v4  ;;  %v7857_v58 = vld [vmem:[%s6439_s11 + $0xd0] sm:$0xff] }
 0x246   : >> { %12689 = vst [vmem:[#allocation154_spill] sm:$0xff] %v7813_v27  ;;  %v3124_v10 = vmul.f32 %v7776_v1, %v7810_v6  ;;  %v7822_v15 = vsel %vm1535_vm5, %v3156_v55, %v12690_v51  ;;  %v3302_v25 = vsel %vm1090_vm0, %v12063_v56, %v7813_v27  ;;  %v7834_v8 = vrot.slane %v7781_v36, 6  ;;  %12697 = vst [vmem:[#allocation159_spill] sm:$0xff] %v7857_v58 }
 0x247   : >> { %12691 = vst [vmem:[#allocation155_spill] sm:$0xff] %v7826_v40  ;;  %v3060_v55 = vadd.f32 %v3044_v12, %v2980_v52  ;;  %v3204_v51 = vmul.f32 %v7803_v42, %v7822_v15  ;;  %v7842_v3 = vrot.slane %v12678_v16, %v6453_v23  ;;  %v4513_v4 = vadd.f32 %v4497_v31, %v4433_v0  ;;  %v5337_v42 = vld [vmem:[%s6439_s11 + $0x1a0] sm:$0xff] }
 0x248   : >> { %12692 = vst [vmem:[#allocation156_spill] sm:$0xff] %v7834_v8  ;;  %v4831_v56 = vsel %vm1535_vm5, %v4813_v62, %v12694_v26  ;;  %v12695_v1 = vrot.slane %v7767_v14, 6  ;;  %v7854_v12 = vrot.slane %v7781_v36, 7  ;;  %v3312_v31 = vmul.f32 %v7826_v40, %v3302_v25  ;;  %v12701_v40 = vld [vmem:[#allocation27_spill] sm:$0xff] }
 0x249   : >> { %12693 = vst [vmem:[#allocation157_spill] sm:$0xff] %v7842_v3  ;;  %v3140_v52 = vadd.f32 %v3124_v10, %v3060_v55  ;;  %v7862_v0 = vrot.slane %v12678_v16, %v6463_v30  ;;  %v7866_v26 = vrot.slane %v12678_v16, %v6519_v59  ;;  %v4593_v62 = vadd.f32 %v7732_v9, %v4513_v4 }
 0x24a   : >> { %v3382_v41 = vsel %vm1171_vm1, %v12695_v1, %v7834_v8  ;;  %12696 = vst [vmem:[#allocation158_spill] sm:$0xff] %v7854_v12  ;;  %v12700_v1 = vrot.slane %v7767_v14, 7  ;;  %v3544_v55 = vrot.slane %v7781_v36, 1  ;;  %v7879_v16 = vrot.slane %v12701_v40, %v12612_v28 }
 0x24b   : >> { %12698 = vst [vmem:[#allocation160_spill] sm:$0xff] %v7862_v0  ;;  %12699 = vst [vmem:[#allocation161_spill] sm:$0xff] %v7866_v26  ;;  %v3220_v20 = vadd.f32 %v3204_v51, %v3140_v52  ;;  %v3392_v24 = vmul.f32 %v7842_v3, %v3382_v41  ;;  %v4633_v9 = vadd.f32 %v7599_v18, %v4593_v62  ;;  %v3624_v14 = vrot.slane %v7781_v36, 2  ;;  %v7901_v62 = vld [vmem:[%s6439_s11 + $0xf0] sm:$0xff] }
 0x24c   : >> { %v3462_v10 = vsel %vm1252_vm2, %v12700_v1, %v7854_v12  ;;  %12702 = vst [vmem:[#allocation162_spill] sm:$0xff] %v7879_v16  ;;  %v4777_v4 = vmul.f32 %v7125_v49, %v4751_v54  ;;  %v12086_v1 = vrot.slane %v7857_v58, 2  ;;  %v4857_v33 = vmul.f32 %v12547_v22, %v4831_v56  ;;  %12705 = vst [vmem:[#allocation164_spill] sm:$0xff] %v7901_v62 }
 0x24d   : >> { %v3328_v25 = vadd.f32 %v3312_v31, %v3220_v20  ;;  %v3472_v51 = vmul.f32 %v7862_v0, %v3462_v10  ;;  %v4713_v52 = vadd.f32 %v4697_v45, %v4633_v9  ;;  %v3512_v41 = vmul.f32 %v7781_v36, %v7866_v26 }
 0x24e   : >> { %v12703_v3 = vrot.slane %v7857_v58, 1  ;;  %v7898_v54 = vrot.slane %v12701_v40, %v12616_v37  ;;  %v3704_v45 = vrot.slane %v7781_v36, 3  ;;  %v3834_v31 = vrot.slane %v5337_v42, 5 }
 0x24f   : >> { %v3408_v56 = vadd.f32 %v3392_v24, %v3328_v25  ;;  %v4793_v10 = vadd.f32 %v4777_v4, %v4713_v52  ;;  %v3914_v9 = vrot.slane %v5337_v42, 6  ;;  %v7915_v24 = vrot.slane %v12701_v40, %v6416_v60 }
 0x250   : >> { %v7894_v18 = vsel %vm1373_vm3, %v3544_v55, %v12703_v3  ;;  %12704 = vst [vmem:[#allocation163_spill] sm:$0xff] %v7898_v54  ;;  %v7910_v3 = vsel %vm1454_vm4, %v3624_v14, %v12086_v1  ;;  %v12087_v55 = vrot.slane %v7857_v58, 3  ;;  %v7918_v25 = vrot.slane %v7901_v62, 5  ;;  %v1050_v58 = vld [vmem:[%s6439_s11 + $0x50] sm:$0xff] }
 0x251   : >> { %v3592_v20 = vmul.f32 %v7879_v16, %v7894_v18  ;;  %v3488_v22 = vadd.f32 %v3472_v51, %v3408_v56  ;;  %12706 = vst [vmem:[#allocation165_spill] sm:$0xff] %v7915_v24  ;;  %v3994_v49 = vrot.slane %v5337_v42, 7  ;;  %v4873_v16 = vadd.f32 %v4857_v33, %v4793_v10 }
 0x252   : >> { %12707 = vst [vmem:[#allocation166_spill] sm:$0xff] %v7918_v25  ;;  %v3672_v4 = vmul.f32 %v7898_v54, %v7910_v3  ;;  %v7924_v14 = vrot.slane %v12701_v40, %v6419_v61  ;;  %v7927_v51 = vrot.slane %v7901_v62, 6  ;;  %v3850_v56 = vsel %vm1090_vm0, %v3834_v31, %v7918_v25 }
 0x253   : >> { %v3528_v52 = vadd.f32 %v3512_v41, %v3488_v22  ;;  %v7934_v33 = vrot.slane %v12701_v40, %v6434_v17  ;;  %v7937_v42 = vrot.slane %v7901_v62, 7  ;;  %4996 = vmatprep.mubr.f32.mxu1 %v4873_v16  ;;  %v7943_v10 = vsel %vm1535_vm5, %v3704_v45, %v12087_v55  ;;  %v7962_v55 = vld [vmem:[%s6439_s11 + $0x100] sm:$0xff] }
 0x254   : >> { %12708 = vst [vmem:[#allocation167_spill] sm:$0xff] %v7924_v14  ;;  %12709 = vst [vmem:[#allocation168_spill] sm:$0xff] %v7927_v51  ;;  %v3930_v22 = vsel %vm1171_vm1, %v3914_v9, %v7927_v51  ;;  %v7950_v41 = vrot.slane %v12701_v40, %v6453_v23  ;;  %v7954_v31 = vrot.slane %v12701_v40, %v6463_v30  ;;  %v4092_v26 = vrot.slane %v7901_v62, 1 }
 0x255   : >> { %12710 = vst [vmem:[#allocation169_spill] sm:$0xff] %v7934_v33  ;;  %12711 = vst [vmem:[#allocation170_spill] sm:$0xff] %v7937_v42  ;;  %v3608_v1 = vadd.f32 %v3592_v20, %v3528_v52  ;;  %v3752_v16 = vmul.f32 %v7915_v24, %v7943_v10  ;;  %v4010_v45 = vsel %vm1252_vm2, %v3994_v49, %v7937_v42  ;;  %v5363_v20 = vld [vmem:[%s6439_s11 + $0x1d0] sm:$0xff]  ;;  %v1238_v50 = vrot.slane %v1050_v58, 7 }
 0x256   : >> { %12712 = vst [vmem:[#allocation171_spill] sm:$0xff] %v7943_v10  ;;  %12713 = vst [vmem:[#allocation172_spill] sm:$0xff] %v7950_v41  ;;  %v3860_v9 = vmul.f32 %v7924_v14, %v3850_v56  ;;  %v3940_v0 = vmul.f32 %v7934_v33, %v3930_v22  ;;  %v4020_v52 = vmul.f32 %v7950_v41, %v4010_v45  ;;  %v4172_v56 = vrot.slane %v7901_v62, 2 }
 0x257   : >> { %12714 = vst [vmem:[#allocation173_spill] sm:$0xff] %v7954_v31  ;;  %12715 = vst [vmem:[#allocation174_spill] sm:$0xff] %v7962_v55  ;;  %v3688_v54 = vadd.f32 %v3672_v4, %v3608_v1  ;;  %v4060_v24 = vmul.f32 %v7901_v62, %v7954_v31  ;;  %v7974_v49 = vrot.slane %v12701_v40, %v6519_v59  ;;  %v12717_v4 = vld [vmem:[#allocation29_spill] sm:$0xff]  ;;  %v1074_v33 = vrot.slane %v1050_v58, 5 }
 0x258   : >> { %v7980_v22 = vrot.slane %v12717_v4, %v12612_v28  ;;  %v4252_v45 = vrot.slane %v7901_v62, 3  ;;  %v1157_v31 = vrot.slane %v1050_v58, 6  ;;  %v12719_v10 = vrot.slane %v7962_v55, 1  ;;  %v12722_v62 = vld [vmem:[#allocation44_spill] sm:$0xff] }
 0x259   : >> { %12716 = vst [vmem:[#allocation175_spill] sm:$0xff] %v7974_v49  ;;  %v3768_v14 = vadd.f32 %v3752_v16, %v3688_v54  ;;  %v7993_v28 = vrot.slane %v12717_v4, %v12616_v37  ;;  %v7996_v16 = vld [vmem:[%s6439_s11 + $0x120] sm:$0xff]  ;;  %v1097_v41 = vsel %vm1090_vm0, %v1074_v33, %v7549_v34  ;;  %v4382_v1 = vrot.slane %v5363_v20, 5 }
 0x25a   : >> { %12718 = vst [vmem:[#allocation176_spill] sm:$0xff] %v7980_v22  ;;  %v7989_v54 = vsel %vm1373_vm3, %v4092_v26, %v12719_v10  ;;  %v1123_v58 = vmul.f32 %v7355_v2, %v1097_v41  ;;  %v1259_v26 = vsel %vm1252_vm2, %v1238_v50, %v7588_v39  ;;  %v12721_v37 = vrot.slane %v7962_v55, 2  ;;  %v5221_v41 = vld [vmem:[%s6439_s11 + $0x80] sm:$0xff] }
 0x25b   : >> { %v3876_v40 = vadd.f32 %v3860_v9, %v3768_v14  ;;  %12720 = vst [vmem:[#allocation177_spill] sm:$0xff] %v7993_v28  ;;  %v1178_v14 = vsel %vm1171_vm1, %v1157_v31, %v7565_v32  ;;  %v1285_v34 = vmul.f32 %v7380_v57, %v1259_v26  ;;  %v4140_v2 = vmul.f32 %v7974_v49, %v7989_v54 }
 0x25c   : >> { %v8012_v9 = vsel %vm1454_vm4, %v4172_v56, %v12721_v37  ;;  %v1204_v33 = vmul.f32 %v12722_v62, %v1178_v14  ;;  %v12723_v50 = vrot.slane %v7962_v55, 3  ;;  %v8032_v14 = vrot.slane %v12717_v4, %v6416_v60  ;;  %v12726_v37 = vld [vmem:[#allocation94_spill] sm:$0xff] }
 0x25d   : >> { %v3956_v10 = vadd.f32 %v3940_v0, %v3876_v40  ;;  %v4220_v31 = vmul.f32 %v7980_v22, %v8012_v9  ;;  %v8028_v0 = vrot.slane %v7996_v16, 5  ;;  %v1325_v39 = vmul.f32 %v7528_v48, %v12726_v37  ;;  %v12814_v37 = vld [vmem:[#allocation49_spill] sm:$0xff] }
 0x25e   : >> { %v8025_v40 = vsel %vm1535_vm5, %v4252_v45, %v12723_v50  ;;  %12725 = vst [vmem:[#allocation179_spill] sm:$0xff] %v8032_v14  ;;  %v1220_v26 = vadd.f32 %v1204_v33, %v1123_v58  ;;  %v4462_v50 = vrot.slane %v5363_v20, 6  ;;  %v1630_v55 = vrot.slane %v5221_v41, 5 }
 0x25f   : >> { %12724 = vst [vmem:[#allocation178_spill] sm:$0xff] %v8028_v0  ;;  %v4036_v56 = vadd.f32 %v4020_v52, %v3956_v10  ;;  %v4300_v32 = vmul.f32 %v7993_v28, %v8025_v40  ;;  %v4398_v45 = vsel %vm1090_vm0, %v4382_v1, %v8028_v0  ;;  %v4542_v62 = vrot.slane %v5363_v20, 7 }
 0x260   : >> { %v1301_v52 = vadd.f32 %v1285_v34, %v1220_v26  ;;  %v1406_v60 = vmul.f32 %v7668_v13, %v7405_v47  ;;  %v8044_v58 = vrot.slane %v7996_v16, 6  ;;  %v8048_v48 = vrot.slane %v12717_v4, %v6419_v61  ;;  %v12811_v47 = vld [vmem:[#allocation50_spill] sm:$0xff] }
 0x261   : >> { %v4076_v57 = vadd.f32 %v4060_v24, %v4036_v56  ;;  %v8051_v10 = vrot.slane %v7996_v16, 7  ;;  %v1710_v1 = vrot.slane %v5221_v41, 6  ;;  %v4408_v24 = vmul.f32 %v8032_v14, %v4398_v45 }
 0x262   : >> { %12727 = vst [vmem:[#allocation180_spill] sm:$0xff] %v8044_v58  ;;  %12728 = vst [vmem:[#allocation181_spill] sm:$0xff] %v8048_v48  ;;  %v1341_v20 = vadd.f32 %v1325_v39, %v1301_v52  ;;  %v1487_v34 = vmul.f32 %v7683_v19, %v7424_v7  ;;  %v4478_v13 = vsel %vm1171_vm1, %v4462_v50, %v8044_v58  ;;  %v1790_v26 = vrot.slane %v5221_v41, 7 }
 0x263   : >> { %12729 = vst [vmem:[#allocation182_spill] sm:$0xff] %v8051_v10  ;;  %v4156_v33 = vadd.f32 %v4140_v2, %v4076_v57  ;;  %v8061_v56 = vrot.slane %v12717_v4, %v6434_v17  ;;  %v1650_v61 = vsel %vm1090_vm0, %v1630_v55, %v7686_v5  ;;  %v8067_v57 = vld [vmem:[%s6439_s11 + $0x130] sm:$0xff]  ;;  %v4558_v39 = vsel %vm1252_vm2, %v4542_v62, %v8051_v10 }
 0x264   : >> { %12731 = vst [vmem:[#allocation184_spill] sm:$0xff] %v8067_v57  ;;  %v1422_v19 = vadd.f32 %v1406_v60, %v1341_v20  ;;  %v1568_v45 = vmul.f32 %v7695_v44, %v7435_v21  ;;  %v8076_v17 = vrot.slane %v12717_v4, %v6453_v23  ;;  %v4640_v50 = vrot.slane %v7996_v16, 1  ;;  %v12761_v5 = vld [vmem:[#allocation147_spill] sm:$0xff] }
 0x265   : >> { %12730 = vst [vmem:[#allocation183_spill] sm:$0xff] %v8061_v56  ;;  %v4236_v2 = vadd.f32 %v4220_v31, %v4156_v33  ;;  %v1730_v41 = vsel %vm1171_vm1, %v1710_v1, %v7708_v38  ;;  %v4488_v52 = vmul.f32 %v8048_v48, %v4478_v13  ;;  %v1676_v60 = vmul.f32 %v7447_v63, %v1650_v61  ;;  %v12803_v63 = vld [vmem:[#allocation167_spill] sm:$0xff] }
 0x266   : >> { %12732 = vst [vmem:[#allocation185_spill] sm:$0xff] %v8076_v17  ;;  %v1503_v62 = vadd.f32 %v1487_v34, %v1422_v19  ;;  %v4568_v44 = vmul.f32 %v8061_v56, %v4558_v39  ;;  %v8088_v23 = vrot.slane %v12717_v4, %v6463_v30  ;;  %v4720_v33 = vrot.slane %v7996_v16, 2 }
 0x267   : >> { %v4316_v31 = vadd.f32 %v4300_v32, %v4236_v2  ;;  %v1810_v20 = vsel %vm1252_vm2, %v1790_v26, %v7726_v43  ;;  %v12121_v32 = vrot.slane %v8067_v57, 2  ;;  %v1756_v34 = vmul.f32 %v7462_v46, %v1730_v41 }
 0x268   : >> { %12733 = vst [vmem:[#allocation186_spill] sm:$0xff] %v8088_v23  ;;  %v1584_v1 = vadd.f32 %v1568_v45, %v1503_v62  ;;  %v4608_v13 = vmul.f32 %v7996_v16, %v8076_v17  ;;  %v12734_v61 = vrot.slane %v8067_v57, 1  ;;  %v8106_v2 = vrot.slane %v12717_v4, %v6519_v59  ;;  %v12736_v45 = vld [vmem:[#allocation122_spill] sm:$0xff] }
 0x269   : >> { %v4424_v55 = vadd.f32 %v4408_v24, %v4316_v31  ;;  %v4800_v24 = vrot.slane %v7996_v16, 3  ;;  %v12122_v39 = vrot.slane %v8067_v57, 3  ;;  %v1836_v41 = vmul.f32 %v12736_v45, %v1810_v20 }
 0x26a   : >> { %v8102_v30 = vsel %vm1373_vm3, %v4640_v50, %v12734_v61  ;;  %12735 = vst [vmem:[#allocation187_spill] sm:$0xff] %v8106_v2  ;;  %v1692_v19 = vadd.f32 %v1676_v60, %v1584_v1  ;;  %v8117_v50 = vsel %vm1454_vm4, %v4720_v33, %v12121_v32  ;;  %v12737_v61 = vld [vmem:[#allocation124_spill] sm:$0xff]  ;;  %v1956_v20 = vmul.f32 %v7792_v11, %v7504_v29  ;;  %v12738_v33 = vld [vmem:[#allocation31_spill] sm:$0xff]  ;;  %v12784_v29 = vld [vmem:[#allocation162_spill] sm:$0xff] }
 0x26b   : >> { %v4504_v26 = vadd.f32 %v4488_v52, %v4424_v55  ;;  %v4688_v31 = vmul.f32 %v8088_v23, %v8102_v30  ;;  %v1876_v4 = vmul.f32 %v7655_v35, %v12737_v61  ;;  %v4768_v55 = vmul.f32 %v8106_v2, %v8117_v50  ;;  %v12739_v35 = vld [vmem:[#allocation128_spill] sm:$0xff]  ;;  %v12798_v61 = vld [vmem:[#allocation173_spill] sm:$0xff] }
 0x26c   : >> { %v1772_v59 = vadd.f32 %v1756_v34, %v1692_v19  ;;  %v8127_v60 = vsel %vm1535_vm5, %v4800_v24, %v12122_v39  ;;  %v2036_v19 = vmul.f32 %v7810_v6, %v12739_v35 }
 0x26d   : >> { %v4584_v62 = vadd.f32 %v4568_v44, %v4504_v26  ;;  %v4848_v1 = vmul.f32 %v12738_v33, %v8127_v60 }
 0x26e   : >> { %v1852_v44 = vadd.f32 %v1836_v41, %v1772_v59  ;;  %v12742_v41 = vld [vmem:[#allocation129_spill] sm:$0xff] }
 0x26f   : >> { %v4624_v52 = vadd.f32 %v4608_v13, %v4584_v62  ;;  %v12740_v13 = vld [vmem:[#allocation82_spill] sm:$0xff]  ;;  %v2116_v59 = vmul.f32 %v7822_v15, %v12742_v41 }
 0x270   : >> { %v1892_v26 = vadd.f32 %v1876_v4, %v1852_v44  ;;  %v12741_v62 = vrot.slane %v12740_v13, 5  ;;  %v12743_v11 = vrot.slane %v12740_v13, 6  ;;  %v12745_v6 = vrot.slane %v12740_v13, 7 }
 0x271   : >> { %v4704_v34 = vadd.f32 %v4688_v31, %v4624_v52  ;;  %v12744_v31 = vld [vmem:[#allocation131_spill] sm:$0xff] }
 0x272   : >> { %v2198_v32 = vsel %vm1090_vm0, %v12741_v62, %v7813_v27  ;;  %v1972_v39 = vadd.f32 %v1956_v20, %v1892_v26  ;;  %v2278_v4 = vsel %vm1171_vm1, %v12743_v11, %v7834_v8  ;;  %v2358_v44 = vsel %vm1252_vm2, %v12745_v6, %v7854_v12  ;;  %v12750_v6 = vld [vmem:[#allocation133_spill] sm:$0xff]  ;;  %v12751_v12 = vld [vmem:[#allocation136_spill] sm:$0xff]  ;;  %v12756_v8 = vld [vmem:[#allocation171_spill] sm:$0xff] }
 0x273   : >> { %v4784_v24 = vadd.f32 %v4768_v55, %v4704_v34  ;;  %v2224_v52 = vmul.f32 %v12744_v31, %v2198_v32  ;;  %v12746_v55 = vld [vmem:[#allocation53_spill] sm:$0xff]  ;;  %v2304_v57 = vmul.f32 %v12750_v6, %v2278_v4  ;;  %v12759_v4 = vld [vmem:[#allocation142_spill] sm:$0xff] }
 0x274   : >> { %v12747_v20 = vrot.slane %v12746_v55, 5  ;;  %v2052_v26 = vadd.f32 %v2036_v19, %v1972_v39  ;;  %v12748_v62 = vrot.slane %v12746_v55, 6  ;;  %v12749_v13 = vrot.slane %v12746_v55, 7  ;;  %v12753_v19 = vld [vmem:[#allocation139_spill] sm:$0xff]  ;;  %v12755_v55 = vld [vmem:[#allocation140_spill] sm:$0xff]  ;;  %v12779_v31 = vld [vmem:[#allocation161_spill] sm:$0xff] }
 0x275   : >> { %v4864_v34 = vadd.f32 %v4848_v1, %v4784_v24  ;;  %v12752_v1 = vld [vmem:[#allocation77_spill] sm:$0xff]  ;;  %v2584_v24 = vmul.f32 %v7910_v3, %v12753_v19  ;;  %v2664_v27 = vmul.f32 %v12756_v8, %v12755_v55 }
 0x276   : >> { %v2746_v15 = vsel %vm1090_vm0, %v12747_v20, %v7918_v25  ;;  %v2826_v32 = vsel %vm1171_vm1, %v12748_v62, %v7927_v51  ;;  %v2906_v11 = vsel %vm1252_vm2, %v12749_v13, %v7937_v42  ;;  %v2424_v20 = vmul.f32 %v7781_v36, %v12751_v12  ;;  %v12754_v51 = vld [vmem:[#allocation135_spill] sm:$0xff]  ;;  %v12757_v13 = vld [vmem:[#allocation148_spill] sm:$0xff] }
 0x277   : >> { %v2504_v39 = vmul.f32 %v7894_v18, %v12752_v1  ;;  %4977 = vmatmul.mubr.f32.vlgmr.msra.gmra.mxu0 %v4864_v34  ;;  %v2132_v62 = vadd.f32 %v2116_v59, %v2052_v26  ;;  %v2384_v25 = vmul.f32 %v12754_v51, %v2358_v44  ;;  %v12758_v42 = vld [vmem:[#allocation164_spill] sm:$0xff]  ;;  %v8183_v38 = vmul.f32 %v12759_v4, %v2746_v15  ;;  %v12762_v59 = vld [vmem:[#allocation126_spill] sm:$0xff]  ;;  %v12772_v1 = vld [vmem:[#allocation35_spill] sm:$0xff] }
 0x278   : >> { %v8180_v43 = vmul.f32 %v12758_v42, %v12757_v13  ;;  %v12760_v36 = vld [vmem:[#allocation144_spill] sm:$0xff]  ;;  %v8189_v3 = vmul.f32 %v12761_v5, %v2906_v11  ;;  %v12763_v44 = vrot.slane %v12762_v59, 5  ;;  %v12764_v26 = vld [vmem:[#allocation150_spill] sm:$0xff]  ;;  %v12766_v11 = vld [vmem:[#allocation153_spill] sm:$0xff]  ;;  %v12769_v55 = vrot.slane %v12762_v59, 7 }
 0x279   : >> { %v8186_v18 = vmul.f32 %v12760_v36, %v2826_v32  ;;  %v2240_v34 = vadd.f32 %v2224_v52, %v2132_v62  ;;  %v8198_v42 = vmul.f32 %v7989_v54, %v12764_v26  ;;  %v5598_v15 = vld [vmem:[%s6439_s11 + $0x18] sm:$0xff]  ;;  %v8207_v5 = vmul.f32 %v8025_v40, %v12766_v11  ;;  %v12770_v40 = vld [vmem:[#allocation37_spill] sm:$0xff] }
 0x27a   : >> { %v3294_v8 = vsel %vm1090_vm0, %v12763_v44, %v8028_v0  ;;  %v1067_v13 = vrot.slane %v5598_v15, 5  ;;  %v1150_v4 = vrot.slane %v5598_v15, 6  ;;  %v12765_v32 = vld [vmem:[#allocation152_spill] sm:$0xff]  ;;  %v12767_v44 = vrot.slane %v12762_v59, 6  ;;  %v12768_v0 = vld [vmem:[#allocation155_spill] sm:$0xff]  ;;  %v12778_v51 = vld [vmem:[#allocation157_spill] sm:$0xff] }
 0x27b   : >> { %v8203_v36 = vmul.f32 %v8012_v9, %v12765_v32  ;;  %v1231_v54 = vrot.slane %v5598_v15, 7  ;;  %v2320_v62 = vadd.f32 %v2304_v57, %v2240_v34  ;;  %v8215_v26 = vmul.f32 %v12768_v0, %v3294_v8  ;;  %v1045_v32 = vld [vmem:[%s6439_s11 + $0x28] sm:$0xff] }
 0x27c   : >> { %v3374_v52 = vsel %vm1171_vm1, %v12767_v44, %v8044_v58  ;;  %v3454_v9 = vsel %vm1252_vm2, %v12769_v55, %v8051_v10  ;;  %v12771_v11 = vrot.slane %v12770_v40, 5  ;;  %v12773_v44 = vrot.slane %v12770_v40, 6  ;;  %v8237_v10 = vld [vmem:[%s6439_s11 + $0x150] sm:$0xff]  ;;  %v12776_v58 = vld [vmem:[#allocation36_spill] sm:$0xff] }
 0x27d   : >> { %v12774_v8 = vrot.slane %v12770_v40, 7  ;;  %v1354_v34 = vrot.slane %v1045_v32, 1  ;;  %v2400_v55 = vadd.f32 %v2384_v25, %v2320_v62  ;;  %12775 = vst [vmem:[#allocation82_spill] sm:$0xff] %v8237_v10  ;;  %v8242_v6 = vmul.f32 %v12778_v51, %v3374_v52  ;;  %v12780_v40 = vld [vmem:[#allocation41_spill] sm:$0xff] }
 0x27e   : >> { %v1104_v19 = vsel %vm1090_vm0, %v12771_v11, %v1067_v13  ;;  %v1185_v57 = vsel %vm1171_vm1, %v12773_v44, %v1150_v4  ;;  %v12777_v13 = vld [vmem:[#allocation38_spill] sm:$0xff]  ;;  %v8246_v4 = vmul.f32 %v7996_v16, %v12779_v31  ;;  %v12781_v44 = vrot.slane %v12780_v40, 1 }
 0x27f   : >> { %v1118_v12 = vmul.f32 %v12772_v1, %v1104_v19  ;;  %v1266_v59 = vsel %vm1252_vm2, %v12774_v8, %v1231_v54  ;;  %v1199_v0 = vmul.f32 %v12776_v58, %v1185_v57  ;;  %v1435_v19 = vrot.slane %v1045_v32, 2  ;;  %v12782_v8 = vld [vmem:[#allocation160_spill] sm:$0xff] }
 0x280   : >> { %v1280_v11 = vmul.f32 %v12777_v13, %v1266_v59  ;;  %v1387_v25 = vsel %vm1373_vm3, %v12781_v44, %v1354_v34  ;;  %v1516_v54 = vrot.slane %v1045_v32, 3  ;;  %v2440_v62 = vadd.f32 %v2424_v20, %v2400_v55  ;;  %v12783_v59 = vld [vmem:[#allocation39_spill] sm:$0xff]  ;;  %v5599_v32 = vld [vmem:[%s6439_s11 + $0x48] sm:$0xff] }
 0x281   : >> { %v8253_v41 = vmul.f32 %v12782_v8, %v3454_v9  ;;  %v1215_v57 = vadd.f32 %v1199_v0, %v1118_v12  ;;  %v1320_v35 = vmul.f32 %v5598_v15, %v12783_v59  ;;  %v8258_v52 = vmul.f32 %v8102_v30, %v12784_v29  ;;  %v12786_v9 = vld [vmem:[#allocation163_spill] sm:$0xff]  ;;  %v12787_v15 = vld [vmem:[#allocation42_spill] sm:$0xff]  ;;  %v12788_v30 = vld [vmem:[#allocation165_spill] sm:$0xff] }
 0x282   : >> { %v12785_v51 = vrot.slane %v12780_v40, 2  ;;  %v1623_v20 = vrot.slane %v5599_v32, 5  ;;  %v2520_v55 = vadd.f32 %v2504_v39, %v2440_v62  ;;  %v8268_v12 = vmul.f32 %v8117_v50, %v12786_v9  ;;  %v12790_v9 = vld [vmem:[#allocation45_spill] sm:$0xff]  ;;  %v12797_v62 = vld [vmem:[#allocation46_spill] sm:$0xff] }
 0x283   : >> { %v1296_v0 = vadd.f32 %v1280_v11, %v1215_v57  ;;  %v1401_v44 = vmul.f32 %v12787_v15, %v1387_v25  ;;  %v8273_v29 = vmul.f32 %v8127_v60, %v12788_v30  ;;  %v12789_v8 = vrot.slane %v12780_v40, 3  ;;  %v8283_v57 = vld [vmem:[%s6439_s11 + $0x160] sm:$0xff]  ;;  %v12793_v60 = vld [vmem:[#allocation138_spill] sm:$0xff] }
 0x284   : >> { %v1468_v34 = vsel %vm1454_vm4, %v12785_v51, %v1435_v19  ;;  %v1703_v19 = vrot.slane %v5599_v32, 6  ;;  %v2600_v39 = vadd.f32 %v2584_v24, %v2520_v55  ;;  %12791 = vst [vmem:[#allocation53_spill] sm:$0xff] %v8283_v57  ;;  %v12792_v25 = vrot.slane %v8237_v10, 5  ;;  %v12802_v55 = vld [vmem:[#allocation47_spill] sm:$0xff] }
 0x285   : >> { %v1549_v51 = vsel %vm1535_vm5, %v12789_v8, %v1516_v54  ;;  %v1336_v50 = vadd.f32 %v1320_v35, %v1296_v0  ;;  %v1482_v11 = vmul.f32 %v12790_v9, %v1468_v34  ;;  %v12794_v30 = vrot.slane %v12793_v60, 5  ;;  %v12795_v54 = vld [vmem:[#allocation43_spill] sm:$0xff] }
 0x286   : >> { %v4104_v16 = vrot.slane %v8237_v10, 1  ;;  %v12796_v8 = vrot.slane %v12795_v54, 5  ;;  %v1783_v35 = vrot.slane %v5599_v32, 7  ;;  %v2680_v34 = vadd.f32 %v2664_v27, %v2600_v39 }
 0x287   : >> { %v3842_v40 = vsel %vm1090_vm0, %v12794_v30, %v12792_v25  ;;  %v1417_v0 = vadd.f32 %v1401_v44, %v1336_v50  ;;  %v1563_v31 = vmul.f32 %v12797_v62, %v1549_v51  ;;  %v8300_v45 = vmul.f32 %v8237_v10, %v12798_v61 }
 0x288   : >> { %v1657_v24 = vsel %vm1090_vm0, %v12796_v8, %v1623_v20  ;;  %v4184_v30 = vrot.slane %v8237_v10, 2  ;;  %v12799_v46 = vrot.slane %v12795_v54, 6  ;;  %v2788_v27 = vadd.f32 %v8183_v38, %v2680_v34  ;;  %v5216_v8 = vld [vmem:[%s6439_s11 + $0x58] sm:$0xff] }
 0x289   : >> { %v12800_v39 = vrot.slane %v8237_v10, 6  ;;  %v12801_v44 = vrot.slane %v12793_v60, 6  ;;  %v1498_v50 = vadd.f32 %v1482_v11, %v1417_v0  ;;  %v1671_v61 = vmul.f32 %v12802_v55, %v1657_v24 }
 0x28a   : >> { %v1737_v20 = vsel %vm1171_vm1, %v12799_v46, %v1703_v19  ;;  %v8318_v25 = vmul.f32 %v12803_v63, %v3842_v40  ;;  %v12804_v21 = vrot.slane %v8237_v10, 7  ;;  %v12805_v46 = vrot.slane %v12793_v60, 7  ;;  %v8327_v19 = vld [vmem:[%s6439_s11 + $0x180] sm:$0xff]  ;;  %v12809_v60 = vld [vmem:[#allocation48_spill] sm:$0xff] }
 0x28b   : >> { %v3922_v51 = vsel %vm1171_vm1, %v12801_v44, %v12800_v39  ;;  %12806 = vst [vmem:[#allocation171_spill] sm:$0xff] %v8327_v19  ;;  %v12807_v34 = vrot.slane %v12795_v54, 7  ;;  %v1905_v0 = vrot.slane %v5216_v8, 1  ;;  %v2868_v24 = vadd.f32 %v8186_v18, %v2788_v27 }
 0x28c   : >> { %v4002_v38 = vsel %vm1252_vm2, %v12805_v46, %v12804_v21  ;;  %v12808_v40 = vrot.slane %v8283_v57, 1  ;;  %v1579_v44 = vadd.f32 %v1563_v31, %v1498_v50  ;;  %v1751_v63 = vmul.f32 %v12809_v60, %v1737_v20  ;;  %v12812_v31 = vld [vmem:[#allocation169_spill] sm:$0xff]  ;;  %v12813_v20 = vld [vmem:[#allocation172_spill] sm:$0xff] }
 0x28d   : >> { %v1817_v11 = vsel %vm1252_vm2, %v12807_v34, %v1783_v35  ;;  %v12810_v21 = vrot.slane %v8283_v57, 2  ;;  %v4264_v54 = vrot.slane %v8237_v10, 3  ;;  %v1985_v34 = vrot.slane %v5216_v8, 2 }
 0x28e   : >> { %v4122_v39 = vsel %vm1373_vm3, %v4104_v16, %v12808_v40  ;;  %v2948_v18 = vadd.f32 %v8189_v3, %v2868_v24  ;;  %v1687_v7 = vadd.f32 %v1671_v61, %v1579_v44  ;;  %v1831_v16 = vmul.f32 %v12811_v47, %v1817_v11  ;;  %v12816_v11 = vld [vmem:[#allocation51_spill] sm:$0xff] }
 0x28f   : >> { %v4202_v46 = vsel %vm1454_vm4, %v4184_v30, %v12810_v21  ;;  %v8349_v50 = vmul.f32 %v12812_v31, %v3922_v51  ;;  %v8352_v40 = vmul.f32 %v12813_v20, %v4002_v38  ;;  %v12815_v30 = vrot.slane %v12814_v37, 1 }
 0x290   : >> { %v2065_v35 = vrot.slane %v5216_v8, 3  ;;  %v2988_v3 = vadd.f32 %v8180_v43, %v2948_v18  ;;  %v8360_v24 = vmul.f32 %v7974_v49, %v4122_v39  ;;  %v1767_v61 = vadd.f32 %v1751_v63, %v1687_v7 }
 0x291   : >> { %v1937_v21 = vsel %vm1373_vm3, %v12815_v30, %v1905_v0  ;;  %v1871_v44 = vmul.f32 %v5599_v32, %v12816_v11  ;;  %v8364_v51 = vmul.f32 %v7980_v22, %v4202_v46  ;;  %v12817_v38 = vrot.slane %v8283_v57, 3  ;;  %v12820_v32 = vld [vmem:[#allocation151_spill] sm:$0xff]  ;;  %v12822_v30 = vld [vmem:[#allocation52_spill] sm:$0xff]  ;;  %v12834_v22 = vld [vmem:[#allocation58_spill] sm:$0xff] }
 0x292   : >> { %v12818_v0 = vrot.slane %v12814_v37, 2  ;;  %v3068_v7 = vadd.f32 %v8198_v42, %v2988_v3  ;;  %v12819_v63 = vrot.slane %v8327_v19, 5  ;;  %v12821_v39 = vrot.slane %v12820_v32, 5  ;;  %v8393_v3 = vld [vmem:[%s6439_s11 + $0x78] sm:$0xff] }
 0x293   : >> { %v4282_v27 = vsel %vm1535_vm5, %v4264_v54, %v12817_v38  ;;  %v1847_v18 = vadd.f32 %v1831_v16, %v1767_v61  ;;  %v1951_v57 = vmul.f32 %v12822_v30, %v1937_v21  ;;  %v8386_v38 = vmul.f32 %v8327_v19, %v8076_v17  ;;  %v8401_v21 = vld [vmem:[%s6439_s11 + $0x190] sm:$0xff] }
 0x294   : >> { %v2017_v43 = vsel %vm1454_vm4, %v12818_v0, %v1985_v34  ;;  %v4390_v46 = vsel %vm1090_vm0, %v12821_v39, %v12819_v63  ;;  %v12823_v34 = vrot.slane %v12814_v37, 3  ;;  %v2171_v0 = vrot.slane %v8393_v3, 5  ;;  %12824 = vst [vmem:[#allocation164_spill] sm:$0xff] %v8401_v21  ;;  %v12825_v39 = vld [vmem:[#allocation54_spill] sm:$0xff] }
 0x295   : >> { %v3148_v63 = vadd.f32 %v8203_v36, %v3068_v7  ;;  %v8398_v16 = vmul.f32 %v7993_v28, %v4282_v27  ;;  %v1887_v61 = vadd.f32 %v1871_v44, %v1847_v18  ;;  %v2031_v54 = vmul.f32 %v12825_v39, %v2017_v43  ;;  %v12828_v18 = vld [vmem:[#allocation55_spill] sm:$0xff] }
 0x296   : >> { %v2097_v42 = vsel %vm1535_vm5, %v12823_v34, %v2065_v35  ;;  %v8405_v8 = vmul.f32 %v8032_v14, %v4390_v46  ;;  %v4652_v37 = vrot.slane %v8327_v19, 1  ;;  %v2251_v34 = vrot.slane %v8393_v3, 6 }
 0x297   : >> { %v3228_v36 = vadd.f32 %v8207_v5, %v3148_v63  ;;  %v12826_v27 = vrot.slane %v8327_v19, 6  ;;  %v12827_v7 = vrot.slane %v12820_v32, 6  ;;  %v1967_v43 = vadd.f32 %v1951_v57, %v1887_v61  ;;  %v12831_v5 = vld [vmem:[#allocation56_spill] sm:$0xff] }
 0x298   : >> { %v2111_v46 = vmul.f32 %v12828_v18, %v2097_v42  ;;  %v12829_v10 = vrot.slane %v8327_v19, 7  ;;  %v12830_v17 = vrot.slane %v12820_v32, 7  ;;  %v4732_v14 = vrot.slane %v8327_v19, 2 }
 0x299   : >> { %v4470_v44 = vsel %vm1171_vm1, %v12827_v7, %v12826_v27  ;;  %v8428_v63 = vsel %vm1090_vm0, %v12831_v5, %v2171_v0  ;;  %v2331_v28 = vrot.slane %v8393_v3, 7  ;;  %v3336_v57 = vadd.f32 %v8215_v26, %v3228_v36  ;;  %v12832_v27 = vld [vmem:[#allocation57_spill] sm:$0xff]  ;;  %v5242_v5 = vld [vmem:[%s6439_s11 + $0x88] sm:$0xff]  ;;  %v12836_v0 = vld [vmem:[#allocation60_spill] sm:$0xff] }
 0x29a   : >> { %v4550_v35 = vsel %vm1252_vm2, %v12830_v17, %v12829_v10  ;;  %v2047_v61 = vadd.f32 %v2031_v54, %v1967_v43  ;;  %v2219_v32 = vmul.f32 %v12832_v27, %v8428_v63  ;;  %v12833_v7 = vrot.slane %v8401_v21, 1  ;;  %v12835_v43 = vld [vmem:[#allocation59_spill] sm:$0xff] }
 0x29b   : >> { %v4812_v17 = vrot.slane %v8327_v19, 3  ;;  %v8445_v26 = vsel %vm1171_vm1, %v12834_v22, %v2251_v34  ;;  %v3416_v54 = vadd.f32 %v8242_v6, %v3336_v57  ;;  %v2453_v49 = vrot.slane %v5242_v5, 1 }
 0x29c   : >> { %v4670_v10 = vsel %vm1373_vm3, %v4652_v37, %v12833_v7  ;;  %v2127_v36 = vadd.f32 %v2111_v46, %v2047_v61  ;;  %v2299_v42 = vmul.f32 %v12835_v43, %v8445_v26  ;;  %v8451_v37 = vmul.f32 %v8048_v48, %v4470_v44  ;;  %v12838_v61 = vld [vmem:[#allocation62_spill] sm:$0xff] }
 0x29d   : >> { %v8454_v7 = vmul.f32 %v8061_v56, %v4550_v35  ;;  %v2365_v19 = vsel %vm1252_vm2, %v12836_v0, %v2331_v28  ;;  %v2533_v22 = vrot.slane %v5242_v5, 2  ;;  %v3496_v34 = vadd.f32 %v8253_v41, %v3416_v54  ;;  %v8473_v56 = vld [vmem:[%s6439_s11 + $0xa8] sm:$0xff] }
 0x29e   : >> { %v12837_v6 = vrot.slane %v8401_v21, 2  ;;  %v2235_v57 = vadd.f32 %v2219_v32, %v2127_v36  ;;  %v2379_v44 = vmul.f32 %v12838_v61, %v2365_v19  ;;  %v8466_v48 = vmul.f32 %v8088_v23, %v4670_v10  ;;  %v12841_v36 = vld [vmem:[#allocation61_spill] sm:$0xff]  ;;  %v12846_v23 = vld [vmem:[#allocation67_spill] sm:$0xff]  ;;  %v12851_v61 = vld [vmem:[#allocation70_spill] sm:$0xff] }
 0x29f   : >> { %v12839_v35 = vrot.slane %v8401_v21, 3  ;;  %v2613_v0 = vrot.slane %v5242_v5, 3  ;;  %v2719_v41 = vrot.slane %v8473_v56, 5  ;;  %v3536_v54 = vadd.f32 %v8246_v4, %v3496_v34 }
 0x2a0   : >> { %v4750_v46 = vsel %vm1454_vm4, %v4732_v14, %v12837_v6  ;;  %v2315_v20 = vadd.f32 %v2299_v42, %v2235_v57  ;;  %v12840_v14 = vld [vmem:[#allocation63_spill] sm:$0xff]  ;;  %v12842_v6 = vrot.slane %v12841_v36, 1  ;;  %v5268_v42 = vld [vmem:[%s6439_s11 + $0xb8] sm:$0xff]  ;;  %v2799_v34 = vrot.slane %v8473_v56, 6 }
 0x2a1   : >> { %v4830_v28 = vsel %vm1535_vm5, %v4812_v17, %v12839_v35  ;;  %v2419_v32 = vmul.f32 %v8393_v3, %v12840_v14  ;;  %v8486_v21 = vmul.f32 %v8106_v2, %v4750_v46  ;;  %v12843_v17 = vld [vmem:[#allocation66_spill] sm:$0xff]  ;;  %v12844_v35 = vrot.slane %v12841_v36, 2 }
 0x2a2   : >> { %v8483_v10 = vsel %vm1373_vm3, %v12842_v6, %v2453_v49  ;;  %v3616_v57 = vadd.f32 %v8258_v52, %v3536_v54  ;;  %v2395_v49 = vadd.f32 %v2379_v44, %v2315_v20  ;;  %v2879_v6 = vrot.slane %v8473_v56, 7 }
 0x2a3   : >> { %v2499_v5 = vmul.f32 %v12843_v17, %v8483_v10  ;;  %v8494_v4 = vsel %vm1454_vm4, %v12844_v35, %v2533_v22  ;;  %v3001_v46 = vrot.slane %v5268_v42, 1  ;;  %v8501_v2 = vmul.f32 %v12738_v33, %v4830_v28  ;;  %v12848_v35 = vld [vmem:[#allocation68_spill] sm:$0xff]  ;;  %v12849_v33 = vld [vmem:[#allocation69_spill] sm:$0xff] }
 0x2a4   : >> { %v2579_v31 = vmul.f32 %v12846_v23, %v8494_v4  ;;  %v12847_v17 = vrot.slane %v12841_v36, 3  ;;  %v8514_v52 = vsel %vm1090_vm0, %v12848_v35, %v2719_v41  ;;  %v3696_v20 = vadd.f32 %v8268_v12, %v3616_v57  ;;  %v12850_v23 = vld [vmem:[#allocation71_spill] sm:$0xff]  ;;  %v12853_v57 = vld [vmem:[#allocation73_spill] sm:$0xff] }
 0x2a5   : >> { %12845 = vst [vmem:[#allocation126_spill] sm:$0xff] %v8501_v2  ;;  %v2435_v44 = vadd.f32 %v2419_v32, %v2395_v49  ;;  %v3081_v54 = vrot.slane %v5268_v42, 2  ;;  %v3161_v28 = vrot.slane %v5268_v42, 3  ;;  %v2767_v36 = vmul.f32 %v12850_v23, %v8514_v52  ;;  %v12854_v49 = vld [vmem:[#allocation74_spill] sm:$0xff] }
 0x2a6   : >> { %v8509_v22 = vsel %vm1535_vm5, %v12847_v17, %v2613_v0  ;;  %v8524_v0 = vsel %vm1171_vm1, %v12851_v61, %v2799_v34  ;;  %v8527_v17 = vld [vmem:[%s6439_s11 + $0xd8] sm:$0xff]  ;;  %v3776_v12 = vadd.f32 %v8273_v29, %v3696_v20  ;;  %v8534_v42 = vsel %vm1252_vm2, %v12853_v57, %v2879_v6  ;;  %v12859_v20 = vld [vmem:[#allocation78_spill] sm:$0xff] }
 0x2a7   : >> { %v2659_v14 = vmul.f32 %v12849_v33, %v8509_v22  ;;  %12852 = vst [vmem:[#allocation37_spill] sm:$0xff] %v8527_v17  ;;  %v3267_v41 = vrot.slane %v8527_v17, 5  ;;  %v2515_v32 = vadd.f32 %v2499_v5, %v2435_v44  ;;  %v12855_v35 = vrot.slane %v12854_v49, 1  ;;  %v12856_v61 = vld [vmem:[#allocation72_spill] sm:$0xff]  ;;  %v12857_v33 = vld [vmem:[#allocation75_spill] sm:$0xff] }
 0x2a8   : >> { %v2847_v34 = vmul.f32 %v12856_v61, %v8524_v0  ;;  %v2927_v43 = vmul.f32 %v12857_v33, %v8534_v42  ;;  %v12858_v29 = vld [vmem:[#allocation76_spill] sm:$0xff]  ;;  %v3884_v44 = vadd.f32 %v8318_v25, %v3776_v12  ;;  %v12860_v27 = vrot.slane %v12854_v49, 2 }
 0x2a9   : >> { %v8540_v23 = vsel %vm1373_vm3, %v12855_v35, %v3001_v46  ;;  %v2967_v5 = vmul.f32 %v8473_v56, %v12858_v29  ;;  %v2595_v57 = vadd.f32 %v2579_v31, %v2515_v32  ;;  %v12861_v35 = vrot.slane %v12854_v49, 3  ;;  %v12863_v29 = vld [vmem:[#allocation81_spill] sm:$0xff]  ;;  %v12865_v25 = vld [vmem:[#allocation84_spill] sm:$0xff]  ;;  %v5294_v49 = vld [vmem:[%s6439_s11 + $0xe8] sm:$0xff] }
 0x2aa   : >> { %v3047_v6 = vmul.f32 %v12859_v20, %v8540_v23  ;;  %v8555_v46 = vsel %vm1454_vm4, %v12860_v27, %v3081_v54  ;;  %v12864_v20 = vld [vmem:[#allocation83_spill] sm:$0xff]  ;;  %v8572_v31 = vsel %vm1090_vm0, %v12865_v25, %v3267_v41  ;;  %v1126_v27 = vmul.f32 %v8428_v63, %v12772_v1 }
 0x2ab   : >> { %v8561_v33 = vsel %vm1535_vm5, %v12861_v35, %v3161_v28  ;;  %v3127_v61 = vmul.f32 %v12863_v29, %v8555_v46  ;;  %12866 = vst [vmem:[#allocation138_spill] sm:$0xff] %v8572_v31  ;;  %v3964_v54 = vadd.f32 %v8349_v50, %v3884_v44  ;;  %v2675_v28 = vadd.f32 %v2659_v14, %v2595_v57  ;;  %v12867_v35 = vld [vmem:[#allocation86_spill] sm:$0xff]  ;;  %v12868_v29 = vld [vmem:[#allocation91_spill] sm:$0xff] }
 0x2ac   : >> { %12862 = vst [vmem:[#allocation41_spill] sm:$0xff] %v8561_v33  ;;  %v8567_v2 = vmul.f32 %v12864_v20, %v8561_v33  ;;  %v3347_v12 = vrot.slane %v8527_v17, 6  ;;  %v3427_v32 = vrot.slane %v8527_v17, 7  ;;  %v8582_v20 = vmul.f32 %v12867_v35, %v8572_v31  ;;  %v8593_v33 = vld [vmem:[%s6439_s11 + $0x108] sm:$0xff] }
 0x2ad   : >> { %v8586_v41 = vmul.f32 %v8527_v17, %v12868_v29  ;;  %v1207_v25 = vmul.f32 %v8445_v26, %v12776_v58  ;;  %v1288_v63 = vmul.f32 %v2365_v19, %v12777_v13  ;;  %v4044_v50 = vadd.f32 %v8352_v40, %v3964_v54  ;;  %v12869_v26 = vld [vmem:[#allocation85_spill] sm:$0xff]  ;;  %v12870_v40 = vld [vmem:[#allocation88_spill] sm:$0xff]  ;;  %v12871_v54 = vld [vmem:[#allocation87_spill] sm:$0xff] }
 0x2ae   : >> { %v2783_v14 = vadd.f32 %v2767_v36, %v2675_v28  ;;  %v3549_v44 = vrot.slane %v5294_v49, 1  ;;  %v3629_v57 = vrot.slane %v5294_v49, 2  ;;  %v3709_v1 = vrot.slane %v5294_v49, 3  ;;  %v12884_v13 = vld [vmem:[#allocation102_spill] sm:$0xff] }
 0x2af   : >> { %v3815_v35 = vrot.slane %v8593_v33, 5  ;;  %v1223_v31 = vadd.f32 %v1207_v25, %v1126_v27  ;;  %v1328_v29 = vmul.f32 %v8393_v3, %v12783_v59  ;;  %v4084_v17 = vadd.f32 %v8300_v45, %v4044_v50  ;;  %v12872_v27 = vld [vmem:[#allocation90_spill] sm:$0xff]  ;;  %v12873_v25 = vld [vmem:[#allocation89_spill] sm:$0xff] }
 0x2b0   : >> { %v2863_v18 = vadd.f32 %v2847_v34, %v2783_v14  ;;  %v8602_v19 = vsel %vm1171_vm1, %v12869_v26, %v3347_v12  ;;  %v8607_v36 = vsel %vm1252_vm2, %v12870_v40, %v3427_v32  ;;  %v1409_v45 = vmul.f32 %v8483_v10, %v12787_v15 }
 0x2b1   : >> { %v3395_v28 = vmul.f32 %v12871_v54, %v8602_v19  ;;  %v8613_v49 = vmul.f32 %v12872_v27, %v8607_v36  ;;  %v1304_v3 = vadd.f32 %v1288_v63, %v1223_v31  ;;  %v4164_v34 = vadd.f32 %v8360_v24, %v4084_v17  ;;  %v12877_v24 = vld [vmem:[#allocation97_spill] sm:$0xff] }
 0x2b2   : >> { %v2943_v12 = vadd.f32 %v2927_v43, %v2863_v18  ;;  %v12874_v50 = vrot.slane %v12873_v25, 1  ;;  %v12875_v14 = vrot.slane %v12873_v25, 2  ;;  %v12876_v31 = vrot.slane %v12873_v25, 3  ;;  %v12879_v25 = vld [vmem:[#allocation96_spill] sm:$0xff] }
 0x2b3   : >> { %v8639_v18 = vsel %vm1090_vm0, %v12877_v24, %v3815_v35  ;;  %v1344_v43 = vadd.f32 %v1328_v29, %v1304_v3  ;;  %v1490_v17 = vmul.f32 %v8494_v4, %v12790_v9  ;;  %v4244_v63 = vadd.f32 %v8364_v51, %v4164_v34  ;;  %v5320_v34 = vld [vmem:[%s6439_s11 + $0x118] sm:$0xff]  ;;  %v12882_v24 = vld [vmem:[#allocation105_spill] sm:$0xff] }
 0x2b4   : >> { %v8622_v32 = vsel %vm1373_vm3, %v12874_v50, %v3549_v44  ;;  %v8628_v26 = vsel %vm1454_vm4, %v12875_v14, %v3629_v57  ;;  %v8634_v10 = vsel %vm1535_vm5, %v12876_v31, %v3709_v1  ;;  %v2983_v44 = vadd.f32 %v2967_v5, %v2943_v12  ;;  %v12878_v57 = vld [vmem:[#allocation93_spill] sm:$0xff]  ;;  %v12880_v5 = vld [vmem:[#allocation98_spill] sm:$0xff]  ;;  %v12881_v12 = vld [vmem:[#allocation100_spill] sm:$0xff] }
 0x2b5   : >> { %v8646_v40 = vmul.f32 %v12878_v57, %v8622_v32  ;;  %v8650_v1 = vmul.f32 %v12879_v25, %v8628_v26  ;;  %v3895_v50 = vrot.slane %v8593_v33, 6  ;;  %v3975_v35 = vrot.slane %v8593_v33, 7 }
 0x2b6   : >> { %v1425_v14 = vadd.f32 %v1409_v45, %v1344_v43  ;;  %v1571_v29 = vmul.f32 %v8509_v22, %v12797_v62  ;;  %v4324_v4 = vadd.f32 %v8398_v16, %v4244_v63  ;;  %v3063_v51 = vadd.f32 %v3047_v6, %v2983_v44  ;;  %v12883_v62 = vld [vmem:[#allocation101_spill] sm:$0xff] }
 0x2b7   : >> { %v8659_v3 = vmul.f32 %v12880_v5, %v8634_v10  ;;  %v8664_v31 = vmul.f32 %v12881_v12, %v8639_v18  ;;  %v8668_v9 = vmul.f32 %v8593_v33, %v12882_v24  ;;  %v4097_v45 = vrot.slane %v5320_v34, 1 }
 0x2b8   : >> { %v1506_v43 = vadd.f32 %v1490_v17, %v1425_v14  ;;  %v1679_v16 = vmul.f32 %v8514_v52, %v12802_v55  ;;  %v4432_v22 = vadd.f32 %v8405_v8, %v4324_v4  ;;  %v3143_v6 = vadd.f32 %v3127_v61, %v3063_v51  ;;  %v12885_v61 = vld [vmem:[#allocation103_spill] sm:$0xff] }
 0x2b9   : >> { %v4177_v63 = vrot.slane %v5320_v34, 2  ;;  %v4257_v44 = vrot.slane %v5320_v34, 3  ;;  %v8676_v15 = vsel %vm1171_vm1, %v12883_v62, %v3895_v50  ;;  %v8681_v59 = vsel %vm1252_vm2, %v12884_v13, %v3975_v35  ;;  %v12886_v62 = vld [vmem:[#allocation104_spill] sm:$0xff]  ;;  %v12887_v4 = vld [vmem:[#allocation99_spill] sm:$0xff] }
 0x2ba   : >> { %v1587_v58 = vadd.f32 %v1571_v29, %v1506_v43  ;;  %v1759_v17 = vmul.f32 %v8524_v0, %v12809_v60  ;;  %v4512_v52 = vadd.f32 %v8451_v37, %v4432_v22  ;;  %v3223_v8 = vadd.f32 %v8567_v2, %v3143_v6  ;;  %v8702_v35 = vld [vmem:[%s6439_s11 + $0x138] sm:$0xff]  ;;  %v12896_v60 = vld [vmem:[#allocation118_spill] sm:$0xff] }
 0x2bb   : >> { %v8689_v14 = vmul.f32 %v12885_v61, %v8676_v15  ;;  %v8693_v50 = vmul.f32 %v12886_v62, %v8681_v59  ;;  %v12888_v51 = vrot.slane %v12887_v4, 1  ;;  %v4363_v37 = vrot.slane %v8702_v35, 5 }
 0x2bc   : >> { %v1695_v2 = vadd.f32 %v1679_v16, %v1587_v58  ;;  %v1839_v0 = vmul.f32 %v8534_v42, %v12811_v47  ;;  %v4592_v29 = vadd.f32 %v8454_v7, %v4512_v52  ;;  %v3331_v34 = vadd.f32 %v8582_v20, %v3223_v8  ;;  %v12891_v58 = vld [vmem:[#allocation106_spill] sm:$0xff]  ;;  %v12892_v7 = vld [vmem:[#allocation108_spill] sm:$0xff] }
 0x2bd   : >> { %v8699_v13 = vsel %vm1373_vm3, %v12888_v51, %v4097_v45  ;;  %v12889_v43 = vrot.slane %v12887_v4, 2  ;;  %v12890_v45 = vrot.slane %v12887_v4, 3  ;;  %v1879_v52 = vmul.f32 %v8473_v56, %v12816_v11  ;;  %v12893_v4 = vld [vmem:[#allocation109_spill] sm:$0xff] }
 0x2be   : >> { %v8723_v16 = vmul.f32 %v12891_v58, %v8699_v13  ;;  %v1775_v20 = vadd.f32 %v1759_v17, %v1695_v2  ;;  %v3411_v8 = vadd.f32 %v3395_v28, %v3331_v34  ;;  %v4523_v17 = vrot.slane %v8702_v35, 7 }
 0x2bf   : >> { %v8713_v22 = vsel %vm1454_vm4, %v12889_v43, %v4177_v63  ;;  %v8719_v6 = vsel %vm1535_vm5, %v12890_v45, %v4257_v44  ;;  %v4632_v63 = vadd.f32 %v8386_v38, %v4592_v29  ;;  %v4443_v44 = vrot.slane %v8702_v35, 6  ;;  %v5346_v43 = vld [vmem:[%s6439_s11 + $0x148] sm:$0xff]  ;;  %v12894_v45 = vld [vmem:[#allocation112_spill] sm:$0xff]  ;;  %v12895_v29 = vld [vmem:[#allocation113_spill] sm:$0xff] }
 0x2c0   : >> { %v8727_v42 = vmul.f32 %v12892_v7, %v8713_v22  ;;  %v8734_v51 = vmul.f32 %v12893_v4, %v8719_v6  ;;  %v8741_v47 = vsel %vm1090_vm0, %v12894_v45, %v4363_v37  ;;  %v1855_v2 = vadd.f32 %v1839_v0, %v1775_v20  ;;  %v12897_v20 = vld [vmem:[#allocation114_spill] sm:$0xff] }
 0x2c1   : >> { %v1959_v56 = vmul.f32 %v8540_v23, %v12822_v30  ;;  %v4712_v38 = vadd.f32 %v8466_v48, %v4632_v63  ;;  %v3491_v28 = vadd.f32 %v8613_v49, %v3411_v8  ;;  %v8750_v34 = vmul.f32 %v12895_v29, %v8741_v47  ;;  %v12898_v8 = vld [vmem:[#allocation115_spill] sm:$0xff]  ;;  %v12917_v4 = vld [vmem:[#allocation66_spill] sm:$0xff] }
 0x2c2   : >> { %v4645_v11 = vrot.slane %v5346_v43, 1  ;;  %v8754_v55 = vmul.f32 %v8702_v35, %v12896_v60  ;;  %v4725_v37 = vrot.slane %v5346_v43, 2  ;;  %v1895_v45 = vadd.f32 %v1879_v52, %v1855_v2  ;;  %v12899_v60 = vld [vmem:[#allocation116_spill] sm:$0xff]  ;;  %v12901_v2 = vld [vmem:[#allocation41_spill] sm:$0xff] }
 0x2c3   : >> { %v2039_v0 = vmul.f32 %v8555_v46, %v12825_v39  ;;  %v4792_v23 = vadd.f32 %v8486_v21, %v4712_v38  ;;  %v3531_v48 = vadd.f32 %v8586_v41, %v3491_v28  ;;  %v8763_v49 = vsel %vm1171_vm1, %v12897_v20, %v4443_v44  ;;  %v12900_v21 = vld [vmem:[#allocation55_spill] sm:$0xff]  ;;  %v12902_v38 = vld [vmem:[#allocation126_spill] sm:$0xff] }
 0x2c4   : >> { %v4805_v63 = vrot.slane %v5346_v43, 3  ;;  %v8767_v30 = vmul.f32 %v12898_v8, %v8763_v49  ;;  %v8772_v52 = vsel %vm1252_vm2, %v12899_v60, %v4523_v17  ;;  %v1975_v46 = vadd.f32 %v1959_v56, %v1895_v45  ;;  %v12903_v43 = vld [vmem:[#allocation117_spill] sm:$0xff]  ;;  %v12904_v39 = vld [vmem:[#allocation119_spill] sm:$0xff]  ;;  %v12906_v60 = vld [vmem:[#allocation120_spill] sm:$0xff] }
 0x2c5   : >> { %v2119_v41 = vmul.f32 %v12901_v2, %v12900_v21  ;;  %v4872_v28 = vadd.f32 %v12902_v38, %v4792_v23  ;;  %v3611_v44 = vadd.f32 %v8646_v40, %v3531_v48  ;;  %v8780_v20 = vmul.f32 %v12903_v43, %v8772_v52  ;;  %v12908_v23 = vld [vmem:[#allocation57_spill] sm:$0xff]  ;;  %v12909_v48 = vld [vmem:[#allocation138_spill] sm:$0xff]  ;;  %v5605_v43 = vld [vmem:[%s6439_s11 + $0x10] sm:$0xff] }
 0x2c6   : >> { %v12905_v8 = vrot.slane %v12904_v39, 1  ;;  %v12907_v56 = vrot.slane %v12904_v39, 2  ;;  %v2055_v40 = vadd.f32 %v2039_v0, %v1975_v46  ;;  %v2227_v2 = vmul.f32 %v12909_v48, %v12908_v23  ;;  %v12912_v0 = vld [vmem:[#allocation32_spill] sm:$0xff]  ;;  %v12914_v23 = vld [vmem:[#allocation62_spill] sm:$0xff] }
 0x2c7   : >> { %4997 = vmatmul.mubr.f32.vlgmr.msra.gmra.mxu1 %v4872_v28  ;;  %v3691_v38 = vadd.f32 %v8650_v1, %v3611_v44  ;;  %v12911_v21 = vrot.slane %v12904_v39, 3  ;;  %v12913_v28 = vld [vmem:[#allocation59_spill] sm:$0xff]  ;;  %v1149_v44 = vrot.slane %v5605_v43, 6  ;;  %v2387_v39 = vmul.f32 %v8607_v36, %v12914_v23 }
 0x2c8   : >> { %v8786_v29 = vsel %vm1373_vm3, %v12905_v8, %v4645_v11  ;;  %v8796_v45 = vsel %vm1454_vm4, %v12907_v56, %v4725_v37  ;;  %v12910_v11 = vld [vmem:[#allocation121_spill] sm:$0xff]  ;;  %v1066_v37 = vrot.slane %v5605_v43, 5  ;;  %v2135_v56 = vadd.f32 %v2119_v41, %v2055_v40 }
 0x2c9   : >> { %v8790_v17 = vmul.f32 %v12906_v60, %v8786_v29  ;;  %v8803_v8 = vmul.f32 %v12910_v11, %v8796_v45  ;;  %v8809_v60 = vsel %vm1535_vm5, %v12911_v21, %v4805_v63  ;;  %v2307_v1 = vmul.f32 %v8602_v19, %v12913_v28  ;;  %v12915_v11 = vld [vmem:[#allocation63_spill] sm:$0xff]  ;;  %v12916_v63 = vld [vmem:[#allocation37_spill] sm:$0xff]  ;;  %v12920_v28 = vld [vmem:[#allocation80_spill] sm:$0xff] }
 0x2ca   : >> { %v8814_v46 = vmul.f32 %v12912_v0, %v8809_v60  ;;  %v3771_v48 = vadd.f32 %v8659_v3, %v3691_v38  ;;  %v2427_v21 = vmul.f32 %v12916_v63, %v12915_v11  ;;  %v2507_v7 = vmul.f32 %v8622_v32, %v12917_v4  ;;  %v12918_v0 = vld [vmem:[#allocation67_spill] sm:$0xff]  ;;  %v12919_v40 = vld [vmem:[#allocation69_spill] sm:$0xff]  ;;  %v12923_v11 = vld [vmem:[#allocation92_spill] sm:$0xff] }
 0x2cb   : >> { %v2243_v58 = vadd.f32 %v2227_v2, %v2135_v56  ;;  %v2587_v41 = vmul.f32 %v8628_v26, %v12918_v0  ;;  %v2667_v19 = vmul.f32 %v8634_v10, %v12919_v40  ;;  %v12921_v62 = vrot.slane %v12920_v28, 5  ;;  %v12922_v38 = vld [vmem:[#allocation71_spill] sm:$0xff]  ;;  %v12925_v56 = vld [vmem:[#allocation72_spill] sm:$0xff]  ;;  %v1044_v40 = vld [vmem:[%s6439_s11 + $0x20] sm:$0xff] }
 0x2cc   : >> { %v3879_v36 = vadd.f32 %v8664_v31, %v3771_v48  ;;  %v2775_v63 = vmul.f32 %v8639_v18, %v12922_v38  ;;  %v12924_v32 = vrot.slane %v12920_v28, 6  ;;  %v2855_v10 = vmul.f32 %v8676_v15, %v12925_v56  ;;  %v12926_v0 = vld [vmem:[#allocation44_spill] sm:$0xff]  ;;  %v12930_v56 = vld [vmem:[#allocation94_spill] sm:$0xff] }
 0x2cd   : >> { %v1103_v3 = vsel %vm1090_vm0, %v12921_v62, %v1066_v37  ;;  %v2323_v2 = vadd.f32 %v2307_v1, %v2243_v58  ;;  %v1230_v62 = vrot.slane %v5605_v43, 7  ;;  %v12927_v37 = vld [vmem:[#allocation75_spill] sm:$0xff]  ;;  %v1353_v48 = vrot.slane %v1044_v40, 1 }
 0x2ce   : >> { %v1117_v23 = vmul.f32 %v12923_v11, %v1103_v3  ;;  %v1184_v26 = vsel %vm1171_vm1, %v12924_v32, %v1149_v44  ;;  %v3959_v31 = vadd.f32 %v8689_v14, %v3879_v36  ;;  %v2935_v18 = vmul.f32 %v8681_v59, %v12927_v37  ;;  %v12929_v32 = vld [vmem:[#allocation79_spill] sm:$0xff] }
 0x2cf   : >> { %v1198_v4 = vmul.f32 %v12926_v0, %v1184_v26  ;;  %v1434_v3 = vrot.slane %v1044_v40, 2  ;;  %v2403_v38 = vadd.f32 %v2387_v39, %v2323_v2  ;;  %v12928_v44 = vrot.slane %v12920_v28, 7  ;;  %v12931_v14 = vld [vmem:[#allocation95_spill] sm:$0xff]  ;;  %v12933_v39 = vld [vmem:[#allocation76_spill] sm:$0xff] }
 0x2d0   : >> { %v1515_v15 = vrot.slane %v1044_v40, 3  ;;  %v4039_v1 = vadd.f32 %v8693_v50, %v3959_v31  ;;  %v1319_v0 = vmul.f32 %v5605_v43, %v12930_v56  ;;  %v12932_v36 = vrot.slane %v12931_v14, 1  ;;  %v5606_v40 = vld [vmem:[%s6439_s11 + $0x40] sm:$0xff] }
 0x2d1   : >> { %v1214_v11 = vadd.f32 %v1198_v4, %v1117_v23  ;;  %v1265_v58 = vsel %vm1252_vm2, %v12928_v44, %v1230_v62  ;;  %v2443_v37 = vadd.f32 %v2427_v21, %v2403_v38  ;;  %v2975_v4 = vmul.f32 %v8593_v33, %v12933_v39  ;;  %v12935_v62 = vld [vmem:[#allocation78_spill] sm:$0xff]  ;;  %v12936_v44 = vld [vmem:[#allocation107_spill] sm:$0xff]  ;;  %v12937_v21 = vld [vmem:[#allocation81_spill] sm:$0xff] }
 0x2d2   : >> { %v1279_v26 = vmul.f32 %v12929_v32, %v1265_v58  ;;  %v1386_v59 = vsel %vm1373_vm3, %v12932_v36, %v1353_v48  ;;  %v12934_v23 = vrot.slane %v12931_v14, 2  ;;  %v1622_v50 = vrot.slane %v5606_v40, 5 }
 0x2d3   : >> { %v4079_v2 = vadd.f32 %v8668_v9, %v4039_v1  ;;  %v3055_v43 = vmul.f32 %v8699_v13, %v12935_v62  ;;  %v1400_v58 = vmul.f32 %v12936_v44, %v1386_v59  ;;  %v2523_v48 = vadd.f32 %v2507_v7, %v2443_v37  ;;  %v12939_v9 = vld [vmem:[#allocation83_spill] sm:$0xff]  ;;  %v12941_v37 = vld [vmem:[#allocation86_spill] sm:$0xff] }
 0x2d4   : >> { %v1467_v28 = vsel %vm1454_vm4, %v12934_v23, %v1434_v3  ;;  %v1295_v31 = vadd.f32 %v1279_v26, %v1214_v11  ;;  %v8872_v38 = vmul.f32 %v8713_v22, %v12937_v21  ;;  %v12938_v33 = vrot.slane %v12931_v14, 3  ;;  %v12940_v11 = vld [vmem:[#allocation110_spill] sm:$0xff]  ;;  %v12942_v14 = vld [vmem:[#allocation111_spill] sm:$0xff] }
 0x2d5   : >> { %v1702_v36 = vrot.slane %v5606_v40, 6  ;;  %v4159_v23 = vadd.f32 %v8723_v16, %v4079_v2  ;;  %v8881_v1 = vmul.f32 %v8719_v6, %v12939_v9  ;;  %v1481_v26 = vmul.f32 %v12940_v11, %v1467_v28  ;;  %v12944_v28 = vld [vmem:[#allocation64_spill] sm:$0xff]  ;;  %v12999_v21 = vld [vmem:[#allocation142_spill] sm:$0xff] }
 0x2d6   : >> { %v1548_v3 = vsel %vm1535_vm5, %v12938_v33, %v1515_v15  ;;  %v1335_v13 = vadd.f32 %v1319_v0, %v1295_v31  ;;  %v2603_v7 = vadd.f32 %v2587_v41, %v2523_v48  ;;  %v8886_v22 = vmul.f32 %v8741_v47, %v12941_v37  ;;  %v12945_v31 = vld [vmem:[#allocation91_spill] sm:$0xff] }
 0x2d7   : >> { %v12943_v59 = vrot.slane %v12942_v14, 5  ;;  %v1782_v33 = vrot.slane %v5606_v40, 7  ;;  %v4239_v16 = vadd.f32 %v8727_v42, %v4159_v23  ;;  %v8895_v6 = vmul.f32 %v8763_v49, %v12871_v54  ;;  %v12947_v23 = vld [vmem:[#allocation33_spill] sm:$0xff] }
 0x2d8   : >> { %v1416_v0 = vadd.f32 %v1400_v58, %v1335_v13  ;;  %v1562_v41 = vmul.f32 %v12944_v28, %v1548_v3  ;;  %v2683_v2 = vadd.f32 %v2667_v19, %v2603_v7  ;;  %v8900_v47 = vmul.f32 %v8772_v52, %v12872_v27  ;;  %v5215_v3 = vld [vmem:[%s6439_s11 + $0x50] sm:$0xff]  ;;  %v12986_v27 = vld [vmem:[#allocation77_spill] sm:$0xff] }
 0x2d9   : >> { %v1656_v15 = vsel %vm1090_vm0, %v12943_v59, %v1622_v50  ;;  %v8904_v48 = vmul.f32 %v8702_v35, %v12945_v31  ;;  %v12946_v50 = vrot.slane %v12942_v14, 6  ;;  %v4319_v49 = vadd.f32 %v8734_v51, %v4239_v16  ;;  %v5607_v16 = vld [vmem:[%s6439_s11 + $0x168] sm:$0xff] }
 0x2da   : >> { %v8913_v58 = vmul.f32 %v8786_v29, %v12878_v57  ;;  %v1497_v19 = vadd.f32 %v1481_v26, %v1416_v0  ;;  %v1670_v52 = vmul.f32 %v12947_v23, %v1656_v15  ;;  %v2791_v13 = vadd.f32 %v2775_v63, %v2683_v2  ;;  %v12949_v0 = vld [vmem:[#allocation34_spill] sm:$0xff] }
 0x2db   : >> { %v1736_v42 = vsel %vm1171_vm1, %v12946_v50, %v1702_v36  ;;  %v8919_v35 = vmul.f32 %v8796_v45, %v12879_v25  ;;  %v12948_v7 = vrot.slane %v12942_v14, 7  ;;  %v1904_v59 = vrot.slane %v5215_v3, 1 }
 0x2dc   : >> { %v4427_v51 = vadd.f32 %v8750_v34, %v4319_v49  ;;  %v3827_v29 = vrot.slane %v5607_v16, 5  ;;  %v1578_v26 = vadd.f32 %v1562_v41, %v1497_v19  ;;  %v1750_v50 = vmul.f32 %v12949_v0, %v1736_v42  ;;  %v12951_v41 = vld [vmem:[#allocation123_spill] sm:$0xff] }
 0x2dd   : >> { %v1816_v36 = vsel %vm1252_vm2, %v12948_v7, %v1782_v33  ;;  %v2871_v15 = vadd.f32 %v2855_v10, %v2791_v13  ;;  %v8930_v63 = vmul.f32 %v8809_v60, %v12880_v5  ;;  %v3907_v45 = vrot.slane %v5607_v16, 6  ;;  %v12950_v7 = vld [vmem:[#allocation122_spill] sm:$0xff]  ;;  %v5332_v13 = vld [vmem:[%s6439_s11 + $0x178] sm:$0xff] }
 0x2de   : >> { %v1984_v2 = vrot.slane %v5215_v3, 2  ;;  %v4507_v14 = vadd.f32 %v8767_v30, %v4427_v51  ;;  %v3987_v25 = vrot.slane %v5607_v16, 7  ;;  %v1686_v33 = vadd.f32 %v1670_v52, %v1578_v26  ;;  %v12953_v5 = vld [vmem:[#allocation40_spill] sm:$0xff] }
 0x2df   : >> { %v1830_v57 = vmul.f32 %v12950_v7, %v1816_v36  ;;  %v2951_v34 = vadd.f32 %v2935_v18, %v2871_v15  ;;  %v8935_v49 = vmul.f32 %v5607_v16, %v12882_v24  ;;  %v12952_v19 = vrot.slane %v12951_v41, 1  ;;  %v12955_v18 = vld [vmem:[#allocation124_spill] sm:$0xff] }
 0x2e0   : >> { %v2064_v42 = vrot.slane %v5215_v3, 3  ;;  %v4587_v60 = vadd.f32 %v8780_v20, %v4507_v14  ;;  %v12954_v30 = vrot.slane %v12953_v5, 5  ;;  %v1766_v36 = vadd.f32 %v1750_v50, %v1686_v33  ;;  %v12978_v24 = vld [vmem:[#allocation108_spill] sm:$0xff] }
 0x2e1   : >> { %v1936_v10 = vsel %vm1373_vm3, %v12952_v19, %v1904_v59  ;;  %v1870_v51 = vmul.f32 %v5606_v40, %v12955_v18  ;;  %v2991_v16 = vadd.f32 %v2975_v4, %v2951_v34  ;;  %v12956_v26 = vrot.slane %v12953_v5, 6  ;;  %v12959_v4 = vld [vmem:[#allocation125_spill] sm:$0xff] }
 0x2e2   : >> { %v3841_v52 = vsel %vm1090_vm0, %v12954_v30, %v3827_v29  ;;  %v4109_v59 = vrot.slane %v5332_v13, 1  ;;  %v12957_v3 = vrot.slane %v12951_v41, 2  ;;  %v4627_v14 = vadd.f32 %v8754_v55, %v4587_v60 }
 0x2e3   : >> { %v3921_v15 = vsel %vm1171_vm1, %v12956_v26, %v3907_v45  ;;  %v12958_v19 = vrot.slane %v12953_v5, 7  ;;  %v1846_v40 = vadd.f32 %v1830_v57, %v1766_v36  ;;  %v1950_v50 = vmul.f32 %v12959_v4, %v1936_v10 }
 0x2e4   : >> { %v2016_v20 = vsel %vm1454_vm4, %v12957_v3, %v1984_v2  ;;  %v3071_v33 = vadd.f32 %v3055_v43, %v2991_v16  ;;  %v8963_v34 = vmul.f32 %v12881_v12, %v3841_v52  ;;  %v12960_v45 = vrot.slane %v12951_v41, 3  ;;  %v8970_v2 = vld [vmem:[%s6439_s11 + $0x70] sm:$0xff]  ;;  %v12961_v43 = vld [vmem:[#allocation128_spill] sm:$0xff]  ;;  %v12962_v52 = vld [vmem:[#allocation65_spill] sm:$0xff] }
 0x2e5   : >> { %v4001_v29 = vsel %vm1252_vm2, %v12958_v19, %v3987_v25  ;;  %v2170_v55 = vrot.slane %v8970_v2, 5  ;;  %v4707_v5 = vadd.f32 %v8790_v17, %v4627_v14  ;;  %v8975_v57 = vmul.f32 %v12885_v61, %v3921_v15  ;;  %v12964_v14 = vld [vmem:[#allocation129_spill] sm:$0xff]  ;;  %v5609_v19 = vld [vmem:[%s6439_s11 + $0x198] sm:$0xff] }
 0x2e6   : >> { %v2096_v30 = vsel %vm1535_vm5, %v12960_v45, %v2064_v42  ;;  %v1886_v25 = vadd.f32 %v1870_v51, %v1846_v40  ;;  %v2030_v10 = vmul.f32 %v12961_v43, %v2016_v20  ;;  %v3151_v60 = vadd.f32 %v8872_v38, %v3071_v33  ;;  %v12965_v38 = vld [vmem:[#allocation130_spill] sm:$0xff]  ;;  %v12980_v61 = vld [vmem:[#allocation113_spill] sm:$0xff] }
 0x2e7   : >> { %v12963_v41 = vrot.slane %v12962_v52, 1  ;;  %v4189_v36 = vrot.slane %v5332_v13, 2  ;;  %v2250_v16 = vrot.slane %v8970_v2, 6  ;;  %v4787_v26 = vadd.f32 %v8803_v8, %v4707_v5 }
 0x2e8   : >> { %v4269_v3 = vrot.slane %v5332_v13, 3  ;;  %v1966_v17 = vadd.f32 %v1950_v50, %v1886_v25  ;;  %v2110_v15 = vmul.f32 %v12964_v14, %v2096_v30  ;;  %v3231_v51 = vadd.f32 %v8881_v1, %v3151_v60  ;;  %v12966_v13 = vld [vmem:[#allocation131_spill] sm:$0xff]  ;;  %v12967_v1 = vld [vmem:[#allocation104_spill] sm:$0xff]  ;;  %v12968_v25 = vld [vmem:[#allocation106_spill] sm:$0xff] }
 0x2e9   : >> { %v4121_v42 = vsel %vm1373_vm3, %v12963_v41, %v4109_v59  ;;  %v4375_v20 = vrot.slane %v5609_v19, 5  ;;  %v8991_v40 = vsel %vm1090_vm0, %v12965_v38, %v2170_v55  ;;  %v2330_v59 = vrot.slane %v8970_v2, 7  ;;  %v12969_v41 = vld [vmem:[#allocation132_spill] sm:$0xff]  ;;  %v12973_v38 = vld [vmem:[#allocation127_spill] sm:$0xff] }
 0x2ea   : >> { %v4867_v33 = vadd.f32 %v8814_v46, %v4787_v26  ;;  %v4455_v45 = vrot.slane %v5609_v19, 6  ;;  %v2046_v8 = vadd.f32 %v2030_v10, %v1966_v17  ;;  %v2218_v50 = vmul.f32 %v12966_v13, %v8991_v40  ;;  %v12972_v17 = vld [vmem:[#allocation133_spill] sm:$0xff] }
 0x2eb   : >> { %v3339_v30 = vadd.f32 %v8886_v22, %v3231_v51  ;;  %v8999_v5 = vmul.f32 %v12967_v1, %v4001_v29  ;;  %v9002_v60 = vmul.f32 %v12968_v25, %v4121_v42  ;;  %v9007_v55 = vsel %vm1171_vm1, %v12969_v41, %v2250_v16  ;;  %v5241_v42 = vld [vmem:[%s6439_s11 + $0x80] sm:$0xff]  ;;  %v12975_v25 = vld [vmem:[#allocation134_spill] sm:$0xff] }
 0x2ec   : >> { %4981 = vmatprep.mubr.f32.mxu0 %v4867_v33  ;;  %v12970_v46 = vrot.slane %v12962_v52, 2  ;;  %v12971_v26 = vrot.slane %v12962_v52, 3  ;;  %v2126_v29 = vadd.f32 %v2110_v15, %v2046_v8  ;;  %v2298_v51 = vmul.f32 %v12972_v17, %v9007_v55 }
 0x2ed   : >> { %v3419_v16 = vadd.f32 %v8895_v6, %v3339_v30  ;;  %v12974_v33 = vrot.slane %v12973_v38, 5  ;;  %v9028_v52 = vsel %vm1252_vm2, %v12975_v25, %v2330_v59  ;;  %v4535_v8 = vrot.slane %v5609_v19, 7  ;;  %v12977_v6 = vld [vmem:[#allocation135_spill] sm:$0xff]  ;;  %v5358_v59 = vld [vmem:[%s6439_s11 + $0x1a8] sm:$0xff] }
 0x2ee   : >> { %v4201_v10 = vsel %vm1454_vm4, %v12970_v46, %v4189_v36  ;;  %v4281_v22 = vsel %vm1535_vm5, %v12971_v26, %v4269_v3  ;;  %v2452_v36 = vrot.slane %v5241_v42, 1  ;;  %v12976_v3 = vrot.slane %v12973_v38, 6 }
 0x2ef   : >> { %v4389_v41 = vsel %vm1090_vm0, %v12974_v33, %v4375_v20  ;;  %v2234_v46 = vadd.f32 %v2218_v50, %v2126_v29  ;;  %v2378_v30 = vmul.f32 %v12977_v6, %v9028_v52  ;;  %v3499_v26 = vadd.f32 %v8900_v47, %v3419_v16  ;;  %v12979_v33 = vld [vmem:[#allocation109_spill] sm:$0xff]  ;;  %v12981_v50 = vld [vmem:[#allocation136_spill] sm:$0xff]  ;;  %v12982_v47 = vld [vmem:[#allocation115_spill] sm:$0xff] }
 0x2f0   : >> { %v4469_v15 = vsel %vm1171_vm1, %v12976_v3, %v4455_v45  ;;  %v9038_v20 = vmul.f32 %v12978_v24, %v4201_v10  ;;  %v9041_v1 = vmul.f32 %v12979_v33, %v4281_v22  ;;  %v2532_v25 = vrot.slane %v5241_v42, 2  ;;  %v12983_v10 = vld [vmem:[#allocation137_spill] sm:$0xff] }
 0x2f1   : >> { %v9045_v12 = vmul.f32 %v12980_v61, %v4389_v41  ;;  %v4657_v45 = vrot.slane %v5358_v59, 1  ;;  %v2314_v3 = vadd.f32 %v2298_v51, %v2234_v46  ;;  %v2418_v29 = vmul.f32 %v8970_v2, %v12981_v50 }
 0x2f2   : >> { %v3539_v31 = vadd.f32 %v8904_v48, %v3499_v26  ;;  %v9051_v16 = vmul.f32 %v12982_v47, %v4469_v15  ;;  %v12984_v24 = vrot.slane %v12983_v10, 1  ;;  %v2612_v33 = vrot.slane %v5241_v42, 3  ;;  %v9073_v42 = vld [vmem:[%s6439_s11 + $0xa0] sm:$0xff] }
 0x2f3   : >> { %v12985_v41 = vrot.slane %v12973_v38, 7  ;;  %v4737_v46 = vrot.slane %v5358_v59, 2  ;;  %v2394_v61 = vadd.f32 %v2378_v30, %v2314_v3  ;;  %v4817_v26 = vrot.slane %v5358_v59, 3  ;;  %v12989_v30 = vld [vmem:[#allocation146_spill] sm:$0xff]  ;;  %v12991_v59 = vld [vmem:[#allocation139_spill] sm:$0xff] }
 0x2f4   : >> { %v9057_v22 = vsel %vm1373_vm3, %v12984_v24, %v2452_v36  ;;  %v3619_v15 = vadd.f32 %v8913_v58, %v3539_v31  ;;  %v12987_v47 = vrot.slane %v12983_v10, 2  ;;  %v2718_v38 = vrot.slane %v9073_v42, 5  ;;  %v12988_v36 = vld [vmem:[#allocation118_spill] sm:$0xff] }
 0x2f5   : >> { %v4549_v51 = vsel %vm1252_vm2, %v12985_v41, %v4535_v8  ;;  %v2498_v48 = vmul.f32 %v12986_v27, %v9057_v22  ;;  %v9077_v8 = vmul.f32 %v5609_v19, %v12988_v36  ;;  %v12990_v3 = vrot.slane %v12989_v30, 1  ;;  %v5293_v27 = vld [vmem:[%s6439_s11 + $0xe0] sm:$0xff] }
 0x2f6   : >> { %v9070_v24 = vsel %vm1454_vm4, %v12987_v47, %v2532_v25  ;;  %v2434_v58 = vadd.f32 %v2418_v29, %v2394_v61  ;;  %v3699_v54 = vadd.f32 %v8919_v35, %v3619_v15  ;;  %v12992_v25 = vld [vmem:[#allocation117_spill] sm:$0xff]  ;;  %v12993_v37 = vrot.slane %v12983_v10, 3  ;;  %v12995_v29 = vld [vmem:[#allocation140_spill] sm:$0xff]  ;;  %v5267_v15 = vld [vmem:[%s6439_s11 + $0xb0] sm:$0xff] }
 0x2f7   : >> { %v4669_v31 = vsel %vm1373_vm3, %v12990_v3, %v4657_v45  ;;  %v2578_v41 = vmul.f32 %v12991_v59, %v9070_v24  ;;  %v9087_v47 = vmul.f32 %v12992_v25, %v4549_v51  ;;  %v2798_v36 = vrot.slane %v9073_v42, 6 }
 0x2f8   : >> { %v9093_v19 = vsel %vm1535_vm5, %v12993_v37, %v2612_v33  ;;  %v12994_v9 = vrot.slane %v12989_v30, 2  ;;  %v2514_v45 = vadd.f32 %v2498_v48, %v2434_v58  ;;  %v2878_v51 = vrot.slane %v9073_v42, 7  ;;  %v12997_v33 = vld [vmem:[#allocation141_spill] sm:$0xff] }
 0x2f9   : >> { %v2658_v35 = vmul.f32 %v12995_v29, %v9093_v19  ;;  %v3779_v10 = vadd.f32 %v8930_v63, %v3699_v54  ;;  %v12996_v3 = vrot.slane %v12989_v30, 3  ;;  %v9112_v25 = vsel %vm1090_vm0, %v12997_v33, %v2718_v38  ;;  %v13000_v63 = vld [vmem:[#allocation121_spill] sm:$0xff]  ;;  %v13002_v33 = vld [vmem:[#allocation32_spill] sm:$0xff] }
 0x2fa   : >> { %v4749_v61 = vsel %vm1454_vm4, %v12994_v9, %v4737_v46  ;;  %v3000_v9 = vrot.slane %v5267_v15, 1  ;;  %v12998_v46 = vld [vmem:[#allocation120_spill] sm:$0xff]  ;;  %v2594_v58 = vadd.f32 %v2578_v41, %v2514_v45  ;;  %v2766_v62 = vmul.f32 %v12999_v21, %v9112_v25  ;;  %v13004_v21 = vld [vmem:[#allocation145_spill] sm:$0xff] }
 0x2fb   : >> { %v4829_v37 = vsel %vm1535_vm5, %v12996_v3, %v4817_v26  ;;  %v9115_v48 = vmul.f32 %v12998_v46, %v4669_v31  ;;  %v3080_v39 = vrot.slane %v5267_v15, 2  ;;  %v3887_v54 = vadd.f32 %v8963_v34, %v3779_v10  ;;  %v13001_v26 = vld [vmem:[#allocation143_spill] sm:$0xff]  ;;  %v13003_v45 = vld [vmem:[#allocation144_spill] sm:$0xff] }
 0x2fc   : >> { %v9121_v30 = vmul.f32 %v13000_v63, %v4749_v61  ;;  %v9126_v38 = vsel %vm1171_vm1, %v13001_v26, %v2798_v36  ;;  %v3160_v3 = vrot.slane %v5267_v15, 3  ;;  %v9129_v31 = vmul.f32 %v13002_v33, %v4829_v37  ;;  %v13005_v10 = vld [vmem:[#allocation147_spill] sm:$0xff]  ;;  %v13006_v36 = vld [vmem:[#allocation148_spill] sm:$0xff]  ;;  %v13007_v26 = vld [vmem:[#allocation149_spill] sm:$0xff] }
 0x2fd   : >> { %v2674_v41 = vadd.f32 %v2658_v35, %v2594_v58  ;;  %v2846_v46 = vmul.f32 %v13003_v45, %v9126_v38  ;;  %v9136_v34 = vsel %vm1252_vm2, %v13004_v21, %v2878_v51  ;;  %v3967_v61 = vadd.f32 %v8975_v57, %v3887_v54  ;;  %v13009_v33 = vld [vmem:[#allocation150_spill] sm:$0xff]  ;;  %v9158_v54 = vld [vmem:[%s6439_s11 + $0xd0] sm:$0xff]  ;;  %v13015_v29 = vld [vmem:[#allocation44_spill] sm:$0xff] }
 0x2fe   : >> { %v2926_v63 = vmul.f32 %v13005_v10, %v9136_v34  ;;  %v2966_v15 = vmul.f32 %v9073_v42, %v13006_v36  ;;  %v13008_v37 = vrot.slane %v13007_v26, 1  ;;  %v13010_v51 = vrot.slane %v13007_v26, 2  ;;  %13011 = vst [vmem:[#allocation43_spill] sm:$0xff] %v9158_v54 }
 0x2ff   : >> { %v2782_v58 = vadd.f32 %v2766_v62, %v2674_v41  ;;  %v3266_v36 = vrot.slane %v9158_v54, 5  ;;  %v4047_v10 = vadd.f32 %v8999_v5, %v3967_v61  ;;  %v13013_v62 = vrot.slane %v13007_v26, 3  ;;  %v13016_v26 = vld [vmem:[#allocation153_spill] sm:$0xff] }
 0x300   : >> { %v9147_v35 = vsel %vm1373_vm3, %v13008_v37, %v3000_v9  ;;  %v9155_v57 = vsel %vm1454_vm4, %v13010_v51, %v3080_v39  ;;  %v13012_v9 = vld [vmem:[#allocation152_spill] sm:$0xff]  ;;  %v3346_v51 = vrot.slane %v9158_v54, 6  ;;  %v1206_v59 = vmul.f32 %v9007_v55, %v13015_v29 }
 0x301   : >> { %v3046_v21 = vmul.f32 %v13009_v33, %v9147_v35  ;;  %v3126_v37 = vmul.f32 %v13012_v9, %v9155_v57  ;;  %v9168_v41 = vsel %vm1535_vm5, %v13013_v62, %v3160_v3  ;;  %v13014_v33 = vld [vmem:[#allocation92_spill] sm:$0xff]  ;;  %v2862_v39 = vadd.f32 %v2846_v46, %v2782_v58  ;;  %v13017_v62 = vld [vmem:[#allocation161_spill] sm:$0xff]  ;;  %v13018_v58 = vld [vmem:[#allocation154_spill] sm:$0xff] }
 0x302   : >> { %v1125_v45 = vmul.f32 %v8991_v40, %v13014_v33  ;;  %v1287_v5 = vmul.f32 %v9028_v52, %v12929_v32  ;;  %v4087_v61 = vadd.f32 %v8935_v49, %v4047_v10  ;;  %v3206_v9 = vmul.f32 %v13016_v26, %v9168_v41  ;;  %v13019_v10 = vld [vmem:[#allocation155_spill] sm:$0xff] }
 0x303   : >> { %v3426_v3 = vrot.slane %v9158_v54, 7  ;;  %v9184_v40 = vmul.f32 %v9158_v54, %v13017_v62  ;;  %v2942_v46 = vadd.f32 %v2926_v63, %v2862_v39  ;;  %v9189_v55 = vsel %vm1090_vm0, %v13018_v58, %v3266_v36  ;;  %v13020_v54 = vld [vmem:[#allocation156_spill] sm:$0xff] }
 0x304   : >> { %v3548_v29 = vrot.slane %v5293_v27, 1  ;;  %v1222_v52 = vadd.f32 %v1206_v59, %v1125_v45  ;;  %v4167_v49 = vadd.f32 %v9002_v60, %v4087_v61  ;;  %v3314_v32 = vmul.f32 %v13019_v10, %v9189_v55  ;;  %v13021_v45 = vld [vmem:[#allocation157_spill] sm:$0xff]  ;;  %v13022_v61 = vld [vmem:[#allocation158_spill] sm:$0xff]  ;;  %v13023_v58 = vld [vmem:[#allocation160_spill] sm:$0xff] }
 0x305   : >> { %v3628_v33 = vrot.slane %v5293_v27, 2  ;;  %v1327_v26 = vmul.f32 %v8970_v2, %v12930_v56  ;;  %v2982_v62 = vadd.f32 %v2966_v15, %v2942_v46  ;;  %v9199_v63 = vsel %vm1171_vm1, %v13020_v54, %v3346_v51 }
 0x306   : >> { %v1303_v36 = vadd.f32 %v1287_v5, %v1222_v52  ;;  %v1408_v59 = vmul.f32 %v9057_v22, %v12936_v44  ;;  %v4247_v60 = vadd.f32 %v9038_v20, %v4167_v49  ;;  %v3394_v39 = vmul.f32 %v13021_v45, %v9199_v63  ;;  %v13024_v20 = vld [vmem:[#allocation159_spill] sm:$0xff]  ;;  %v13032_v44 = vld [vmem:[#allocation173_spill] sm:$0xff] }
 0x307   : >> { %v9209_v2 = vsel %vm1252_vm2, %v13022_v61, %v3426_v3  ;;  %v3708_v15 = vrot.slane %v5293_v27, 3  ;;  %v3062_v46 = vadd.f32 %v3046_v21, %v2982_v62  ;;  %v1489_v5 = vmul.f32 %v9070_v24, %v12940_v11  ;;  %v9229_v21 = vld [vmem:[%s6439_s11 + $0x100] sm:$0xff]  ;;  %v13031_v11 = vld [vmem:[#allocation166_spill] sm:$0xff] }
 0x308   : >> { %v3474_v54 = vmul.f32 %v13023_v58, %v9209_v2  ;;  %v1343_v51 = vadd.f32 %v1327_v26, %v1303_v36  ;;  %v4327_v22 = vadd.f32 %v9041_v1, %v4247_v60  ;;  %v13025_v52 = vrot.slane %v13024_v20, 1  ;;  %v13027_v60 = vld [vmem:[#allocation162_spill] sm:$0xff] }
 0x309   : >> { %v13026_v3 = vrot.slane %v13024_v20, 2  ;;  %v3814_v26 = vrot.slane %v9229_v21, 5  ;;  %v3142_v62 = vadd.f32 %v3126_v37, %v3062_v46  ;;  %v3894_v24 = vrot.slane %v9229_v21, 6 }
 0x30a   : >> { %v9220_v49 = vsel %vm1373_vm3, %v13025_v52, %v3548_v29  ;;  %v1424_v1 = vadd.f32 %v1408_v59, %v1343_v51  ;;  %v1570_v36 = vmul.f32 %v9093_v19, %v12944_v28  ;;  %v4435_v29 = vadd.f32 %v9045_v12, %v4327_v22  ;;  %v13030_v22 = vld [vmem:[#allocation165_spill] sm:$0xff] }
 0x30b   : >> { %v9226_v27 = vsel %vm1454_vm4, %v13026_v3, %v3628_v33  ;;  %v3594_v61 = vmul.f32 %v13027_v60, %v9220_v49  ;;  %v13028_v33 = vld [vmem:[#allocation163_spill] sm:$0xff]  ;;  %v13029_v3 = vrot.slane %v13024_v20, 3  ;;  %v3222_v46 = vadd.f32 %v3206_v9, %v3142_v62 }
 0x30c   : >> { %v3674_v52 = vmul.f32 %v13028_v33, %v9226_v27  ;;  %v3974_v59 = vrot.slane %v9229_v21, 7  ;;  %v1505_v51 = vadd.f32 %v1489_v5, %v1424_v1  ;;  %v1678_v19 = vmul.f32 %v9112_v25, %v12947_v23  ;;  %v5319_v62 = vld [vmem:[%s6439_s11 + $0x110] sm:$0xff]  ;;  %v13033_v5 = vld [vmem:[#allocation168_spill] sm:$0xff] }
 0x30d   : >> { %v9244_v37 = vsel %vm1535_vm5, %v13029_v3, %v3708_v15  ;;  %v4515_v12 = vadd.f32 %v9051_v16, %v4435_v29  ;;  %v9255_v20 = vsel %vm1090_vm0, %v13031_v11, %v3814_v26  ;;  %v9259_v15 = vmul.f32 %v9229_v21, %v13032_v44  ;;  %v13034_v11 = vld [vmem:[#allocation167_spill] sm:$0xff] }
 0x30e   : >> { %v3754_v28 = vmul.f32 %v13030_v22, %v9244_v37  ;;  %v3330_v9 = vadd.f32 %v3314_v32, %v3222_v46  ;;  %v9265_v25 = vsel %vm1171_vm1, %v13033_v5, %v3894_v24  ;;  %v1586_v16 = vadd.f32 %v1570_v36, %v1505_v51  ;;  %v13035_v32 = vld [vmem:[#allocation170_spill] sm:$0xff] }
 0x30f   : >> { %v1758_v1 = vmul.f32 %v9126_v38, %v12949_v0  ;;  %v4595_v29 = vadd.f32 %v9087_v47, %v4515_v12  ;;  %v3862_v26 = vmul.f32 %v13034_v11, %v9255_v20  ;;  %v4096_v3 = vrot.slane %v5319_v62, 1  ;;  %v13036_v38 = vld [vmem:[#allocation169_spill] sm:$0xff]  ;;  %v13037_v12 = vld [vmem:[#allocation172_spill] sm:$0xff] }
 0x310   : >> { %v4176_v23 = vrot.slane %v5319_v62, 2  ;;  %v3410_v56 = vadd.f32 %v3394_v39, %v3330_v9  ;;  %v9275_v46 = vsel %vm1252_vm2, %v13035_v32, %v3974_v59  ;;  %v1694_v24 = vadd.f32 %v1678_v19, %v1586_v16  ;;  %v9287_v9 = vld [vmem:[%s6439_s11 + $0x130] sm:$0xff]  ;;  %v13038_v16 = vld [vmem:[#allocation174_spill] sm:$0xff] }
 0x311   : >> { %v1838_v36 = vmul.f32 %v9136_v34, %v12950_v7  ;;  %v4635_v51 = vadd.f32 %v9077_v8, %v4595_v29  ;;  %v3942_v47 = vmul.f32 %v13036_v38, %v9265_v25  ;;  %v9284_v5 = vmul.f32 %v13037_v12, %v9275_v46 }
 0x312   : >> { %v4256_v0 = vrot.slane %v5319_v62, 3  ;;  %v3490_v39 = vadd.f32 %v3474_v54, %v3410_v56  ;;  %v4362_v59 = vrot.slane %v9287_v9, 5  ;;  %v1774_v19 = vadd.f32 %v1758_v1, %v1694_v24 }
 0x313   : >> { %v1878_v34 = vmul.f32 %v9073_v42, %v12955_v18  ;;  %v4715_v8 = vadd.f32 %v9115_v48, %v4635_v51  ;;  %v13039_v29 = vrot.slane %v13038_v16, 1  ;;  %v13040_v62 = vrot.slane %v13038_v16, 2  ;;  %v13042_v18 = vld [vmem:[#allocation176_spill] sm:$0xff] }
 0x314   : >> { %v4442_v54 = vrot.slane %v9287_v9, 6  ;;  %v3530_v1 = vadd.f32 %v9184_v40, %v3490_v39  ;;  %v4522_v42 = vrot.slane %v9287_v9, 7  ;;  %v1854_v24 = vadd.f32 %v1838_v36, %v1774_v19  ;;  %v5345_v36 = vld [vmem:[%s6439_s11 + $0x140] sm:$0xff] }
 0x315   : >> { %v9297_v32 = vsel %vm1373_vm3, %v13039_v29, %v4096_v3  ;;  %v9303_v56 = vsel %vm1454_vm4, %v13040_v62, %v4176_v23  ;;  %v1958_v48 = vmul.f32 %v9147_v35, %v12959_v4  ;;  %v4795_v51 = vadd.f32 %v9121_v30, %v4715_v8  ;;  %v13041_v3 = vld [vmem:[#allocation175_spill] sm:$0xff]  ;;  %v13044_v4 = vld [vmem:[#allocation178_spill] sm:$0xff] }
 0x316   : >> { %v9313_v29 = vmul.f32 %v13041_v3, %v9297_v32  ;;  %v9317_v23 = vmul.f32 %v13042_v18, %v9303_v56  ;;  %v13043_v62 = vrot.slane %v13038_v16, 3  ;;  %v3610_v39 = vadd.f32 %v3594_v61, %v3530_v1  ;;  %v13045_v18 = vld [vmem:[#allocation180_spill] sm:$0xff] }
 0x317   : >> { %v4644_v19 = vrot.slane %v5345_v36, 1  ;;  %v1894_v35 = vadd.f32 %v1878_v34, %v1854_v24  ;;  %v2038_v30 = vmul.f32 %v9155_v57, %v12961_v43  ;;  %v4875_v8 = vadd.f32 %v9129_v31, %v4795_v51  ;;  %v13046_v31 = vld [vmem:[#allocation177_spill] sm:$0xff] }
 0x318   : >> { %v9323_v40 = vsel %vm1535_vm5, %v13043_v62, %v4256_v0  ;;  %v9332_v7 = vsel %vm1090_vm0, %v13044_v4, %v4362_v59  ;;  %v9337_v16 = vsel %vm1171_vm1, %v13045_v18, %v4442_v54  ;;  %v4724_v0 = vrot.slane %v5345_v36, 2  ;;  %v13047_v4 = vld [vmem:[#allocation179_spill] sm:$0xff]  ;;  %v13048_v18 = vld [vmem:[#allocation181_spill] sm:$0xff] }
 0x319   : >> { %v3690_v62 = vadd.f32 %v3674_v52, %v3610_v39  ;;  %v4804_v61 = vrot.slane %v5345_v36, 3  ;;  %v1974_v34 = vadd.f32 %v1958_v48, %v1894_v35  ;;  %v2118_v57 = vmul.f32 %v9168_v41, %v12964_v14  ;;  %5001 = vmatprep.mubr.f32.mxu1 %v4875_v8  ;;  %v13049_v52 = vld [vmem:[#allocation182_spill] sm:$0xff]  ;;  %v13050_v41 = vld [vmem:[#allocation184_spill] sm:$0xff]  ;;  %v13052_v8 = vld [vmem:[#allocation183_spill] sm:$0xff] }
 0x31a   : >> { %v9343_v1 = vmul.f32 %v13046_v31, %v9323_v40  ;;  %v9347_v59 = vmul.f32 %v13047_v4, %v9332_v7  ;;  %v9351_v54 = vmul.f32 %v13048_v18, %v9337_v16  ;;  %v9356_v24 = vsel %vm1252_vm2, %v13049_v52, %v4522_v42  ;;  %v13053_v43 = vld [vmem:[#allocation185_spill] sm:$0xff] }
 0x31b   : >> { %v3770_v48 = vadd.f32 %v3754_v28, %v3690_v62  ;;  %v13051_v51 = vrot.slane %v13050_v41, 1  ;;  %v2054_v39 = vadd.f32 %v2038_v30, %v1974_v34  ;;  %v2226_v35 = vmul.f32 %v9189_v55, %v12966_v13  ;;  %v13054_v28 = vld [vmem:[#allocation186_spill] sm:$0xff]  ;;  %v9385_v30 = vld [vmem:[%s6439_s11 + $0x38] sm:$0xff] }
 0x31c   : >> { %v9368_v14 = vmul.f32 %v13052_v8, %v9356_v24  ;;  %v9372_v42 = vmul.f32 %v9287_v9, %v13053_v43  ;;  %v13055_v52 = vrot.slane %v13050_v41, 2  ;;  %13056 = vst [vmem:[#allocation49_spill] sm:$0xff] %v9385_v30  ;;  %v13057_v34 = vrot.slane %v13050_v41, 3  ;;  %v13058_v43 = vld [vmem:[#allocation187_spill] sm:$0xff] }
 0x31d   : >> { %v9362_v36 = vsel %vm1373_vm3, %v13051_v51, %v4644_v19  ;;  %v3878_v55 = vadd.f32 %v3862_v26, %v3770_v48  ;;  %v2134_v13 = vadd.f32 %v2118_v57, %v2054_v39  ;;  %v5614_v48 = vld [vmem:[%s6439_s11 + $0x28] sm:$0xff]  ;;  %v13061_v39 = vld [vmem:[#allocation139_spill] sm:$0xff] }
 0x31e   : >> { %v9376_v62 = vmul.f32 %v13054_v28, %v9362_v36  ;;  %v9382_v19 = vsel %vm1454_vm4, %v13055_v52, %v4724_v0  ;;  %v9391_v51 = vsel %vm1535_vm5, %v13057_v34, %v4804_v61  ;;  %v2306_v28 = vmul.f32 %v9199_v63, %v12972_v17  ;;  %v13059_v52 = vld [vmem:[#allocation43_spill] sm:$0xff]  ;;  %v13060_v61 = vld [vmem:[#allocation77_spill] sm:$0xff]  ;;  %v13062_v17 = vld [vmem:[#allocation140_spill] sm:$0xff] }
 0x31f   : >> { %v9397_v8 = vmul.f32 %v13058_v43, %v9382_v19  ;;  %v2386_v0 = vmul.f32 %v9209_v2, %v12977_v6  ;;  %v2426_v26 = vmul.f32 %v13059_v52, %v12981_v50  ;;  %v1069_v41 = vrot.slane %v5614_v48, 5 }
 0x320   : >> { %v3958_v18 = vadd.f32 %v3942_v47, %v3878_v55  ;;  %v2242_v4 = vadd.f32 %v2226_v35, %v2134_v13  ;;  %v2506_v57 = vmul.f32 %v9220_v49, %v13060_v61  ;;  %v12218_v63 = vrot.slane %v9385_v30, 5  ;;  %v13063_v47 = vld [vmem:[#allocation142_spill] sm:$0xff]  ;;  %v13064_v35 = vld [vmem:[#allocation144_spill] sm:$0xff] }
 0x321   : >> { %v2586_v34 = vmul.f32 %v9226_v27, %v13061_v39  ;;  %v2666_v43 = vmul.f32 %v9244_v37, %v13062_v17  ;;  %v1152_v2 = vrot.slane %v5614_v48, 6  ;;  %v12217_v6 = vrot.slane %v9385_v30, 6 }
 0x322   : >> { %v4038_v52 = vadd.f32 %v9284_v5, %v3958_v18  ;;  %v2322_v50 = vadd.f32 %v2306_v28, %v2242_v4  ;;  %v2774_v13 = vmul.f32 %v9255_v20, %v13063_v47  ;;  %v2854_v49 = vmul.f32 %v9265_v25, %v13064_v35  ;;  %v9428_v18 = vld [vmem:[%s6439_s11 + $0x48] sm:$0xff]  ;;  %v13066_v25 = vld [vmem:[#allocation35_spill] sm:$0xff]  ;;  %v13067_v35 = vld [vmem:[#allocation36_spill] sm:$0xff] }
 0x323   : >> { %v1102_v27 = vsel %vm1090_vm0, %v1069_v41, %v12218_v63  ;;  %v1183_v37 = vsel %vm1171_vm1, %v1152_v2, %v12217_v6  ;;  %v1233_v55 = vrot.slane %v5614_v48, 7  ;;  %v12219_v5 = vrot.slane %v9385_v30, 7  ;;  %13065 = vst [vmem:[#allocation151_spill] sm:$0xff] %v9428_v18  ;;  %v13068_v2 = vld [vmem:[#allocation39_spill] sm:$0xff] }
 0x324   : >> { %v4078_v4 = vadd.f32 %v9259_v15, %v4038_v52  ;;  %v2402_v20 = vadd.f32 %v2386_v0, %v2322_v50  ;;  %v1120_v28 = vmul.f32 %v13066_v25, %v1102_v27  ;;  %v1201_v47 = vmul.f32 %v13067_v35, %v1183_v37  ;;  %v13069_v52 = vld [vmem:[#allocation38_spill] sm:$0xff] }
 0x325   : >> { %v1264_v41 = vsel %vm1252_vm2, %v1233_v55, %v12219_v5  ;;  %v1322_v6 = vmul.f32 %v13068_v2, %v9385_v30  ;;  %v1356_v48 = vrot.slane %v9385_v30, 1  ;;  %v12220_v63 = vrot.slane %v9428_v18, 1  ;;  %v9443_v37 = vld [vmem:[%s6439_s11 + $0x68] sm:$0xff] }
 0x326   : >> { %v4158_v50 = vadd.f32 %v9313_v29, %v4078_v4  ;;  %v2442_v15 = vadd.f32 %v2426_v26, %v2402_v20  ;;  %v1217_v0 = vadd.f32 %v1201_v47, %v1120_v28  ;;  %v1282_v27 = vmul.f32 %v13069_v52, %v1264_v41  ;;  %13070 = vst [vmem:[#allocation56_spill] sm:$0xff] %v9443_v37  ;;  %v13071_v47 = vld [vmem:[#allocation42_spill] sm:$0xff]  ;;  %v5615_v41 = vld [vmem:[%s6439_s11 + $0x58] sm:$0xff] }
 0x327   : >> { %v1385_v55 = vsel %vm1373_vm3, %v1356_v48, %v12220_v63  ;;  %v1437_v5 = vrot.slane %v9385_v30, 2  ;;  %v12227_v17 = vrot.slane %v9428_v18, 2  ;;  %v1518_v39 = vrot.slane %v9385_v30, 3 }
 0x328   : >> { %v4238_v61 = vadd.f32 %v9317_v23, %v4158_v50  ;;  %v2522_v29 = vadd.f32 %v2506_v57, %v2442_v15  ;;  %v1298_v26 = vadd.f32 %v1282_v27, %v1217_v0  ;;  %v1403_v4 = vmul.f32 %v13071_v47, %v1385_v55  ;;  %v13072_v23 = vld [vmem:[#allocation45_spill] sm:$0xff]  ;;  %v13074_v55 = vld [vmem:[#allocation147_spill] sm:$0xff] }
 0x329   : >> { %v1466_v20 = vsel %vm1454_vm4, %v1437_v5, %v12227_v17  ;;  %v12224_v28 = vrot.slane %v9428_v18, 3  ;;  %v1625_v48 = vrot.slane %v5615_v41, 5  ;;  %v12223_v63 = vrot.slane %v9443_v37, 5  ;;  %v13097_v18 = vld [vmem:[#allocation62_spill] sm:$0xff] }
 0x32a   : >> { %v4318_v2 = vadd.f32 %v9343_v1, %v4238_v61  ;;  %v2602_v30 = vadd.f32 %v2586_v34, %v2522_v29  ;;  %v1338_v52 = vadd.f32 %v1322_v6, %v1298_v26  ;;  %v1484_v57 = vmul.f32 %v13072_v23, %v1466_v20  ;;  %v13073_v34 = vld [vmem:[#allocation46_spill] sm:$0xff] }
 0x32b   : >> { %v1547_v50 = vsel %vm1535_vm5, %v1518_v39, %v12224_v28  ;;  %v1655_v5 = vsel %vm1090_vm0, %v1625_v48, %v12223_v63  ;;  %v1705_v15 = vrot.slane %v5615_v41, 6  ;;  %v12226_v0 = vrot.slane %v9443_v37, 6 }
 0x32c   : >> { %v4426_v1 = vadd.f32 %v9347_v59, %v4318_v2  ;;  %v2682_v61 = vadd.f32 %v2666_v43, %v2602_v30  ;;  %v1419_v6 = vadd.f32 %v1403_v4, %v1338_v52  ;;  %v1565_v27 = vmul.f32 %v13073_v34, %v1547_v50  ;;  %v9483_v59 = vld [vmem:[%s6439_s11 + $0x78] sm:$0xff]  ;;  %v13076_v43 = vld [vmem:[#allocation47_spill] sm:$0xff] }
 0x32d   : >> { %v2934_v29 = vmul.f32 %v9275_v46, %v13074_v55  ;;  %v1735_v39 = vsel %vm1171_vm1, %v1705_v15, %v12226_v0  ;;  %v1785_v26 = vrot.slane %v5615_v41, 7  ;;  %v12225_v20 = vrot.slane %v9443_v37, 7  ;;  %13075 = vst [vmem:[#allocation58_spill] sm:$0xff] %v9483_v59  ;;  %v13077_v2 = vld [vmem:[#allocation148_spill] sm:$0xff] }
 0x32e   : >> { %v4506_v48 = vadd.f32 %v9351_v54, %v4426_v1  ;;  %v2790_v63 = vadd.f32 %v2774_v13, %v2682_v61  ;;  %v1500_v28 = vadd.f32 %v1484_v57, %v1419_v6  ;;  %v1673_v30 = vmul.f32 %v13076_v43, %v1655_v5  ;;  %v13078_v50 = vld [vmem:[#allocation48_spill] sm:$0xff]  ;;  %v13079_v5 = vld [vmem:[#allocation31_spill] sm:$0xff]  ;;  %v13080_v61 = vld [vmem:[#allocation150_spill] sm:$0xff] }
 0x32f   : >> { %v2974_v52 = vmul.f32 %v9229_v21, %v13077_v2  ;;  %v1815_v46 = vsel %vm1252_vm2, %v1785_v26, %v12225_v20  ;;  %v1907_v4 = vrot.slane %v9443_v37, 1  ;;  %v12228_v41 = vrot.slane %v9483_v59, 1  ;;  %v13123_v2 = vld [vmem:[#allocation76_spill] sm:$0xff] }
 0x330   : >> { %v4586_v54 = vadd.f32 %v9368_v14, %v4506_v48  ;;  %v2870_v13 = vadd.f32 %v2854_v49, %v2790_v63  ;;  %v1581_v57 = vadd.f32 %v1565_v27, %v1500_v28  ;;  %v1753_v15 = vmul.f32 %v13078_v50, %v1735_v39  ;;  %v13081_v14 = vld [vmem:[#allocation50_spill] sm:$0xff]  ;;  %v13082_v49 = vld [vmem:[#allocation152_spill] sm:$0xff] }
 0x331   : >> { %v4850_v1 = vmul.f32 %v13079_v5, %v9391_v51  ;;  %v3054_v21 = vmul.f32 %v9297_v32, %v13080_v61  ;;  %v1987_v6 = vrot.slane %v9443_v37, 2  ;;  %v12231_v26 = vrot.slane %v9483_v59, 2 }
 0x332   : >> { %v4626_v20 = vadd.f32 %v9372_v42, %v4586_v54  ;;  %v2950_v0 = vadd.f32 %v2934_v29, %v2870_v13  ;;  %v1689_v17 = vadd.f32 %v1673_v30, %v1581_v57  ;;  %v1833_v63 = vmul.f32 %v13081_v14, %v1815_v46  ;;  %v13083_v30 = vld [vmem:[#allocation51_spill] sm:$0xff]  ;;  %v9516_v54 = vld [vmem:[%s6439_s11 + $0x98] sm:$0xff] }
 0x333   : >> { %v3134_v28 = vmul.f32 %v9303_v56, %v13082_v49  ;;  %v1935_v27 = vsel %vm1373_vm3, %v1907_v4, %v12228_v41  ;;  %v2067_v32 = vrot.slane %v9443_v37, 3  ;;  %v1873_v46 = vmul.f32 %v9443_v37, %v13083_v30  ;;  %13084 = vst [vmem:[#allocation60_spill] sm:$0xff] %v9516_v54  ;;  %v13085_v56 = vld [vmem:[#allocation153_spill] sm:$0xff] }
 0x334   : >> { %v4706_v48 = vadd.f32 %v9376_v62, %v4626_v20  ;;  %v2990_v42 = vadd.f32 %v2974_v52, %v2950_v0  ;;  %v1769_v29 = vadd.f32 %v1753_v15, %v1689_v17  ;;  %v3214_v13 = vmul.f32 %v9323_v40, %v13085_v56  ;;  %v13086_v62 = vld [vmem:[#allocation52_spill] sm:$0xff]  ;;  %v5616_v40 = vld [vmem:[%s6439_s11 + $0x88] sm:$0xff] }
 0x335   : >> { %v2015_v4 = vsel %vm1454_vm4, %v1987_v6, %v12231_v26  ;;  %v1953_v0 = vmul.f32 %v13086_v62, %v1935_v27  ;;  %v3322_v17 = vmul.f32 %v9332_v7, %v13019_v10  ;;  %v13087_v20 = vrot.slane %v9483_v59, 3 }
 0x336   : >> { %v4786_v57 = vadd.f32 %v9397_v8, %v4706_v48  ;;  %v3070_v41 = vadd.f32 %v3054_v21, %v2990_v42  ;;  %v1849_v39 = vadd.f32 %v1833_v63, %v1769_v29  ;;  %v2173_v15 = vrot.slane %v5616_v40, 5  ;;  %v13088_v21 = vld [vmem:[#allocation54_spill] sm:$0xff]  ;;  %v13089_v29 = vld [vmem:[#allocation161_spill] sm:$0xff] }
 0x337   : >> { %v2095_v52 = vsel %vm1535_vm5, %v2067_v32, %v13087_v20  ;;  %v2033_v63 = vmul.f32 %v13088_v21, %v2015_v4  ;;  %v3402_v27 = vmul.f32 %v9337_v16, %v13021_v45  ;;  %v3482_v7 = vmul.f32 %v9356_v24, %v13023_v58 }
 0x338   : >> { %v4866_v6 = vadd.f32 %v4850_v1, %v4786_v57  ;;  %v3150_v26 = vadd.f32 %v3134_v28, %v3070_v41  ;;  %v1889_v8 = vadd.f32 %v1873_v46, %v1849_v39  ;;  %v2253_v48 = vrot.slane %v5616_v40, 6  ;;  %v13090_v1 = vld [vmem:[#allocation55_spill] sm:$0xff]  ;;  %v5617_v28 = vld [vmem:[%s6439_s11 + $0x160] sm:$0xff] }
 0x339   : >> { %v12234_v42 = vrot.slane %v9516_v54, 6  ;;  %v3522_v20 = vmul.f32 %v9287_v9, %v13089_v29  ;;  %v2113_v41 = vmul.f32 %v13090_v1, %v2095_v52  ;;  %v3826_v39 = vrot.slane %v5617_v28, 5 }
 0x33a   : >> { %4982 = vmatmul.mubr.f32.gmra.mxu0 %v4866_v6  ;;  %v3230_v32 = vadd.f32 %v3214_v13, %v3150_v26  ;;  %v1969_v37 = vadd.f32 %v1953_v0, %v1889_v8  ;;  %v13091_v46 = vrot.slane %v9516_v54, 5  ;;  %v2333_v24 = vrot.slane %v5616_v40, 7  ;;  %v13092_v13 = vld [vmem:[#allocation57_spill] sm:$0xff]  ;;  %v9566_v8 = vld [vmem:[%s6439_s11 + $0xa8] sm:$0xff] }
 0x33b   : >> { %v12237_v4 = vrot.slane %v9516_v54, 7  ;;  %v3602_v26 = vmul.f32 %v9362_v36, %v13027_v60  ;;  %v3682_v52 = vmul.f32 %v9382_v19, %v13028_v33  ;;  %v3762_v6 = vmul.f32 %v9391_v51, %v13030_v22  ;;  %13093 = vst [vmem:[#allocation61_spill] sm:$0xff] %v9566_v8  ;;  %v13104_v60 = vld [vmem:[#allocation53_spill] sm:$0xff] }
 0x33c   : >> { %v9548_v16 = vsel %vm1090_vm0, %v2173_v15, %v13091_v46  ;;  %v3338_v57 = vadd.f32 %v3322_v17, %v3230_v32  ;;  %v2049_v9 = vadd.f32 %v2033_v63, %v1969_v37  ;;  %v3906_v15 = vrot.slane %v5617_v28, 6  ;;  %v13094_v63 = vld [vmem:[#allocation59_spill] sm:$0xff]  ;;  %v13095_v46 = vld [vmem:[#allocation82_spill] sm:$0xff] }
 0x33d   : >> { %v2221_v0 = vmul.f32 %v13092_v13, %v9548_v16  ;;  %v9563_v17 = vsel %vm1171_vm1, %v2253_v48, %v12234_v42  ;;  %v3986_v36 = vrot.slane %v5617_v28, 7  ;;  %v13096_v19 = vrot.slane %v13095_v46, 5  ;;  %v13099_v48 = vld [vmem:[#allocation63_spill] sm:$0xff] }
 0x33e   : >> { %v3418_v40 = vadd.f32 %v3402_v27, %v3338_v57  ;;  %v2129_v37 = vadd.f32 %v2113_v41, %v2049_v9  ;;  %v2301_v32 = vmul.f32 %v13094_v63, %v9563_v17  ;;  %v9578_v59 = vsel %vm1252_vm2, %v2333_v24, %v12237_v4  ;;  %v5331_v57 = vld [vmem:[%s6439_s11 + $0x170] sm:$0xff] }
 0x33f   : >> { %v3840_v51 = vsel %vm1090_vm0, %v13096_v19, %v3826_v39  ;;  %v2455_v27 = vrot.slane %v9516_v54, 1  ;;  %v9584_v9 = vmul.f32 %v5617_v28, %v13032_v44  ;;  %v2381_v39 = vmul.f32 %v13097_v18, %v9578_v59 }
 0x340   : >> { %v3498_v41 = vadd.f32 %v3482_v7, %v3418_v40  ;;  %v2237_v42 = vadd.f32 %v2221_v0, %v2129_v37  ;;  %v13098_v19 = vrot.slane %v13095_v46, 6  ;;  %v4108_v4 = vrot.slane %v5331_v57, 1  ;;  %v9598_v37 = vld [vmem:[%s6439_s11 + $0xc8] sm:$0xff] }
 0x341   : >> { %v2535_v22 = vrot.slane %v9516_v54, 2  ;;  %v3870_v40 = vmul.f32 %v13034_v11, %v3840_v51  ;;  %v2421_v0 = vmul.f32 %v9516_v54, %v13099_v48  ;;  %13100 = vst [vmem:[#allocation68_spill] sm:$0xff] %v9598_v37  ;;  %v13101_v44 = vrot.slane %v13095_v46, 7  ;;  %v13103_v11 = vld [vmem:[#allocation66_spill] sm:$0xff] }
 0x342   : >> { %v3920_v24 = vsel %vm1171_vm1, %v13098_v19, %v3906_v15  ;;  %v3538_v7 = vadd.f32 %v3522_v20, %v3498_v41  ;;  %v2317_v28 = vadd.f32 %v2301_v32, %v2237_v42  ;;  %v13102_v19 = vrot.slane %v9566_v8, 1  ;;  %v13107_v42 = vld [vmem:[#allocation67_spill] sm:$0xff] }
 0x343   : >> { %v4000_v15 = vsel %vm1252_vm2, %v13101_v44, %v3986_v36  ;;  %v2615_v20 = vrot.slane %v9516_v54, 3  ;;  %v3950_v51 = vmul.f32 %v13036_v38, %v3920_v24  ;;  %v13105_v29 = vrot.slane %v13104_v60, 1 }
 0x344   : >> { %v9608_v33 = vsel %vm1373_vm3, %v2455_v27, %v13102_v19  ;;  %v3618_v32 = vadd.f32 %v3602_v26, %v3538_v7  ;;  %v2397_v41 = vadd.f32 %v2381_v39, %v2317_v28  ;;  %v13106_v36 = vrot.slane %v9566_v8, 2  ;;  %v5618_v19 = vld [vmem:[%s6439_s11 + $0xb8] sm:$0xff] }
 0x345   : >> { %v2501_v46 = vmul.f32 %v13103_v11, %v9608_v33  ;;  %v4120_v44 = vsel %vm1373_vm3, %v13105_v29, %v4108_v4  ;;  %v2721_v26 = vrot.slane %v5618_v19, 5  ;;  %v4030_v7 = vmul.f32 %v13037_v12, %v4000_v15 }
 0x346   : >> { %v9623_v27 = vsel %vm1454_vm4, %v2535_v22, %v13106_v36  ;;  %v3698_v39 = vadd.f32 %v3682_v52, %v3618_v32  ;;  %v2437_v28 = vadd.f32 %v2421_v0, %v2397_v41  ;;  %v4188_v58 = vrot.slane %v5331_v57, 2  ;;  %v13109_v52 = vld [vmem:[#allocation69_spill] sm:$0xff]  ;;  %v5619_v0 = vld [vmem:[%s6439_s11 + $0x190] sm:$0xff] }
 0x347   : >> { %v2581_v38 = vmul.f32 %v13107_v42, %v9623_v27  ;;  %v13108_v29 = vrot.slane %v9566_v8, 3  ;;  %v2801_v22 = vrot.slane %v5618_v19, 6  ;;  %v4268_v10 = vrot.slane %v5331_v57, 3  ;;  %v13137_v42 = vld [vmem:[#allocation164_spill] sm:$0xff] }
 0x348   : >> { %v3778_v45 = vadd.f32 %v3762_v6, %v3698_v39  ;;  %v2517_v24 = vadd.f32 %v2501_v46, %v2437_v28  ;;  %v4374_v32 = vrot.slane %v5619_v0, 5  ;;  %v13110_v41 = vrot.slane %v9598_v37, 5  ;;  %v13111_v46 = vld [vmem:[#allocation71_spill] sm:$0xff] }
 0x349   : >> { %v9634_v4 = vsel %vm1535_vm5, %v2615_v20, %v13108_v29  ;;  %v2881_v20 = vrot.slane %v5618_v19, 7  ;;  %v4150_v6 = vmul.f32 %v13041_v3, %v4120_v44  ;;  %v13112_v28 = vrot.slane %v13104_v60, 2 }
 0x34a   : >> { %v2661_v15 = vmul.f32 %v13109_v52, %v9634_v4  ;;  %v9644_v8 = vsel %vm1090_vm0, %v2721_v26, %v13110_v41  ;;  %v3886_v12 = vadd.f32 %v3870_v40, %v3778_v45  ;;  %v2597_v57 = vadd.f32 %v2581_v38, %v2517_v24  ;;  %v9665_v24 = vld [vmem:[%s6439_s11 + $0xd8] sm:$0xff] }
 0x34b   : >> { %v2769_v39 = vmul.f32 %v13111_v46, %v9644_v8  ;;  %v4200_v36 = vsel %vm1454_vm4, %v13112_v28, %v4188_v58  ;;  %v4454_v56 = vrot.slane %v5619_v0, 6  ;;  %v4534_v49 = vrot.slane %v5619_v0, 7  ;;  %13115 = vst [vmem:[#allocation70_spill] sm:$0xff] %v9665_v24  ;;  %v13116_v41 = vld [vmem:[#allocation72_spill] sm:$0xff]  ;;  %v13117_v28 = vld [vmem:[#allocation171_spill] sm:$0xff] }
 0x34c   : >> { %v13113_v26 = vrot.slane %v9598_v37, 6  ;;  %v3966_v45 = vadd.f32 %v3950_v51, %v3886_v12  ;;  %v13114_v40 = vrot.slane %v13104_v60, 3  ;;  %v2677_v44 = vadd.f32 %v2661_v15, %v2597_v57  ;;  %v13120_v15 = vld [vmem:[#allocation176_spill] sm:$0xff] }
 0x34d   : >> { %v13118_v29 = vrot.slane %v13117_v28, 5  ;;  %v4230_v57 = vmul.f32 %v13120_v15, %v4200_v36  ;;  %v13138_v11 = vrot.slane %v13137_v42, 1 }
 0x34e   : >> { %v9658_v19 = vsel %vm1171_vm1, %v2801_v22, %v13113_v26  ;;  %v4280_v38 = vsel %vm1535_vm5, %v13114_v40, %v4268_v10  ;;  %v13119_v22 = vrot.slane %v9598_v37, 7  ;;  %v3003_v10 = vrot.slane %v9598_v37, 1  ;;  %v13121_v40 = vld [vmem:[#allocation75_spill] sm:$0xff] }
 0x34f   : >> { %v2849_v58 = vmul.f32 %v13116_v41, %v9658_v19  ;;  %v4388_v3 = vsel %vm1090_vm0, %v13118_v29, %v4374_v32  ;;  %v4046_v51 = vadd.f32 %v4030_v7, %v3966_v45  ;;  %v2785_v26 = vadd.f32 %v2769_v39, %v2677_v44  ;;  %v9696_v44 = vld [vmem:[%s6439_s11 + $0xf8] sm:$0xff] }
 0x350   : >> { %v9677_v60 = vsel %vm1252_vm2, %v2881_v20, %v13119_v22  ;;  %v13122_v32 = vrot.slane %v13117_v28, 6  ;;  %v2969_v20 = vmul.f32 %v9598_v37, %v13123_v2  ;;  %v3083_v22 = vrot.slane %v9598_v37, 2  ;;  %13124 = vst [vmem:[#allocation73_spill] sm:$0xff] %v9696_v44 }
 0x351   : >> { %v2929_v61 = vmul.f32 %v13121_v40, %v9677_v60  ;;  %v4086_v7 = vadd.f32 %v9584_v9, %v4046_v51  ;;  %v2865_v36 = vadd.f32 %v2849_v58, %v2785_v26  ;;  %v3163_v39 = vrot.slane %v9598_v37, 3  ;;  %v13128_v40 = vld [vmem:[#allocation78_spill] sm:$0xff] }
 0x352   : >> { %v4468_v29 = vsel %vm1171_vm1, %v13122_v32, %v4454_v56  ;;  %v4310_v12 = vmul.f32 %v13046_v31, %v4280_v38  ;;  %v5357_v56 = vld [vmem:[%s6439_s11 + $0x1a0] sm:$0xff]  ;;  %v13125_v32 = vld [vmem:[#allocation179_spill] sm:$0xff]  ;;  %v13126_v2 = vrot.slane %v13117_v28, 7  ;;  %v13127_v9 = vrot.slane %v9665_v24, 1 }
 0x353   : >> { %v4418_v15 = vmul.f32 %v13125_v32, %v4388_v3  ;;  %v4166_v51 = vadd.f32 %v4150_v6, %v4086_v7  ;;  %v4656_v26 = vrot.slane %v5357_v56, 1  ;;  %v2945_v45 = vadd.f32 %v2929_v61, %v2865_v36  ;;  %v13129_v31 = vld [vmem:[#allocation181_spill] sm:$0xff] }
 0x354   : >> { %v4548_v55 = vsel %vm1252_vm2, %v13126_v2, %v4534_v49  ;;  %v9709_v58 = vsel %vm1373_vm3, %v3003_v10, %v13127_v9  ;;  %v4498_v41 = vmul.f32 %v13129_v31, %v4468_v29  ;;  %v13130_v3 = vrot.slane %v9665_v24, 2  ;;  %v5620_v2 = vld [vmem:[%s6439_s11 + $0xe8] sm:$0xff]  ;;  %v13131_v6 = vld [vmem:[#allocation81_spill] sm:$0xff] }
 0x355   : >> { %v3049_v38 = vmul.f32 %v13128_v40, %v9709_v58  ;;  %v3269_v49 = vrot.slane %v5620_v2, 5  ;;  %v4246_v10 = vadd.f32 %v4230_v57, %v4166_v51  ;;  %v2985_v9 = vadd.f32 %v2969_v20, %v2945_v45  ;;  %v13134_v51 = vld [vmem:[#allocation183_spill] sm:$0xff] }
 0x356   : >> { %v9718_v28 = vsel %vm1454_vm4, %v3083_v22, %v13130_v3  ;;  %v13132_v7 = vrot.slane %v9665_v24, 3  ;;  %v4736_v36 = vrot.slane %v5357_v56, 2  ;;  %v13133_v22 = vld [vmem:[#allocation83_spill] sm:$0xff]  ;;  %v3349_v31 = vrot.slane %v5620_v2, 6  ;;  %v13135_v24 = vld [vmem:[#allocation185_spill] sm:$0xff] }
 0x357   : >> { %v3129_v61 = vmul.f32 %v13131_v6, %v9718_v28  ;;  %v12254_v40 = vrot.slane %v9696_v44, 6  ;;  %v4326_v32 = vadd.f32 %v4310_v12, %v4246_v10  ;;  %v3065_v57 = vadd.f32 %v3049_v38, %v2985_v9  ;;  %v13142_v9 = vld [vmem:[#allocation87_spill] sm:$0xff] }
 0x358   : >> { %v9728_v29 = vsel %vm1535_vm5, %v3163_v39, %v13132_v7  ;;  %v3429_v20 = vrot.slane %v5620_v2, 7  ;;  %v12255_v45 = vrot.slane %v9696_v44, 7  ;;  %v4578_v6 = vmul.f32 %v13134_v51, %v4548_v55  ;;  %v9747_v2 = vld [vmem:[%s6439_s11 + $0x108] sm:$0xff]  ;;  %v13146_v51 = vld [vmem:[#allocation187_spill] sm:$0xff] }
 0x359   : >> { %v3209_v3 = vmul.f32 %v13133_v22, %v9728_v29  ;;  %v4618_v46 = vmul.f32 %v5619_v0, %v13135_v24  ;;  %v4816_v52 = vrot.slane %v5357_v56, 3  ;;  %v13136_v39 = vrot.slane %v9696_v44, 5  ;;  %13139 = vst [vmem:[#allocation74_spill] sm:$0xff] %v9747_v2  ;;  %v13140_v55 = vld [vmem:[#allocation86_spill] sm:$0xff] }
 0x35a   : >> { %v4434_v22 = vadd.f32 %v4418_v15, %v4326_v32  ;;  %v4668_v12 = vsel %vm1373_vm3, %v13138_v11, %v4656_v26  ;;  %v3145_v38 = vadd.f32 %v3129_v61, %v3065_v57  ;;  %v13141_v0 = vrot.slane %v13137_v42, 2  ;;  %v13143_v57 = vld [vmem:[#allocation186_spill] sm:$0xff] }
 0x35b   : >> { %v9740_v7 = vsel %vm1090_vm0, %v3269_v49, %v13136_v39  ;;  %v9759_v15 = vsel %vm1171_vm1, %v3349_v31, %v12254_v40  ;;  %v3551_v32 = vrot.slane %v9696_v44, 1  ;;  %v4698_v39 = vmul.f32 %v13143_v57, %v4668_v12 }
 0x35c   : >> { %v3317_v10 = vmul.f32 %v13140_v55, %v9740_v7  ;;  %v4748_v56 = vsel %vm1454_vm4, %v13141_v0, %v4736_v36  ;;  %v4514_v26 = vadd.f32 %v4498_v41, %v4434_v22  ;;  %v3225_v49 = vadd.f32 %v3209_v3, %v3145_v38  ;;  %v13145_v41 = vld [vmem:[#allocation90_spill] sm:$0xff] }
 0x35d   : >> { %v3397_v61 = vmul.f32 %v13142_v9, %v9759_v15  ;;  %v9769_v36 = vsel %vm1252_vm2, %v3429_v20, %v12255_v45  ;;  %v13144_v31 = vrot.slane %v13137_v42, 3  ;;  %v3631_v40 = vrot.slane %v9696_v44, 2  ;;  %v13147_v45 = vld [vmem:[#allocation91_spill] sm:$0xff] }
 0x35e   : >> { %v3477_v22 = vmul.f32 %v13145_v41, %v9769_v36  ;;  %v4594_v3 = vadd.f32 %v4578_v6, %v4514_v26  ;;  %v3333_v38 = vadd.f32 %v3317_v10, %v3225_v49  ;;  %v4778_v20 = vmul.f32 %v13146_v51, %v4748_v56  ;;  %v9794_v56 = vld [vmem:[%s6439_s11 + $0x128] sm:$0xff]  ;;  %v13150_v51 = vld [vmem:[#allocation93_spill] sm:$0xff] }
 0x35f   : >> { %v4828_v0 = vsel %vm1535_vm5, %v13144_v31, %v4816_v52  ;;  %v3517_v12 = vmul.f32 %v9696_v44, %v13147_v45  ;;  %v13148_v42 = vrot.slane %v9747_v2, 1  ;;  %v1128_v6 = vmul.f32 %v9548_v16, %v13066_v25  ;;  %13149 = vst [vmem:[#allocation84_spill] sm:$0xff] %v9794_v56 }
 0x360   : >> { %v4634_v10 = vadd.f32 %v4618_v46, %v4594_v3  ;;  %v3413_v26 = vadd.f32 %v3397_v61, %v3333_v38  ;;  %v3711_v49 = vrot.slane %v9696_v44, 3  ;;  %v4858_v11 = vmul.f32 %v13079_v5, %v4828_v0  ;;  %v5621_v38 = vld [vmem:[%s6439_s11 + $0x118] sm:$0xff] }
 0x361   : >> { %v9787_v52 = vsel %vm1373_vm3, %v3551_v32, %v13148_v42  ;;  %v1209_v32 = vmul.f32 %v9563_v17, %v13067_v35  ;;  %v13151_v42 = vld [vmem:[#allocation38_spill] sm:$0xff]  ;;  %v13152_v61 = vrot.slane %v9747_v2, 2  ;;  %v3817_v31 = vrot.slane %v5621_v38, 5  ;;  %v13153_v0 = vld [vmem:[#allocation96_spill] sm:$0xff]  ;;  %v13154_v17 = vld [vmem:[#allocation39_spill] sm:$0xff] }
 0x362   : >> { %v3597_v57 = vmul.f32 %v13150_v51, %v9787_v52  ;;  %v1290_v24 = vmul.f32 %v9578_v59, %v13151_v42  ;;  %v4714_v16 = vadd.f32 %v4698_v39, %v4634_v10  ;;  %v3493_v46 = vadd.f32 %v3477_v22, %v3413_v26 }
 0x363   : >> { %v9807_v3 = vsel %vm1454_vm4, %v3631_v40, %v13152_v61  ;;  %v1225_v51 = vadd.f32 %v1209_v32, %v1128_v6  ;;  %v1330_v35 = vmul.f32 %v9516_v54, %v13154_v17  ;;  %v13155_v22 = vrot.slane %v9747_v2, 3 }
 0x364   : >> { %v3677_v25 = vmul.f32 %v13153_v0, %v9807_v3  ;;  %v4794_v59 = vadd.f32 %v4778_v20, %v4714_v16  ;;  %v3533_v39 = vadd.f32 %v3517_v12, %v3493_v46  ;;  %v3897_v40 = vrot.slane %v5621_v38, 6  ;;  %v13156_v20 = vld [vmem:[#allocation98_spill] sm:$0xff] }
 0x365   : >> { %v9819_v10 = vsel %vm1535_vm5, %v3711_v49, %v13155_v22  ;;  %v12259_v26 = vrot.slane %v9794_v56, 6  ;;  %v3977_v61 = vrot.slane %v5621_v38, 7  ;;  %v1306_v42 = vadd.f32 %v1290_v24, %v1225_v51  ;;  %v13158_v51 = vld [vmem:[#allocation100_spill] sm:$0xff] }
 0x366   : >> { %v1411_v6 = vmul.f32 %v9608_v33, %v13071_v47  ;;  %v4874_v32 = vadd.f32 %v4858_v11, %v4794_v59  ;;  %v3613_v5 = vadd.f32 %v3597_v57, %v3533_v39  ;;  %v3757_v12 = vmul.f32 %v13156_v20, %v9819_v10  ;;  %v9838_v57 = vld [vmem:[%s6439_s11 + $0x138] sm:$0xff] }
 0x367   : >> { %v12260_v16 = vrot.slane %v9794_v56, 7  ;;  %v13157_v46 = vrot.slane %v9794_v56, 5  ;;  %v1346_v22 = vadd.f32 %v1330_v35, %v1306_v42  ;;  %v1492_v24 = vmul.f32 %v9623_v27, %v13072_v23  ;;  %13159 = vst [vmem:[#allocation85_spill] sm:$0xff] %v9838_v57 }
 0x368   : >> { %5002 = vmatmul.mubr.f32.gmra.mxu1 %v4874_v32  ;;  %v3693_v33 = vadd.f32 %v3677_v25, %v3613_v5  ;;  %v9844_v38 = vsel %vm1171_vm1, %v3897_v40, %v12259_v26  ;;  %v1573_v42 = vmul.f32 %v9634_v4, %v13073_v34  ;;  %v13160_v25 = vld [vmem:[#allocation103_spill] sm:$0xff]  ;;  %v4179_v40 = vrot.slane %v9794_v56, 2  ;;  %v9861_v32 = vld [vmem:[%s6439_s11 + $0x158] sm:$0xff] }
 0x369   : >> { %v9831_v49 = vsel %vm1090_vm0, %v3817_v31, %v13157_v46  ;;  %v4099_v31 = vrot.slane %v9794_v56, 1  ;;  %v1427_v35 = vadd.f32 %v1411_v6, %v1346_v22  ;;  %v3945_v5 = vmul.f32 %v13160_v25, %v9844_v38  ;;  %13161 = vst [vmem:[#allocation88_spill] sm:$0xff] %v9861_v32  ;;  %v13162_v22 = vld [vmem:[#allocation104_spill] sm:$0xff]  ;;  %v13163_v6 = vld [vmem:[#allocation105_spill] sm:$0xff] }
 0x36a   : >> { %v3865_v11 = vmul.f32 %v13158_v51, %v9831_v49  ;;  %v3773_v27 = vadd.f32 %v3757_v12, %v3693_v33  ;;  %v9855_v59 = vsel %vm1252_vm2, %v3977_v61, %v12260_v16  ;;  %v1681_v12 = vmul.f32 %v9644_v8, %v13076_v43 }
 0x36b   : >> { %v1508_v4 = vadd.f32 %v1492_v24, %v1427_v35  ;;  %v4025_v33 = vmul.f32 %v13162_v22, %v9855_v59  ;;  %v4259_v26 = vrot.slane %v9794_v56, 3  ;;  %v1761_v39 = vmul.f32 %v9658_v19, %v13078_v50  ;;  %v5622_v24 = vld [vmem:[%s6439_s11 + $0x148] sm:$0xff]  ;;  %v13167_v50 = vld [vmem:[#allocation108_spill] sm:$0xff] }
 0x36c   : >> { %v3881_v46 = vadd.f32 %v3865_v11, %v3773_v27  ;;  %v4065_v54 = vmul.f32 %v9794_v56, %v13163_v6  ;;  %v4365_v35 = vrot.slane %v5622_v24, 5  ;;  %v13164_v11 = vrot.slane %v9838_v57, 1 }
 0x36d   : >> { %v1589_v16 = vadd.f32 %v1573_v42, %v1508_v4  ;;  %v13165_v61 = vrot.slane %v9838_v57, 2  ;;  %v4445_v34 = vrot.slane %v5622_v24, 6  ;;  %v2309_v17 = vmul.f32 %v9759_v15, %v13094_v63  ;;  %v13188_v15 = vld [vmem:[#allocation71_spill] sm:$0xff] }
 0x36e   : >> { %v3961_v2 = vadd.f32 %v3945_v5, %v3881_v46  ;;  %v9879_v27 = vsel %vm1373_vm3, %v4099_v31, %v13164_v11  ;;  %v1841_v5 = vmul.f32 %v9677_v60, %v13081_v14  ;;  %v13166_v46 = vld [vmem:[#allocation106_spill] sm:$0xff]  ;;  %v13168_v31 = vrot.slane %v9838_v57, 3 }
 0x36f   : >> { %v9885_v19 = vsel %vm1454_vm4, %v4179_v40, %v13165_v61  ;;  %v1697_v42 = vadd.f32 %v1681_v12, %v1589_v16  ;;  %v4145_v8 = vmul.f32 %v13166_v46, %v9879_v27  ;;  %v1881_v60 = vmul.f32 %v9598_v37, %v13083_v30  ;;  %v13169_v12 = vld [vmem:[#allocation109_spill] sm:$0xff]  ;;  %v13175_v40 = vld [vmem:[#allocation115_spill] sm:$0xff] }
 0x370   : >> { %v4041_v4 = vadd.f32 %v4025_v33, %v3961_v2  ;;  %v4225_v43 = vmul.f32 %v13167_v50, %v9885_v19  ;;  %v9897_v11 = vsel %vm1535_vm5, %v4259_v26, %v13168_v31  ;;  %v13170_v61 = vrot.slane %v9861_v32, 5  ;;  %v9911_v26 = vld [vmem:[%s6439_s11 + $0x168] sm:$0xff] }
 0x371   : >> { %v1777_v16 = vadd.f32 %v1761_v39, %v1697_v42  ;;  %v4305_v33 = vmul.f32 %v13169_v12, %v9897_v11  ;;  %v4525_v14 = vrot.slane %v5622_v24, 7  ;;  %13171 = vst [vmem:[#allocation89_spill] sm:$0xff] %v9911_v26  ;;  %v4647_v39 = vrot.slane %v9861_v32, 1 }
 0x372   : >> { %v4081_v2 = vadd.f32 %v4065_v54, %v4041_v4  ;;  %v9908_v57 = vsel %vm1090_vm0, %v4365_v35, %v13170_v61  ;;  %v1961_v54 = vmul.f32 %v9709_v58, %v13086_v62  ;;  %v4727_v37 = vrot.slane %v9861_v32, 2 }
 0x373   : >> { %v1857_v42 = vadd.f32 %v1841_v5, %v1777_v16  ;;  %v4807_v35 = vrot.slane %v9861_v32, 3  ;;  %v2041_v31 = vmul.f32 %v9718_v28, %v13088_v21  ;;  %v13172_v5 = vld [vmem:[#allocation113_spill] sm:$0xff]  ;;  %v13173_v58 = vrot.slane %v9861_v32, 6 }
 0x374   : >> { %v4161_v4 = vadd.f32 %v4145_v8, %v4081_v2  ;;  %v4413_v16 = vmul.f32 %v13172_v5, %v9908_v57  ;;  %v13174_v2 = vld [vmem:[#allocation118_spill] sm:$0xff]  ;;  %v13178_v21 = vrot.slane %v9911_v26, 1  ;;  %v13179_v47 = vrot.slane %v9911_v26, 2 }
 0x375   : >> { %v1897_v61 = vadd.f32 %v1881_v60, %v1857_v42  ;;  %v9930_v8 = vsel %vm1171_vm1, %v4445_v34, %v13173_v58  ;;  %v4613_v30 = vmul.f32 %v9861_v32, %v13174_v2  ;;  %v13176_v60 = vrot.slane %v9861_v32, 7  ;;  %v13177_v34 = vld [vmem:[#allocation117_spill] sm:$0xff] }
 0x376   : >> { %v4241_v23 = vadd.f32 %v4225_v43, %v4161_v4  ;;  %v4493_v24 = vmul.f32 %v13175_v40, %v9930_v8  ;;  %v2121_v42 = vmul.f32 %v9728_v29, %v13090_v1  ;;  %v9950_v62 = vsel %vm1373_vm3, %v4647_v39, %v13178_v21 }
 0x377   : >> { %v9940_v43 = vsel %vm1252_vm2, %v4525_v14, %v13176_v60  ;;  %v1977_v28 = vadd.f32 %v1961_v54, %v1897_v61  ;;  %v9956_v14 = vsel %vm1454_vm4, %v4727_v37, %v13179_v47  ;;  %v13180_v54 = vld [vmem:[#allocation120_spill] sm:$0xff]  ;;  %v2229_v21 = vmul.f32 %v9740_v7, %v13092_v13  ;;  %v13182_v60 = vld [vmem:[#allocation121_spill] sm:$0xff] }
 0x378   : >> { %v4321_v4 = vadd.f32 %v4305_v33, %v4241_v23  ;;  %v4573_v58 = vmul.f32 %v13177_v34, %v9940_v43  ;;  %v4693_v61 = vmul.f32 %v13180_v54, %v9950_v62  ;;  %v13181_v23 = vrot.slane %v9911_v26, 3  ;;  %v13183_v47 = vld [vmem:[#allocation32_spill] sm:$0xff]  ;;  %v9975_v26 = vld [vmem:[%s6439_s11 + $0x30] sm:$0xff]  ;;  %v13187_v13 = vld [vmem:[#allocation69_spill] sm:$0xff] }
 0x379   : >> { %v2057_v33 = vadd.f32 %v2041_v31, %v1977_v28  ;;  %v4773_v1 = vmul.f32 %v13182_v60, %v9956_v14  ;;  %13184 = vst [vmem:[#allocation97_spill] sm:$0xff] %v9975_v26  ;;  %v2389_v31 = vmul.f32 %v9769_v36, %v13097_v18  ;;  %v2429_v7 = vmul.f32 %v9696_v44, %v13099_v48  ;;  %v5623_v18 = vld [vmem:[%s6439_s11 + $0x20] sm:$0xff] }
 0x37a   : >> { %v9964_v29 = vsel %vm1535_vm5, %v4807_v35, %v13181_v23  ;;  %v4429_v39 = vadd.f32 %v4413_v16, %v4321_v4  ;;  %v13185_v35 = vld [vmem:[#allocation66_spill] sm:$0xff]  ;;  %v13186_v4 = vld [vmem:[#allocation67_spill] sm:$0xff]  ;;  %v2777_v63 = vmul.f32 %v9831_v49, %v13188_v15  ;;  %v1068_v44 = vrot.slane %v5623_v18, 5 }
 0x37b   : >> { %v4853_v37 = vmul.f32 %v13183_v47, %v9964_v29  ;;  %v2137_v54 = vadd.f32 %v2121_v42, %v2057_v33  ;;  %v2509_v16 = vmul.f32 %v9787_v52, %v13185_v35  ;;  %v2589_v23 = vmul.f32 %v9807_v3, %v13186_v4  ;;  %v13189_v33 = vld [vmem:[#allocation72_spill] sm:$0xff] }
 0x37c   : >> { %v4509_v28 = vadd.f32 %v4493_v24, %v4429_v39  ;;  %v2669_v47 = vmul.f32 %v9819_v10, %v13187_v13  ;;  %v9991_v36 = vmul.f32 %v9844_v38, %v13189_v33  ;;  %v12288_v52 = vrot.slane %v9975_v26, 5  ;;  %v13190_v39 = vld [vmem:[#allocation75_spill] sm:$0xff]  ;;  %v13191_v4 = vld [vmem:[#allocation76_spill] sm:$0xff]  ;;  %v10015_v13 = vld [vmem:[%s6439_s11 + $0x40] sm:$0xff] }
 0x37d   : >> { %v2245_v42 = vadd.f32 %v2229_v21, %v2137_v54  ;;  %v9997_v3 = vmul.f32 %v9855_v59, %v13190_v39  ;;  %v10001_v10 = vmul.f32 %v9794_v56, %v13191_v4  ;;  %v1151_v49 = vrot.slane %v5623_v18, 6  ;;  %v13192_v21 = vld [vmem:[#allocation78_spill] sm:$0xff]  ;;  %v13193_v59 = vld [vmem:[#allocation92_spill] sm:$0xff]  ;;  %13194 = vst [vmem:[#allocation101_spill] sm:$0xff] %v10015_v13 }
 0x37e   : >> { %v4589_v24 = vadd.f32 %v4573_v58, %v4509_v28  ;;  %v10005_v38 = vmul.f32 %v9879_v27, %v13192_v21  ;;  %v1101_v33 = vsel %vm1090_vm0, %v1068_v44, %v12288_v52  ;;  %v12289_v58 = vrot.slane %v9975_v26, 6  ;;  %v13195_v27 = vld [vmem:[#allocation94_spill] sm:$0xff]  ;;  %v13197_v52 = vld [vmem:[#allocation79_spill] sm:$0xff] }
 0x37f   : >> { %v2325_v54 = vadd.f32 %v2309_v17, %v2245_v42  ;;  %v1119_v39 = vmul.f32 %v13193_v59, %v1101_v33  ;;  %v1232_v15 = vrot.slane %v5623_v18, 7  ;;  %v12292_v56 = vrot.slane %v9975_v26, 7 }
 0x380   : >> { %v4629_v28 = vadd.f32 %v4613_v30, %v4589_v24  ;;  %v1182_v17 = vsel %vm1171_vm1, %v1151_v49, %v12289_v58  ;;  %v1321_v44 = vmul.f32 %v13195_v27, %v9975_v26  ;;  %v1355_v42 = vrot.slane %v9975_v26, 1  ;;  %v13196_v24 = vld [vmem:[#allocation44_spill] sm:$0xff] }
 0x381   : >> { %v2405_v4 = vadd.f32 %v2389_v31, %v2325_v54  ;;  %v1200_v33 = vmul.f32 %v13196_v24, %v1182_v17  ;;  %v1263_v18 = vsel %vm1252_vm2, %v1232_v15, %v12292_v56  ;;  %v12291_v31 = vrot.slane %v10015_v13, 1  ;;  %v10039_v15 = vld [vmem:[%s6439_s11 + $0x60] sm:$0xff] }
 0x382   : >> { %v4709_v30 = vadd.f32 %v4693_v61, %v4629_v28  ;;  %v1281_v21 = vmul.f32 %v13197_v52, %v1263_v18  ;;  %v1436_v49 = vrot.slane %v9975_v26, 2  ;;  %v12298_v58 = vrot.slane %v10015_v13, 2  ;;  %13198 = vst [vmem:[#allocation102_spill] sm:$0xff] %v10039_v15  ;;  %v13200_v18 = vld [vmem:[#allocation107_spill] sm:$0xff] }
 0x383   : >> { %v2445_v54 = vadd.f32 %v2429_v7, %v2405_v4  ;;  %v1216_v48 = vadd.f32 %v1200_v33, %v1119_v39  ;;  %v1384_v61 = vsel %vm1373_vm3, %v1355_v42, %v12291_v31  ;;  %v1517_v28 = vrot.slane %v9975_v26, 3  ;;  %v13199_v7 = vld [vmem:[#allocation81_spill] sm:$0xff]  ;;  %v5624_v31 = vld [vmem:[%s6439_s11 + $0x50] sm:$0xff] }
 0x384   : >> { %v4789_v35 = vadd.f32 %v4773_v1, %v4709_v30  ;;  %v10043_v4 = vmul.f32 %v9885_v19, %v13199_v7  ;;  %v1465_v1 = vsel %vm1454_vm4, %v1436_v49, %v12298_v58  ;;  %v12297_v39 = vrot.slane %v10015_v13, 3  ;;  %v13201_v7 = vld [vmem:[#allocation83_spill] sm:$0xff]  ;;  %v13208_v58 = vld [vmem:[#allocation34_spill] sm:$0xff] }
 0x385   : >> { %v2525_v17 = vadd.f32 %v2509_v16, %v2445_v54  ;;  %v1297_v33 = vadd.f32 %v1281_v21, %v1216_v48  ;;  %v1402_v42 = vmul.f32 %v13200_v18, %v1384_v61  ;;  %v1624_v56 = vrot.slane %v5624_v31, 5  ;;  %v13202_v48 = vld [vmem:[#allocation110_spill] sm:$0xff] }
 0x386   : >> { %v4869_v30 = vadd.f32 %v4853_v37, %v4789_v35  ;;  %v1546_v19 = vsel %vm1535_vm5, %v1517_v28, %v12297_v39  ;;  %v12295_v16 = vrot.slane %v10039_v15, 5  ;;  %v1704_v54 = vrot.slane %v5624_v31, 6 }
 0x387   : >> { %v2605_v26 = vadd.f32 %v2589_v23, %v2525_v17  ;;  %v10059_v49 = vmul.f32 %v9897_v11, %v13201_v7  ;;  %v1337_v37 = vadd.f32 %v1321_v44, %v1297_v33  ;;  %v1483_v35 = vmul.f32 %v13202_v48, %v1465_v1 }
 0x388   : >> { %4986 = vmatprep.mubr.f32.mxu0 %v4869_v30  ;;  %v12296_v21 = vrot.slane %v10039_v15, 6  ;;  %v1654_v61 = vsel %vm1090_vm0, %v1624_v56, %v12295_v16  ;;  %v1784_v28 = vrot.slane %v5624_v31, 7  ;;  %v12299_v17 = vrot.slane %v10039_v15, 7  ;;  %v13203_v30 = vld [vmem:[#allocation64_spill] sm:$0xff] }
 0x389   : >> { %v2685_v23 = vadd.f32 %v2669_v47, %v2605_v26  ;;  %v10070_v11 = vmul.f32 %v9908_v57, %v13140_v55  ;;  %v10074_v44 = vmul.f32 %v9930_v8, %v13142_v9  ;;  %v1418_v1 = vadd.f32 %v1402_v42, %v1337_v37  ;;  %v13204_v8 = vld [vmem:[#allocation93_spill] sm:$0xff]  ;;  %v10098_v42 = vld [vmem:[%s6439_s11 + $0x188] sm:$0xff] }
 0x38a   : >> { %v1564_v26 = vmul.f32 %v13203_v30, %v1546_v19  ;;  %v10079_v33 = vmul.f32 %v9940_v43, %v13145_v41  ;;  %v10083_v56 = vmul.f32 %v9861_v32, %v13147_v45  ;;  %v1734_v57 = vsel %vm1171_vm1, %v1704_v54, %v12296_v21  ;;  %13205 = vst [vmem:[#allocation99_spill] sm:$0xff] %v10098_v42  ;;  %v10101_v19 = vld [vmem:[%s6439_s11 + $0x70] sm:$0xff]  ;;  %v13207_v37 = vld [vmem:[#allocation33_spill] sm:$0xff]  ;;  %v13211_v21 = vld [vmem:[#allocation124_spill] sm:$0xff] }
 0x38b   : >> { %v2793_v47 = vadd.f32 %v2777_v63, %v2685_v23  ;;  %v10091_v31 = vmul.f32 %v9950_v62, %v13204_v8  ;;  %v10095_v63 = vmul.f32 %v9956_v14, %v13153_v0  ;;  %v1499_v43 = vadd.f32 %v1483_v35, %v1418_v1  ;;  %13206 = vst [vmem:[#allocation112_spill] sm:$0xff] %v10101_v19  ;;  %v5625_v35 = vld [vmem:[%s6439_s11 + $0x178] sm:$0xff]  ;;  %v13221_v45 = vld [vmem:[#allocation129_spill] sm:$0xff] }
 0x38c   : >> { %v1672_v23 = vmul.f32 %v13207_v37, %v1654_v61  ;;  %v1814_v54 = vsel %vm1252_vm2, %v1784_v28, %v12299_v17  ;;  %v1906_v62 = vrot.slane %v10039_v15, 1  ;;  %v10113_v14 = vmul.f32 %v9964_v29, %v13156_v20  ;;  %v13209_v29 = vld [vmem:[#allocation122_spill] sm:$0xff]  ;;  %v13216_v17 = vld [vmem:[#allocation125_spill] sm:$0xff] }
 0x38d   : >> { %v2873_v16 = vadd.f32 %v9991_v36, %v2793_v47  ;;  %v3829_v1 = vrot.slane %v5625_v35, 5  ;;  %v1580_v39 = vadd.f32 %v1564_v26, %v1499_v43  ;;  %v1752_v61 = vmul.f32 %v13208_v58, %v1734_v57 }
 0x38e   : >> { %v1986_v28 = vrot.slane %v10039_v15, 2  ;;  %v3909_v13 = vrot.slane %v5625_v35, 6  ;;  %v1832_v20 = vmul.f32 %v13209_v29, %v1814_v54  ;;  %v13210_v26 = vrot.slane %v10101_v19, 1 }
 0x38f   : >> { %v2953_v36 = vadd.f32 %v9997_v3, %v2873_v16  ;;  %v1688_v32 = vadd.f32 %v1672_v23, %v1580_v39  ;;  %v2066_v16 = vrot.slane %v10039_v15, 3  ;;  %v3989_v43 = vrot.slane %v5625_v35, 7  ;;  %v10134_v23 = vld [vmem:[%s6439_s11 + $0x90] sm:$0xff] }
 0x390   : >> { %v1934_v3 = vsel %vm1373_vm3, %v1906_v62, %v13210_v26  ;;  %v1872_v39 = vmul.f32 %v10039_v15, %v13211_v21  ;;  %13212 = vst [vmem:[#allocation114_spill] sm:$0xff] %v10134_v23  ;;  %v13213_v54 = vrot.slane %v10098_v42, 5  ;;  %v13214_v35 = vrot.slane %v10101_v19, 2 }
 0x391   : >> { %v2993_v0 = vadd.f32 %v10001_v10, %v2953_v36  ;;  %v1768_v47 = vadd.f32 %v1752_v61, %v1688_v32  ;;  %v10143_v36 = vmul.f32 %v10098_v42, %v13163_v6  ;;  %v13215_v61 = vrot.slane %v10098_v42, 6  ;;  %v5626_v6 = vld [vmem:[%s6439_s11 + $0x80] sm:$0xff] }
 0x392   : >> { %v3839_v62 = vsel %vm1090_vm0, %v3829_v1, %v13213_v54  ;;  %v2014_v32 = vsel %vm1454_vm4, %v1986_v28, %v13214_v35  ;;  %v1952_v57 = vmul.f32 %v13216_v17, %v1934_v3  ;;  %v13217_v54 = vrot.slane %v10101_v19, 3  ;;  %v10163_v35 = vld [vmem:[%s6439_s11 + $0x198] sm:$0xff] }
 0x393   : >> { %v3073_v10 = vadd.f32 %v10005_v38, %v2993_v0  ;;  %v3919_v26 = vsel %vm1171_vm1, %v3909_v13, %v13215_v61  ;;  %v4111_v0 = vrot.slane %v10098_v42, 1  ;;  %v1848_v38 = vadd.f32 %v1832_v20, %v1768_v47  ;;  %13218 = vst [vmem:[#allocation116_spill] sm:$0xff] %v10163_v35  ;;  %v13220_v3 = vld [vmem:[#allocation128_spill] sm:$0xff] }
 0x394   : >> { %v2094_v15 = vsel %vm1535_vm5, %v2066_v16, %v13217_v54  ;;  %v2172_v8 = vrot.slane %v5626_v6, 5  ;;  %v10166_v13 = vmul.f32 %v13158_v51, %v3839_v62  ;;  %v13219_v20 = vrot.slane %v10098_v42, 7 }
 0x395   : >> { %v3153_v1 = vadd.f32 %v10043_v4, %v3073_v10  ;;  %v1888_v4 = vadd.f32 %v1872_v39, %v1848_v38  ;;  %v2032_v10 = vmul.f32 %v13220_v3, %v2014_v32  ;;  %v12314_v16 = vrot.slane %v10163_v35, 1 }
 0x396   : >> { %v3999_v47 = vsel %vm1252_vm2, %v3989_v43, %v13219_v20  ;;  %v2252_v54 = vrot.slane %v5626_v6, 6  ;;  %v12316_v28 = vrot.slane %v10134_v23, 6  ;;  %v4191_v19 = vrot.slane %v10098_v42, 2 }
 0x397   : >> { %v3233_v61 = vadd.f32 %v10059_v49, %v3153_v1  ;;  %v12315_v62 = vrot.slane %v10163_v35, 2  ;;  %v1968_v51 = vadd.f32 %v1952_v57, %v1888_v4  ;;  %v2112_v41 = vmul.f32 %v13221_v45, %v2094_v15  ;;  %v13223_v15 = vld [vmem:[#allocation131_spill] sm:$0xff] }
 0x398   : >> { %v13222_v39 = vrot.slane %v10134_v23, 5  ;;  %v2332_v32 = vrot.slane %v5626_v6, 7  ;;  %v12317_v38 = vrot.slane %v10134_v23, 7  ;;  %v10188_v1 = vmul.f32 %v13160_v25, %v3919_v26  ;;  %v10199_v6 = vld [vmem:[%s6439_s11 + $0x1b8] sm:$0xff] }
 0x399   : >> { %v3341_v43 = vadd.f32 %v10070_v11, %v3233_v61  ;;  %v10191_v20 = vmul.f32 %v13162_v22, %v3999_v47  ;;  %v2048_v57 = vadd.f32 %v2032_v10, %v1968_v51  ;;  %v4271_v61 = vrot.slane %v10098_v42, 3  ;;  %13224 = vst [vmem:[#allocation41_spill] sm:$0xff] %v10199_v6  ;;  %v10216_v10 = vld [vmem:[%s6439_s11 + $0xa0] sm:$0xff] }
 0x39a   : >> { %v10184_v49 = vsel %vm1090_vm0, %v2172_v8, %v13222_v39  ;;  %v10205_v26 = vsel %vm1171_vm1, %v2252_v54, %v12316_v28  ;;  %v4119_v51 = vsel %vm1373_vm3, %v4111_v0, %v12314_v16  ;;  %13225 = vst [vmem:[#allocation126_spill] sm:$0xff] %v10216_v10  ;;  %v10225_v54 = vsel %vm1252_vm2, %v2332_v32, %v12317_v38  ;;  %v5628_v16 = vld [vmem:[%s6439_s11 + $0xb0] sm:$0xff] }
 0x39b   : >> { %v2220_v11 = vmul.f32 %v13223_v15, %v10184_v49  ;;  %v3421_v4 = vadd.f32 %v10074_v44, %v3341_v43  ;;  %v4199_v44 = vsel %vm1454_vm4, %v4191_v19, %v12315_v62  ;;  %v2128_v47 = vadd.f32 %v2112_v41, %v2048_v57  ;;  %v13226_v43 = vld [vmem:[#allocation133_spill] sm:$0xff]  ;;  %v10230_v19 = vld [vmem:[%s6439_s11 + $0x1a8] sm:$0xff]  ;;  %v13229_v57 = vld [vmem:[#allocation136_spill] sm:$0xff] }
 0x39c   : >> { %v2300_v39 = vmul.f32 %v13226_v43, %v10205_v26  ;;  %v2454_v0 = vrot.slane %v10134_v23, 1  ;;  %v4377_v41 = vrot.slane %v10230_v19, 5  ;;  %v13228_v32 = vrot.slane %v10163_v35, 3 }
 0x39d   : >> { %v3501_v8 = vadd.f32 %v10079_v33, %v3421_v4  ;;  %v2236_v62 = vadd.f32 %v2220_v11, %v2128_v47  ;;  %v13227_v33 = vld [vmem:[#allocation135_spill] sm:$0xff]  ;;  %v2534_v42 = vrot.slane %v10134_v23, 2  ;;  %v10244_v22 = vmul.f32 %v13166_v46, %v4119_v51 }
 0x39e   : >> { %v2380_v4 = vmul.f32 %v13227_v33, %v10225_v54  ;;  %v4279_v38 = vsel %vm1535_vm5, %v4271_v61, %v13228_v32  ;;  %v10247_v11 = vmul.f32 %v13167_v50, %v4199_v44  ;;  %v13231_v61 = vrot.slane %v10216_v10, 1 }
 0x39f   : >> { %v3541_v28 = vadd.f32 %v10083_v56, %v3501_v8  ;;  %v2316_v47 = vadd.f32 %v2300_v39, %v2236_v62  ;;  %v2420_v56 = vmul.f32 %v10134_v23, %v13229_v57  ;;  %v10252_v8 = vld [vmem:[%s6439_s11 + $0xc0] sm:$0xff]  ;;  %v2614_v51 = vrot.slane %v10134_v23, 3 }
 0x3a0   : >> { %13230 = vst [vmem:[#allocation119_spill] sm:$0xff] %v10252_v8  ;;  %v10259_v32 = vsel %vm1373_vm3, %v2454_v0, %v13231_v61  ;;  %v10264_v44 = vmul.f32 %v13169_v12, %v4279_v38  ;;  %v13232_v62 = vrot.slane %v10199_v6, 5  ;;  %v13234_v0 = vrot.slane %v10216_v10, 2 }
 0x3a1   : >> { %v3621_v35 = vadd.f32 %v10091_v31, %v3541_v28  ;;  %v2396_v50 = vadd.f32 %v2380_v4, %v2316_v47  ;;  %v13233_v31 = vld [vmem:[#allocation77_spill] sm:$0xff]  ;;  %v2720_v38 = vrot.slane %v5628_v16, 5  ;;  %v4457_v25 = vrot.slane %v10230_v19, 6  ;;  %v13235_v47 = vld [vmem:[#allocation139_spill] sm:$0xff] }
 0x3a2   : >> { %v4387_v39 = vsel %vm1090_vm0, %v4377_v41, %v13232_v62  ;;  %v2500_v28 = vmul.f32 %v13233_v31, %v10259_v32  ;;  %v10277_v61 = vsel %vm1454_vm4, %v2534_v42, %v13234_v0  ;;  %v2800_v0 = vrot.slane %v5628_v16, 6 }
 0x3a3   : >> { %v3701_v46 = vadd.f32 %v10095_v63, %v3621_v35  ;;  %v2436_v4 = vadd.f32 %v2420_v56, %v2396_v50  ;;  %v2580_v62 = vmul.f32 %v13235_v47, %v10277_v61  ;;  %v13236_v35 = vrot.slane %v10216_v10, 3  ;;  %v13237_v56 = vld [vmem:[#allocation140_spill] sm:$0xff]  ;;  %v5629_v47 = vld [vmem:[%s6439_s11 + $0xe0] sm:$0xff] }
 0x3a4   : >> { %v10294_v9 = vmul.f32 %v13172_v5, %v4387_v39  ;;  %v4537_v41 = vrot.slane %v10230_v19, 7  ;;  %v10308_v39 = vld [vmem:[%s6439_s11 + $0x1c8] sm:$0xff]  ;;  %v13240_v19 = vrot.slane %v10199_v6, 6  ;;  %v3268_v31 = vrot.slane %v5629_v47, 5 }
 0x3a5   : >> { %v3781_v63 = vadd.f32 %v10113_v14, %v3701_v46  ;;  %v10290_v42 = vsel %vm1535_vm5, %v2614_v51, %v13236_v35  ;;  %v2516_v50 = vadd.f32 %v2500_v28, %v2436_v4  ;;  %v13238_v14 = vrot.slane %v10252_v8, 5  ;;  %13239 = vst [vmem:[#allocation138_spill] sm:$0xff] %v10308_v39  ;;  %v13244_v4 = vld [vmem:[#allocation144_spill] sm:$0xff] }
 0x3a6   : >> { %v2660_v55 = vmul.f32 %v13237_v56, %v10290_v42  ;;  %v2880_v35 = vrot.slane %v5628_v16, 7  ;;  %v4467_v28 = vsel %vm1171_vm1, %v4457_v25, %v13240_v19  ;;  %v4739_v25 = vrot.slane %v10199_v6, 2 }
 0x3a7   : >> { %v3889_v46 = vadd.f32 %v10166_v13, %v3781_v63  ;;  %v10304_v51 = vsel %vm1090_vm0, %v2720_v38, %v13238_v14  ;;  %v2596_v13 = vadd.f32 %v2580_v62, %v2516_v50  ;;  %v13241_v63 = vld [vmem:[#allocation142_spill] sm:$0xff]  ;;  %v4659_v38 = vrot.slane %v10199_v6, 1  ;;  %v10329_v50 = vld [vmem:[%s6439_s11 + $0xd0] sm:$0xff] }
 0x3a8   : >> { %v2768_v10 = vmul.f32 %v13241_v63, %v10304_v51  ;;  %v13242_v14 = vrot.slane %v10252_v8, 6  ;;  %13243 = vst [vmem:[#allocation37_spill] sm:$0xff] %v10329_v50  ;;  %v13245_v16 = vrot.slane %v10252_v8, 7  ;;  %v3082_v56 = vrot.slane %v10252_v8, 2 }
 0x3a9   : >> { %v3969_v5 = vadd.f32 %v10188_v1, %v3889_v46  ;;  %v2676_v62 = vadd.f32 %v2660_v55, %v2596_v13  ;;  %v4819_v55 = vrot.slane %v10199_v6, 3  ;;  %v13248_v13 = vrot.slane %v10308_v39, 1 }
 0x3aa   : >> { %v10324_v12 = vsel %vm1171_vm1, %v2800_v0, %v13242_v14  ;;  %v10338_v7 = vsel %vm1252_vm2, %v2880_v35, %v13245_v16  ;;  %v3002_v0 = vrot.slane %v10252_v8, 1  ;;  %v13247_v16 = vrot.slane %v10199_v6, 7 }
 0x3ab   : >> { %v2848_v1 = vmul.f32 %v13244_v4, %v10324_v12  ;;  %v4049_v46 = vadd.f32 %v10191_v20, %v3969_v5  ;;  %v2784_v19 = vadd.f32 %v2768_v10, %v2676_v62  ;;  %v13246_v4 = vld [vmem:[#allocation147_spill] sm:$0xff]  ;;  %v4501_v20 = vmul.f32 %v13175_v40, %v4467_v28 }
 0x3ac   : >> { %v2928_v63 = vmul.f32 %v13246_v4, %v10338_v7  ;;  %v4547_v14 = vsel %vm1252_vm2, %v4537_v41, %v13247_v16  ;;  %v4667_v10 = vsel %vm1373_vm3, %v4659_v38, %v13248_v13  ;;  %v13249_v4 = vld [vmem:[#allocation148_spill] sm:$0xff]  ;;  %v10361_v28 = vld [vmem:[%s6439_s11 + $0xf0] sm:$0xff]  ;;  %v13251_v35 = vrot.slane %v10329_v50, 1 }
 0x3ad   : >> { %v4089_v5 = vadd.f32 %v10143_v36, %v4049_v46  ;;  %v2864_v62 = vadd.f32 %v2848_v1, %v2784_v19  ;;  %v2968_v36 = vmul.f32 %v10252_v8, %v13249_v4  ;;  %13250 = vst [vmem:[#allocation80_spill] sm:$0xff] %v10361_v28  ;;  %v3162_v41 = vrot.slane %v10252_v8, 3 }
 0x3ae   : >> { %v10368_v40 = vsel %vm1373_vm3, %v3002_v0, %v13251_v35  ;;  %v13252_v38 = vrot.slane %v10308_v39, 2  ;;  %v13253_v1 = vrot.slane %v10308_v39, 3  ;;  %v13255_v35 = vrot.slane %v10329_v50, 2  ;;  %v13256_v39 = vld [vmem:[#allocation152_spill] sm:$0xff] }
 0x3af   : >> { %v4169_v46 = vadd.f32 %v10244_v22, %v4089_v5  ;;  %v2944_v13 = vadd.f32 %v2928_v63, %v2864_v62  ;;  %v13254_v5 = vld [vmem:[#allocation150_spill] sm:$0xff]  ;;  %v3348_v63 = vrot.slane %v5629_v47, 6  ;;  %v13258_v62 = vld [vmem:[#allocation153_spill] sm:$0xff] }
 0x3b0   : >> { %v4747_v19 = vsel %vm1454_vm4, %v4739_v25, %v13252_v38  ;;  %v4827_v22 = vsel %vm1535_vm5, %v4819_v55, %v13253_v1  ;;  %v3048_v4 = vmul.f32 %v13254_v5, %v10368_v40  ;;  %v10387_v16 = vsel %vm1454_vm4, %v3082_v56, %v13255_v35 }
 0x3b1   : >> { %v4249_v0 = vadd.f32 %v10247_v11, %v4169_v46  ;;  %v2984_v38 = vadd.f32 %v2968_v36, %v2944_v13  ;;  %v3128_v55 = vmul.f32 %v13256_v39, %v10387_v16  ;;  %v13257_v11 = vrot.slane %v10329_v50, 3 }
 0x3b2   : >> { %v3428_v56 = vrot.slane %v5629_v47, 7  ;;  %v4581_v36 = vmul.f32 %v13177_v34, %v4547_v14  ;;  %v4621_v13 = vmul.f32 %v10199_v6, %v13174_v2  ;;  %v13261_v14 = vld [vmem:[#allocation32_spill] sm:$0xff]  ;;  %v13263_v6 = vrot.slane %v10361_v28, 6  ;;  %v13268_v2 = vld [vmem:[#allocation161_spill] sm:$0xff] }
 0x3b3   : >> { %v4329_v1 = vadd.f32 %v10264_v44, %v4249_v0  ;;  %v10399_v46 = vsel %vm1535_vm5, %v3162_v41, %v13257_v11  ;;  %v3064_v25 = vadd.f32 %v3048_v4, %v2984_v38  ;;  %v13259_v0 = vld [vmem:[#allocation120_spill] sm:$0xff]  ;;  %v4781_v41 = vmul.f32 %v13182_v60, %v4747_v19  ;;  %v13262_v4 = vld [vmem:[#allocation155_spill] sm:$0xff]  ;;  %v10426_v19 = vld [vmem:[%s6439_s11 + $0x100] sm:$0xff] }
 0x3b4   : >> { %v3208_v39 = vmul.f32 %v13258_v62, %v10399_v46  ;;  %v4701_v50 = vmul.f32 %v13259_v0, %v4667_v10  ;;  %v13260_v11 = vrot.slane %v10361_v28, 5  ;;  %v4861_v35 = vmul.f32 %v13261_v14, %v4827_v22  ;;  %13264 = vst [vmem:[#allocation95_spill] sm:$0xff] %v10426_v19  ;;  %v10455_v14 = vld [vmem:[%s6439_s11 + $0x120] sm:$0xff] }
 0x3b5   : >> { %v4437_v44 = vadd.f32 %v10294_v9, %v4329_v1  ;;  %v3144_v34 = vadd.f32 %v3128_v55, %v3064_v25  ;;  %v10423_v9 = vsel %vm1171_vm1, %v3348_v63, %v13263_v6  ;;  %v13265_v1 = vld [vmem:[#allocation157_spill] sm:$0xff]  ;;  %v3550_v25 = vrot.slane %v10361_v28, 1  ;;  %13269 = vst [vmem:[#allocation111_spill] sm:$0xff] %v10455_v14 }
 0x3b6   : >> { %v10414_v47 = vsel %vm1090_vm0, %v3268_v31, %v13260_v11  ;;  %v3396_v60 = vmul.f32 %v13265_v1, %v10423_v9  ;;  %v13266_v31 = vrot.slane %v10361_v28, 7  ;;  %v1127_v6 = vmul.f32 %v10184_v49, %v13193_v59 }
 0x3b7   : >> { %v3316_v38 = vmul.f32 %v13262_v4, %v10414_v47  ;;  %v4517_v10 = vadd.f32 %v4501_v20, %v4437_v44  ;;  %v3224_v55 = vadd.f32 %v3208_v39, %v3144_v34  ;;  %v1208_v20 = vmul.f32 %v10205_v26, %v13196_v24  ;;  %v13267_v34 = vld [vmem:[#allocation160_spill] sm:$0xff]  ;;  %v13302_v24 = vld [vmem:[#allocation49_spill] sm:$0xff] }
 0x3b8   : >> { %v10434_v22 = vsel %vm1252_vm2, %v3428_v56, %v13266_v31  ;;  %v3630_v44 = vrot.slane %v10361_v28, 2  ;;  %v1289_v56 = vmul.f32 %v10225_v54, %v13197_v52  ;;  %v1329_v49 = vmul.f32 %v10134_v23, %v13195_v27 }
 0x3b9   : >> { %v4597_v63 = vadd.f32 %v4581_v36, %v4517_v10  ;;  %v3332_v31 = vadd.f32 %v3316_v38, %v3224_v55  ;;  %v3476_v39 = vmul.f32 %v13267_v34, %v10434_v22  ;;  %v1224_v11 = vadd.f32 %v1208_v20, %v1127_v6 }
 0x3ba   : >> { %v3516_v26 = vmul.f32 %v10361_v28, %v13268_v2  ;;  %v3710_v36 = vrot.slane %v10361_v28, 3  ;;  %v13270_v38 = vrot.slane %v10426_v19, 1  ;;  %v13272_v27 = vrot.slane %v10426_v19, 2 }
 0x3bb   : >> { %v4637_v0 = vadd.f32 %v4621_v13, %v4597_v63  ;;  %v3412_v54 = vadd.f32 %v3396_v60, %v3332_v31  ;;  %v1305_v6 = vadd.f32 %v1289_v56, %v1224_v11  ;;  %v1410_v13 = vmul.f32 %v10259_v32, %v13200_v18  ;;  %v13271_v63 = vld [vmem:[#allocation162_spill] sm:$0xff]  ;;  %v5630_v60 = vld [vmem:[%s6439_s11 + $0x110] sm:$0xff] }
 0x3bc   : >> { %v10461_v55 = vsel %vm1373_vm3, %v3550_v25, %v13270_v38  ;;  %v10471_v10 = vsel %vm1454_vm4, %v3630_v44, %v13272_v27  ;;  %v3816_v31 = vrot.slane %v5630_v60, 5  ;;  %v1491_v11 = vmul.f32 %v10277_v61, %v13202_v48 }
 0x3bd   : >> { %v4717_v20 = vadd.f32 %v4701_v50, %v4637_v0  ;;  %v3596_v23 = vmul.f32 %v13271_v63, %v10461_v55  ;;  %v3492_v52 = vadd.f32 %v3476_v39, %v3412_v54  ;;  %v1345_v38 = vadd.f32 %v1329_v49, %v1305_v6  ;;  %v13273_v50 = vld [vmem:[#allocation163_spill] sm:$0xff] }
 0x3be   : >> { %v3676_v0 = vmul.f32 %v13273_v50, %v10471_v10  ;;  %v13274_v56 = vrot.slane %v10426_v19, 3  ;;  %v3896_v27 = vrot.slane %v5630_v60, 6  ;;  %v12350_v39 = vrot.slane %v10455_v14, 6 }
 0x3bf   : >> { %v4797_v32 = vadd.f32 %v4781_v41, %v4717_v20  ;;  %v3532_v44 = vadd.f32 %v3516_v26, %v3492_v52  ;;  %v1426_v54 = vadd.f32 %v1410_v13, %v1345_v38  ;;  %v1572_v49 = vmul.f32 %v10290_v42, %v13203_v30  ;;  %v13275_v41 = vld [vmem:[#allocation165_spill] sm:$0xff]  ;;  %v13277_v42 = vld [vmem:[#allocation167_spill] sm:$0xff] }
 0x3c0   : >> { %v10483_v18 = vsel %vm1535_vm5, %v3710_v36, %v13274_v56  ;;  %v3976_v20 = vrot.slane %v5630_v60, 7  ;;  %v12349_v25 = vrot.slane %v10455_v14, 7  ;;  %v13276_v36 = vrot.slane %v10455_v14, 5 }
 0x3c1   : >> { %v4877_v61 = vadd.f32 %v4861_v35, %v4797_v32  ;;  %v3756_v6 = vmul.f32 %v13275_v41, %v10483_v18  ;;  %v3612_v19 = vadd.f32 %v3596_v23, %v3532_v44  ;;  %v1507_v26 = vadd.f32 %v1491_v11, %v1426_v54  ;;  %v10510_v32 = vld [vmem:[%s6439_s11 + $0x130] sm:$0xff]  ;;  %v13279_v11 = vld [vmem:[#allocation169_spill] sm:$0xff] }
 0x3c2   : >> { %v10495_v52 = vsel %vm1090_vm0, %v3816_v31, %v13276_v36  ;;  %v1680_v13 = vmul.f32 %v10304_v51, %v13207_v37  ;;  %v10505_v23 = vsel %vm1171_vm1, %v3896_v27, %v12350_v39  ;;  %v1760_v31 = vmul.f32 %v10324_v12, %v13208_v58  ;;  %13278 = vst [vmem:[#allocation123_spill] sm:$0xff] %v10510_v32  ;;  %v10523_v44 = vld [vmem:[%s6439_s11 + $0x150] sm:$0xff] }
 0x3c3   : >> { %5006 = vmatprep.mubr.f32.mxu1 %v4877_v61  ;;  %v3864_v35 = vmul.f32 %v13277_v42, %v10495_v52  ;;  %v3692_v38 = vadd.f32 %v3676_v0, %v3612_v19  ;;  %v1588_v60 = vadd.f32 %v1572_v49, %v1507_v26  ;;  %v3944_v51 = vmul.f32 %v13279_v11, %v10505_v23 }
 0x3c4   : >> { %v10518_v19 = vsel %vm1252_vm2, %v3976_v20, %v12349_v25  ;;  %v4098_v0 = vrot.slane %v10455_v14, 1  ;;  %13280 = vst [vmem:[#allocation40_spill] sm:$0xff] %v10523_v44  ;;  %v1840_v54 = vmul.f32 %v10338_v7, %v13209_v29  ;;  %v4178_v49 = vrot.slane %v10455_v14, 2  ;;  %v13281_v25 = vld [vmem:[#allocation172_spill] sm:$0xff]  ;;  %v5631_v7 = vld [vmem:[%s6439_s11 + $0x140] sm:$0xff] }
 0x3c5   : >> { %v3772_v56 = vadd.f32 %v3756_v6, %v3692_v38  ;;  %v1696_v12 = vadd.f32 %v1680_v13, %v1588_v60  ;;  %v4258_v36 = vrot.slane %v10455_v14, 3  ;;  %v4024_v6 = vmul.f32 %v13281_v25, %v10518_v19  ;;  %v13282_v13 = vld [vmem:[#allocation173_spill] sm:$0xff] }
 0x3c6   : >> { %v1880_v39 = vmul.f32 %v10252_v8, %v13211_v21  ;;  %v4064_v60 = vmul.f32 %v10455_v14, %v13282_v13  ;;  %v4364_v27 = vrot.slane %v5631_v7, 5  ;;  %v13283_v58 = vrot.slane %v10510_v32, 1 }
 0x3c7   : >> { %v3880_v26 = vadd.f32 %v3864_v35, %v3772_v56  ;;  %v1776_v38 = vadd.f32 %v1760_v31, %v1696_v12  ;;  %v1960_v31 = vmul.f32 %v10368_v40, %v13216_v17  ;;  %v13284_v12 = vld [vmem:[#allocation175_spill] sm:$0xff]  ;;  %v13285_v8 = vrot.slane %v10510_v32, 2  ;;  %v13288_v17 = vld [vmem:[#allocation177_spill] sm:$0xff] }
 0x3c8   : >> { %v10543_v35 = vsel %vm1373_vm3, %v4098_v0, %v13283_v58  ;;  %v13287_v0 = vld [vmem:[#allocation176_spill] sm:$0xff]  ;;  %v13303_v59 = vrot.slane %v13302_v24, 5 }
 0x3c9   : >> { %v3960_v61 = vadd.f32 %v3944_v51, %v3880_v26  ;;  %v1856_v56 = vadd.f32 %v1840_v54, %v1776_v38  ;;  %v4144_v20 = vmul.f32 %v13284_v12, %v10543_v35  ;;  %v10553_v29 = vsel %vm1454_vm4, %v4178_v49, %v13285_v8 }
 0x3ca   : >> { %v13286_v51 = vrot.slane %v10510_v32, 3  ;;  %v4224_v54 = vmul.f32 %v13287_v0, %v10553_v29  ;;  %v2040_v38 = vmul.f32 %v10387_v16, %v13220_v3  ;;  %v13289_v8 = vrot.slane %v10523_v44, 5 }
 0x3cb   : >> { %v4040_v58 = vadd.f32 %v4024_v6, %v3960_v61  ;;  %v1896_v40 = vadd.f32 %v1880_v39, %v1856_v56  ;;  %v4444_v32 = vrot.slane %v5631_v7, 6  ;;  %v10575_v6 = vld [vmem:[%s6439_s11 + $0x160] sm:$0xff]  ;;  %v2120_v16 = vmul.f32 %v10399_v46, %v13221_v45 }
 0x3cc   : >> { %v10559_v26 = vsel %vm1535_vm5, %v4258_v36, %v13286_v51  ;;  %v10571_v49 = vsel %vm1090_vm0, %v4364_v27, %v13289_v8  ;;  %13290 = vst [vmem:[#allocation65_spill] sm:$0xff] %v10575_v6  ;;  %v4524_v51 = vrot.slane %v5631_v7, 7  ;;  %v12362_v56 = vrot.slane %v10523_v44, 7  ;;  %v13291_v7 = vld [vmem:[#allocation179_spill] sm:$0xff] }
 0x3cd   : >> { %v4304_v21 = vmul.f32 %v13288_v17, %v10559_v26  ;;  %v4080_v61 = vadd.f32 %v4064_v60, %v4040_v58  ;;  %v1976_v39 = vadd.f32 %v1960_v31, %v1896_v40  ;;  %v4646_v3 = vrot.slane %v10523_v44, 1  ;;  %v13314_v17 = vld [vmem:[#allocation39_spill] sm:$0xff] }
 0x3ce   : >> { %v4726_v27 = vrot.slane %v10523_v44, 2  ;;  %v2228_v60 = vmul.f32 %v10414_v47, %v13223_v15  ;;  %v4412_v31 = vmul.f32 %v13291_v7, %v10571_v49  ;;  %v13292_v46 = vrot.slane %v10523_v44, 6  ;;  %v13293_v47 = vld [vmem:[#allocation181_spill] sm:$0xff]  ;;  %v13298_v15 = vld [vmem:[#allocation186_spill] sm:$0xff] }
 0x3cf   : >> { %v4160_v8 = vadd.f32 %v4144_v20, %v4080_v61  ;;  %v2056_v36 = vadd.f32 %v2040_v38, %v1976_v39  ;;  %v4806_v40 = vrot.slane %v10523_v44, 3  ;;  %v2308_v38 = vmul.f32 %v10423_v9, %v13226_v43 }
 0x3d0   : >> { %v10592_v58 = vsel %vm1171_vm1, %v4444_v32, %v13292_v46  ;;  %v10604_v30 = vsel %vm1252_vm2, %v4524_v51, %v12362_v56  ;;  %v13294_v32 = vld [vmem:[#allocation185_spill] sm:$0xff]  ;;  %v13296_v9 = vrot.slane %v10575_v6, 2  ;;  %v2388_v51 = vmul.f32 %v10434_v22, %v13227_v33  ;;  %v13297_v56 = vld [vmem:[#allocation183_spill] sm:$0xff] }
 0x3d1   : >> { %v4240_v37 = vadd.f32 %v4224_v54, %v4160_v8  ;;  %v2136_v61 = vadd.f32 %v2120_v16, %v2056_v36  ;;  %v4492_v39 = vmul.f32 %v13293_v47, %v10592_v58  ;;  %v4612_v46 = vmul.f32 %v10523_v44, %v13294_v32  ;;  %v13304_v32 = vld [vmem:[#allocation77_spill] sm:$0xff] }
 0x3d2   : >> { %v13295_v54 = vrot.slane %v10575_v6, 1  ;;  %v10618_v8 = vsel %vm1454_vm4, %v4726_v27, %v13296_v9  ;;  %v4572_v43 = vmul.f32 %v13297_v56, %v10604_v30  ;;  %v13300_v27 = vrot.slane %v10575_v6, 3  ;;  %v13301_v9 = vld [vmem:[#allocation31_spill] sm:$0xff] }
 0x3d3   : >> { %v4320_v16 = vadd.f32 %v4304_v21, %v4240_v37  ;;  %v2244_v20 = vadd.f32 %v2228_v60, %v2136_v61  ;;  %v5632_v21 = vld [vmem:[%s6439_s11 + $0x48] sm:$0xff]  ;;  %v2428_v61 = vmul.f32 %v10361_v28, %v13229_v57  ;;  %v13307_v57 = vrot.slane %v13302_v24, 6 }
 0x3d4   : >> { %v10612_v36 = vsel %vm1373_vm3, %v4646_v3, %v13295_v54  ;;  %v13299_v3 = vld [vmem:[#allocation187_spill] sm:$0xff]  ;;  %v1073_v37 = vrot.slane %v5632_v21, 5  ;;  %v10633_v60 = vsel %vm1535_vm5, %v4806_v40, %v13300_v27  ;;  %v2508_v40 = vmul.f32 %v10461_v55, %v13304_v32 }
 0x3d5   : >> { %v4692_v45 = vmul.f32 %v13298_v15, %v10612_v36  ;;  %v4772_v54 = vmul.f32 %v13299_v3, %v10618_v8  ;;  %v4428_v48 = vadd.f32 %v4412_v31, %v4320_v16  ;;  %v2324_v22 = vadd.f32 %v2308_v38, %v2244_v20  ;;  %v13305_v27 = vld [vmem:[#allocation35_spill] sm:$0xff] }
 0x3d6   : >> { %v4852_v33 = vmul.f32 %v13301_v9, %v10633_v60  ;;  %v1100_v3 = vsel %vm1090_vm0, %v13303_v59, %v1073_v37  ;;  %v1156_v15 = vrot.slane %v5632_v21, 6  ;;  %v1237_v31 = vrot.slane %v5632_v21, 7  ;;  %v13306_v38 = vld [vmem:[#allocation139_spill] sm:$0xff]  ;;  %v13309_v37 = vld [vmem:[#allocation36_spill] sm:$0xff] }
 0x3d7   : >> { %v4508_v16 = vadd.f32 %v4492_v39, %v4428_v48  ;;  %v2404_v6 = vadd.f32 %v2388_v51, %v2324_v22  ;;  %v1122_v20 = vmul.f32 %v13305_v27, %v1100_v3  ;;  %v2588_v28 = vmul.f32 %v10471_v10, %v13306_v38  ;;  %v5633_v48 = vld [vmem:[%s6439_s11 + $0x58] sm:$0xff]  ;;  %v13310_v22 = vld [vmem:[#allocation38_spill] sm:$0xff]  ;;  %v13312_v27 = vld [vmem:[#allocation151_spill] sm:$0xff] }
 0x3d8   : >> { %v1181_v9 = vsel %vm1171_vm1, %v13307_v57, %v1156_v15  ;;  %v13308_v56 = vrot.slane %v13302_v24, 7  ;;  %v1360_v39 = vrot.slane %v5633_v48, 1  ;;  %v13311_v10 = vld [vmem:[#allocation140_spill] sm:$0xff]  ;;  %v13313_v47 = vrot.slane %v13312_v27, 1 }
 0x3d9   : >> { %v4588_v51 = vadd.f32 %v4572_v43, %v4508_v16  ;;  %v2444_v55 = vadd.f32 %v2428_v61, %v2404_v6  ;;  %v1203_v3 = vmul.f32 %v13309_v37, %v1181_v9  ;;  %v2668_v38 = vmul.f32 %v10483_v18, %v13311_v10  ;;  %v13315_v6 = vld [vmem:[#allocation142_spill] sm:$0xff]  ;;  %v13316_v9 = vld [vmem:[#allocation144_spill] sm:$0xff] }
 0x3da   : >> { %v1262_v59 = vsel %vm1252_vm2, %v13308_v56, %v1237_v31  ;;  %v1383_v24 = vsel %vm1373_vm3, %v13313_v47, %v1360_v39  ;;  %v1441_v15 = vrot.slane %v5633_v48, 2  ;;  %v1522_v57 = vrot.slane %v5633_v48, 3  ;;  %v5634_v10 = vld [vmem:[%s6439_s11 + $0x78] sm:$0xff] }
 0x3db   : >> { %v1284_v32 = vmul.f32 %v13310_v22, %v1262_v59  ;;  %v4628_v56 = vadd.f32 %v4612_v46, %v4588_v51  ;;  %v2524_v31 = vadd.f32 %v2508_v40, %v2444_v55  ;;  %v1219_v7 = vadd.f32 %v1203_v3, %v1122_v20  ;;  %v13318_v40 = vld [vmem:[#allocation42_spill] sm:$0xff]  ;;  %v13319_v51 = vld [vmem:[#allocation147_spill] sm:$0xff]  ;;  %v13320_v55 = vld [vmem:[#allocation148_spill] sm:$0xff] }
 0x3dc   : >> { %v1324_v43 = vmul.f32 %v5632_v21, %v13314_v17  ;;  %v2776_v61 = vmul.f32 %v10495_v52, %v13315_v6  ;;  %v2856_v16 = vmul.f32 %v10505_v23, %v13316_v9  ;;  %v13317_v18 = vrot.slane %v13312_v27, 2 }
 0x3dd   : >> { %v1629_v47 = vrot.slane %v5634_v10, 5  ;;  %v4708_v39 = vadd.f32 %v4692_v45, %v4628_v56  ;;  %v2604_v48 = vadd.f32 %v2588_v28, %v2524_v31  ;;  %v1300_v46 = vadd.f32 %v1284_v32, %v1219_v7  ;;  %v13322_v28 = vld [vmem:[#allocation45_spill] sm:$0xff]  ;;  %v13324_v56 = vld [vmem:[#allocation56_spill] sm:$0xff] }
 0x3de   : >> { %v1464_v59 = vsel %vm1454_vm4, %v13317_v18, %v1441_v15  ;;  %v1405_v20 = vmul.f32 %v13318_v40, %v1383_v24  ;;  %v2936_v21 = vmul.f32 %v10518_v19, %v13319_v51  ;;  %v2976_v52 = vmul.f32 %v10455_v14, %v13320_v55  ;;  %v13323_v24 = vld [vmem:[#allocation152_spill] sm:$0xff]  ;;  %v13375_v55 = vld [vmem:[#allocation71_spill] sm:$0xff] }
 0x3df   : >> { %v13321_v23 = vrot.slane %v13312_v27, 3  ;;  %v1709_v9 = vrot.slane %v5634_v10, 6  ;;  %v4788_v15 = vadd.f32 %v4772_v54, %v4708_v39  ;;  %v2684_v18 = vadd.f32 %v2668_v38, %v2604_v48  ;;  %v13326_v38 = vld [vmem:[#allocation46_spill] sm:$0xff]  ;;  %v10703_v39 = vld [vmem:[%s6439_s11 + $0x180] sm:$0xff] }
 0x3e0   : >> { %v1340_v45 = vadd.f32 %v1324_v43, %v1300_v46  ;;  %v1486_v7 = vmul.f32 %v13322_v28, %v1464_v59  ;;  %v3056_v32 = vmul.f32 %v10543_v35, %v13254_v5  ;;  %v3136_v19 = vmul.f32 %v10553_v29, %v13323_v24  ;;  %13327 = vst [vmem:[#allocation130_spill] sm:$0xff] %v10703_v39  ;;  %v13329_v46 = vld [vmem:[#allocation47_spill] sm:$0xff] }
 0x3e1   : >> { %v1545_v3 = vsel %vm1535_vm5, %v13321_v23, %v1522_v57  ;;  %v13325_v31 = vrot.slane %v13324_v56, 5  ;;  %v1789_v14 = vrot.slane %v5634_v10, 7  ;;  %v4868_v57 = vadd.f32 %v4852_v33, %v4788_v15  ;;  %v13371_v24 = vld [vmem:[#allocation183_spill] sm:$0xff] }
 0x3e2   : >> { %v2792_v23 = vadd.f32 %v2776_v61, %v2684_v18  ;;  %v1421_v54 = vadd.f32 %v1405_v20, %v1340_v45  ;;  %v1567_v43 = vmul.f32 %v13326_v38, %v1545_v3  ;;  %v3216_v59 = vmul.f32 %v10559_v26, %v13258_v62  ;;  %v5635_v20 = vld [vmem:[%s6439_s11 + $0x170] sm:$0xff]  ;;  %v5636_v18 = vld [vmem:[%s6439_s11 + $0x88] sm:$0xff] }
 0x3e3   : >> { %v1653_v27 = vsel %vm1090_vm0, %v13325_v31, %v1629_v47  ;;  %v3324_v35 = vmul.f32 %v10571_v49, %v13262_v4  ;;  %v10700_v29 = vmul.f32 %v10592_v58, %v13265_v1  ;;  %v13328_v47 = vrot.slane %v13324_v56, 6  ;;  %4987 = vmatmul.mubr.f32.gmra.mxu0 %v4868_v57 }
 0x3e4   : >> { %v2872_v61 = vadd.f32 %v2856_v16, %v2792_v23  ;;  %v10711_v48 = vmul.f32 %v10604_v30, %v13267_v34  ;;  %v1502_v26 = vadd.f32 %v1486_v7, %v1421_v54  ;;  %v1675_v49 = vmul.f32 %v13329_v46, %v1653_v27  ;;  %v13331_v7 = vld [vmem:[#allocation48_spill] sm:$0xff] }
 0x3e5   : >> { %v1733_v33 = vsel %vm1171_vm1, %v13328_v47, %v1709_v9  ;;  %v10716_v58 = vmul.f32 %v10523_v44, %v13268_v2  ;;  %v3828_v3 = vrot.slane %v5635_v20, 5  ;;  %v13330_v15 = vrot.slane %v13324_v56, 7  ;;  %v13357_v2 = vld [vmem:[#allocation63_spill] sm:$0xff] }
 0x3e6   : >> { %v1911_v16 = vrot.slane %v5636_v18, 1  ;;  %v2952_v45 = vadd.f32 %v2936_v21, %v2872_v61  ;;  %v1583_v31 = vadd.f32 %v1567_v43, %v1502_v26  ;;  %v1755_v57 = vmul.f32 %v13331_v7, %v1733_v33  ;;  %v13332_v61 = vld [vmem:[#allocation50_spill] sm:$0xff] }
 0x3e7   : >> { %v1813_v9 = vsel %vm1252_vm2, %v13330_v15, %v1789_v14  ;;  %v10728_v27 = vmul.f32 %v10612_v36, %v13271_v63  ;;  %v3908_v23 = vrot.slane %v5635_v20, 6  ;;  %v1991_v47 = vrot.slane %v5636_v18, 2  ;;  %v13333_v26 = vld [vmem:[#allocation58_spill] sm:$0xff] }
 0x3e8   : >> { %v2992_v56 = vadd.f32 %v2976_v52, %v2952_v45  ;;  %v10733_v14 = vmul.f32 %v10618_v8, %v13273_v50  ;;  %v1691_v21 = vadd.f32 %v1675_v49, %v1583_v31  ;;  %v1835_v15 = vmul.f32 %v13332_v61, %v1813_v9  ;;  %v13336_v49 = vld [vmem:[#allocation51_spill] sm:$0xff] }
 0x3e9   : >> { %v3988_v43 = vrot.slane %v5635_v20, 7  ;;  %v13334_v30 = vrot.slane %v13333_v26, 1  ;;  %v2071_v44 = vrot.slane %v5636_v18, 3  ;;  %v13335_v52 = vrot.slane %v10703_v39, 5 }
 0x3ea   : >> { %v3072_v54 = vadd.f32 %v3056_v32, %v2992_v56  ;;  %v1771_v45 = vadd.f32 %v1755_v57, %v1691_v21  ;;  %v1875_v31 = vmul.f32 %v5634_v10, %v13336_v49  ;;  %v10748_v20 = vmul.f32 %v10633_v60, %v13275_v41  ;;  %v10763_v10 = vld [vmem:[%s6439_s11 + $0x190] sm:$0xff]  ;;  %v13340_v56 = vld [vmem:[#allocation52_spill] sm:$0xff] }
 0x3eb   : >> { %v1933_v36 = vsel %vm1373_vm3, %v13334_v30, %v1911_v16  ;;  %v3838_v8 = vsel %vm1090_vm0, %v3828_v3, %v13335_v52  ;;  %v13337_v9 = vrot.slane %v10703_v39, 6  ;;  %v10756_v32 = vmul.f32 %v10703_v39, %v13282_v13  ;;  %13339 = vst [vmem:[#allocation132_spill] sm:$0xff] %v10763_v10  ;;  %v13345_v41 = vld [vmem:[#allocation55_spill] sm:$0xff] }
 0x3ec   : >> { %v13338_v18 = vrot.slane %v13333_v26, 2  ;;  %v3152_v30 = vadd.f32 %v3136_v19, %v3072_v54  ;;  %v4110_v60 = vrot.slane %v10703_v39, 1  ;;  %v1851_v57 = vadd.f32 %v1835_v15, %v1771_v45  ;;  %v13343_v45 = vld [vmem:[#allocation54_spill] sm:$0xff] }
 0x3ed   : >> { %v3918_v16 = vsel %vm1171_vm1, %v3908_v23, %v13337_v9  ;;  %v1955_v21 = vmul.f32 %v13340_v56, %v1933_v36  ;;  %v10768_v23 = vmul.f32 %v13277_v42, %v3838_v8  ;;  %v13341_v9 = vrot.slane %v13333_v26, 3 }
 0x3ee   : >> { %v2013_v3 = vsel %vm1454_vm4, %v13338_v18, %v1991_v47  ;;  %v10776_v47 = vld [vmem:[%s6439_s11 + $0xa8] sm:$0xff]  ;;  %v3232_v54 = vadd.f32 %v3216_v59, %v3152_v30  ;;  %v13342_v15 = vrot.slane %v10703_v39, 7  ;;  %v1891_v8 = vadd.f32 %v1875_v31, %v1851_v57  ;;  %v5638_v31 = vld [vmem:[%s6439_s11 + $0x1a0] sm:$0xff]  ;;  %v13346_v57 = vld [vmem:[#allocation60_spill] sm:$0xff] }
 0x3ef   : >> { %v2093_v33 = vsel %vm1535_vm5, %v13341_v9, %v2071_v44  ;;  %v2177_v19 = vrot.slane %v10776_v47, 5  ;;  %v2035_v18 = vmul.f32 %v13343_v45, %v2013_v3  ;;  %v4190_v52 = vrot.slane %v10703_v39, 2  ;;  %v10788_v9 = vld [vmem:[%s6439_s11 + $0x1b0] sm:$0xff] }
 0x3f0   : >> { %v3998_v36 = vsel %vm1252_vm2, %v3988_v43, %v13342_v15  ;;  %v4270_v44 = vrot.slane %v10703_v39, 3  ;;  %13344 = vst [vmem:[#allocation127_spill] sm:$0xff] %v10788_v9  ;;  %v2257_v13 = vrot.slane %v10776_v47, 6  ;;  %v3340_v42 = vadd.f32 %v3324_v35, %v3232_v54 }
 0x3f1   : >> { %v1971_v30 = vadd.f32 %v1955_v21, %v1891_v8  ;;  %v2115_v50 = vmul.f32 %v13345_v41, %v2093_v33  ;;  %v10794_v43 = vmul.f32 %v13279_v11, %v3918_v16  ;;  %v4376_v3 = vrot.slane %v5638_v31, 5  ;;  %v13348_v33 = vld [vmem:[#allocation57_spill] sm:$0xff] }
 0x3f2   : >> { %v13347_v15 = vrot.slane %v13346_v57, 5  ;;  %v2337_v39 = vrot.slane %v10776_v47, 7  ;;  %v3420_v35 = vadd.f32 %v10700_v29, %v3340_v42  ;;  %v10809_v8 = vmul.f32 %v13281_v25, %v3998_v36 }
 0x3f3   : >> { %v2051_v54 = vadd.f32 %v2035_v18, %v1971_v30  ;;  %v13349_v59 = vrot.slane %v10763_v10, 1  ;;  %v13351_v42 = vrot.slane %v13346_v57, 6  ;;  %v13352_v36 = vrot.slane %v10763_v10, 3 }
 0x3f4   : >> { %v10801_v26 = vsel %vm1090_vm0, %v13347_v15, %v2177_v19  ;;  %v13350_v15 = vrot.slane %v10763_v10, 2  ;;  %v3500_v18 = vadd.f32 %v10711_v48, %v3420_v35  ;;  %v4456_v25 = vrot.slane %v5638_v31, 6 }
 0x3f5   : >> { %v2223_v16 = vmul.f32 %v13348_v33, %v10801_v26  ;;  %v4118_v19 = vsel %vm1373_vm3, %v4110_v60, %v13349_v59  ;;  %v10823_v29 = vsel %vm1171_vm1, %v13351_v42, %v2257_v13  ;;  %v4278_v30 = vsel %vm1535_vm5, %v4270_v44, %v13352_v36  ;;  %v13353_v60 = vld [vmem:[#allocation59_spill] sm:$0xff]  ;;  %v5639_v42 = vld [vmem:[%s6439_s11 + $0xb8] sm:$0xff] }
 0x3f6   : >> { %v4198_v11 = vsel %vm1454_vm4, %v4190_v52, %v13350_v15  ;;  %v2131_v21 = vadd.f32 %v2115_v50, %v2051_v54  ;;  %v2303_v59 = vmul.f32 %v13353_v60, %v10823_v29  ;;  %v13354_v15 = vrot.slane %v13346_v57, 7  ;;  %v13356_v54 = vld [vmem:[#allocation62_spill] sm:$0xff] }
 0x3f7   : >> { %v2459_v63 = vrot.slane %v5639_v42, 1  ;;  %v3540_v48 = vadd.f32 %v10716_v58, %v3500_v18  ;;  %v13355_v35 = vrot.slane %v10788_v9, 5  ;;  %v10845_v10 = vmul.f32 %v13284_v12, %v4118_v19  ;;  %v13359_v19 = vld [vmem:[#allocation179_spill] sm:$0xff] }
 0x3f8   : >> { %v2361_v13 = vsel %vm1252_vm2, %v13354_v15, %v2337_v39  ;;  %v2239_v44 = vadd.f32 %v2223_v16, %v2131_v21  ;;  %v4536_v57 = vrot.slane %v5638_v31, 7  ;;  %v2539_v39 = vrot.slane %v5639_v42, 2  ;;  %v13358_v21 = vld [vmem:[#allocation177_spill] sm:$0xff] }
 0x3f9   : >> { %v4386_v50 = vsel %vm1090_vm0, %v4376_v3, %v13355_v35  ;;  %v2383_v36 = vmul.f32 %v13356_v54, %v2361_v13  ;;  %v3620_v15 = vadd.f32 %v10728_v27, %v3540_v48  ;;  %v10850_v58 = vmul.f32 %v13287_v0, %v4198_v11  ;;  %v13360_v31 = vld [vmem:[#allocation61_spill] sm:$0xff]  ;;  %v13363_v0 = vld [vmem:[#allocation66_spill] sm:$0xff] }
 0x3fa   : >> { %v2319_v18 = vadd.f32 %v2303_v59, %v2239_v44  ;;  %v2423_v3 = vmul.f32 %v10776_v47, %v13357_v2  ;;  %v10855_v16 = vmul.f32 %v13358_v21, %v4278_v30  ;;  %v10858_v35 = vmul.f32 %v13359_v19, %v4386_v50  ;;  %v10871_v21 = vld [vmem:[%s6439_s11 + $0x1c0] sm:$0xff] }
 0x3fb   : >> { %v13361_v12 = vrot.slane %v13360_v31, 1  ;;  %v2619_v27 = vrot.slane %v5639_v42, 3  ;;  %v3700_v48 = vadd.f32 %v10733_v14, %v3620_v15  ;;  %v13362_v11 = vrot.slane %v10788_v9, 6  ;;  %13364 = vst [vmem:[#allocation134_spill] sm:$0xff] %v10871_v21  ;;  %v10883_v42 = vld [vmem:[%s6439_s11 + $0xd8] sm:$0xff] }
 0x3fc   : >> { %v2399_v44 = vadd.f32 %v2383_v36, %v2319_v18  ;;  %v13365_v50 = vrot.slane %v10788_v9, 7  ;;  %v13368_v1 = vrot.slane %v13360_v31, 3  ;;  %v1211_v6 = vmul.f32 %v10823_v29, %v13309_v37 }
 0x3fd   : >> { %v2481_v52 = vsel %vm1373_vm3, %v13361_v12, %v2459_v63  ;;  %v4466_v59 = vsel %vm1171_vm1, %v4456_v25, %v13362_v11  ;;  %v4658_v63 = vrot.slane %v10788_v9, 1  ;;  %v13366_v12 = vrot.slane %v13360_v31, 2  ;;  %v13367_v11 = vld [vmem:[#allocation67_spill] sm:$0xff] }
 0x3fe   : >> { %v2503_v30 = vmul.f32 %v13363_v0, %v2481_v52  ;;  %v4546_v19 = vsel %vm1252_vm2, %v4536_v57, %v13365_v50  ;;  %v2725_v25 = vrot.slane %v10883_v42, 5  ;;  %v3780_v36 = vadd.f32 %v10748_v20, %v3700_v48  ;;  %v13369_v20 = vld [vmem:[#allocation69_spill] sm:$0xff] }
 0x3ff   : >> { %v2561_v14 = vsel %vm1454_vm4, %v13366_v12, %v2539_v39  ;;  %v2439_v18 = vadd.f32 %v2423_v3, %v2399_v44  ;;  %v4738_v57 = vrot.slane %v10788_v9, 2  ;;  %v2641_v39 = vsel %vm1535_vm5, %v13368_v1, %v2619_v27  ;;  %v13370_v44 = vld [vmem:[#allocation181_spill] sm:$0xff]  ;;  %v13373_v1 = vld [vmem:[#allocation68_spill] sm:$0xff] }
 0x400   : >> { %v2583_v34 = vmul.f32 %v13367_v11, %v2561_v14  ;;  %v2805_v12 = vrot.slane %v10883_v42, 6  ;;  %v3888_v4 = vadd.f32 %v10768_v23, %v3780_v36  ;;  %v2663_v48 = vmul.f32 %v13369_v20, %v2641_v39  ;;  %v13372_v50 = vld [vmem:[#allocation185_spill] sm:$0xff] }
 0x401   : >> { %v2519_v62 = vadd.f32 %v2503_v30, %v2439_v18  ;;  %v2885_v3 = vrot.slane %v10883_v42, 7  ;;  %v4500_v15 = vmul.f32 %v13370_v44, %v4466_v59  ;;  %v10901_v5 = vmul.f32 %v13371_v24, %v4546_v19 }
 0x402   : >> { %v10905_v31 = vmul.f32 %v10788_v9, %v13372_v50  ;;  %v13374_v27 = vrot.slane %v13373_v1, 5  ;;  %v3968_v30 = vadd.f32 %v10794_v43, %v3888_v4  ;;  %v4818_v36 = vrot.slane %v10788_v9, 3  ;;  %v13379_v43 = vld [vmem:[#allocation72_spill] sm:$0xff] }
 0x403   : >> { %v2599_v18 = vadd.f32 %v2583_v34, %v2519_v62  ;;  %v13376_v44 = vrot.slane %v10871_v21, 1  ;;  %v13377_v50 = vrot.slane %v10871_v21, 2  ;;  %v13380_v9 = vrot.slane %v13373_v1, 7 }
 0x404   : >> { %v2749_v23 = vsel %vm1090_vm0, %v13374_v27, %v2725_v25  ;;  %v13378_v25 = vrot.slane %v13373_v1, 6  ;;  %v4048_v62 = vadd.f32 %v10809_v8, %v3968_v30  ;;  %v1332_v37 = vmul.f32 %v10776_v47, %v13314_v17 }
 0x405   : >> { %v2771_v59 = vmul.f32 %v13375_v55, %v2749_v23  ;;  %v4666_v19 = vsel %vm1373_vm3, %v4658_v63, %v13376_v44  ;;  %v4746_v24 = vsel %vm1454_vm4, %v4738_v57, %v13377_v50  ;;  %v2679_v34 = vadd.f32 %v2663_v48, %v2599_v18  ;;  %v5641_v44 = vld [vmem:[%s6439_s11 + $0xe8] sm:$0xff]  ;;  %v13381_v50 = vld [vmem:[#allocation35_spill] sm:$0xff] }
 0x406   : >> { %v2829_v4 = vsel %vm1171_vm1, %v13378_v25, %v2805_v12  ;;  %v10933_v63 = vsel %vm1252_vm2, %v13380_v9, %v2885_v3  ;;  %v3007_v57 = vrot.slane %v5641_v44, 1  ;;  %v1130_v51 = vmul.f32 %v10801_v26, %v13381_v50  ;;  %v13382_v48 = vld [vmem:[#allocation186_spill] sm:$0xff]  ;;  %v13383_v18 = vld [vmem:[#allocation75_spill] sm:$0xff] }
 0x407   : >> { %v2851_v27 = vmul.f32 %v13379_v43, %v2829_v4  ;;  %v1292_v12 = vmul.f32 %v2361_v13, %v13310_v22  ;;  %v4088_v8 = vadd.f32 %v10756_v32, %v4048_v62  ;;  %v10943_v30 = vmul.f32 %v13382_v48, %v4666_v19  ;;  %v13384_v3 = vld [vmem:[#allocation187_spill] sm:$0xff]  ;;  %v13387_v62 = vld [vmem:[#allocation70_spill] sm:$0xff]  ;;  %v13422_v48 = vld [vmem:[#allocation108_spill] sm:$0xff] }
 0x408   : >> { %v2787_v1 = vadd.f32 %v2771_v59, %v2679_v34  ;;  %v2931_v9 = vmul.f32 %v13383_v18, %v10933_v63  ;;  %v10948_v25 = vmul.f32 %v13384_v3, %v4746_v24  ;;  %v3087_v43 = vrot.slane %v5641_v44, 2  ;;  %v13386_v59 = vld [vmem:[#allocation76_spill] sm:$0xff]  ;;  %v13389_v50 = vld [vmem:[#allocation78_spill] sm:$0xff] }
 0x409   : >> { %v1227_v26 = vadd.f32 %v1211_v6, %v1130_v51  ;;  %v4168_v22 = vadd.f32 %v10845_v10, %v4088_v8  ;;  %v13385_v32 = vrot.slane %v10871_v21, 3  ;;  %v2971_v19 = vmul.f32 %v10883_v42, %v13386_v59  ;;  %v10967_v21 = vld [vmem:[%s6439_s11 + $0x108] sm:$0xff] }
 0x40a   : >> { %v2867_v13 = vadd.f32 %v2851_v27, %v2787_v1  ;;  %v13388_v34 = vrot.slane %v13387_v62, 1  ;;  %v3167_v6 = vrot.slane %v5641_v44, 3  ;;  %v1413_v17 = vmul.f32 %v2481_v52, %v13318_v40 }
 0x40b   : >> { %v4826_v29 = vsel %vm1535_vm5, %v4818_v36, %v13385_v32  ;;  %v1308_v51 = vadd.f32 %v1292_v12, %v1227_v26  ;;  %v4248_v10 = vadd.f32 %v10850_v58, %v4168_v22  ;;  %v3273_v36 = vrot.slane %v10967_v21, 5  ;;  %v13391_v58 = vld [vmem:[#allocation81_spill] sm:$0xff]  ;;  %v13392_v22 = vld [vmem:[#allocation31_spill] sm:$0xff] }
 0x40c   : >> { %v3029_v24 = vsel %vm1373_vm3, %v13388_v34, %v3007_v57  ;;  %v2947_v47 = vadd.f32 %v2931_v9, %v2867_v13  ;;  %v13390_v27 = vrot.slane %v13387_v62, 2  ;;  %v3353_v57 = vrot.slane %v10967_v21, 6 }
 0x40d   : >> { %v3051_v8 = vmul.f32 %v13389_v50, %v3029_v24  ;;  %v1348_v44 = vadd.f32 %v1332_v37, %v1308_v51  ;;  %v1494_v12 = vmul.f32 %v2561_v14, %v13322_v28  ;;  %v4328_v40 = vadd.f32 %v10855_v16, %v4248_v10  ;;  %v13394_v16 = vld [vmem:[#allocation83_spill] sm:$0xff]  ;;  %v13395_v51 = vld [vmem:[#allocation73_spill] sm:$0xff] }
 0x40e   : >> { %v3109_v1 = vsel %vm1454_vm4, %v13390_v27, %v3087_v43  ;;  %v2987_v52 = vadd.f32 %v2971_v19, %v2947_v47  ;;  %v3433_v26 = vrot.slane %v10967_v21, 7  ;;  %v4860_v32 = vmul.f32 %v13392_v22, %v4826_v29  ;;  %v13397_v29 = vld [vmem:[#allocation86_spill] sm:$0xff]  ;;  %v13416_v22 = vld [vmem:[#allocation104_spill] sm:$0xff] }
 0x40f   : >> { %v3131_v9 = vmul.f32 %v13391_v58, %v3109_v1  ;;  %v13393_v13 = vrot.slane %v13387_v62, 3  ;;  %v1429_v34 = vadd.f32 %v1413_v17, %v1348_v44  ;;  %v1575_v37 = vmul.f32 %v2641_v39, %v13326_v38  ;;  %v5643_v44 = vld [vmem:[%s6439_s11 + $0x118] sm:$0xff] }
 0x410   : >> { %v4436_v28 = vadd.f32 %v10858_v35, %v4328_v40  ;;  %v3067_v14 = vadd.f32 %v3051_v8, %v2987_v52  ;;  %v13396_v10 = vrot.slane %v13395_v51, 5  ;;  %v13398_v27 = vrot.slane %v13395_v51, 6  ;;  %v13400_v52 = vld [vmem:[#allocation87_spill] sm:$0xff] }
 0x411   : >> { %v3189_v43 = vsel %vm1535_vm5, %v13393_v13, %v3167_v6  ;;  %v1510_v38 = vadd.f32 %v1494_v12, %v1429_v34  ;;  %v1683_v35 = vmul.f32 %v2749_v23, %v13329_v46  ;;  %v13399_v8 = vrot.slane %v13395_v51, 7 }
 0x412   : >> { %v3211_v19 = vmul.f32 %v13394_v16, %v3189_v43  ;;  %v10991_v47 = vsel %vm1090_vm0, %v13396_v10, %v3273_v36  ;;  %v10999_v6 = vsel %vm1171_vm1, %v13398_v27, %v3353_v57  ;;  %v4516_v39 = vadd.f32 %v4500_v15, %v4436_v28  ;;  %v13401_v15 = vld [vmem:[#allocation90_spill] sm:$0xff]  ;;  %v13402_v28 = vld [vmem:[#allocation91_spill] sm:$0xff] }
 0x413   : >> { %v3319_v62 = vmul.f32 %v13397_v29, %v10991_v47  ;;  %v3147_v17 = vadd.f32 %v3131_v9, %v3067_v14  ;;  %v11006_v36 = vsel %vm1252_vm2, %v13399_v8, %v3433_v26  ;;  %v3555_v40 = vrot.slane %v5643_v44, 1  ;;  %v11018_v14 = vld [vmem:[%s6439_s11 + $0x138] sm:$0xff] }
 0x414   : >> { %v3399_v13 = vmul.f32 %v13400_v52, %v10999_v6  ;;  %v3635_v10 = vrot.slane %v5643_v44, 2  ;;  %v1591_v57 = vadd.f32 %v1575_v37, %v1510_v38  ;;  %v1763_v12 = vmul.f32 %v2829_v4, %v13331_v7 }
 0x415   : >> { %v4596_v34 = vadd.f32 %v10901_v5, %v4516_v39  ;;  %v3227_v46 = vadd.f32 %v3211_v19, %v3147_v17  ;;  %v3479_v23 = vmul.f32 %v13401_v15, %v11006_v36  ;;  %v3715_v9 = vrot.slane %v5643_v44, 3  ;;  %v13403_v5 = vld [vmem:[#allocation74_spill] sm:$0xff]  ;;  %v13406_v44 = vld [vmem:[#allocation93_spill] sm:$0xff] }
 0x416   : >> { %v3519_v26 = vmul.f32 %v10967_v21, %v13402_v28  ;;  %v3821_v51 = vrot.slane %v11018_v14, 5  ;;  %v1699_v27 = vadd.f32 %v1683_v35, %v1591_v57  ;;  %v1843_v37 = vmul.f32 %v10933_v63, %v13332_v61 }
 0x417   : >> { %v4636_v7 = vadd.f32 %v10905_v31, %v4596_v34  ;;  %v3335_v4 = vadd.f32 %v3319_v62, %v3227_v46  ;;  %v13404_v19 = vrot.slane %v13403_v5, 1  ;;  %v3901_v39 = vrot.slane %v11018_v14, 6 }
 0x418   : >> { %v13405_v17 = vrot.slane %v13403_v5, 2  ;;  %v3981_v35 = vrot.slane %v11018_v14, 7  ;;  %v1779_v61 = vadd.f32 %v1763_v12, %v1699_v27  ;;  %v1883_v31 = vmul.f32 %v10883_v42, %v13336_v49  ;;  %v13409_v12 = vld [vmem:[#allocation98_spill] sm:$0xff] }
 0x419   : >> { %v11028_v38 = vsel %vm1373_vm3, %v13404_v19, %v3555_v40  ;;  %v4716_v63 = vadd.f32 %v10943_v30, %v4636_v7  ;;  %v3415_v62 = vadd.f32 %v3399_v13, %v3335_v4  ;;  %v13407_v57 = vrot.slane %v13403_v5, 3  ;;  %v13410_v13 = vld [vmem:[#allocation84_spill] sm:$0xff] }
 0x41a   : >> { %v11035_v8 = vsel %vm1454_vm4, %v13405_v17, %v3635_v10  ;;  %v3599_v40 = vmul.f32 %v13406_v44, %v11028_v38  ;;  %v13408_v10 = vld [vmem:[#allocation96_spill] sm:$0xff]  ;;  %v1859_v19 = vadd.f32 %v1843_v37, %v1779_v61  ;;  %v1963_v49 = vmul.f32 %v3029_v24, %v13340_v56 }
 0x41b   : >> { %v11047_v34 = vsel %vm1535_vm5, %v13407_v57, %v3715_v9  ;;  %v3679_v46 = vmul.f32 %v13408_v10, %v11035_v8  ;;  %v4796_v42 = vadd.f32 %v10948_v25, %v4716_v63  ;;  %v3495_v30 = vadd.f32 %v3479_v23, %v3415_v62  ;;  %v5645_v25 = vld [vmem:[%s6439_s11 + $0x148] sm:$0xff]  ;;  %v13414_v63 = vld [vmem:[#allocation100_spill] sm:$0xff] }
 0x41c   : >> { %v3759_v27 = vmul.f32 %v13409_v12, %v11047_v34  ;;  %v13411_v7 = vrot.slane %v13410_v13, 5  ;;  %v13412_v9 = vrot.slane %v13410_v13, 6  ;;  %v13413_v17 = vrot.slane %v13410_v13, 7 }
 0x41d   : >> { %v4103_v24 = vrot.slane %v5645_v25, 1  ;;  %v1899_v23 = vadd.f32 %v1883_v31, %v1859_v19  ;;  %v2043_v37 = vmul.f32 %v3109_v1, %v13343_v45  ;;  %v3535_v61 = vadd.f32 %v3519_v26, %v3495_v30  ;;  %v11083_v19 = vld [vmem:[%s6439_s11 + $0x168] sm:$0xff] }
 0x41e   : >> { %v11059_v4 = vsel %vm1090_vm0, %v13411_v7, %v3821_v51  ;;  %v11065_v5 = vsel %vm1171_vm1, %v13412_v9, %v3901_v39  ;;  %v11071_v56 = vsel %vm1252_vm2, %v13413_v17, %v3981_v35  ;;  %v4876_v51 = vadd.f32 %v4860_v32, %v4796_v42  ;;  %v13415_v39 = vld [vmem:[#allocation103_spill] sm:$0xff]  ;;  %v13417_v32 = vld [vmem:[#allocation105_spill] sm:$0xff] }
 0x41f   : >> { %v3867_v62 = vmul.f32 %v13414_v63, %v11059_v4  ;;  %v4183_v57 = vrot.slane %v5645_v25, 2  ;;  %v3947_v7 = vmul.f32 %v13415_v39, %v11065_v5  ;;  %v4263_v13 = vrot.slane %v5645_v25, 3  ;;  %v13418_v42 = vld [vmem:[#allocation85_spill] sm:$0xff]  ;;  %v13420_v25 = vld [vmem:[#allocation106_spill] sm:$0xff] }
 0x420   : >> { %v1979_v9 = vadd.f32 %v1963_v49, %v1899_v23  ;;  %v2123_v35 = vmul.f32 %v3189_v43, %v13345_v41  ;;  %5007 = vmatmul.mubr.f32.gmra.mxu1 %v4876_v51  ;;  %v3615_v17 = vadd.f32 %v3599_v40, %v3535_v61  ;;  %v4027_v31 = vmul.f32 %v13416_v22, %v11071_v56 }
 0x421   : >> { %v4369_v45 = vrot.slane %v11083_v19, 5  ;;  %v4449_v1 = vrot.slane %v11083_v19, 6  ;;  %v4067_v26 = vmul.f32 %v11018_v14, %v13417_v32  ;;  %v13419_v30 = vrot.slane %v13418_v42, 1 }
 0x422   : >> { %v2059_v43 = vadd.f32 %v2043_v37, %v1979_v9  ;;  %v2231_v40 = vmul.f32 %v10991_v47, %v13348_v33  ;;  %v3695_v49 = vadd.f32 %v3679_v46, %v3615_v17  ;;  %v13421_v51 = vrot.slane %v13418_v42, 2  ;;  %v13424_v17 = vld [vmem:[#allocation88_spill] sm:$0xff] }
 0x423   : >> { %v11093_v41 = vsel %vm1373_vm3, %v13419_v30, %v4103_v24  ;;  %v4529_v3 = vrot.slane %v11083_v19, 7  ;;  %v13423_v37 = vrot.slane %v13418_v42, 3  ;;  %v2311_v46 = vmul.f32 %v10999_v6, %v13353_v60 }
 0x424   : >> { %v4147_v23 = vmul.f32 %v13420_v25, %v11093_v41  ;;  %v11103_v61 = vsel %vm1454_vm4, %v13421_v51, %v4183_v57  ;;  %v2139_v47 = vadd.f32 %v2123_v35, %v2059_v43  ;;  %v3775_v9 = vadd.f32 %v3759_v27, %v3695_v49  ;;  %v13427_v43 = vld [vmem:[#allocation109_spill] sm:$0xff] }
 0x425   : >> { %v4227_v24 = vmul.f32 %v13422_v48, %v11103_v61  ;;  %v11112_v33 = vsel %vm1535_vm5, %v13423_v37, %v4263_v13  ;;  %v13425_v30 = vrot.slane %v13424_v17, 5  ;;  %v13426_v51 = vrot.slane %v13424_v17, 6  ;;  %v5647_v48 = vld [vmem:[%s6439_s11 + $0x40] sm:$0xff] }
 0x426   : >> { %v1072_v13 = vrot.slane %v5647_v48, 5  ;;  %v2247_v37 = vadd.f32 %v2231_v40, %v2139_v47  ;;  %v2391_v35 = vmul.f32 %v11006_v36, %v13356_v54  ;;  %v1155_v60 = vrot.slane %v5647_v48, 6  ;;  %v13430_v40 = vld [vmem:[#allocation115_spill] sm:$0xff] }
 0x427   : >> { %v11120_v57 = vsel %vm1090_vm0, %v13425_v30, %v4369_v45  ;;  %v11126_v42 = vsel %vm1171_vm1, %v13426_v51, %v4449_v1  ;;  %v1236_v6 = vrot.slane %v5647_v48, 7  ;;  %v3883_v27 = vadd.f32 %v3867_v62, %v3775_v9  ;;  %v13428_v45 = vld [vmem:[#allocation113_spill] sm:$0xff] }
 0x428   : >> { %v4307_v49 = vmul.f32 %v13427_v43, %v11112_v33  ;;  %v4415_v30 = vmul.f32 %v13428_v45, %v11120_v57  ;;  %v13429_v25 = vrot.slane %v13424_v17, 7  ;;  %v11143_v47 = vmul.f32 %v13430_v40, %v11126_v42  ;;  %v13431_v62 = vld [vmem:[#allocation97_spill] sm:$0xff]  ;;  %v13433_v43 = vld [vmem:[#allocation92_spill] sm:$0xff] }
 0x429   : >> { %v2327_v54 = vadd.f32 %v2311_v46, %v2247_v37  ;;  %v2431_v36 = vmul.f32 %v10967_v21, %v13357_v2  ;;  %v13432_v9 = vrot.slane %v13431_v62, 5  ;;  %v3963_v45 = vadd.f32 %v3947_v7, %v3883_v27  ;;  %v13436_v21 = vld [vmem:[#allocation44_spill] sm:$0xff]  ;;  %v13437_v7 = vld [vmem:[#allocation79_spill] sm:$0xff] }
 0x42a   : >> { %v11139_v1 = vsel %vm1252_vm2, %v13429_v25, %v4529_v3  ;;  %v13434_v32 = vrot.slane %v13431_v62, 6  ;;  %v13435_v25 = vrot.slane %v13431_v62, 7  ;;  %v2511_v2 = vmul.f32 %v11028_v38, %v13363_v0 }
 0x42b   : >> { %v1099_v51 = vsel %vm1090_vm0, %v13432_v9, %v1072_v13  ;;  %v2407_v37 = vadd.f32 %v2391_v35, %v2327_v54  ;;  %v4043_v9 = vadd.f32 %v4027_v31, %v3963_v45  ;;  %v5649_v45 = vld [vmem:[%s6439_s11 + $0x70] sm:$0xff] }
 0x42c   : >> { %v1121_v17 = vmul.f32 %v13433_v43, %v1099_v51  ;;  %v1180_v3 = vsel %vm1171_vm1, %v13434_v32, %v1155_v60  ;;  %v1261_v46 = vsel %vm1252_vm2, %v13435_v25, %v1236_v6  ;;  %v5648_v51 = vld [vmem:[%s6439_s11 + $0x50] sm:$0xff]  ;;  %v2591_v60 = vmul.f32 %v11035_v8, %v13367_v11  ;;  %v13438_v6 = vld [vmem:[#allocation94_spill] sm:$0xff]  ;;  %v13439_v25 = vld [vmem:[#allocation101_spill] sm:$0xff] }
 0x42d   : >> { %v1202_v13 = vmul.f32 %v13436_v21, %v1180_v3  ;;  %v1283_v27 = vmul.f32 %v13437_v7, %v1261_v46  ;;  %v1359_v40 = vrot.slane %v5648_v51, 1  ;;  %v1440_v43 = vrot.slane %v5648_v51, 2  ;;  %v13443_v46 = vld [vmem:[#allocation117_spill] sm:$0xff] }
 0x42e   : >> { %v1521_v22 = vrot.slane %v5648_v51, 3  ;;  %v2447_v32 = vadd.f32 %v2431_v36, %v2407_v37  ;;  %v1323_v35 = vmul.f32 %v5647_v48, %v13438_v6  ;;  %v4083_v54 = vadd.f32 %v4067_v26, %v4043_v9  ;;  %v13442_v48 = vld [vmem:[#allocation107_spill] sm:$0xff]  ;;  %v13445_v51 = vld [vmem:[#allocation110_spill] sm:$0xff] }
 0x42f   : >> { %v1218_v62 = vadd.f32 %v1202_v13, %v1121_v17  ;;  %v13440_v39 = vrot.slane %v13439_v25, 1  ;;  %v13441_v38 = vrot.slane %v13439_v25, 2  ;;  %v1628_v36 = vrot.slane %v5649_v45, 5 }
 0x430   : >> { %v2527_v3 = vadd.f32 %v2511_v2, %v2447_v32  ;;  %v2671_v11 = vmul.f32 %v11047_v34, %v13369_v20  ;;  %v4163_v17 = vadd.f32 %v4147_v23, %v4083_v54  ;;  %v4575_v37 = vmul.f32 %v13443_v46, %v11139_v1  ;;  %v13446_v23 = vld [vmem:[#allocation102_spill] sm:$0xff] }
 0x431   : >> { %v1382_v0 = vsel %vm1373_vm3, %v13440_v39, %v1359_v40  ;;  %v1463_v31 = vsel %vm1454_vm4, %v13441_v38, %v1440_v43  ;;  %v1299_v8 = vadd.f32 %v1283_v27, %v1218_v62  ;;  %v13444_v39 = vrot.slane %v13439_v25, 3  ;;  %v5650_v27 = vld [vmem:[%s6439_s11 + $0x178] sm:$0xff] }
 0x432   : >> { %v1404_v26 = vmul.f32 %v13442_v48, %v1382_v0  ;;  %v1708_v43 = vrot.slane %v5649_v45, 6  ;;  %v2607_v13 = vadd.f32 %v2591_v60, %v2527_v3  ;;  %v2779_v2 = vmul.f32 %v11059_v4, %v13375_v55  ;;  %v13449_v3 = vld [vmem:[#allocation64_spill] sm:$0xff] }
 0x433   : >> { %v1544_v40 = vsel %vm1535_vm5, %v13444_v39, %v1521_v22  ;;  %v1339_v9 = vadd.f32 %v1323_v35, %v1299_v8  ;;  %v1485_v20 = vmul.f32 %v13445_v51, %v1463_v31  ;;  %v4243_v34 = vadd.f32 %v4227_v24, %v4163_v17  ;;  %v13448_v22 = vld [vmem:[#allocation72_spill] sm:$0xff]  ;;  %v13450_v35 = vld [vmem:[#allocation118_spill] sm:$0xff] }
 0x434   : >> { %v4651_v32 = vrot.slane %v5650_v27, 1  ;;  %v13447_v62 = vrot.slane %v13446_v23, 5  ;;  %v1788_v25 = vrot.slane %v5649_v45, 7  ;;  %v2687_v0 = vadd.f32 %v2671_v11, %v2607_v13  ;;  %v13452_v13 = vld [vmem:[#allocation33_spill] sm:$0xff] }
 0x435   : >> { %v2859_v60 = vmul.f32 %v11065_v5, %v13448_v22  ;;  %v1420_v38 = vadd.f32 %v1404_v26, %v1339_v9  ;;  %v1566_v55 = vmul.f32 %v13449_v3, %v1544_v40  ;;  %v4323_v4 = vadd.f32 %v4307_v49, %v4243_v34  ;;  %v13453_v9 = vld [vmem:[#allocation89_spill] sm:$0xff]  ;;  %v13457_v22 = vld [vmem:[#allocation120_spill] sm:$0xff] }
 0x436   : >> { %v1652_v54 = vsel %vm1090_vm0, %v13447_v62, %v1628_v36  ;;  %v4615_v24 = vmul.f32 %v11083_v19, %v13450_v35  ;;  %v4731_v31 = vrot.slane %v5650_v27, 2  ;;  %v13451_v8 = vrot.slane %v13446_v23, 6 }
 0x437   : >> { %v2795_v36 = vadd.f32 %v2779_v2, %v2687_v0  ;;  %v2939_v11 = vmul.f32 %v11071_v56, %v13383_v18  ;;  %v1501_v39 = vadd.f32 %v1485_v20, %v1420_v38  ;;  %v1674_v5 = vmul.f32 %v13452_v13, %v1652_v54  ;;  %v13456_v20 = vld [vmem:[#allocation34_spill] sm:$0xff] }
 0x438   : >> { %v1732_v17 = vsel %vm1171_vm1, %v13451_v8, %v1708_v43  ;;  %v4431_v26 = vadd.f32 %v4415_v30, %v4323_v4  ;;  %v13454_v40 = vrot.slane %v13453_v9, 1  ;;  %v13455_v34 = vrot.slane %v13446_v23, 7  ;;  %v5651_v43 = vld [vmem:[%s6439_s11 + $0x80] sm:$0xff] }
 0x439   : >> { %v1910_v2 = vrot.slane %v5651_v43, 1  ;;  %v2875_v0 = vadd.f32 %v2859_v60, %v2795_v36  ;;  %v2979_v18 = vmul.f32 %v11018_v14, %v13386_v59  ;;  %v1582_v56 = vadd.f32 %v1566_v55, %v1501_v39  ;;  %v13460_v55 = vld [vmem:[#allocation112_spill] sm:$0xff] }
 0x43a   : >> { %v11210_v49 = vsel %vm1373_vm3, %v13454_v40, %v4651_v32  ;;  %v1812_v62 = vsel %vm1252_vm2, %v13455_v34, %v1788_v25  ;;  %v1754_v30 = vmul.f32 %v13456_v20, %v1732_v17  ;;  %v4511_v54 = vadd.f32 %v11143_v47, %v4431_v26  ;;  %v13458_v40 = vld [vmem:[#allocation122_spill] sm:$0xff]  ;;  %v13462_v39 = vld [vmem:[#allocation124_spill] sm:$0xff]  ;;  %v13463_v26 = vld [vmem:[#allocation121_spill] sm:$0xff] }
 0x43b   : >> { %v4695_v32 = vmul.f32 %v13457_v22, %v11210_v49  ;;  %v4811_v38 = vrot.slane %v5650_v27, 3  ;;  %v1990_v4 = vrot.slane %v5651_v43, 2  ;;  %v2955_v23 = vadd.f32 %v2939_v11, %v2875_v0 }
 0x43c   : >> { %v3059_v25 = vmul.f32 %v11093_v41, %v13389_v50  ;;  %v1690_v8 = vadd.f32 %v1674_v5, %v1582_v56  ;;  %v1834_v60 = vmul.f32 %v13458_v40, %v1812_v62  ;;  %v4591_v36 = vadd.f32 %v4575_v37, %v4511_v54  ;;  %v13467_v56 = vld [vmem:[#allocation32_spill] sm:$0xff] }
 0x43d   : >> { %v13459_v59 = vrot.slane %v13453_v9, 2  ;;  %v13461_v47 = vrot.slane %v13460_v55, 1  ;;  %v2070_v27 = vrot.slane %v5651_v43, 3  ;;  %v2995_v11 = vadd.f32 %v2979_v18, %v2955_v23  ;;  %v13466_v18 = vld [vmem:[#allocation125_spill] sm:$0xff] }
 0x43e   : >> { %v3139_v50 = vmul.f32 %v11103_v61, %v13391_v58  ;;  %v1770_v41 = vadd.f32 %v1754_v30, %v1690_v8  ;;  %v1874_v5 = vmul.f32 %v5649_v45, %v13462_v39  ;;  %v4631_v37 = vadd.f32 %v4615_v24, %v4591_v36 }
 0x43f   : >> { %v4753_v14 = vsel %vm1454_vm4, %v13459_v59, %v4731_v31  ;;  %v1932_v17 = vsel %vm1373_vm3, %v13461_v47, %v1910_v2  ;;  %v13464_v62 = vrot.slane %v13453_v9, 3  ;;  %v13465_v0 = vrot.slane %v13460_v55, 2  ;;  %v13470_v47 = vld [vmem:[#allocation129_spill] sm:$0xff] }
 0x440   : >> { %v4775_v34 = vmul.f32 %v13463_v26, %v4753_v14  ;;  %v3075_v2 = vadd.f32 %v3059_v25, %v2995_v11  ;;  %v3219_v58 = vmul.f32 %v11112_v33, %v13394_v16  ;;  %v1850_v61 = vadd.f32 %v1834_v60, %v1770_v41  ;;  %v13469_v33 = vld [vmem:[#allocation128_spill] sm:$0xff]  ;;  %v13471_v11 = vld [vmem:[#allocation114_spill] sm:$0xff] }
 0x441   : >> { %v4833_v31 = vsel %vm1535_vm5, %v13464_v62, %v4811_v38  ;;  %v2012_v43 = vsel %vm1454_vm4, %v13465_v0, %v1990_v4  ;;  %v1954_v45 = vmul.f32 %v13466_v18, %v1932_v17  ;;  %v4711_v24 = vadd.f32 %v4695_v32, %v4631_v37  ;;  %v11255_v38 = vld [vmem:[%s6439_s11 + $0xa0] sm:$0xff]  ;;  %v5653_v62 = vld [vmem:[%s6439_s11 + $0x198] sm:$0xff] }
 0x442   : >> { %v4855_v30 = vmul.f32 %v13467_v56, %v4833_v31  ;;  %v13468_v9 = vrot.slane %v13460_v55, 3  ;;  %v2176_v23 = vrot.slane %v11255_v38, 5  ;;  %v3155_v4 = vadd.f32 %v3139_v50, %v3075_v2 }
 0x443   : >> { %v3327_v25 = vmul.f32 %v11120_v57, %v13397_v29  ;;  %v1890_v16 = vadd.f32 %v1874_v5, %v1850_v61  ;;  %v2034_v8 = vmul.f32 %v13469_v33, %v2012_v43  ;;  %v4791_v32 = vadd.f32 %v4775_v34, %v4711_v24 }
 0x444   : >> { %v2092_v54 = vsel %vm1535_vm5, %v13468_v9, %v2070_v27  ;;  %v2256_v60 = vrot.slane %v11255_v38, 6  ;;  %v3235_v36 = vadd.f32 %v3219_v58, %v3155_v4  ;;  %v3407_v59 = vmul.f32 %v11126_v42, %v13400_v52  ;;  %v13473_v52 = vld [vmem:[#allocation131_spill] sm:$0xff] }
 0x445   : >> { %v1970_v55 = vadd.f32 %v1954_v45, %v1890_v16  ;;  %v2114_v17 = vmul.f32 %v13470_v47, %v2092_v54  ;;  %v4871_v27 = vadd.f32 %v4855_v30, %v4791_v32  ;;  %v13472_v50 = vrot.slane %v13471_v11, 5  ;;  %v5654_v9 = vld [vmem:[%s6439_s11 + $0xb0] sm:$0xff] }
 0x446   : >> { %v2336_v57 = vrot.slane %v11255_v38, 7  ;;  %v3343_v41 = vadd.f32 %v3327_v25, %v3235_v36  ;;  %v3487_v5 = vmul.f32 %v11139_v1, %v13401_v15  ;;  %v3527_v34 = vmul.f32 %v11083_v19, %v13402_v28  ;;  %v13475_v1 = vld [vmem:[#allocation133_spill] sm:$0xff]  ;;  %v13477_v16 = vld [vmem:[#allocation135_spill] sm:$0xff]  ;;  %v5655_v36 = vld [vmem:[%s6439_s11 + $0x1a8] sm:$0xff] }
 0x447   : >> { %v11269_v29 = vsel %vm1090_vm0, %v13472_v50, %v2176_v23  ;;  %v2050_v37 = vadd.f32 %v2034_v8, %v1970_v55  ;;  %4991 = vmatprep.mubr.f32.mxu0 %v4871_v27  ;;  %v3833_v0 = vrot.slane %v5653_v62, 5  ;;  %v13474_v43 = vrot.slane %v13471_v11, 6 }
 0x448   : >> { %v2222_v42 = vmul.f32 %v13473_v52, %v11269_v29  ;;  %v3423_v58 = vadd.f32 %v3407_v59, %v3343_v41  ;;  %v3913_v61 = vrot.slane %v5653_v62, 6  ;;  %v3607_v24 = vmul.f32 %v11210_v49, %v13406_v44  ;;  %v13483_v41 = vld [vmem:[#allocation126_spill] sm:$0xff] }
 0x449   : >> { %v11283_v2 = vsel %vm1171_vm1, %v13474_v43, %v2256_v60  ;;  %v2130_v15 = vadd.f32 %v2114_v17, %v2050_v37  ;;  %v3993_v30 = vrot.slane %v5653_v62, 7  ;;  %v13476_v28 = vrot.slane %v13471_v11, 7  ;;  %v13478_v60 = vld [vmem:[#allocation99_spill] sm:$0xff]  ;;  %v13481_v11 = vld [vmem:[#allocation136_spill] sm:$0xff] }
 0x44a   : >> { %v2302_v45 = vmul.f32 %v13475_v1, %v11283_v2  ;;  %v2458_v54 = vrot.slane %v5654_v9, 1  ;;  %v3503_v23 = vadd.f32 %v3487_v5, %v3423_v58  ;;  %v3687_v4 = vmul.f32 %v4753_v14, %v13408_v10  ;;  %v13485_v58 = vld [vmem:[#allocation77_spill] sm:$0xff] }
 0x44b   : >> { %v11293_v19 = vsel %vm1252_vm2, %v13476_v28, %v2336_v57  ;;  %v2238_v25 = vadd.f32 %v2222_v42, %v2130_v15  ;;  %v3767_v32 = vmul.f32 %v4833_v31, %v13409_v12  ;;  %v13479_v44 = vrot.slane %v13478_v60, 5  ;;  %v13486_v15 = vld [vmem:[#allocation103_spill] sm:$0xff] }
 0x44c   : >> { %v2382_v8 = vmul.f32 %v13477_v16, %v11293_v19  ;;  %v4115_v59 = vrot.slane %v5655_v36, 1  ;;  %v2538_v55 = vrot.slane %v5654_v9, 2  ;;  %v3543_v17 = vadd.f32 %v3527_v34, %v3503_v23 }
 0x44d   : >> { %v3837_v49 = vsel %vm1090_vm0, %v13479_v44, %v3833_v0  ;;  %v13480_v27 = vrot.slane %v13478_v60, 6  ;;  %v2318_v14 = vadd.f32 %v2302_v45, %v2238_v25  ;;  %v2422_v50 = vmul.f32 %v11255_v38, %v13481_v11 }
 0x44e   : >> { %v13482_v12 = vrot.slane %v13478_v60, 7  ;;  %v4195_v57 = vrot.slane %v5655_v36, 2  ;;  %v13484_v5 = vrot.slane %v13483_v41, 1  ;;  %v2618_v42 = vrot.slane %v5654_v9, 3  ;;  %v13489_v60 = vld [vmem:[#allocation139_spill] sm:$0xff] }
 0x44f   : >> { %v3917_v10 = vsel %vm1171_vm1, %v13480_v27, %v3913_v61  ;;  %v3623_v34 = vadd.f32 %v3607_v24, %v3543_v17  ;;  %v3875_v0 = vmul.f32 %v13414_v63, %v3837_v49  ;;  %v2398_v43 = vadd.f32 %v2382_v8, %v2318_v14  ;;  %v13488_v63 = vld [vmem:[#allocation104_spill] sm:$0xff] }
 0x450   : >> { %v3997_v31 = vsel %vm1252_vm2, %v13482_v12, %v3993_v30  ;;  %v11319_v37 = vsel %vm1373_vm3, %v13484_v5, %v2458_v54  ;;  %v3955_v45 = vmul.f32 %v13486_v15, %v3917_v10  ;;  %v4275_v28 = vrot.slane %v5655_v36, 3  ;;  %v11332_v54 = vld [vmem:[%s6439_s11 + $0xd0] sm:$0xff]  ;;  %v13490_v49 = vld [vmem:[#allocation116_spill] sm:$0xff]  ;;  %v5657_v12 = vld [vmem:[%s6439_s11 + $0x1c8] sm:$0xff] }
 0x451   : >> { %v2502_v61 = vmul.f32 %v13485_v58, %v11319_v37  ;;  %v13487_v30 = vrot.slane %v13483_v41, 2  ;;  %v2724_v24 = vrot.slane %v11332_v54, 5  ;;  %v3703_v9 = vadd.f32 %v3687_v4, %v3623_v34  ;;  %v13494_v34 = vld [vmem:[#allocation140_spill] sm:$0xff]  ;;  %v13503_v58 = vld [vmem:[#allocation41_spill] sm:$0xff] }
 0x452   : >> { %v4035_v25 = vmul.f32 %v13488_v63, %v3997_v31  ;;  %v2438_v8 = vadd.f32 %v2422_v50, %v2398_v43  ;;  %v13491_v17 = vrot.slane %v13490_v49, 1  ;;  %v13492_v27 = vrot.slane %v13490_v49, 2 }
 0x453   : >> { %v11329_v23 = vsel %vm1454_vm4, %v13487_v30, %v2538_v55  ;;  %v13493_v10 = vrot.slane %v13483_v41, 3  ;;  %v2804_v14 = vrot.slane %v11332_v54, 6  ;;  %v3783_v50 = vadd.f32 %v3767_v32, %v3703_v9  ;;  %v13496_v41 = vld [vmem:[#allocation119_spill] sm:$0xff] }
 0x454   : >> { %v2582_v44 = vmul.f32 %v13489_v60, %v11329_v23  ;;  %v4117_v36 = vsel %vm1373_vm3, %v13491_v17, %v4115_v59  ;;  %v4197_v55 = vsel %vm1454_vm4, %v13492_v27, %v4195_v57  ;;  %v4381_v31 = vrot.slane %v5657_v12, 5 }
 0x455   : >> { %v11350_v4 = vsel %vm1535_vm5, %v13493_v10, %v2618_v42  ;;  %v2518_v5 = vadd.f32 %v2502_v61, %v2438_v8  ;;  %v13495_v43 = vrot.slane %v13490_v49, 3  ;;  %v4461_v15 = vrot.slane %v5657_v12, 6  ;;  %v13498_v8 = vld [vmem:[#allocation142_spill] sm:$0xff]  ;;  %v13499_v49 = vld [vmem:[#allocation105_spill] sm:$0xff] }
 0x456   : >> { %v2662_v59 = vmul.f32 %v13494_v34, %v11350_v4  ;;  %v13497_v30 = vrot.slane %v13496_v41, 5  ;;  %v2884_v32 = vrot.slane %v11332_v54, 7  ;;  %v3891_v9 = vadd.f32 %v3875_v0, %v3783_v50  ;;  %v13500_v10 = vld [vmem:[#allocation106_spill] sm:$0xff] }
 0x457   : >> { %v4277_v57 = vsel %vm1535_vm5, %v13495_v43, %v4275_v28  ;;  %v4541_v61 = vrot.slane %v5657_v12, 7  ;;  %v2598_v63 = vadd.f32 %v2582_v44, %v2518_v5  ;;  %v4075_v27 = vmul.f32 %v5653_v62, %v13499_v49  ;;  %v13501_v43 = vld [vmem:[#allocation108_spill] sm:$0xff]  ;;  %v13506_v49 = vld [vmem:[#allocation109_spill] sm:$0xff] }
 0x458   : >> { %v11364_v42 = vsel %vm1090_vm0, %v13497_v30, %v2724_v24  ;;  %v4155_v28 = vmul.f32 %v13500_v10, %v4117_v36  ;;  %v4235_v34 = vmul.f32 %v13501_v43, %v4197_v55  ;;  %v13502_v60 = vrot.slane %v13496_v41, 6  ;;  %v13505_v5 = vld [vmem:[#allocation144_spill] sm:$0xff]  ;;  %v13510_v43 = vld [vmem:[#allocation147_spill] sm:$0xff] }
 0x459   : >> { %v2770_v17 = vmul.f32 %v13498_v8, %v11364_v42  ;;  %v3971_v30 = vadd.f32 %v3955_v45, %v3891_v9  ;;  %v13504_v0 = vrot.slane %v13503_v58, 5  ;;  %v2678_v50 = vadd.f32 %v2662_v59, %v2598_v63  ;;  %v13514_v8 = vld [vmem:[#allocation148_spill] sm:$0xff] }
 0x45a   : >> { %v11376_v24 = vsel %vm1171_vm1, %v13502_v60, %v2804_v14  ;;  %v4315_v36 = vmul.f32 %v13506_v49, %v4277_v57  ;;  %v13507_v55 = vrot.slane %v13503_v58, 6  ;;  %v13508_v60 = vrot.slane %v13496_v41, 7  ;;  %v5658_v14 = vld [vmem:[%s6439_s11 + $0xe0] sm:$0xff]  ;;  %v13512_v41 = vld [vmem:[#allocation92_spill] sm:$0xff] }
 0x45b   : >> { %v4385_v44 = vsel %vm1090_vm0, %v13504_v0, %v4381_v31  ;;  %v2850_v62 = vmul.f32 %v13505_v5, %v11376_v24  ;;  %v3006_v9 = vrot.slane %v5658_v14, 1  ;;  %v4051_v31 = vadd.f32 %v4035_v25, %v3971_v30  ;;  %v13511_v49 = vld [vmem:[#allocation113_spill] sm:$0xff]  ;;  %v13513_v30 = vld [vmem:[#allocation115_spill] sm:$0xff] }
 0x45c   : >> { %v4465_v10 = vsel %vm1171_vm1, %v13507_v55, %v4461_v15  ;;  %v11393_v45 = vsel %vm1252_vm2, %v13508_v60, %v2884_v32  ;;  %v13509_v59 = vrot.slane %v13503_v58, 7  ;;  %v2786_v57 = vadd.f32 %v2770_v17, %v2678_v50  ;;  %v13515_v50 = vld [vmem:[#allocation37_spill] sm:$0xff] }
 0x45d   : >> { %v2930_v0 = vmul.f32 %v13510_v43, %v11393_v45  ;;  %v4423_v15 = vmul.f32 %v13511_v49, %v4385_v44  ;;  %v3086_v55 = vrot.slane %v5658_v14, 2  ;;  %v1129_v32 = vmul.f32 %v11269_v29, %v13512_v41 }
 0x45e   : >> { %v4545_v63 = vsel %vm1252_vm2, %v13509_v59, %v4541_v61  ;;  %v1210_v60 = vmul.f32 %v11283_v2, %v13436_v21  ;;  %v4091_v25 = vadd.f32 %v4075_v27, %v4051_v31  ;;  %v4503_v58 = vmul.f32 %v13513_v30, %v4465_v10  ;;  %v13517_v27 = vld [vmem:[#allocation150_spill] sm:$0xff]  ;;  %v11427_v31 = vld [vmem:[%s6439_s11 + $0x100] sm:$0xff] }
 0x45f   : >> { %v2866_v5 = vadd.f32 %v2850_v62, %v2786_v57  ;;  %v2970_v61 = vmul.f32 %v11332_v54, %v13514_v8  ;;  %v4583_v17 = vmul.f32 %v13443_v46, %v4545_v63  ;;  %v13516_v44 = vrot.slane %v13515_v50, 1  ;;  %v13519_v57 = vld [vmem:[#allocation152_spill] sm:$0xff] }
 0x460   : >> { %v3166_v29 = vrot.slane %v5658_v14, 3  ;;  %v1226_v49 = vadd.f32 %v1210_v60, %v1129_v32  ;;  %v4171_v41 = vadd.f32 %v4155_v28, %v4091_v25  ;;  %v4623_v21 = vmul.f32 %v5657_v12, %v13450_v35  ;;  %v5660_v28 = vld [vmem:[%s6439_s11 + $0x1d8] sm:$0xff] }
 0x461   : >> { %v11415_v59 = vsel %vm1373_vm3, %v13516_v44, %v3006_v9  ;;  %v2946_v2 = vadd.f32 %v2930_v0, %v2866_v5  ;;  %v13518_v10 = vrot.slane %v13515_v50, 2  ;;  %v3272_v9 = vrot.slane %v11427_v31, 5 }
 0x462   : >> { %v3050_v62 = vmul.f32 %v13517_v27, %v11415_v59  ;;  %v1291_v14 = vmul.f32 %v11293_v19, %v13437_v7  ;;  %v1331_v35 = vmul.f32 %v11255_v38, %v13438_v6  ;;  %v4251_v12 = vadd.f32 %v4235_v34, %v4171_v41  ;;  %v13521_v34 = vld [vmem:[#allocation153_spill] sm:$0xff] }
 0x463   : >> { %v11424_v46 = vsel %vm1454_vm4, %v13518_v10, %v3086_v55  ;;  %v4663_v5 = vrot.slane %v5660_v28, 1  ;;  %v2986_v63 = vadd.f32 %v2970_v61, %v2946_v2  ;;  %v13520_v55 = vrot.slane %v13515_v50, 3  ;;  %v13522_v61 = vld [vmem:[#allocation80_spill] sm:$0xff]  ;;  %v13524_v2 = vld [vmem:[#allocation155_spill] sm:$0xff]  ;;  %v13525_v10 = vld [vmem:[#allocation138_spill] sm:$0xff] }
 0x464   : >> { %v3130_v0 = vmul.f32 %v13519_v57, %v11424_v46  ;;  %v3352_v60 = vrot.slane %v11427_v31, 6  ;;  %v1307_v25 = vadd.f32 %v1291_v14, %v1226_v49  ;;  %v1412_v7 = vmul.f32 %v11319_v37, %v13442_v48 }
 0x465   : >> { %v11441_v32 = vsel %vm1535_vm5, %v13520_v55, %v3166_v29  ;;  %v4331_v6 = vadd.f32 %v4315_v36, %v4251_v12  ;;  %v4743_v38 = vrot.slane %v5660_v28, 2  ;;  %v3066_v19 = vadd.f32 %v3050_v62, %v2986_v63  ;;  %v13529_v55 = vld [vmem:[#allocation157_spill] sm:$0xff] }
 0x466   : >> { %v3210_v30 = vmul.f32 %v13521_v34, %v11441_v32  ;;  %v13523_v44 = vrot.slane %v13522_v61, 5  ;;  %v3432_v29 = vrot.slane %v11427_v31, 7  ;;  %v1347_v41 = vadd.f32 %v1331_v35, %v1307_v25 }
 0x467   : >> { %v1493_v49 = vmul.f32 %v11329_v23, %v13445_v51  ;;  %v4439_v48 = vadd.f32 %v4423_v15, %v4331_v6  ;;  %v4823_v37 = vrot.slane %v5660_v28, 3  ;;  %v3146_v36 = vadd.f32 %v3130_v0, %v3066_v19 }
 0x468   : >> { %v11452_v50 = vsel %vm1090_vm0, %v13523_v44, %v3272_v9  ;;  %v13526_v14 = vrot.slane %v13525_v10, 1  ;;  %v13527_v9 = vrot.slane %v13522_v61, 6  ;;  %v1428_v35 = vadd.f32 %v1412_v7, %v1347_v41  ;;  %v5661_v7 = vld [vmem:[%s6439_s11 + $0x110] sm:$0xff] }
 0x469   : >> { %v3318_v62 = vmul.f32 %v13524_v2, %v11452_v50  ;;  %v1574_v51 = vmul.f32 %v11350_v4, %v13449_v3  ;;  %v4519_v23 = vadd.f32 %v4503_v58, %v4439_v48  ;;  %v13528_v15 = vrot.slane %v13525_v10, 2 }
 0x46a   : >> { %v4665_v12 = vsel %vm1373_vm3, %v13526_v14, %v4663_v5  ;;  %v11467_v63 = vsel %vm1171_vm1, %v13527_v9, %v3352_v60  ;;  %v3226_v0 = vadd.f32 %v3210_v30, %v3146_v36  ;;  %v13530_v25 = vrot.slane %v13522_v61, 7  ;;  %v13531_v30 = vld [vmem:[#allocation160_spill] sm:$0xff]  ;;  %v13534_v14 = vld [vmem:[#allocation95_spill] sm:$0xff] }
 0x46b   : >> { %v4745_v28 = vsel %vm1454_vm4, %v13528_v15, %v4743_v38  ;;  %v3398_v5 = vmul.f32 %v13529_v55, %v11467_v63  ;;  %v3554_v6 = vrot.slane %v5661_v7, 1  ;;  %v1509_v19 = vadd.f32 %v1493_v49, %v1428_v35 }
 0x46c   : >> { %v11481_v60 = vsel %vm1252_vm2, %v13530_v25, %v3432_v29  ;;  %v1682_v3 = vmul.f32 %v11364_v42, %v13452_v13  ;;  %v4599_v4 = vadd.f32 %v4583_v17, %v4519_v23  ;;  %v4703_v58 = vmul.f32 %v13457_v22, %v4665_v12  ;;  %v13533_v22 = vld [vmem:[#allocation161_spill] sm:$0xff] }
 0x46d   : >> { %v3334_v38 = vadd.f32 %v3318_v62, %v3226_v0  ;;  %v3478_v44 = vmul.f32 %v13531_v30, %v11481_v60  ;;  %v13532_v41 = vrot.slane %v13525_v10, 3  ;;  %v3634_v29 = vrot.slane %v5661_v7, 2  ;;  %v5408_v62 = vpop.f32.mrf.mxu0  ;;  %v11516_v0 = vld [vmem:[%s6439_s11 + $0x130] sm:$0xff] }
 0x46e   : >> { %v1590_v48 = vadd.f32 %v1574_v51, %v1509_v19  ;;  %v1762_v49 = vmul.f32 %v11376_v24, %v13456_v20  ;;  %v4639_v36 = vadd.f32 %v4623_v21, %v4599_v4  ;;  %v4783_v13 = vmul.f32 %v13463_v26, %v4745_v28  ;;  %v5420_v24 = vpop.f32.mrf.mxu1  ;;  %v13536_v51 = vld [vmem:[#allocation162_spill] sm:$0xff] }
 0x46f   : >> { %v4825_v61 = vsel %vm1535_vm5, %v13532_v41, %v4823_v37  ;;  %v3414_v42 = vadd.f32 %v3398_v5, %v3334_v38  ;;  %v3518_v17 = vmul.f32 %v11427_v31, %v13533_v22  ;;  %v13535_v12 = vrot.slane %v13534_v14, 1 }
 0x470   : >> { %v3714_v37 = vrot.slane %v5661_v7, 3  ;;  %v1698_v9 = vadd.f32 %v1682_v3, %v1590_v48  ;;  %v1842_v20 = vmul.f32 %v11393_v45, %v13458_v40  ;;  %v4719_v21 = vadd.f32 %v4703_v58, %v4639_v36  ;;  %v5409_v3 = vpop.f32.mrf.mxu0 }
 0x471   : >> { %v11502_v10 = vsel %vm1373_vm3, %v13535_v12, %v3554_v6  ;;  %v4863_v26 = vmul.f32 %v13467_v56, %v4825_v61  ;;  %v3494_v35 = vadd.f32 %v3478_v44, %v3414_v42  ;;  %v13537_v15 = vrot.slane %v13534_v14, 2  ;;  %v13538_v6 = vld [vmem:[#allocation163_spill] sm:$0xff] }
 0x472   : >> { %v3598_v23 = vmul.f32 %v13536_v51, %v11502_v10  ;;  %v3820_v5 = vrot.slane %v11516_v0, 5  ;;  %v1778_v25 = vadd.f32 %v1762_v49, %v1698_v9  ;;  %v1882_v40 = vmul.f32 %v11332_v54, %v13462_v39  ;;  %v5421_v39 = vpop.f32.mrf.mxu1  ;;  %v13541_v49 = vld [vmem:[#allocation111_spill] sm:$0xff] }
 0x473   : >> { %v11513_v28 = vsel %vm1454_vm4, %v13537_v15, %v3634_v29  ;;  %v4799_v45 = vadd.f32 %v4783_v13, %v4719_v21  ;;  %v3534_v7 = vadd.f32 %v3518_v17, %v3494_v35  ;;  %v13539_v4 = vrot.slane %v13534_v14, 3  ;;  %v13540_v29 = vld [vmem:[#allocation165_spill] sm:$0xff]  ;;  %v13543_v14 = vld [vmem:[#allocation167_spill] sm:$0xff] }
 0x474   : >> { %v3678_v19 = vmul.f32 %v13538_v6, %v11513_v28  ;;  %v3900_v38 = vrot.slane %v11516_v0, 6  ;;  %v1858_v44 = vadd.f32 %v1842_v20, %v1778_v25  ;;  %v1962_v41 = vmul.f32 %v11415_v59, %v13466_v18  ;;  %v5423_v35 = vpop.f32.mrf.mxu1  ;;  %v5663_v25 = vld [vmem:[%s6439_s11 + $0x140] sm:$0xff] }
 0x475   : >> { %v11527_v58 = vsel %vm1535_vm5, %v13539_v4, %v3714_v37  ;;  %v4879_v54 = vadd.f32 %v4863_v26, %v4799_v45  ;;  %v3614_v61 = vadd.f32 %v3598_v23, %v3534_v7  ;;  %v13542_v36 = vrot.slane %v13541_v49, 5  ;;  %v5411_v37 = vpop.f32.mrf.mxu0 }
 0x476   : >> { %v3758_v48 = vmul.f32 %v13540_v29, %v11527_v58  ;;  %v3980_v42 = vrot.slane %v11516_v0, 7  ;;  %v1898_v17 = vadd.f32 %v1882_v40, %v1858_v44  ;;  %v2042_v18 = vmul.f32 %v11424_v46, %v13469_v33  ;;  %v13545_v46 = vld [vmem:[#allocation169_spill] sm:$0xff] }
 0x477   : >> { %v11538_v13 = vsel %vm1090_vm0, %v13542_v36, %v3820_v5  ;;  %5011 = vmatprep.mubr.f32.mxu1 %v4879_v54  ;;  %v3694_v59 = vadd.f32 %v3678_v19, %v3614_v61  ;;  %v13544_v9 = vrot.slane %v13541_v49, 6  ;;  %v2122_v26 = vmul.f32 %v11441_v32, %v13470_v47  ;;  %v13547_v47 = vld [vmem:[#allocation172_spill] sm:$0xff]  ;;  %v5412_v4 = vpop.f32.mrf.mxu0  ;;  %v5424_v61 = vpop.f32.mrf.mxu1 }
 0x478   : >> { %v3866_v12 = vmul.f32 %v13543_v14, %v11538_v13  ;;  %v1978_v21 = vadd.f32 %v1962_v41, %v1898_v17  ;;  %v13546_v15 = vrot.slane %v13541_v49, 7  ;;  %v4102_v40 = vrot.slane %v5663_v25, 1  ;;  %v13548_v49 = vld [vmem:[#allocation173_spill] sm:$0xff] }
 0x479   : >> { %v11549_v20 = vsel %vm1171_vm1, %v13544_v9, %v3900_v38  ;;  %v3774_v33 = vadd.f32 %v3758_v48, %v3694_v59  ;;  %v2230_v7 = vmul.f32 %v11452_v50, %v13473_v52  ;;  %v4182_v38 = vrot.slane %v5663_v25, 2 }
 0x47a   : >> { %v3946_v23 = vmul.f32 %v13545_v46, %v11549_v20  ;;  %v11560_v5 = vsel %vm1252_vm2, %v13546_v15, %v3980_v42  ;;  %v2058_v45 = vadd.f32 %v2042_v18, %v1978_v21  ;;  %v2310_v41 = vmul.f32 %v11467_v63, %v13475_v1  ;;  %v13549_v42 = vld [vmem:[#allocation123_spill] sm:$0xff] }
 0x47b   : >> { %v3882_v19 = vadd.f32 %v3866_v12, %v3774_v33  ;;  %v4026_v32 = vmul.f32 %v13547_v47, %v11560_v5  ;;  %v5410_v54 = vadd.f32 %v5409_v3, %v5408_v62  ;;  %v4066_v52 = vmul.f32 %v11516_v0, %v13548_v49  ;;  %v13551_v3 = vld [vmem:[#allocation175_spill] sm:$0xff] }
 0x47c   : >> { %v2138_v44 = vadd.f32 %v2122_v26, %v2058_v45  ;;  %v4262_v50 = vrot.slane %v5663_v25, 3  ;;  %v5422_v36 = vadd.f32 %v5421_v39, %v5420_v24  ;;  %v13550_v17 = vrot.slane %v13549_v42, 1  ;;  %v11588_v39 = vld [vmem:[%s6439_s11 + $0x160] sm:$0xff] }
 0x47d   : >> { %v3962_v48 = vadd.f32 %v3946_v23, %v3882_v19  ;;  %v2390_v1 = vmul.f32 %v11481_v60, %v13477_v16  ;;  %5019 = vst [vmem:[%s11568_s27] sm:$0xff] %v5410_v54  ;;  %v5413_v63 = vadd.f32 %v5412_v4, %v5411_v37  ;;  %v5425_v9 = vadd.f32 %v5424_v61, %v5423_v35  ;;  %v13553_v37 = vld [vmem:[#allocation176_spill] sm:$0xff]  ;;  %v13555_v45 = vld [vmem:[#allocation77_spill] sm:$0xff]  ;;  %v13559_v54 = vld [vmem:[#allocation139_spill] sm:$0xff] }
 0x47e   : >> { %v4124_v18 = vsel %vm1373_vm3, %v13550_v17, %v4102_v40  ;;  %v2246_v59 = vadd.f32 %v2230_v7, %v2138_v44  ;;  %5023 = vst [vmem:[%s11568_s27 + $0x20] sm:$0xff] %v5422_v36  ;;  %v13552_v21 = vrot.slane %v13549_v42, 2  ;;  %v4368_v26 = vrot.slane %v11588_v39, 5  ;;  %v13562_v17 = vld [vmem:[#allocation140_spill] sm:$0xff] }
 0x47f   : >> { %v4042_v62 = vadd.f32 %v4026_v32, %v3962_v48  ;;  %v4146_v12 = vmul.f32 %v13551_v3, %v4124_v18  ;;  %v2430_v16 = vmul.f32 %v11427_v31, %v13481_v11  ;;  %5020 = vst [vmem:[%s11568_s27 + $0x8] sm:$0xff] %v5413_v63  ;;  %5024 = vst [vmem:[%s11568_s27 + $0x28] sm:$0xff] %v5425_v9  ;;  %v13554_v35 = vrot.slane %v13549_v42, 3  ;;  %v13556_v32 = vld [vmem:[#allocation177_spill] sm:$0xff]  ;;  %v13557_v31 = vld [vmem:[#allocation40_spill] sm:$0xff] }
 0x480   : >> { %v4204_v24 = vsel %vm1454_vm4, %v13552_v21, %v4182_v38  ;;  %v2326_v33 = vadd.f32 %v2310_v41, %v2246_v59  ;;  %v4448_v25 = vrot.slane %v11588_v39, 6  ;;  %v2510_v7 = vmul.f32 %v11502_v10, %v13555_v45  ;;  %v13563_v63 = vld [vmem:[#allocation181_spill] sm:$0xff]  ;;  %v5665_v9 = vld [vmem:[%s6439_s11 + $0x170] sm:$0xff] }
 0x481   : >> { %v4082_v60 = vadd.f32 %v4066_v52, %v4042_v62  ;;  %v4226_v23 = vmul.f32 %v13553_v37, %v4204_v24  ;;  %v4284_v15 = vsel %vm1535_vm5, %v13554_v35, %v4262_v50  ;;  %v13558_v4 = vrot.slane %v13557_v31, 5  ;;  %v13560_v52 = vld [vmem:[#allocation179_spill] sm:$0xff] }
 0x482   : >> { %v2406_v40 = vadd.f32 %v2390_v1, %v2326_v33  ;;  %v4306_v11 = vmul.f32 %v13556_v32, %v4284_v15  ;;  %v4528_v44 = vrot.slane %v11588_v39, 7  ;;  %v2590_v61 = vmul.f32 %v11513_v28, %v13559_v54  ;;  %v13565_v33 = vld [vmem:[#allocation142_spill] sm:$0xff] }
 0x483   : >> { %v4162_v19 = vadd.f32 %v4146_v12, %v4082_v60  ;;  %v4392_v38 = vsel %vm1090_vm0, %v13558_v4, %v4368_v26  ;;  %v13561_v36 = vrot.slane %v13557_v31, 6  ;;  %v2670_v59 = vmul.f32 %v11527_v58, %v13562_v17  ;;  %v13567_v58 = vld [vmem:[#allocation144_spill] sm:$0xff] }
 0x484   : >> { %v2446_v41 = vadd.f32 %v2430_v16, %v2406_v40  ;;  %v4414_v50 = vmul.f32 %v13560_v52, %v4392_v38  ;;  %v13564_v12 = vrot.slane %v13557_v31, 7  ;;  %v4650_v21 = vrot.slane %v5665_v9, 1  ;;  %v13569_v31 = vld [vmem:[#allocation65_spill] sm:$0xff] }
 0x485   : >> { %v4242_v48 = vadd.f32 %v4226_v23, %v4162_v19  ;;  %v4472_v10 = vsel %vm1171_vm1, %v13561_v36, %v4448_v25  ;;  %v2778_v16 = vmul.f32 %v11538_v13, %v13565_v33  ;;  %v13566_v23 = vld [vmem:[#allocation183_spill] sm:$0xff]  ;;  %v4730_v25 = vrot.slane %v5665_v9, 2  ;;  %v13568_v19 = vld [vmem:[#allocation185_spill] sm:$0xff] }
 0x486   : >> { %v2526_v42 = vadd.f32 %v2510_v7, %v2446_v41  ;;  %v4494_v62 = vmul.f32 %v13563_v63, %v4472_v10  ;;  %v4552_v28 = vsel %vm1252_vm2, %v13564_v12, %v4528_v44  ;;  %v2858_v45 = vmul.f32 %v11549_v20, %v13567_v58 }
 0x487   : >> { %v4322_v1 = vadd.f32 %v4306_v11, %v4242_v48  ;;  %v4574_v35 = vmul.f32 %v13566_v23, %v4552_v28  ;;  %v4614_v11 = vmul.f32 %v11588_v39, %v13568_v19  ;;  %v13570_v4 = vrot.slane %v13569_v31, 1  ;;  %v13571_v48 = vld [vmem:[#allocation186_spill] sm:$0xff] }
 0x488   : >> { %v2606_v26 = vadd.f32 %v2590_v61, %v2526_v42  ;;  %v4810_v41 = vrot.slane %v5665_v9, 3  ;;  %v2938_v13 = vmul.f32 %v11560_v5, %v13510_v43  ;;  %v13572_v36 = vrot.slane %v13569_v31, 2 }
 0x489   : >> { %v4430_v60 = vadd.f32 %v4414_v50, %v4322_v1  ;;  %v4672_v44 = vsel %vm1373_vm3, %v13570_v4, %v4650_v21  ;;  %v2978_v17 = vmul.f32 %v11516_v0, %v13514_v8  ;;  %v13573_v1 = vld [vmem:[#allocation187_spill] sm:$0xff]  ;;  %v13574_v12 = vrot.slane %v13569_v31, 3 }
 0x48a   : >> { %v2686_v40 = vadd.f32 %v2670_v59, %v2606_v26  ;;  %v4694_v50 = vmul.f32 %v13571_v48, %v4672_v44  ;;  %v4752_v20 = vsel %vm1454_vm4, %v13572_v36, %v4730_v25  ;;  %v3058_v9 = vmul.f32 %v4124_v18, %v13517_v27  ;;  %v13575_v26 = vld [vmem:[#allocation31_spill] sm:$0xff] }
 0x48b   : >> { %v4510_v7 = vadd.f32 %v4494_v62, %v4430_v60  ;;  %v4774_v62 = vmul.f32 %v13573_v1, %v4752_v20  ;;  %v4832_v43 = vsel %vm1535_vm5, %v13574_v12, %v4810_v41  ;;  %v3138_v60 = vmul.f32 %v4204_v24, %v13519_v57  ;;  %v5666_v57 = vld [vmem:[%s6439_s11 + $0x190] sm:$0xff] }
 0x48c   : >> { %v2794_v54 = vadd.f32 %v2778_v16, %v2686_v40  ;;  %v4854_v33 = vmul.f32 %v13575_v26, %v4832_v43  ;;  %v3218_v0 = vmul.f32 %v4284_v15, %v13521_v34  ;;  %v3326_v58 = vmul.f32 %v4392_v38, %v13524_v2  ;;  %v13576_v38 = vld [vmem:[#allocation130_spill] sm:$0xff] }
 0x48d   : >> { %v4590_v61 = vadd.f32 %v4574_v35, %v4510_v7  ;;  %v3406_v7 = vmul.f32 %v4472_v10, %v13529_v55  ;;  %v3486_v18 = vmul.f32 %v4552_v28, %v13531_v30  ;;  %v3526_v31 = vmul.f32 %v11588_v39, %v13533_v22 }
 0x48e   : >> { %v2874_v42 = vadd.f32 %v2858_v45, %v2794_v54  ;;  %v3832_v24 = vrot.slane %v5666_v57, 5  ;;  %v3606_v34 = vmul.f32 %v4672_v44, %v13536_v51  ;;  %v3912_v15 = vrot.slane %v5666_v57, 6 }
 0x48f   : >> { %v4630_v59 = vadd.f32 %v4614_v11, %v4590_v61  ;;  %v3686_v2 = vmul.f32 %v4752_v20, %v13538_v6  ;;  %v13577_v54 = vrot.slane %v13576_v38, 5  ;;  %v3992_v30 = vrot.slane %v5666_v57, 7  ;;  %v5667_v61 = vld [vmem:[%s6439_s11 + $0x1a0] sm:$0xff] }
 0x490   : >> { %v2954_v5 = vadd.f32 %v2938_v13, %v2874_v42  ;;  %v3766_v28 = vmul.f32 %v4832_v43, %v13540_v29  ;;  %v13578_v22 = vrot.slane %v13576_v38, 6  ;;  %v13579_v6 = vrot.slane %v13576_v38, 7 }
 0x491   : >> { %v4710_v21 = vadd.f32 %v4694_v50, %v4630_v59  ;;  %v3836_v55 = vsel %vm1090_vm0, %v13577_v54, %v3832_v24  ;;  %v4114_v50 = vrot.slane %v5667_v61, 1  ;;  %v4194_v29 = vrot.slane %v5667_v61, 2  ;;  %v13580_v59 = vld [vmem:[#allocation132_spill] sm:$0xff]  ;;  %v5669_v24 = vld [vmem:[%s6439_s11 + $0x1d0] sm:$0xff]  ;;  %v13588_v54 = vld [vmem:[#allocation134_spill] sm:$0xff] }
 0x492   : >> { %v2994_v16 = vadd.f32 %v2978_v17, %v2954_v5  ;;  %v3916_v39 = vsel %vm1171_vm1, %v13578_v22, %v3912_v15  ;;  %v3874_v44 = vmul.f32 %v13543_v14, %v3836_v55  ;;  %v3996_v13 = vsel %vm1252_vm2, %v13579_v6, %v3992_v30 }
 0x493   : >> { %v4790_v35 = vadd.f32 %v4774_v62, %v4710_v21  ;;  %v3954_v20 = vmul.f32 %v13545_v46, %v3916_v39  ;;  %v4034_v17 = vmul.f32 %v13547_v47, %v3996_v13  ;;  %v13581_v62 = vrot.slane %v13580_v59, 1 }
 0x494   : >> { %v3074_v8 = vadd.f32 %v3058_v9, %v2994_v16  ;;  %v4274_v14 = vrot.slane %v5667_v61, 3  ;;  %v4074_v5 = vmul.f32 %v5666_v57, %v13548_v49  ;;  %v13582_v9 = vrot.slane %v13580_v59, 2 }
 0x495   : >> { %v4870_v25 = vadd.f32 %v4854_v33, %v4790_v35  ;;  %v4116_v12 = vsel %vm1373_vm3, %v13581_v62, %v4114_v50  ;;  %v5668_v33 = vld [vmem:[%s6439_s11 + $0x1c0] sm:$0xff]  ;;  %v13589_v55 = vrot.slane %v13588_v54, 1  ;;  %v4822_v30 = vrot.slane %v5669_v24, 3 }
 0x496   : >> { %v3154_v40 = vadd.f32 %v3138_v60, %v3074_v8  ;;  %v4196_v21 = vsel %vm1454_vm4, %v13582_v9, %v4194_v29  ;;  %v4380_v46 = vrot.slane %v5668_v33, 5  ;;  %v4154_v47 = vmul.f32 %v13551_v3, %v4116_v12 }
 0x497   : >> { %4992 = vmatmul.mubr.f32.gmra.mxu0 %v4870_v25  ;;  %v13583_v60 = vrot.slane %v13580_v59, 3  ;;  %v4460_v8 = vrot.slane %v5668_v33, 6  ;;  %v4234_v49 = vmul.f32 %v13553_v37, %v4196_v21  ;;  %v13584_v25 = vld [vmem:[#allocation127_spill] sm:$0xff]  ;;  %v13590_v39 = vrot.slane %v13588_v54, 2 }
 0x498   : >> { %v3234_v45 = vadd.f32 %v3218_v0, %v3154_v40  ;;  %v13585_v40 = vrot.slane %v13584_v25, 5  ;;  %v13586_v3 = vrot.slane %v13584_v25, 6  ;;  %v13587_v57 = vrot.slane %v13584_v25, 7 }
 0x499   : >> { %v4276_v35 = vsel %vm1535_vm5, %v13583_v60, %v4274_v14  ;;  %v13591_v6 = vrot.slane %v13588_v54, 3 }
 0x49a   : >> { %v3342_v27 = vadd.f32 %v3326_v58, %v3234_v45  ;;  %v4384_v58 = vsel %vm1090_vm0, %v13585_v40, %v4380_v46  ;;  %v4540_v45 = vrot.slane %v5668_v33, 7 }
 0x49b   : >> { %v4824_v13 = vsel %vm1535_vm5, %v13591_v6, %v4822_v30 }
 0x49c   : >> { %v3422_v11 = vadd.f32 %v3406_v7, %v3342_v27  ;;  %v4314_v27 = vmul.f32 %v13556_v32, %v4276_v35  ;;  %v4544_v37 = vsel %vm1252_vm2, %v13587_v57, %v4540_v45  ;;  %v4742_v32 = vrot.slane %v5669_v24, 2 }
 0x49e   : >> { %v3502_v4 = vadd.f32 %v3486_v18, %v3422_v11  ;;  %v4464_v18 = vsel %vm1171_vm1, %v13586_v3, %v4460_v8 }
 0x49f   : >> { %v4502_v15 = vmul.f32 %v13563_v63, %v4464_v18  ;;  %v4744_v63 = vsel %vm1454_vm4, %v13590_v39, %v4742_v32 }
 0x4a0   : >> { %v3542_v41 = vadd.f32 %v3526_v31, %v3502_v4  ;;  %v4422_v31 = vmul.f32 %v13560_v52, %v4384_v58  ;;  %v4662_v4 = vrot.slane %v5669_v24, 1 }
 0x4a2   : >> { %v3622_v10 = vadd.f32 %v3606_v34, %v3542_v41  ;;  %v4664_v52 = vsel %vm1373_vm3, %v13589_v55, %v4662_v4 }
 0x4a3   : >> { %v5414_v38 = vpop.f32.mrf.mxu0 }
 0x4a4   : >> { %v3702_v51 = vadd.f32 %v3686_v2, %v3622_v10  ;;  %v4582_v2 = vmul.f32 %v13566_v23, %v4544_v37  ;;  %v4702_v23 = vmul.f32 %v13571_v48, %v4664_v52 }
 0x4a5   : >> { %v5415_v22 = vpop.f32.mrf.mxu0 }
 0x4a6   : >> { %v3782_v36 = vadd.f32 %v3766_v28, %v3702_v51  ;;  %v4622_v28 = vmul.f32 %v5668_v33, %v13568_v19  ;;  %v5416_v51 = vadd.f32 %v5415_v22, %v5414_v38  ;;  %v4782_v19 = vmul.f32 %v13573_v1, %v4744_v63 }
 0x4a8   : >> { %v3890_v42 = vadd.f32 %v3874_v44, %v3782_v36  ;;  %5021 = vst [vmem:[%s11568_s27 + $0x10] sm:$0xff] %v5416_v51  ;;  %v4862_v36 = vmul.f32 %v13575_v26, %v4824_v13 }
 0x4aa   : >> { %v3970_v43 = vadd.f32 %v3954_v20, %v3890_v42 }
 0x4ac   : >> { %v4050_v16 = vadd.f32 %v4034_v17, %v3970_v43 }
 0x4ae   : >> { %v4090_v0 = vadd.f32 %v4074_v5, %v4050_v16 }
 0x4b0   : >> { %v4170_v7 = vadd.f32 %v4154_v47, %v4090_v0 }
 0x4b2   : >> { %v4250_v11 = vadd.f32 %v4234_v49, %v4170_v7 }
 0x4b4   : >> { %v4330_v34 = vadd.f32 %v4314_v27, %v4250_v11 }
 0x4b6   : >> { %v4438_v41 = vadd.f32 %v4422_v31, %v4330_v34 }
 0x4b8   : >> { %v4518_v10 = vadd.f32 %v4502_v15, %v4438_v41 }
 0x4ba   : >> { %v4598_v44 = vadd.f32 %v4582_v2, %v4518_v10 }
 0x4bc   : >> { %v4638_v61 = vadd.f32 %v4622_v28, %v4598_v44 }
 0x4be   : >> { %v4718_v50 = vadd.f32 %v4702_v23, %v4638_v61 }
 0x4c0   : >> { %v4798_v20 = vadd.f32 %v4782_v19, %v4718_v50 }
 0x4c2   : >> { %v4878_v29 = vadd.f32 %v4862_v36, %v4798_v20 }
 0x4c4   : >> { %5012 = vmatmul.mubr.f32.gmra.mxu1 %v4878_v29 }
 0x4e0   : >> { %v5426_v42 = vpop.f32.mrf.mxu1 }
 0x4e2   : >> { %v5427_v17 = vpop.f32.mrf.mxu1 }
 0x4e3   : >> { %v5428_v48 = vadd.f32 %v5427_v17, %v5426_v42 }
 0x4e5   : >> { %5025 = vst [vmem:[%s11568_s27 + $0x30] sm:$0xff] %v5428_v48 }
 0x557   : >> { %v5417_v59 = vpop.f32.mrf.mxu0 }
 0x559   : >> { %v5418_v62 = vpop.f32.mrf.mxu0 }
 0x55a   : >> { %v5419_v53 = vadd.f32 %v5418_v62, %v5417_v59 }
 0x55c   : >> { %5022 = vst [vmem:[%s11568_s27 + $0x18] sm:$0xff] %v5419_v53 }
 0x584   : >> { %v5429_v12 = vpop.f32.mrf.mxu1 }
 0x585   : > { %1034 = sbr.rel (!%p1032_p9) target bundleno = 420 (0x1a4), region = 119 }
 0x586   : >> { %v5430_v14 = vpop.f32.mrf.mxu1 }
 0x587   : >> { %v5431_v43 = vadd.f32 %v5430_v14, %v5429_v12 }
 0x589   : >> { %5026 = vst [vmem:[%s11568_s27 + $0x38] sm:$0xff] %v5431_v43 }
 0x58a   : > { %5804 = shalt.err (!%p5801_p8)
}
 0x58b   : > { %s5805_s6 = scalar_lea.hbm %s11738_s12, 4096  ;;  %s5809_s11 = scalar_lea.hbm %s11789_s5, 8192 }
 0x58c   : > { %p5806_p5 = scmp.ne.s32.totalorder %s11738_s12, %s5805_s6  ;;  %p5810_p12 = scmp.lt.s32.totalorder %s11738_s12, %s11789_s5 }
 0x58d   : > { %p5811_p7 = scmp.lt.s32.totalorder %s5809_s11, %s5805_s6 }
 0x58e   : > { %p5807_p11 = pnand %p5806_p5, %p13592_p0 }
 0x58f   : > { %p5812_p9 = por %p5811_p7, %p5810_p12 }
 0x590   : > { %p5808_p6 = pneg %p5807_p11 }
 0x592   : > { %p5813_p13 = pnand %p5812_p9, %p5808_p6 }
 0x594   : > { %5816 = shalt.err (!%p5813_p13)
}
 0x595   : > { %s5888_s15 = smov 128   ;;  %s5889_s7 = smov 8  }
 0x596   : > { %5514 = dma.vmem_to_hbm [thread:$0]  (%p13592_p0), %s11741_s30, 4096, %s11738_s12, %s5028_s16, %s5888_s15, %s5888_s15, %s5889_s7  }
 0x597 PF: > { %s5056_s13 = sand.u32 1, %s5859_s18   ;;  %p13593_p3 = scmp.ne.s32.totalorder %s12403_s25, 0 }
 0x598   : > { %p13594_p1 = scmp.ge.s32.totalorder %s5871_s21, 2  ;;  %s5057_s10 = scalar_lea.sflag [#allocation5], %s5056_s13 }
 0x59a   : > { %p5534_p2 = pnand %p13594_p1, %p13593_p3 }
 0x59c   : > { %p5535_p10 = pneg %p5534_p2 }
 0x59e   : > { %5854 = dma.done.wait (%p5535_p10), %s5057_s10, 4096  }
 0x59f   : > { %5856 = vsyncadd (%p5535_p10), %s5057_s10, 4294963200  ;;  %p21_p4 = scmp.ge.s32.totalorder %s6011_s8, 4   ;;  %s13595_s18 = smov %s5863_s19 }
 0x5a0   : > { %s13596_s19 = smov %s5867_s20  ;;  %s13597_s20 = smov %s6020_s29 }
 0x5a1   : > { %s13598_s21 = smov %s6011_s8  ;;  %23 = sbr.rel (!%p21_p4) target bundleno = 8 (0x8), region = 130 }
 0x5a6   :  { %5062 = vsyncpa [#allocation4], 1 }
 0x5a7   :  { %5064 = vsyncpa [#allocation4 + $0x1], 1 }
 0x5a8   :  { %5065 = vsyncpa [#allocation8], 1 }
 0x5a9   :  { %5066 = vsyncpa [#allocation11], 1 }
 0x5aa   :  { %5067 = vsyncpa [#allocation5], 1 }
 0x5ab   :  { %5069 = vsyncpa [#allocation5 + $0x1], 1 }
 0x5ac   :  { %5070 = vsyncpa [#allocation6], 1 }
 0x5ad   :  { %5072 = vsyncpa [#allocation6 + $0x1], 1 }

</bundles_post_ra>
